<compile_context>
chip_gen: v7x
topology: tpu7x:2x2x1
jax: 0.10.0
libtpu: 0.0.40
codegen_flags: <defaults>
</compile_context>

<pallas_src>
import functools

import jax
import jax.numpy as jnp
from jax.experimental import pallas as pl
from jax.experimental.pallas import tpu as pltpu

COMPUTE_DTYPE = jnp.bfloat16   # HBM I/O dtype for activations / weights
LANE = 128                     # channel padding target (lane width)
NEG_INF = -1e30                # finite "-inf" for masked attention scores


def _round_up(x, m):
    return ((x + m - 1) // m) * m


def _m_tiling(m, block_m):
    """Token-tile size: rows multiple of 8, >=2 tiles when possible (v7x cores)."""
    tm = min(block_m, _round_up(m, 8))
    mp = _round_up(m, tm)
    if mp // tm == 1 and tm >= 16 and tm % 16 == 0:
        tm //= 2
        mp = _round_up(m, tm)
    return tm, mp


def _cparams(semantics, block_bytes=0):
    """CompilerParams with an explicit VMEM budget derived from block sizes
    (above the 16/32 MiB scoped defaults, well under v7x's 64 MiB physical)."""
    budget = int(min(max(6 * block_bytes, 16 << 20), 48 << 20))
    return pltpu.CompilerParams(dimension_semantics=semantics,
                                vmem_limit_bytes=budget)


# ----------------------------------------------------------------------------
# Exact-GELU (erf via Abramowitz & Stegun 7.1.26, |err| < 1.5e-7); only uses
# exp / mul / add / where so it lowers cleanly inside Pallas kernels.
# ----------------------------------------------------------------------------
def _erf_approx(x):
    a1, a2, a3, a4, a5 = (0.254829592, -0.284496736, 1.421413741,
                          -1.453152027, 1.061405429)
    p = 0.3275911
    s = jnp.where(x >= 0.0, 1.0, -1.0)
    z = jnp.abs(x)
    t = 1.0 / (1.0 + p * z)
    poly = ((((a5 * t + a4) * t + a3) * t + a2) * t + a1) * t
    return s * (1.0 - poly * jnp.exp(-z * z))


def _gelu_exact(x):
    return 0.5 * x * (1.0 + _erf_approx(x * 0.7071067811865476))


def _masked_layer_norm(x, gamma, beta, c_real, eps):
    """LayerNorm over the first c_real lanes of a CP-padded channel axis.
    Padded lanes of the output are zero (gamma/beta padded with zeros)."""
    mask = jax.lax.broadcasted_iota(jnp.int32, x.shape, 1) < c_real
    inv_c = 1.0 / float(c_real)
    mu = jnp.sum(jnp.where(mask, x, 0.0), axis=-1, keepdims=True) * inv_c
    d = jnp.where(mask, x - mu, 0.0)
    var = jnp.sum(d * d, axis=-1, keepdims=True) * inv_c
    return d * jax.lax.rsqrt(var + eps) * gamma + beta


# ----------------------------------------------------------------------------
# Kernel: token-tiled matmul + bias (+ optional GELU)  (1x1 convs, final proj)
# ----------------------------------------------------------------------------
def _linear_kernel(x_ref, w_ref, b_ref, o_ref, *, activation):
    acc = jnp.dot(x_ref[...], w_ref[...], preferred_element_type=jnp.float32)
    acc = acc + b_ref[...]
    if activation == "gelu":
        acc = _gelu_exact(acc)
    o_ref[...] = acc.astype(o_ref.dtype)


def linear(x, w, b, *, activation=None, out_dtype=None, block_m=256):
    """y = act(x @ w + b).  x:(M,K) bf16, w:(K,N) bf16, b:(1,N) f32.
    K and N are assumed pre-padded to multiples of 128 (lane dense)."""
    M, K = x.shape
    N = w.shape[1]
    out_dtype = out_dtype or x.dtype
    tm, Mp = _m_tiling(M, block_m)
    if Mp != M:
        x = jnp.pad(x, ((0, Mp - M), (0, 0)))
    est = 2 * (tm * K + K * N + N + tm * N) * 4
    y = pl.pallas_call(
        functools.partial(_linear_kernel, activation=activation),
        out_shape=jax.ShapeDtypeStruct((Mp, N), out_dtype),
        grid=(Mp // tm,),
        in_specs=[
            pl.BlockSpec((tm, K), lambda i: (i, 0)),
            pl.BlockSpec((K, N), lambda i: (0, 0)),
            pl.BlockSpec((1, N), lambda i: (0, 0)),
        ],
        out_specs=pl.BlockSpec((tm, N), lambda i: (i, 0)),
        compiler_params=_cparams(("parallel",), est),
    )(x, w, b)
    return y[:M] if Mp != M else y


# ----------------------------------------------------------------------------
# Kernel: fused linear + residual + LayerNorm  (CGA out_proj + norm1)
# ----------------------------------------------------------------------------
def _linear_ln_kernel(x_ref, w_ref, b_ref, res_ref, g_ref, bt_ref, o_ref, *,
                      c_real, eps):
    y = jnp.dot(x_ref[...], w_ref[...], preferred_element_type=jnp.float32)
    y = y + b_ref[...] + res_ref[...].astype(jnp.float32)
    o_ref[...] = _masked_layer_norm(y, g_ref[...], bt_ref[...], c_real,
                                    eps).astype(o_ref.dtype)


def linear_ln_residual(x, w, b, res, gamma, beta, c_real, eps, *, block_m=256):
    M, C = x.shape
    tm, Mp = _m_tiling(M, block_m)
    if Mp != M:
        x = jnp.pad(x, ((0, Mp - M), (0, 0)))
        res = jnp.pad(res, ((0, Mp - M), (0, 0)))
    y = pl.pallas_call(
        functools.partial(_linear_ln_kernel, c_real=c_real, eps=eps),
        out_shape=jax.ShapeDtypeStruct((Mp, C), x.dtype),
        grid=(Mp // tm,),
        in_specs=[
            pl.BlockSpec((tm, C), lambda i: (i, 0)),
            pl.BlockSpec((C, C), lambda i: (0, 0)),
            pl.BlockSpec((1, C), lambda i: (0, 0)),
            pl.BlockSpec((tm, C), lambda i: (i, 0)),
            pl.BlockSpec((1, C), lambda i: (0, 0)),
            pl.BlockSpec((1, C), lambda i: (0, 0)),
        ],
        out_specs=pl.BlockSpec((tm, C), lambda i: (i, 0)),
        compiler_params=_cparams(("parallel",)),
    )(x, w, b, res, gamma, beta)
    return y[:M] if Mp != M else y


# ----------------------------------------------------------------------------
# Kernel: fused MLP (w1 + GELU + w2) + residual + LayerNorm  (FFN + norm2)
# ----------------------------------------------------------------------------
def _mlp_ln_kernel(x_ref, w1_ref, b1_ref, w2_ref, b2_ref, g_ref, bt_ref,
                   o_ref, *, c_real, eps):
    xin = x_ref[...]
    h = jnp.dot(xin, w1_ref[...], preferred_element_type=jnp.float32)
    h = _gelu_exact(h + b1_ref[...])
    y = jnp.dot(h.astype(xin.dtype), w2_ref[...],
                preferred_element_type=jnp.float32)
    y = y + b2_ref[...] + xin.astype(jnp.float32)
    o_ref[...] = _masked_layer_norm(y, g_ref[...], bt_ref[...], c_real,
                                    eps).astype(o_ref.dtype)


def mlp_ln(x, p, c_real, eps, *, block_m=256):
    M, C = x.shape
    HP = p["mlp_w1"].shape[1]
    tm, Mp = _m_tiling(M, block_m)
    if Mp != M:
        x = jnp.pad(x, ((0, Mp - M), (0, 0)))
    y = pl.pallas_call(
        functools.partial(_mlp_ln_kernel, c_real=c_real, eps=eps),
        out_shape=jax.ShapeDtypeStruct((Mp, C), x.dtype),
        grid=(Mp // tm,),
        in_specs=[
            pl.BlockSpec((tm, C), lambda i: (i, 0)),
            pl.BlockSpec((C, HP), lambda i: (0, 0)),
            pl.BlockSpec((1, HP), lambda i: (0, 0)),
            pl.BlockSpec((HP, C), lambda i: (0, 0)),
            pl.BlockSpec((1, C), lambda i: (0, 0)),
            pl.BlockSpec((1, C), lambda i: (0, 0)),
            pl.BlockSpec((1, C), lambda i: (0, 0)),
        ],
        out_specs=pl.BlockSpec((tm, C), lambda i: (i, 0)),
        compiler_params=_cparams(("parallel",)),
    )(x, p["mlp_w1"], p["mlp_b1"], p["mlp_w2"], p["mlp_b2"],
      p["norm2_g"], p["norm2_b"])
    return y[:M] if Mp != M else y


# ----------------------------------------------------------------------------
# Kernel: fused MHA Q/K/V projection, emitted directly in head-major layout
# (B, heads, L, DHP) with the per-head dim zero-padded to 128 lanes.
# ----------------------------------------------------------------------------
def _mha_qkv_kernel(tok_ref, pos_ref, wq_ref, bq_ref, wk_ref, bk_ref,
                    wv_ref, bv_ref, q_ref, k_ref, v_ref, *, num_heads):
    x = tok_ref[0]                              # (L, CP) bf16
    xqk = x + pos_ref[...]                      # q = k input = x + pos
    for h in range(num_heads):                  # static unroll
        q = jnp.dot(xqk, wq_ref[h], preferred_element_type=jnp.float32) + bq_ref[h]
        k = jnp.dot(xqk, wk_ref[h], preferred_element_type=jnp.float32) + bk_ref[h]
        v = jnp.dot(x, wv_ref[h], preferred_element_type=jnp.float32) + bv_ref[h]
        q_ref[0, h] = q.astype(q_ref.dtype)
        k_ref[0, h] = k.astype(k_ref.dtype)
        v_ref[0, h] = v.astype(v_ref.dtype)


def mha_qkv_project(tok, pos, p):
    B, L, CP = tok.shape
    heads, _, DHP = p["mha_wq"].shape
    struct = jax.ShapeDtypeStruct((B, heads, L, DHP), tok.dtype)
    w_spec = pl.BlockSpec((heads, CP, DHP), lambda b: (0, 0, 0))
    b_spec = pl.BlockSpec((heads, 1, DHP), lambda b: (0, 0, 0))
    o_spec = pl.BlockSpec((1, heads, L, DHP), lambda b: (b, 0, 0, 0))
    q, k, v = pl.pallas_call(
        functools.partial(_mha_qkv_kernel, num_heads=heads),
        out_shape=(struct, struct, struct),
        grid=(B,),
        in_specs=[
            pl.BlockSpec((1, L, CP), lambda b: (b, 0, 0)),
            pl.BlockSpec((L, CP), lambda b: (0, 0)),
            w_spec, b_spec, w_spec, b_spec, w_spec, b_spec,
        ],
        out_specs=(o_spec, o_spec, o_spec),
        compiler_params=_cparams(("parallel",)),
    )(tok, pos, p["mha_wq"], p["mha_bq"], p["mha_wk"], p["mha_bk"],
      p["mha_wv"], p["mha_bv"])
    return q, k, v


# ----------------------------------------------------------------------------
# Kernel: fused MHA output projection (head contraction) + residual + norm1
# ----------------------------------------------------------------------------
def _mha_out_ln_kernel(o_ref, wo_ref, bo_ref, res_ref, g_ref, bt_ref,
                       out_ref, *, num_heads, c_real, eps):
    L = o_ref.shape[2]
    CP = out_ref.shape[-1]
    acc = jnp.zeros((L, CP), jnp.float32)
    for h in range(num_heads):
        acc = acc + jnp.dot(o_ref[0, h], wo_ref[h],
                            preferred_element_type=jnp.float32)
    x = acc + bo_ref[...] + res_ref[0].astype(jnp.float32)
    out_ref[0] = _masked_layer_norm(x, g_ref[...], bt_ref[...], c_real,
                                    eps).astype(out_ref.dtype)


def mha_out_ln(o, tok, p, c_real, eps):
    B, heads, L, DHP = o.shape
    CP = tok.shape[-1]
    y = pl.pallas_call(
        functools.partial(_mha_out_ln_kernel, num_heads=heads, c_real=c_real,
                          eps=eps),
        out_shape=jax.ShapeDtypeStruct((B, L, CP), tok.dtype),
        grid=(B,),
        in_specs=[
            pl.BlockSpec((1, heads, L, DHP), lambda b: (b, 0, 0, 0)),
            pl.BlockSpec((heads, DHP, CP), lambda b: (0, 0, 0)),
            pl.BlockSpec((1, CP), lambda b: (0, 0)),
            pl.BlockSpec((1, L, CP), lambda b: (b, 0, 0)),
            pl.BlockSpec((1, CP), lambda b: (0, 0)),
            pl.BlockSpec((1, CP), lambda b: (0, 0)),
        ],
        out_specs=pl.BlockSpec((1, L, CP), lambda b: (b, 0, 0)),
        compiler_params=_cparams(("parallel",)),
    )(o, p["mha_wo"], p["mha_bo"], tok, p["norm1_g"], p["norm1_b"])
    return y


# ----------------------------------------------------------------------------
# Kernel: fused CGA Q/K/V projection (three outputs, no XLA slices afterwards)
# ----------------------------------------------------------------------------
def _cga_qkv_kernel(low_ref, high_ref, wq_ref, bq_ref, wk_ref, bk_ref,
                    wv_ref, bv_ref, q_ref, k_ref, v_ref):
    low = low_ref[...]
    high = high_ref[...]
    q = jnp.dot(low, wq_ref[...], preferred_element_type=jnp.float32) + bq_ref[...]
    k = jnp.dot(high, wk_ref[...], preferred_element_type=jnp.float32) + bk_ref[...]
    v = jnp.dot(high, wv_ref[...], preferred_element_type=jnp.float32) + bv_ref[...]
    q_ref[...] = q.astype(q_ref.dtype)
    k_ref[...] = k.astype(k_ref.dtype)
    v_ref[...] = v.astype(v_ref.dtype)


def cga_qkv_project(low, high, p, *, block_m=256):
    M, C = low.shape
    tm, Mp = _m_tiling(M, block_m)
    if Mp != M:
        low = jnp.pad(low, ((0, Mp - M), (0, 0)))
        high = jnp.pad(high, ((0, Mp - M), (0, 0)))
    struct = jax.ShapeDtypeStruct((Mp, C), low.dtype)
    t_spec = pl.BlockSpec((tm, C), lambda i: (i, 0))
    w_spec = pl.BlockSpec((C, C), lambda i: (0, 0))
    b_spec = pl.BlockSpec((1, C), lambda i: (0, 0))
    q, k, v = pl.pallas_call(
        _cga_qkv_kernel,
        out_shape=(struct, struct, struct),
        grid=(Mp // tm,),
        in_specs=[t_spec, t_spec, w_spec, b_spec, w_spec, b_spec, w_spec, b_spec],
        out_specs=(t_spec, t_spec, t_spec),
        compiler_params=_cparams(("parallel",)),
    )(low, high, p["w_q"], p["b_q"], p["w_k"], p["b_k"], p["w_v"], p["b_v"])
    if Mp != M:
        q, k, v = q[:M], k[:M], v[:M]
    return q, k, v


# ----------------------------------------------------------------------------
# Kernel: batched attention  softmax(QK^T*scale)V, bf16 MXU operands.
#   - single-KV-tile fast path: no online-softmax bookkeeping / scratch.
#   - tiled path: flash-style online softmax with VMEM scratch.
# ----------------------------------------------------------------------------
def _attn_single_kernel(q_ref, k_ref, v_ref, o_ref, *, scale, kv_len,
                        needs_mask):
    s = jnp.einsum("gqd,gkd->gqk", q_ref[...], k_ref[...],
                   preferred_element_type=jnp.float32) * scale
    if needs_mask:
        col = jax.lax.broadcasted_iota(jnp.int32, s.shape, 2)
        s = jnp.where(col < kv_len, s, NEG_INF)
    m = jnp.max(s, axis=-1, keepdims=True)
    p = jnp.exp(s - m)
    l = jnp.sum(p, axis=-1, keepdims=True)
    pv = jnp.einsum("gqk,gkd->gqd", p.astype(v_ref.dtype), v_ref[...],
                    preferred_element_type=jnp.float32)
    o_ref[...] = (pv * pl.reciprocal(l, approx=True)).astype(o_ref.dtype)


def _flash_attn_kernel(q_ref, k_ref, v_ref, o_ref, m_sc, l_sc, acc_sc, *,
                       scale, kv_len, block_k):
    kv_idx = pl.program_id(2)

    @pl.when(kv_idx == 0)
    def _():
        m_sc[...] = jnp.full(m_sc.shape, NEG_INF, jnp.float32)
        l_sc[...] = jnp.zeros(l_sc.shape, jnp.float32)
        acc_sc[...] = jnp.zeros(acc_sc.shape, jnp.float32)

    s = jnp.einsum("gqd,gkd->gqk", q_ref[...], k_ref[...],
                   preferred_element_type=jnp.float32) * scale
    col = jax.lax.broadcasted_iota(jnp.int32, s.shape, 2) + kv_idx * block_k
    s = jnp.where(col < kv_len, s, NEG_INF)

    m_prev = m_sc[...]
    m_new = jnp.maximum(m_prev, jnp.max(s, axis=-1, keepdims=True))
    alpha = jnp.exp(m_prev - m_new)
    p = jnp.exp(s - m_new)
    l_sc[...] = alpha * l_sc[...] + jnp.sum(p, axis=-1, keepdims=True)
    acc_sc[...] = alpha * acc_sc[...] + jnp.einsum(
        "gqk,gkd->gqd", p.astype(v_ref.dtype), v_ref[...],
        preferred_element_type=jnp.float32)
    m_sc[...] = m_new

    @pl.when(kv_idx == pl.num_programs(2) - 1)
    def _():
        inv = pl.reciprocal(l_sc[...], approx=True)
        o_ref[...] = (acc_sc[...] * inv).astype(o_ref.dtype)


def flash_attention(q, k, v, scale, *, block_q=256, block_k=256, block_g=None):
    """q:(G,L,D)  k,v:(G,Lk,D) bf16 -> (G,L,D).  D must be lane-dense (128k)."""
    G, L, D = q.shape
    Lk = k.shape[1]
    if block_g is None:
        bg = G // 2 if (G >= 2 and G % 2 == 0) else G     # >=2 group tiles (v7x)
    else:
        bg = block_g
    assert G % bg == 0
    tq = min(block_q, _round_up(L, 8))
    tk = min(block_k, _round_up(Lk, 8))
    Lp = _round_up(L, tq)
    Lkp = _round_up(Lk, tk)
    if Lp != L:
        q = jnp.pad(q, ((0, 0), (0, Lp - L), (0, 0)))
    if Lkp != Lk:
        k = jnp.pad(k, ((0, 0), (0, Lkp - Lk), (0, 0)))
        v = jnp.pad(v, ((0, 0), (0, Lkp - Lk), (0, 0)))
    grid_g = G // bg
    isz = q.dtype.itemsize

    if Lkp == tk:
        # Single-KV-tile fast path: plain softmax, no scratch / rescale.
        est = 2 * bg * (tq * D * 2 + tk * D * 2) * isz
        out = pl.pallas_call(
            functools.partial(_attn_single_kernel, scale=scale, kv_len=Lk,
                              needs_mask=(Lkp != Lk)),
            out_shape=jax.ShapeDtypeStruct((G, Lp, D), q.dtype),
            grid=(grid_g, Lp // tq),
            in_specs=[
                pl.BlockSpec((bg, tq, D), lambda g, qi: (g, qi, 0)),
                pl.BlockSpec((bg, tk, D), lambda g, qi: (g, 0, 0)),
                pl.BlockSpec((bg, tk, D), lambda g, qi: (g, 0, 0)),
            ],
            out_specs=pl.BlockSpec((bg, tq, D), lambda g, qi: (g, qi, 0)),
            compiler_params=_cparams(("parallel", "parallel"), est),
        )(q, k, v)
    else:
        est = (2 * bg * (tq * D * 2 + tk * D * 2) * isz
               + bg * tq * (D + 2) * 4)
        out = pl.pallas_call(
            functools.partial(_flash_attn_kernel, scale=scale, kv_len=Lk,
                              block_k=tk),
            out_shape=jax.ShapeDtypeStruct((G, Lp, D), q.dtype),
            grid=(grid_g, Lp // tq, Lkp // tk),
            in_specs=[
                pl.BlockSpec((bg, tq, D), lambda g, qi, ki: (g, qi, 0)),
                pl.BlockSpec((bg, tk, D), lambda g, qi, ki: (g, ki, 0)),
                pl.BlockSpec((bg, tk, D), lambda g, qi, ki: (g, ki, 0)),
            ],
            out_specs=pl.BlockSpec((bg, tq, D), lambda g, qi, ki: (g, qi, 0)),
            scratch_shapes=[
                pltpu.VMEM((bg, tq, 1), jnp.float32),
                pltpu.VMEM((bg, tq, 1), jnp.float32),
                pltpu.VMEM((bg, tq, D), jnp.float32),
            ],
            compiler_params=_cparams(("parallel", "parallel", "arbitrary"), est),
        )(q, k, v)
    return out[:, :L, :] if Lp != L else out


# ----------------------------------------------------------------------------
# Plain-JAX glue: matmul-based bilinear resize (align_corners=True) and fixed
# sinusoidal positional encodings.
# ----------------------------------------------------------------------------
def _interp_matrix(out_n, in_n):
    if out_n == 1:
        pos = jnp.zeros((1,), jnp.float32)
    else:
        pos = jnp.arange(out_n, dtype=jnp.float32) * ((in_n - 1) / (out_n - 1))
    idx = jnp.arange(in_n, dtype=jnp.float32)
    return jnp.maximum(0.0, 1.0 - jnp.abs(pos[:, None] - idx[None, :]))


def bilinear_resize_nhwc(x, out_h, out_w):
    """F.interpolate(mode='bilinear', align_corners=True) as two small matmuls."""
    B, H, W, C = x.shape
    if (H, W) == (out_h, out_w):
        return x
    xf = x.astype(jnp.float32)
    if out_h != H:
        xf = jnp.einsum("oh,bhwc->bowc", _interp_matrix(out_h, H), xf)
    if out_w != W:
        xf = jnp.einsum("pw,bowc->bopc", _interp_matrix(out_w, W), xf)
    return xf.astype(x.dtype)


def positional_encodings_fixed(h, w, emb_dim, temperature=10000.0):
    """Fixed 2D sinusoidal positional encodings -> (h*w, emb_dim) f32."""
    # TODO(synk): PositionalEncodingsFixed is not defined in the provided
    # snippet; a standard 2D sinusoidal encoding is used.
    half = emb_dim // 2
    i = jnp.arange(half, dtype=jnp.float32)
    temp = temperature ** (2.0 * jnp.floor(i / 2.0) / half)

    def enc_1d(pos):
        e = pos[:, None] / temp[None, :]
        sin = jnp.sin(e[:, 0::2])
        cos = jnp.cos(e[:, 1::2])
        return jnp.stack([sin, cos], axis=-1).reshape(pos.shape[0], half)

    ey = enc_1d(jnp.arange(1, h + 1, dtype=jnp.float32))   # (h, half)
    ex = enc_1d(jnp.arange(1, w + 1, dtype=jnp.float32))   # (w, half)
    pe = jnp.concatenate(
        [jnp.broadcast_to(ey[:, None, :], (h, w, half)),
         jnp.broadcast_to(ex[None, :, :], (h, w, half))], axis=-1)
    return pe.reshape(h * w, emb_dim)


# ----------------------------------------------------------------------------
# Sub-modules
# ----------------------------------------------------------------------------
def content_guided_attention(low_bhwc, high_bhwc, p, emb_dim, num_heads, eps):
    """ContentGuidedAttention.forward (norm_first=False, eval), NHWC+padded C."""
    B, H, W, CP = low_bhwc.shape
    high = bilinear_resize_nhwc(high_bhwc, H, W)

    M = B * H * W
    low_t = low_bhwc.reshape(M, CP)
    high_t = high.reshape(M, CP)

    q, k, v = cga_qkv_project(low_t, high_t, p)

    HW = H * W
    # Reference semantics: single-head attention over all channels; num_heads
    # enters only through the scale factor.
    scale = float((emb_dim // num_heads) ** (-0.5))
    o = flash_attention(q.reshape(B, HW, CP), k.reshape(B, HW, CP),
                        v.reshape(B, HW, CP), scale)

    fused = linear_ln_residual(o.reshape(M, CP), p["w_out"], p["b_out"],
                               low_t, p["ln_g"], p["ln_b"], emb_dim, eps)
    return fused.reshape(B, H, W, CP)


# ----------------------------------------------------------------------------
# HybridEncoder forward (norm_first=False, eval mode)
# ----------------------------------------------------------------------------
def hybrid_encoder_forward(params, s3, s4, s5, *, emb_dim, num_heads, eps=1e-5):
    B = s3.shape[0]
    CP = params["conv_low_w"].shape[1]          # padded channel width (128)
    Dh = emb_dim // num_heads

    # NCHW -> NHWC once at the boundary; bf16 activations from here on.
    def to_nhwc(x):
        return jnp.transpose(x, (0, 2, 3, 1)).astype(COMPUTE_DTYPE)

    x3, x4, x5 = to_nhwc(s3), to_nhwc(s4), to_nhwc(s5)
    H3, W3 = x3.shape[1:3]
    H4, W4 = x4.shape[1:3]
    h5, w5 = x5.shape[1:3]

    # 1x1 convs = token-tiled matmuls, outputs already 128-lane dense.
    t3 = linear(x3.reshape(-1, x3.shape[-1]), params["conv_low_w"], params["conv_low_b"])
    t4 = linear(x4.reshape(-1, x4.shape[-1]), params["conv_mid_w"], params["conv_mid_b"])
    t5 = linear(x5.reshape(-1, x5.shape[-1]), params["conv_high_w"], params["conv_high_b"])

    # --- transformer encoder block on s5 tokens (post-norm, dropouts = id) ---
    L = h5 * w5
    pos = positional_encodings_fixed(h5, w5, emb_dim)
    pos = jnp.pad(pos, ((0, 0), (0, CP - emb_dim))).astype(COMPUTE_DTYPE)

    tok = t5.reshape(B, L, CP)
    q, k, v = mha_qkv_project(tok, pos, params)            # (B, heads, L, DHP)
    heads, _, DHP = params["mha_wq"].shape
    G = B * heads
    o = flash_attention(q.reshape(G, L, DHP), k.reshape(G, L, DHP),
                        v.reshape(G, L, DHP), scale=1.0 / float(Dh) ** 0.5)
    t5n = mha_out_ln(o.reshape(B, heads, L, DHP), tok, params, emb_dim, eps)
    t5f = mlp_ln(t5n.reshape(B * L, CP), params, emb_dim, eps)
    x5n = t5f.reshape(B, h5, w5, CP)

    x4e = t4.reshape(B, H4, W4, CP)
    x3e = t3.reshape(B, H3, W3, CP)

    x4_fused = content_guided_attention(x4e, x5n, params["cga45"], emb_dim, num_heads, eps)
    x3_fused = content_guided_attention(x3e, x4_fused, params["cga34"], emb_dim, num_heads, eps)

    x4_up = bilinear_resize_nhwc(x4_fused, H3, W3)
    x5_up = bilinear_resize_nhwc(x5n, H3, W3)
    concat = jnp.concatenate([x3_fused, x4_up, x5_up], axis=-1)      # (..., 3*CP)
    out = linear(concat.reshape(B * H3 * W3, 3 * CP),
                 params["final_w"], params["final_b"], out_dtype=jnp.float32)
    out = out[:, :emb_dim]                                           # drop padding
    return jnp.transpose(out.reshape(B, H3, W3, emb_dim), (0, 3, 1, 2))


# ----------------------------------------------------------------------------
# Deterministic parameter construction.  Weights are stored pre-padded to the
# 128-lane-dense layout (bf16); biases / LN params padded with zeros (f32).
# ----------------------------------------------------------------------------
def make_params(key, emb_dim, num_heads, mlp_factor):
    CP = _round_up(emb_dim, LANE)
    hidden = mlp_factor * emb_dim
    HP = _round_up(hidden, LANE)
    Dh = emb_dim // num_heads
    DHP = _round_up(Dh, LANE)

    ks = iter(jax.random.split(key, 64))
    std = 0.05

    def rnd(shape):
        return std * jax.random.normal(next(ks), shape, jnp.float32)

    def wpad(w, rows, cols):
        return jnp.pad(w, ((0, rows - w.shape[0]),
                           (0, cols - w.shape[1]))).astype(COMPUTE_DTYPE)

    def bpad(b, n):
        return jnp.pad(b, ((0, n - b.shape[0]),)).reshape(1, n).astype(jnp.float32)

    def pack_qkv_head(w, b):
        """(E,E) weight -> (heads, CP, DHP) head-major, per-head dim 0-padded."""
        ws, bs = [], []
        for h in range(num_heads):
            wh = w[:, h * Dh:(h + 1) * Dh]
            ws.append(jnp.pad(wh, ((0, CP - emb_dim), (0, DHP - Dh))))
            bs.append(jnp.pad(b[h * Dh:(h + 1) * Dh], ((0, DHP - Dh),)))
        return (jnp.stack(ws).astype(COMPUTE_DTYPE),
                jnp.stack(bs)[:, None, :].astype(jnp.float32))

    def pack_out_head(w):
        """(E,E) weight -> (heads, DHP, CP) for the in-kernel head contraction."""
        ws = []
        for h in range(num_heads):
            wh = w[h * Dh:(h + 1) * Dh, :]
            ws.append(jnp.pad(wh, ((0, DHP - Dh), (0, CP - emb_dim))))
        return jnp.stack(ws).astype(COMPUTE_DTYPE)

    mha_wq, mha_bq = pack_qkv_head(rnd((emb_dim, emb_dim)), rnd((emb_dim,)))
    mha_wk, mha_bk = pack_qkv_head(rnd((emb_dim, emb_dim)), rnd((emb_dim,)))
    mha_wv, mha_bv = pack_qkv_head(rnd((emb_dim, emb_dim)), rnd((emb_dim,)))
    mha_wo = pack_out_head(rnd((emb_dim, emb_dim)))
    mha_bo = bpad(rnd((emb_dim,)), CP)

    # final_proj consumes the concat of three CP-padded channel groups.
    wf = rnd((3 * emb_dim, emb_dim))
    wfp = jnp.zeros((3 * CP, CP), jnp.float32)
    for i in range(3):
        wfp = wfp.at[i * CP:i * CP + emb_dim, :emb_dim].set(
            wf[i * emb_dim:(i + 1) * emb_dim])

    def ln(n):
        return (bpad(jnp.ones((emb_dim,), jnp.float32), n),
                bpad(jnp.zeros((emb_dim,), jnp.float32), n))

    def cga_params():
        return {
            "w_q": wpad(rnd((emb_dim, emb_dim)), CP, CP), "b_q": bpad(rnd((emb_dim,)), CP),
            "w_k": wpad(rnd((emb_dim, emb_dim)), CP, CP), "b_k": bpad(rnd((emb_dim,)), CP),
            "w_v": wpad(rnd((emb_dim, emb_dim)), CP, CP), "b_v": bpad(rnd((emb_dim,)), CP),
            "w_out": wpad(rnd((emb_dim, emb_dim)), CP, CP), "b_out": bpad(rnd((emb_dim,)), CP),
            "ln_g": ln(CP)[0], "ln_b": ln(CP)[1],
        }

    n1g, n1b = ln(CP)
    n2g, n2b = ln(CP)
    return {
        "conv_low_w": wpad(rnd((256, emb_dim)), 256, CP), "conv_low_b": bpad(rnd((emb_dim,)), CP),
        "conv_mid_w": wpad(rnd((512, emb_dim)), 512, CP), "conv_mid_b": bpad(rnd((emb_dim,)), CP),
        "conv_high_w": wpad(rnd((1024, emb_dim)), 1024, CP), "conv_high_b": bpad(rnd((emb_dim,)), CP),
        "mha_wq": mha_wq, "mha_bq": mha_bq,
        "mha_wk": mha_wk, "mha_bk": mha_bk,
        "mha_wv": mha_wv, "mha_bv": mha_bv,
        "mha_wo": mha_wo, "mha_bo": mha_bo,
        "norm1_g": n1g, "norm1_b": n1b,
        "norm2_g": n2g, "norm2_b": n2b,
        "mlp_w1": wpad(rnd((emb_dim, hidden)), CP, HP), "mlp_b1": bpad(rnd((hidden,)), HP),
        "mlp_w2": wpad(rnd((hidden, emb_dim)), HP, CP), "mlp_b2": bpad(rnd((emb_dim,)), CP),
        "final_w": wfp.astype(COMPUTE_DTYPE), "final_b": bpad(rnd((emb_dim,)), CP),
        "cga45": cga_params(),
        "cga34": cga_params(),
    }


# ----------------------------------------------------------------------------
# Main
# ----------------------------------------------------------------------------
if __name__ == "__main__":
    emb_dim = 32
    num_heads = 4
    mlp_factor = 4

    key = jax.random.PRNGKey(0)
    k_params, k3, k4, k5 = jax.random.split(key, 4)
    params = make_params(k_params, emb_dim, num_heads, mlp_factor)

    # small feature pyramid consistent with the module's 256/512/1024 channels
    s3 = jax.random.normal(k3, (2, 256, 16, 16), jnp.float32)
    s4 = jax.random.normal(k4, (2, 512, 8, 8), jnp.float32)
    s5 = jax.random.normal(k5, (2, 1024, 4, 4), jnp.float32)

    fwd = jax.jit(functools.partial(
        hybrid_encoder_forward, emb_dim=emb_dim, num_heads=num_heads))
    out = jax.block_until_ready(fwd(params, s3, s4, s5))

    assert out.shape == (2, emb_dim, 16, 16), out.shape
    assert bool(jnp.all(jnp.isfinite(out)))
    print("KERNEL_OK")
</pallas_src>

<mosaic_0001>
module attributes {stable_mosaic.version = 11 : i64} {
  func.func @_mha_qkv_kernel(%arg0: i32, %arg1: memref<1x16x128xbf16, #tpu.memory_space<vmem>>, %arg2: memref<16x128xbf16, #tpu.memory_space<vmem>>, %arg3: memref<4x128x128xbf16, #tpu.memory_space<vmem>>, %arg4: memref<4x1x128xf32, #tpu.memory_space<vmem>>, %arg5: memref<4x128x128xbf16, #tpu.memory_space<vmem>>, %arg6: memref<4x1x128xf32, #tpu.memory_space<vmem>>, %arg7: memref<4x128x128xbf16, #tpu.memory_space<vmem>>, %arg8: memref<4x1x128xf32, #tpu.memory_space<vmem>>, %arg9: memref<1x4x16x128xbf16, #tpu.memory_space<vmem>>, %arg10: memref<1x4x16x128xbf16, #tpu.memory_space<vmem>>, %arg11: memref<1x4x16x128xbf16, #tpu.memory_space<vmem>>) attributes {dimension_semantics = [#tpu.dimension_semantics<parallel>], iteration_bounds = array<i64: 2>, scalar_prefetch = 0 : i64, scratch_operands = 0 : i64, tpu.core_type = #tpu.core_type<tc>, window_params = [{transform_indices = @transform_0, window_bounds = array<i64: 1, 16, 128>}, {pipeline_mode = #tpu.pipeline_mode<synchronous>, transform_indices = @transform_1, window_bounds = array<i64: 16, 128>}, {pipeline_mode = #tpu.pipeline_mode<synchronous>, transform_indices = @transform_2, window_bounds = array<i64: 4, 128, 128>}, {pipeline_mode = #tpu.pipeline_mode<synchronous>, transform_indices = @transform_3, window_bounds = array<i64: 4, 1, 128>}, {pipeline_mode = #tpu.pipeline_mode<synchronous>, transform_indices = @transform_4, window_bounds = array<i64: 4, 128, 128>}, {pipeline_mode = #tpu.pipeline_mode<synchronous>, transform_indices = @transform_5, window_bounds = array<i64: 4, 1, 128>}, {pipeline_mode = #tpu.pipeline_mode<synchronous>, transform_indices = @transform_6, window_bounds = array<i64: 4, 128, 128>}, {pipeline_mode = #tpu.pipeline_mode<synchronous>, transform_indices = @transform_7, window_bounds = array<i64: 4, 1, 128>}, {transform_indices = @transform_8, window_bounds = array<i64: 1, 4, 16, 128>}, {transform_indices = @transform_9, window_bounds = array<i64: 1, 4, 16, 128>}, {transform_indices = @transform_10, window_bounds = array<i64: 1, 4, 16, 128>}]} {
    %c0 = arith.constant 0 : index
    %c0_0 = arith.constant 0 : index
    %c0_1 = arith.constant 0 : index
    %0 = vector.load %arg1[%c0, %c0_0, %c0_1] : memref<1x16x128xbf16, #tpu.memory_space<vmem>>, vector<1x16x128xbf16>
    %1 = vector.shape_cast %0 : vector<1x16x128xbf16> to vector<16x128xbf16>
    %c0_2 = arith.constant 0 : index
    %c0_3 = arith.constant 0 : index
    %2 = vector.load %arg2[%c0_2, %c0_3] : memref<16x128xbf16, #tpu.memory_space<vmem>>, vector<16x128xbf16>
    %3 = arith.addf %1, %2 : vector<16x128xbf16>
    %c0_4 = arith.constant 0 : index
    %c0_5 = arith.constant 0 : index
    %c0_6 = arith.constant 0 : index
    %4 = vector.load %arg3[%c0_4, %c0_5, %c0_6] : memref<4x128x128xbf16, #tpu.memory_space<vmem>>, vector<1x128x128xbf16>
    %5 = vector.shape_cast %4 : vector<1x128x128xbf16> to vector<128x128xbf16>
    %cst = arith.constant dense<0.000000e+00> : vector<16x128xf32>
    %6 = tpu.matmul %3, %5, %cst {dimension_numbers = #tpu.dot_dimension_numbers<[1], [0], [0], [1], [0, 0, 1, 1], [], []>} : vector<16x128xbf16>, vector<128x128xbf16>, vector<16x128xf32> -> vector<16x128xf32>
    %c0_7 = arith.constant 0 : index
    %c0_8 = arith.constant 0 : index
    %c0_9 = arith.constant 0 : index
    %7 = vector.load %arg4[%c0_7, %c0_8, %c0_9] : memref<4x1x128xf32, #tpu.memory_space<vmem>>, vector<1x1x128xf32>
    %8 = vector.shape_cast %7 : vector<1x1x128xf32> to vector<1x128xf32>
    %9 = vector.broadcast %8 : vector<1x128xf32> to vector<16x128xf32>
    %10 = arith.addf %6, %9 : vector<16x128xf32>
    %c0_10 = arith.constant 0 : index
    %c0_11 = arith.constant 0 : index
    %c0_12 = arith.constant 0 : index
    %11 = vector.load %arg5[%c0_10, %c0_11, %c0_12] : memref<4x128x128xbf16, #tpu.memory_space<vmem>>, vector<1x128x128xbf16>
    %12 = vector.shape_cast %11 : vector<1x128x128xbf16> to vector<128x128xbf16>
    %cst_13 = arith.constant dense<0.000000e+00> : vector<16x128xf32>
    %13 = tpu.matmul %3, %12, %cst_13 {dimension_numbers = #tpu.dot_dimension_numbers<[1], [0], [0], [1], [0, 0, 1, 1], [], []>} : vector<16x128xbf16>, vector<128x128xbf16>, vector<16x128xf32> -> vector<16x128xf32>
    %c0_14 = arith.constant 0 : index
    %c0_15 = arith.constant 0 : index
    %c0_16 = arith.constant 0 : index
    %14 = vector.load %arg6[%c0_14, %c0_15, %c0_16] : memref<4x1x128xf32, #tpu.memory_space<vmem>>, vector<1x1x128xf32>
    %15 = vector.shape_cast %14 : vector<1x1x128xf32> to vector<1x128xf32>
    %16 = vector.broadcast %15 : vector<1x128xf32> to vector<16x128xf32>
    %17 = arith.addf %13, %16 : vector<16x128xf32>
    %c0_17 = arith.constant 0 : index
    %c0_18 = arith.constant 0 : index
    %c0_19 = arith.constant 0 : index
    %18 = vector.load %arg7[%c0_17, %c0_18, %c0_19] : memref<4x128x128xbf16, #tpu.memory_space<vmem>>, vector<1x128x128xbf16>
    %19 = vector.shape_cast %18 : vector<1x128x128xbf16> to vector<128x128xbf16>
    %cst_20 = arith.constant dense<0.000000e+00> : vector<16x128xf32>
    %20 = tpu.matmul %1, %19, %cst_20 {dimension_numbers = #tpu.dot_dimension_numbers<[1], [0], [0], [1], [0, 0, 1, 1], [], []>} : vector<16x128xbf16>, vector<128x128xbf16>, vector<16x128xf32> -> vector<16x128xf32>
    %c0_21 = arith.constant 0 : index
    %c0_22 = arith.constant 0 : index
    %c0_23 = arith.constant 0 : index
    %21 = vector.load %arg8[%c0_21, %c0_22, %c0_23] : memref<4x1x128xf32, #tpu.memory_space<vmem>>, vector<1x1x128xf32>
    %22 = vector.shape_cast %21 : vector<1x1x128xf32> to vector<1x128xf32>
    %23 = vector.broadcast %22 : vector<1x128xf32> to vector<16x128xf32>
    %24 = arith.addf %20, %23 : vector<16x128xf32>
    %25 = arith.truncf %10 : vector<16x128xf32> to vector<16x128xbf16>
    %c0_24 = arith.constant 0 : index
    %c0_25 = arith.constant 0 : index
    %c0_26 = arith.constant 0 : index
    %c0_27 = arith.constant 0 : index
    %26 = vector.load %arg9[%c0_24, %c0_25, %c0_26, %c0_27] : memref<1x4x16x128xbf16, #tpu.memory_space<vmem>>, vector<1x1x16x128xbf16>
    %27 = vector.shape_cast %26 : vector<1x1x16x128xbf16> to vector<16x128xbf16>
    %28 = vector.shape_cast %25 : vector<16x128xbf16> to vector<1x1x16x128xbf16>
    tpu.vector_store %arg9[%c0_24, %c0_25, %c0_26, %c0_27], %28 {strides = array<i32>} : memref<1x4x16x128xbf16, #tpu.memory_space<vmem>>, vector<1x1x16x128xbf16>,
    %29 = arith.truncf %17 : vector<16x128xf32> to vector<16x128xbf16>
    %c0_28 = arith.constant 0 : index
    %c0_29 = arith.constant 0 : index
    %c0_30 = arith.constant 0 : index
    %c0_31 = arith.constant 0 : index
    %30 = vector.load %arg10[%c0_28, %c0_29, %c0_30, %c0_31] : memref<1x4x16x128xbf16, #tpu.memory_space<vmem>>, vector<1x1x16x128xbf16>
    %31 = vector.shape_cast %30 : vector<1x1x16x128xbf16> to vector<16x128xbf16>
    %32 = vector.shape_cast %29 : vector<16x128xbf16> to vector<1x1x16x128xbf16>
    tpu.vector_store %arg10[%c0_28, %c0_29, %c0_30, %c0_31], %32 {strides = array<i32>} : memref<1x4x16x128xbf16, #tpu.memory_space<vmem>>, vector<1x1x16x128xbf16>,
    %33 = arith.truncf %24 : vector<16x128xf32> to vector<16x128xbf16>
    %c0_32 = arith.constant 0 : index
    %c0_33 = arith.constant 0 : index
    %c0_34 = arith.constant 0 : index
    %c0_35 = arith.constant 0 : index
    %34 = vector.load %arg11[%c0_32, %c0_33, %c0_34, %c0_35] : memref<1x4x16x128xbf16, #tpu.memory_space<vmem>>, vector<1x1x16x128xbf16>
    %35 = vector.shape_cast %34 : vector<1x1x16x128xbf16> to vector<16x128xbf16>
    %36 = vector.shape_cast %33 : vector<16x128xbf16> to vector<1x1x16x128xbf16>
    tpu.vector_store %arg11[%c0_32, %c0_33, %c0_34, %c0_35], %36 {strides = array<i32>} : memref<1x4x16x128xbf16, #tpu.memory_space<vmem>>, vector<1x1x16x128xbf16>,
    %c1 = arith.constant 1 : index
    %c0_36 = arith.constant 0 : index
    %c0_37 = arith.constant 0 : index
    %37 = vector.load %arg3[%c1, %c0_36, %c0_37] : memref<4x128x128xbf16, #tpu.memory_space<vmem>>, vector<1x128x128xbf16>
    %38 = vector.shape_cast %37 : vector<1x128x128xbf16> to vector<128x128xbf16>
    %cst_38 = arith.constant dense<0.000000e+00> : vector<16x128xf32>
    %39 = tpu.matmul %3, %38, %cst_38 {dimension_numbers = #tpu.dot_dimension_numbers<[1], [0], [0], [1], [0, 0, 1, 1], [], []>} : vector<16x128xbf16>, vector<128x128xbf16>, vector<16x128xf32> -> vector<16x128xf32>
    %c1_39 = arith.constant 1 : index
    %c0_40 = arith.constant 0 : index
    %c0_41 = arith.constant 0 : index
    %40 = vector.load %arg4[%c1_39, %c0_40, %c0_41] : memref<4x1x128xf32, #tpu.memory_space<vmem>>, vector<1x1x128xf32>
    %41 = vector.shape_cast %40 : vector<1x1x128xf32> to vector<1x128xf32>
    %42 = vector.broadcast %41 : vector<1x128xf32> to vector<16x128xf32>
    %43 = arith.addf %39, %42 : vector<16x128xf32>
    %c1_42 = arith.constant 1 : index
    %c0_43 = arith.constant 0 : index
    %c0_44 = arith.constant 0 : index
    %44 = vector.load %arg5[%c1_42, %c0_43, %c0_44] : memref<4x128x128xbf16, #tpu.memory_space<vmem>>, vector<1x128x128xbf16>
    %45 = vector.shape_cast %44 : vector<1x128x128xbf16> to vector<128x128xbf16>
    %cst_45 = arith.constant dense<0.000000e+00> : vector<16x128xf32>
    %46 = tpu.matmul %3, %45, %cst_45 {dimension_numbers = #tpu.dot_dimension_numbers<[1], [0], [0], [1], [0, 0, 1, 1], [], []>} : vector<16x128xbf16>, vector<128x128xbf16>, vector<16x128xf32> -> vector<16x128xf32>
    %c1_46 = arith.constant 1 : index
    %c0_47 = arith.constant 0 : index
    %c0_48 = arith.constant 0 : index
    %47 = vector.load %arg6[%c1_46, %c0_47, %c0_48] : memref<4x1x128xf32, #tpu.memory_space<vmem>>, vector<1x1x128xf32>
    %48 = vector.shape_cast %47 : vector<1x1x128xf32> to vector<1x128xf32>
    %49 = vector.broadcast %48 : vector<1x128xf32> to vector<16x128xf32>
    %50 = arith.addf %46, %49 : vector<16x128xf32>
    %c1_49 = arith.constant 1 : index
    %c0_50 = arith.constant 0 : index
    %c0_51 = arith.constant 0 : index
    %51 = vector.load %arg7[%c1_49, %c0_50, %c0_51] : memref<4x128x128xbf16, #tpu.memory_space<vmem>>, vector<1x128x128xbf16>
    %52 = vector.shape_cast %51 : vector<1x128x128xbf16> to vector<128x128xbf16>
    %cst_52 = arith.constant dense<0.000000e+00> : vector<16x128xf32>
    %53 = tpu.matmul %1, %52, %cst_52 {dimension_numbers = #tpu.dot_dimension_numbers<[1], [0], [0], [1], [0, 0, 1, 1], [], []>} : vector<16x128xbf16>, vector<128x128xbf16>, vector<16x128xf32> -> vector<16x128xf32>
    %c1_53 = arith.constant 1 : index
    %c0_54 = arith.constant 0 : index
    %c0_55 = arith.constant 0 : index
    %54 = vector.load %arg8[%c1_53, %c0_54, %c0_55] : memref<4x1x128xf32, #tpu.memory_space<vmem>>, vector<1x1x128xf32>
    %55 = vector.shape_cast %54 : vector<1x1x128xf32> to vector<1x128xf32>
    %56 = vector.broadcast %55 : vector<1x128xf32> to vector<16x128xf32>
    %57 = arith.addf %53, %56 : vector<16x128xf32>
    %58 = arith.truncf %43 : vector<16x128xf32> to vector<16x128xbf16>
    %c0_56 = arith.constant 0 : index
    %c1_57 = arith.constant 1 : index
    %c0_58 = arith.constant 0 : index
    %c0_59 = arith.constant 0 : index
    %59 = vector.load %arg9[%c0_56, %c1_57, %c0_58, %c0_59] : memref<1x4x16x128xbf16, #tpu.memory_space<vmem>>, vector<1x1x16x128xbf16>
    %60 = vector.shape_cast %59 : vector<1x1x16x128xbf16> to vector<16x128xbf16>
    %61 = vector.shape_cast %58 : vector<16x128xbf16> to vector<1x1x16x128xbf16>
    tpu.vector_store %arg9[%c0_56, %c1_57, %c0_58, %c0_59], %61 {strides = array<i32>} : memref<1x4x16x128xbf16, #tpu.memory_space<vmem>>, vector<1x1x16x128xbf16>,
    %62 = arith.truncf %50 : vector<16x128xf32> to vector<16x128xbf16>
    %c0_60 = arith.constant 0 : index
    %c1_61 = arith.constant 1 : index
    %c0_62 = arith.constant 0 : index
    %c0_63 = arith.constant 0 : index
    %63 = vector.load %arg10[%c0_60, %c1_61, %c0_62, %c0_63] : memref<1x4x16x128xbf16, #tpu.memory_space<vmem>>, vector<1x1x16x128xbf16>
    %64 = vector.shape_cast %63 : vector<1x1x16x128xbf16> to vector<16x128xbf16>
    %65 = vector.shape_cast %62 : vector<16x128xbf16> to vector<1x1x16x128xbf16>
    tpu.vector_store %arg10[%c0_60, %c1_61, %c0_62, %c0_63], %65 {strides = array<i32>} : memref<1x4x16x128xbf16, #tpu.memory_space<vmem>>, vector<1x1x16x128xbf16>,
    %66 = arith.truncf %57 : vector<16x128xf32> to vector<16x128xbf16>
    %c0_64 = arith.constant 0 : index
    %c1_65 = arith.constant 1 : index
    %c0_66 = arith.constant 0 : index
    %c0_67 = arith.constant 0 : index
    %67 = vector.load %arg11[%c0_64, %c1_65, %c0_66, %c0_67] : memref<1x4x16x128xbf16, #tpu.memory_space<vmem>>, vector<1x1x16x128xbf16>
    %68 = vector.shape_cast %67 : vector<1x1x16x128xbf16> to vector<16x128xbf16>
    %69 = vector.shape_cast %66 : vector<16x128xbf16> to vector<1x1x16x128xbf16>
    tpu.vector_store %arg11[%c0_64, %c1_65, %c0_66, %c0_67], %69 {strides = array<i32>} : memref<1x4x16x128xbf16, #tpu.memory_space<vmem>>, vector<1x1x16x128xbf16>,
    %c2 = arith.constant 2 : index
    %c0_68 = arith.constant 0 : index
    %c0_69 = arith.constant 0 : index
    %70 = vector.load %arg3[%c2, %c0_68, %c0_69] : memref<4x128x128xbf16, #tpu.memory_space<vmem>>, vector<1x128x128xbf16>
    %71 = vector.shape_cast %70 : vector<1x128x128xbf16> to vector<128x128xbf16>
    %cst_70 = arith.constant dense<0.000000e+00> : vector<16x128xf32>
    %72 = tpu.matmul %3, %71, %cst_70 {dimension_numbers = #tpu.dot_dimension_numbers<[1], [0], [0], [1], [0, 0, 1, 1], [], []>} : vector<16x128xbf16>, vector<128x128xbf16>, vector<16x128xf32> -> vector<16x128xf32>
    %c2_71 = arith.constant 2 : index
    %c0_72 = arith.constant 0 : index
    %c0_73 = arith.constant 0 : index
    %73 = vector.load %arg4[%c2_71, %c0_72, %c0_73] : memref<4x1x128xf32, #tpu.memory_space<vmem>>, vector<1x1x128xf32>
    %74 = vector.shape_cast %73 : vector<1x1x128xf32> to vector<1x128xf32>
    %75 = vector.broadcast %74 : vector<1x128xf32> to vector<16x128xf32>
    %76 = arith.addf %72, %75 : vector<16x128xf32>
    %c2_74 = arith.constant 2 : index
    %c0_75 = arith.constant 0 : index
    %c0_76 = arith.constant 0 : index
    %77 = vector.load %arg5[%c2_74, %c0_75, %c0_76] : memref<4x128x128xbf16, #tpu.memory_space<vmem>>, vector<1x128x128xbf16>
    %78 = vector.shape_cast %77 : vector<1x128x128xbf16> to vector<128x128xbf16>
    %cst_77 = arith.constant dense<0.000000e+00> : vector<16x128xf32>
    %79 = tpu.matmul %3, %78, %cst_77 {dimension_numbers = #tpu.dot_dimension_numbers<[1], [0], [0], [1], [0, 0, 1, 1], [], []>} : vector<16x128xbf16>, vector<128x128xbf16>, vector<16x128xf32> -> vector<16x128xf32>
    %c2_78 = arith.constant 2 : index
    %c0_79 = arith.constant 0 : index
    %c0_80 = arith.constant 0 : index
    %80 = vector.load %arg6[%c2_78, %c0_79, %c0_80] : memref<4x1x128xf32, #tpu.memory_space<vmem>>, vector<1x1x128xf32>
    %81 = vector.shape_cast %80 : vector<1x1x128xf32> to vector<1x128xf32>
    %82 = vector.broadcast %81 : vector<1x128xf32> to vector<16x128xf32>
    %83 = arith.addf %79, %82 : vector<16x128xf32>
    %c2_81 = arith.constant 2 : index
    %c0_82 = arith.constant 0 : index
    %c0_83 = arith.constant 0 : index
    %84 = vector.load %arg7[%c2_81, %c0_82, %c0_83] : memref<4x128x128xbf16, #tpu.memory_space<vmem>>, vector<1x128x128xbf16>
    %85 = vector.shape_cast %84 : vector<1x128x128xbf16> to vector<128x128xbf16>
    %cst_84 = arith.constant dense<0.000000e+00> : vector<16x128xf32>
    %86 = tpu.matmul %1, %85, %cst_84 {dimension_numbers = #tpu.dot_dimension_numbers<[1], [0], [0], [1], [0, 0, 1, 1], [], []>} : vector<16x128xbf16>, vector<128x128xbf16>, vector<16x128xf32> -> vector<16x128xf32>
    %c2_85 = arith.constant 2 : index
    %c0_86 = arith.constant 0 : index
    %c0_87 = arith.constant 0 : index
    %87 = vector.load %arg8[%c2_85, %c0_86, %c0_87] : memref<4x1x128xf32, #tpu.memory_space<vmem>>, vector<1x1x128xf32>
    %88 = vector.shape_cast %87 : vector<1x1x128xf32> to vector<1x128xf32>
    %89 = vector.broadcast %88 : vector<1x128xf32> to vector<16x128xf32>
    %90 = arith.addf %86, %89 : vector<16x128xf32>
    %91 = arith.truncf %76 : vector<16x128xf32> to vector<16x128xbf16>
    %c0_88 = arith.constant 0 : index
    %c2_89 = arith.constant 2 : index
    %c0_90 = arith.constant 0 : index
    %c0_91 = arith.constant 0 : index
    %92 = vector.load %arg9[%c0_88, %c2_89, %c0_90, %c0_91] : memref<1x4x16x128xbf16, #tpu.memory_space<vmem>>, vector<1x1x16x128xbf16>
    %93 = vector.shape_cast %92 : vector<1x1x16x128xbf16> to vector<16x128xbf16>
    %94 = vector.shape_cast %91 : vector<16x128xbf16> to vector<1x1x16x128xbf16>
    tpu.vector_store %arg9[%c0_88, %c2_89, %c0_90, %c0_91], %94 {strides = array<i32>} : memref<1x4x16x128xbf16, #tpu.memory_space<vmem>>, vector<1x1x16x128xbf16>,
    %95 = arith.truncf %83 : vector<16x128xf32> to vector<16x128xbf16>
    %c0_92 = arith.constant 0 : index
    %c2_93 = arith.constant 2 : index
    %c0_94 = arith.constant 0 : index
    %c0_95 = arith.constant 0 : index
    %96 = vector.load %arg10[%c0_92, %c2_93, %c0_94, %c0_95] : memref<1x4x16x128xbf16, #tpu.memory_space<vmem>>, vector<1x1x16x128xbf16>
    %97 = vector.shape_cast %96 : vector<1x1x16x128xbf16> to vector<16x128xbf16>
    %98 = vector.shape_cast %95 : vector<16x128xbf16> to vector<1x1x16x128xbf16>
    tpu.vector_store %arg10[%c0_92, %c2_93, %c0_94, %c0_95], %98 {strides = array<i32>} : memref<1x4x16x128xbf16, #tpu.memory_space<vmem>>, vector<1x1x16x128xbf16>,
    %99 = arith.truncf %90 : vector<16x128xf32> to vector<16x128xbf16>
    %c0_96 = arith.constant 0 : index
    %c2_97 = arith.constant 2 : index
    %c0_98 = arith.constant 0 : index
    %c0_99 = arith.constant 0 : index
    %100 = vector.load %arg11[%c0_96, %c2_97, %c0_98, %c0_99] : memref<1x4x16x128xbf16, #tpu.memory_space<vmem>>, vector<1x1x16x128xbf16>
    %101 = vector.shape_cast %100 : vector<1x1x16x128xbf16> to vector<16x128xbf16>
    %102 = vector.shape_cast %99 : vector<16x128xbf16> to vector<1x1x16x128xbf16>
    tpu.vector_store %arg11[%c0_96, %c2_97, %c0_98, %c0_99], %102 {strides = array<i32>} : memref<1x4x16x128xbf16, #tpu.memory_space<vmem>>, vector<1x1x16x128xbf16>,
    %c3 = arith.constant 3 : index
    %c0_100 = arith.constant 0 : index
    %c0_101 = arith.constant 0 : index
    %103 = vector.load %arg3[%c3, %c0_100, %c0_101] : memref<4x128x128xbf16, #tpu.memory_space<vmem>>, vector<1x128x128xbf16>
    %104 = vector.shape_cast %103 : vector<1x128x128xbf16> to vector<128x128xbf16>
    %cst_102 = arith.constant dense<0.000000e+00> : vector<16x128xf32>
    %105 = tpu.matmul %3, %104, %cst_102 {dimension_numbers = #tpu.dot_dimension_numbers<[1], [0], [0], [1], [0, 0, 1, 1], [], []>} : vector<16x128xbf16>, vector<128x128xbf16>, vector<16x128xf32> -> vector<16x128xf32>
    %c3_103 = arith.constant 3 : index
    %c0_104 = arith.constant 0 : index
    %c0_105 = arith.constant 0 : index
    %106 = vector.load %arg4[%c3_103, %c0_104, %c0_105] : memref<4x1x128xf32, #tpu.memory_space<vmem>>, vector<1x1x128xf32>
    %107 = vector.shape_cast %106 : vector<1x1x128xf32> to vector<1x128xf32>
    %108 = vector.broadcast %107 : vector<1x128xf32> to vector<16x128xf32>
    %109 = arith.addf %105, %108 : vector<16x128xf32>
    %c3_106 = arith.constant 3 : index
    %c0_107 = arith.constant 0 : index
    %c0_108 = arith.constant 0 : index
    %110 = vector.load %arg5[%c3_106, %c0_107, %c0_108] : memref<4x128x128xbf16, #tpu.memory_space<vmem>>, vector<1x128x128xbf16>
    %111 = vector.shape_cast %110 : vector<1x128x128xbf16> to vector<128x128xbf16>
    %cst_109 = arith.constant dense<0.000000e+00> : vector<16x128xf32>
    %112 = tpu.matmul %3, %111, %cst_109 {dimension_numbers = #tpu.dot_dimension_numbers<[1], [0], [0], [1], [0, 0, 1, 1], [], []>} : vector<16x128xbf16>, vector<128x128xbf16>, vector<16x128xf32> -> vector<16x128xf32>
    %c3_110 = arith.constant 3 : index
    %c0_111 = arith.constant 0 : index
    %c0_112 = arith.constant 0 : index
    %113 = vector.load %arg6[%c3_110, %c0_111, %c0_112] : memref<4x1x128xf32, #tpu.memory_space<vmem>>, vector<1x1x128xf32>
    %114 = vector.shape_cast %113 : vector<1x1x128xf32> to vector<1x128xf32>
    %115 = vector.broadcast %114 : vector<1x128xf32> to vector<16x128xf32>
    %116 = arith.addf %112, %115 : vector<16x128xf32>
    %c3_113 = arith.constant 3 : index
    %c0_114 = arith.constant 0 : index
    %c0_115 = arith.constant 0 : index
    %117 = vector.load %arg7[%c3_113, %c0_114, %c0_115] : memref<4x128x128xbf16, #tpu.memory_space<vmem>>, vector<1x128x128xbf16>
    %118 = vector.shape_cast %117 : vector<1x128x128xbf16> to vector<128x128xbf16>
    %cst_116 = arith.constant dense<0.000000e+00> : vector<16x128xf32>
    %119 = tpu.matmul %1, %118, %cst_116 {dimension_numbers = #tpu.dot_dimension_numbers<[1], [0], [0], [1], [0, 0, 1, 1], [], []>} : vector<16x128xbf16>, vector<128x128xbf16>, vector<16x128xf32> -> vector<16x128xf32>
    %c3_117 = arith.constant 3 : index
    %c0_118 = arith.constant 0 : index
    %c0_119 = arith.constant 0 : index
    %120 = vector.load %arg8[%c3_117, %c0_118, %c0_119] : memref<4x1x128xf32, #tpu.memory_space<vmem>>, vector<1x1x128xf32>
    %121 = vector.shape_cast %120 : vector<1x1x128xf32> to vector<1x128xf32>
    %122 = vector.broadcast %121 : vector<1x128xf32> to vector<16x128xf32>
    %123 = arith.addf %119, %122 : vector<16x128xf32>
    %124 = arith.truncf %109 : vector<16x128xf32> to vector<16x128xbf16>
    %c0_120 = arith.constant 0 : index
    %c3_121 = arith.constant 3 : index
    %c0_122 = arith.constant 0 : index
    %c0_123 = arith.constant 0 : index
    %125 = vector.load %arg9[%c0_120, %c3_121, %c0_122, %c0_123] : memref<1x4x16x128xbf16, #tpu.memory_space<vmem>>, vector<1x1x16x128xbf16>
    %126 = vector.shape_cast %125 : vector<1x1x16x128xbf16> to vector<16x128xbf16>
    %127 = vector.shape_cast %124 : vector<16x128xbf16> to vector<1x1x16x128xbf16>
    tpu.vector_store %arg9[%c0_120, %c3_121, %c0_122, %c0_123], %127 {strides = array<i32>} : memref<1x4x16x128xbf16, #tpu.memory_space<vmem>>, vector<1x1x16x128xbf16>,
    %128 = arith.truncf %116 : vector<16x128xf32> to vector<16x128xbf16>
    %c0_124 = arith.constant 0 : index
    %c3_125 = arith.constant 3 : index
    %c0_126 = arith.constant 0 : index
    %c0_127 = arith.constant 0 : index
    %129 = vector.load %arg10[%c0_124, %c3_125, %c0_126, %c0_127] : memref<1x4x16x128xbf16, #tpu.memory_space<vmem>>, vector<1x1x16x128xbf16>
    %130 = vector.shape_cast %129 : vector<1x1x16x128xbf16> to vector<16x128xbf16>
    %131 = vector.shape_cast %128 : vector<16x128xbf16> to vector<1x1x16x128xbf16>
    tpu.vector_store %arg10[%c0_124, %c3_125, %c0_126, %c0_127], %131 {strides = array<i32>} : memref<1x4x16x128xbf16, #tpu.memory_space<vmem>>, vector<1x1x16x128xbf16>,
    %132 = arith.truncf %123 : vector<16x128xf32> to vector<16x128xbf16>
    %c0_128 = arith.constant 0 : index
    %c3_129 = arith.constant 3 : index
    %c0_130 = arith.constant 0 : index
    %c0_131 = arith.constant 0 : index
    %133 = vector.load %arg11[%c0_128, %c3_129, %c0_130, %c0_131] : memref<1x4x16x128xbf16, #tpu.memory_space<vmem>>, vector<1x1x16x128xbf16>
    %134 = vector.shape_cast %133 : vector<1x1x16x128xbf16> to vector<16x128xbf16>
    %135 = vector.shape_cast %132 : vector<16x128xbf16> to vector<1x1x16x128xbf16>
    tpu.vector_store %arg11[%c0_128, %c3_129, %c0_130, %c0_131], %135 {strides = array<i32>} : memref<1x4x16x128xbf16, #tpu.memory_space<vmem>>, vector<1x1x16x128xbf16>,
    return
  }
  func.func @transform_0(%arg0: i32) -> (i32, i32, i32) {
    %c0_i32 = arith.constant 0 : i32
    %c0_i32_0 = arith.constant 0 : i32
    %c0_i32_1 = arith.constant 0 : i32
    return %arg0, %c0_i32, %c0_i32_0 : i32, i32, i32
  }
  func.func @transform_1(%arg0: i32) -> (i32, i32) {
    %c0_i32 = arith.constant 0 : i32
    %c0_i32_0 = arith.constant 0 : i32
    %c0_i32_1 = arith.constant 0 : i32
    return %c0_i32, %c0_i32_0 : i32, i32
  }
  func.func @transform_2(%arg0: i32) -> (i32, i32, i32) {
    %c0_i32 = arith.constant 0 : i32
    %c0_i32_0 = arith.constant 0 : i32
    %c0_i32_1 = arith.constant 0 : i32
    %c0_i32_2 = arith.constant 0 : i32
    return %c0_i32, %c0_i32_0, %c0_i32_1 : i32, i32, i32
  }
  func.func @transform_3(%arg0: i32) -> (i32, i32, i32) {
    %c0_i32 = arith.constant 0 : i32
    %c0_i32_0 = arith.constant 0 : i32
    %c0_i32_1 = arith.constant 0 : i32
    %c0_i32_2 = arith.constant 0 : i32
    return %c0_i32, %c0_i32_0, %c0_i32_1 : i32, i32, i32
  }
  func.func @transform_4(%arg0: i32) -> (i32, i32, i32) {
    %c0_i32 = arith.constant 0 : i32
    %c0_i32_0 = arith.constant 0 : i32
    %c0_i32_1 = arith.constant 0 : i32
    %c0_i32_2 = arith.constant 0 : i32
    return %c0_i32, %c0_i32_0, %c0_i32_1 : i32, i32, i32
  }
  func.func @transform_5(%arg0: i32) -> (i32, i32, i32) {
    %c0_i32 = arith.constant 0 : i32
    %c0_i32_0 = arith.constant 0 : i32
    %c0_i32_1 = arith.constant 0 : i32
    %c0_i32_2 = arith.constant 0 : i32
    return %c0_i32, %c0_i32_0, %c0_i32_1 : i32, i32, i32
  }
  func.func @transform_6(%arg0: i32) -> (i32, i32, i32) {
    %c0_i32 = arith.constant 0 : i32
    %c0_i32_0 = arith.constant 0 : i32
    %c0_i32_1 = arith.constant 0 : i32
    %c0_i32_2 = arith.constant 0 : i32
    return %c0_i32, %c0_i32_0, %c0_i32_1 : i32, i32, i32
  }
  func.func @transform_7(%arg0: i32) -> (i32, i32, i32) {
    %c0_i32 = arith.constant 0 : i32
    %c0_i32_0 = arith.constant 0 : i32
    %c0_i32_1 = arith.constant 0 : i32
    %c0_i32_2 = arith.constant 0 : i32
    return %c0_i32, %c0_i32_0, %c0_i32_1 : i32, i32, i32
  }
  func.func @transform_8(%arg0: i32) -> (i32, i32, i32, i32) {
    %c0_i32 = arith.constant 0 : i32
    %c0_i32_0 = arith.constant 0 : i32
    %c0_i32_1 = arith.constant 0 : i32
    %c0_i32_2 = arith.constant 0 : i32
    return %arg0, %c0_i32, %c0_i32_0, %c0_i32_1 : i32, i32, i32, i32
  }
  func.func @transform_9(%arg0: i32) -> (i32, i32, i32, i32) {
    %c0_i32 = arith.constant 0 : i32
    %c0_i32_0 = arith.constant 0 : i32
    %c0_i32_1 = arith.constant 0 : i32
    %c0_i32_2 = arith.constant 0 : i32
    return %arg0, %c0_i32, %c0_i32_0, %c0_i32_1 : i32, i32, i32, i32
  }
  func.func @transform_10(%arg0: i32) -> (i32, i32, i32, i32) {
    %c0_i32 = arith.constant 0 : i32
    %c0_i32_0 = arith.constant 0 : i32
    %c0_i32_1 = arith.constant 0 : i32
    %c0_i32_2 = arith.constant 0 : i32
    return %arg0, %c0_i32, %c0_i32_0, %c0_i32_1 : i32, i32, i32, i32
  }
}

module attributes {stable_mosaic.version = 11 : i64} {
  func.func @_attn_single_kernel(%arg0: i32, %arg1: i32, %arg2: memref<4x16x128xbf16, #tpu.memory_space<vmem>>, %arg3: memref<4x16x128xbf16, #tpu.memory_space<vmem>>, %arg4: memref<4x16x128xbf16, #tpu.memory_space<vmem>>, %arg5: memref<4x16x128xbf16, #tpu.memory_space<vmem>>) attributes {dimension_semantics = [#tpu.dimension_semantics<parallel>, #tpu.dimension_semantics<parallel>], iteration_bounds = array<i64: 2, 1>, scalar_prefetch = 0 : i64, scratch_operands = 0 : i64, tpu.core_type = #tpu.core_type<tc>, window_params = [{transform_indices = @transform_0, window_bounds = array<i64: 4, 16, 128>}, {transform_indices = @transform_1, window_bounds = array<i64: 4, 16, 128>}, {transform_indices = @transform_2, window_bounds = array<i64: 4, 16, 128>}, {transform_indices = @transform_3, window_bounds = array<i64: 4, 16, 128>}]} {
    %c0 = arith.constant 0 : index
    %c0_0 = arith.constant 0 : index
    %c0_1 = arith.constant 0 : index
    %0 = vector.load %arg2[%c0, %c0_0, %c0_1] : memref<4x16x128xbf16, #tpu.memory_space<vmem>>, vector<4x16x128xbf16>
    %c0_2 = arith.constant 0 : index
    %c0_3 = arith.constant 0 : index
    %c0_4 = arith.constant 0 : index
    %1 = vector.load %arg3[%c0_2, %c0_3, %c0_4] : memref<4x16x128xbf16, #tpu.memory_space<vmem>>, vector<4x16x128xbf16>
    "tpu.trace_start"() <{level = 10 : i32, message = "gqd,gkd->gqk"}> : () -> ()
    %cst = arith.constant dense<0.000000e+00> : vector<4x16x16xf32>
    %2 = tpu.matmul %0, %1, %cst {dimension_numbers = #tpu.dot_dimension_numbers<[2], [2], [1], [1], [0, 0, 0, 1, 1, 1], [0], [0]>} : vector<4x16x128xbf16>, vector<4x16x128xbf16>, vector<4x16x16xf32> -> vector<4x16x16xf32>
    "tpu.trace_stop"() : () -> ()
    %cst_5 = arith.constant 0.353553385 : f32
    %3 = vector.broadcast %cst_5 : f32 to vector<4x16x16xf32>
    %4 = arith.mulf %2, %3 : vector<4x16x16xf32>
    %cst_6 = arith.constant dense<0xFF800000> : vector<4x16xf32>
    %5 = vector.multi_reduction <maximumf>, %4, %cst_6 [2] : vector<4x16x16xf32> to vector<4x16xf32>
    %6 = vector.shape_cast %5 : vector<4x16xf32> to vector<4x16x1xf32>
    %7 = vector.broadcast %6 : vector<4x16x1xf32> to vector<4x16x16xf32>
    %8 = arith.subf %4, %7 : vector<4x16x16xf32>
    %9 = math.exp %8 : vector<4x16x16xf32>
    %cst_7 = arith.constant dense<0.000000e+00> : vector<4x16xf32>
    %10 = vector.multi_reduction <add>, %9, %cst_7 [2] : vector<4x16x16xf32> to vector<4x16xf32>
    %11 = vector.shape_cast %10 : vector<4x16xf32> to vector<4x16x1xf32>
    %12 = arith.truncf %9 : vector<4x16x16xf32> to vector<4x16x16xbf16>
    %c0_8 = arith.constant 0 : index
    %c0_9 = arith.constant 0 : index
    %c0_10 = arith.constant 0 : index
    %13 = vector.load %arg4[%c0_8, %c0_9, %c0_10] : memref<4x16x128xbf16, #tpu.memory_space<vmem>>, vector<4x16x128xbf16>
    "tpu.trace_start"() <{level = 10 : i32, message = "gqk,gkd->gqd"}> : () -> ()
    %cst_11 = arith.constant dense<0.000000e+00> : vector<4x16x128xf32>
    %14 = tpu.matmul %12, %13, %cst_11 {dimension_numbers = #tpu.dot_dimension_numbers<[2], [1], [1], [2], [0, 0, 0, 1, 1, 2], [0], [0]>} : vector<4x16x16xbf16>, vector<4x16x128xbf16>, vector<4x16x128xf32> -> vector<4x16x128xf32>
    "tpu.trace_stop"() : () -> ()
    %15 = tpu.reciprocal %11 {approx = true} : vector<4x16x1xf32> -> vector<4x16x1xf32>
    %16 = vector.broadcast %15 : vector<4x16x1xf32> to vector<4x16x128xf32>
    %17 = arith.mulf %14, %16 : vector<4x16x128xf32>
    %18 = arith.truncf %17 : vector<4x16x128xf32> to vector<4x16x128xbf16>
    %c0_12 = arith.constant 0 : index
    %c0_13 = arith.constant 0 : index
    %c0_14 = arith.constant 0 : index
    %19 = vector.load %arg5[%c0_12, %c0_13, %c0_14] : memref<4x16x128xbf16, #tpu.memory_space<vmem>>, vector<4x16x128xbf16>
    tpu.vector_store %arg5[%c0_12, %c0_13, %c0_14], %18 {strides = array<i32>} : memref<4x16x128xbf16, #tpu.memory_space<vmem>>, vector<4x16x128xbf16>,
    return
  }
  func.func @transform_0(%arg0: i32, %arg1: i32) -> (i32, i32, i32) {
    %c0_i32 = arith.constant 0 : i32
    %c0_i32_0 = arith.constant 0 : i32
    return %arg0, %arg1, %c0_i32 : i32, i32, i32
  }
  func.func @transform_1(%arg0: i32, %arg1: i32) -> (i32, i32, i32) {
    %c0_i32 = arith.constant 0 : i32
    %c0_i32_0 = arith.constant 0 : i32
    %c0_i32_1 = arith.constant 0 : i32
    return %arg0, %c0_i32, %c0_i32_0 : i32, i32, i32
  }
  func.func @transform_2(%arg0: i32, %arg1: i32) -> (i32, i32, i32) {
    %c0_i32 = arith.constant 0 : i32
    %c0_i32_0 = arith.constant 0 : i32
    %c0_i32_1 = arith.constant 0 : i32
    return %arg0, %c0_i32, %c0_i32_0 : i32, i32, i32
  }
  func.func @transform_3(%arg0: i32, %arg1: i32) -> (i32, i32, i32) {
    %c0_i32 = arith.constant 0 : i32
    %c0_i32_0 = arith.constant 0 : i32
    return %arg0, %arg1, %c0_i32 : i32, i32, i32
  }
}

module attributes {stable_mosaic.version = 11 : i64} {
  func.func @_linear_kernel(%arg0: i32, %arg1: memref<16x1024xbf16, #tpu.memory_space<vmem>>, %arg2: memref<1024x128xbf16, #tpu.memory_space<vmem>>, %arg3: memref<1x128xf32, #tpu.memory_space<vmem>>, %arg4: memref<16x128xbf16, #tpu.memory_space<vmem>>) attributes {dimension_semantics = [#tpu.dimension_semantics<parallel>], iteration_bounds = array<i64: 2>, scalar_prefetch = 0 : i64, scratch_operands = 0 : i64, tpu.core_type = #tpu.core_type<tc>, window_params = [{transform_indices = @transform_0, window_bounds = array<i64: 16, 1024>}, {pipeline_mode = #tpu.pipeline_mode<synchronous>, transform_indices = @transform_1, window_bounds = array<i64: 1024, 128>}, {pipeline_mode = #tpu.pipeline_mode<synchronous>, transform_indices = @transform_2, window_bounds = array<i64: 1, 128>}, {transform_indices = @transform_3, window_bounds = array<i64: 16, 128>}]} {
    %c0 = arith.constant 0 : index
    %c0_0 = arith.constant 0 : index
    %0 = vector.load %arg1[%c0, %c0_0] : memref<16x1024xbf16, #tpu.memory_space<vmem>>, vector<16x1024xbf16>
    %c0_1 = arith.constant 0 : index
    %c0_2 = arith.constant 0 : index
    %1 = vector.load %arg2[%c0_1, %c0_2] : memref<1024x128xbf16, #tpu.memory_space<vmem>>, vector<1024x128xbf16>
    %cst = arith.constant dense<0.000000e+00> : vector<16x128xf32>
    %2 = tpu.matmul %0, %1, %cst {dimension_numbers = #tpu.dot_dimension_numbers<[1], [0], [0], [1], [0, 0, 1, 1], [], []>} : vector<16x1024xbf16>, vector<1024x128xbf16>, vector<16x128xf32> -> vector<16x128xf32>
    %c0_3 = arith.constant 0 : index
    %c0_4 = arith.constant 0 : index
    %3 = vector.load %arg3[%c0_3, %c0_4] : memref<1x128xf32, #tpu.memory_space<vmem>>, vector<1x128xf32>
    %4 = vector.broadcast %3 : vector<1x128xf32> to vector<16x128xf32>
    %5 = arith.addf %2, %4 : vector<16x128xf32>
    %6 = arith.truncf %5 : vector<16x128xf32> to vector<16x128xbf16>
    %c0_5 = arith.constant 0 : index
    %c0_6 = arith.constant 0 : index
    %7 = vector.load %arg4[%c0_5, %c0_6] : memref<16x128xbf16, #tpu.memory_space<vmem>>, vector<16x128xbf16>
    tpu.vector_store %arg4[%c0_5, %c0_6], %6 {strides = array<i32>} : memref<16x128xbf16, #tpu.memory_space<vmem>>, vector<16x128xbf16>,
    return
  }
  func.func @transform_0(%arg0: i32) -> (i32, i32) {
    %c0_i32 = arith.constant 0 : i32
    %c0_i32_0 = arith.constant 0 : i32
    return %arg0, %c0_i32 : i32, i32
  }
  func.func @transform_1(%arg0: i32) -> (i32, i32) {
    %c0_i32 = arith.constant 0 : i32
    %c0_i32_0 = arith.constant 0 : i32
    %c0_i32_1 = arith.constant 0 : i32
    return %c0_i32, %c0_i32_0 : i32, i32
  }
  func.func @transform_2(%arg0: i32) -> (i32, i32) {
    %c0_i32 = arith.constant 0 : i32
    %c0_i32_0 = arith.constant 0 : i32
    %c0_i32_1 = arith.constant 0 : i32
    return %c0_i32, %c0_i32_0 : i32, i32
  }
  func.func @transform_3(%arg0: i32) -> (i32, i32) {
    %c0_i32 = arith.constant 0 : i32
    %c0_i32_0 = arith.constant 0 : i32
    return %arg0, %c0_i32 : i32, i32
  }
}

module attributes {stable_mosaic.version = 11 : i64} {
  func.func @_mha_out_ln_kernel(%arg0: i32, %arg1: memref<1x4x16x128xbf16, #tpu.memory_space<vmem>>, %arg2: memref<4x128x128xbf16, #tpu.memory_space<vmem>>, %arg3: memref<1x128xf32, #tpu.memory_space<vmem>>, %arg4: memref<1x16x128xbf16, #tpu.memory_space<vmem>>, %arg5: memref<1x128xf32, #tpu.memory_space<vmem>>, %arg6: memref<1x128xf32, #tpu.memory_space<vmem>>, %arg7: memref<1x16x128xbf16, #tpu.memory_space<vmem>>) attributes {dimension_semantics = [#tpu.dimension_semantics<parallel>], iteration_bounds = array<i64: 2>, scalar_prefetch = 0 : i64, scratch_operands = 0 : i64, tpu.core_type = #tpu.core_type<tc>, window_params = [{transform_indices = @transform_0, window_bounds = array<i64: 1, 4, 16, 128>}, {pipeline_mode = #tpu.pipeline_mode<synchronous>, transform_indices = @transform_1, window_bounds = array<i64: 4, 128, 128>}, {pipeline_mode = #tpu.pipeline_mode<synchronous>, transform_indices = @transform_2, window_bounds = array<i64: 1, 128>}, {transform_indices = @transform_3, window_bounds = array<i64: 1, 16, 128>}, {pipeline_mode = #tpu.pipeline_mode<synchronous>, transform_indices = @transform_4, window_bounds = array<i64: 1, 128>}, {pipeline_mode = #tpu.pipeline_mode<synchronous>, transform_indices = @transform_5, window_bounds = array<i64: 1, 128>}, {transform_indices = @transform_6, window_bounds = array<i64: 1, 16, 128>}]} {
    %cst = arith.constant 0.000000e+00 : f32
    %0 = vector.broadcast %cst : f32 to vector<16x128xf32>
    %c0 = arith.constant 0 : index
    %c0_0 = arith.constant 0 : index
    %c0_1 = arith.constant 0 : index
    %c0_2 = arith.constant 0 : index
    %1 = vector.load %arg1[%c0, %c0_0, %c0_1, %c0_2] : memref<1x4x16x128xbf16, #tpu.memory_space<vmem>>, vector<1x1x16x128xbf16>
    %2 = vector.shape_cast %1 : vector<1x1x16x128xbf16> to vector<16x128xbf16>
    %c0_3 = arith.constant 0 : index
    %c0_4 = arith.constant 0 : index
    %c0_5 = arith.constant 0 : index
    %3 = vector.load %arg2[%c0_3, %c0_4, %c0_5] : memref<4x128x128xbf16, #tpu.memory_space<vmem>>, vector<1x128x128xbf16>
    %4 = vector.shape_cast %3 : vector<1x128x128xbf16> to vector<128x128xbf16>
    %cst_6 = arith.constant dense<0.000000e+00> : vector<16x128xf32>
    %5 = tpu.matmul %2, %4, %cst_6 {dimension_numbers = #tpu.dot_dimension_numbers<[1], [0], [0], [1], [0, 0, 1, 1], [], []>} : vector<16x128xbf16>, vector<128x128xbf16>, vector<16x128xf32> -> vector<16x128xf32>
    %6 = arith.addf %0, %5 : vector<16x128xf32>
    %c0_7 = arith.constant 0 : index
    %c1 = arith.constant 1 : index
    %c0_8 = arith.constant 0 : index
    %c0_9 = arith.constant 0 : index
    %7 = vector.load %arg1[%c0_7, %c1, %c0_8, %c0_9] : memref<1x4x16x128xbf16, #tpu.memory_space<vmem>>, vector<1x1x16x128xbf16>
    %8 = vector.shape_cast %7 : vector<1x1x16x128xbf16> to vector<16x128xbf16>
    %c1_10 = arith.constant 1 : index
    %c0_11 = arith.constant 0 : index
    %c0_12 = arith.constant 0 : index
    %9 = vector.load %arg2[%c1_10, %c0_11, %c0_12] : memref<4x128x128xbf16, #tpu.memory_space<vmem>>, vector<1x128x128xbf16>
    %10 = vector.shape_cast %9 : vector<1x128x128xbf16> to vector<128x128xbf16>
    %cst_13 = arith.constant dense<0.000000e+00> : vector<16x128xf32>
    %11 = tpu.matmul %8, %10, %cst_13 {dimension_numbers = #tpu.dot_dimension_numbers<[1], [0], [0], [1], [0, 0, 1, 1], [], []>} : vector<16x128xbf16>, vector<128x128xbf16>, vector<16x128xf32> -> vector<16x128xf32>
    %12 = arith.addf %6, %11 : vector<16x128xf32>
    %c0_14 = arith.constant 0 : index
    %c2 = arith.constant 2 : index
    %c0_15 = arith.constant 0 : index
    %c0_16 = arith.constant 0 : index
    %13 = vector.load %arg1[%c0_14, %c2, %c0_15, %c0_16] : memref<1x4x16x128xbf16, #tpu.memory_space<vmem>>, vector<1x1x16x128xbf16>
    %14 = vector.shape_cast %13 : vector<1x1x16x128xbf16> to vector<16x128xbf16>
    %c2_17 = arith.constant 2 : index
    %c0_18 = arith.constant 0 : index
    %c0_19 = arith.constant 0 : index
    %15 = vector.load %arg2[%c2_17, %c0_18, %c0_19] : memref<4x128x128xbf16, #tpu.memory_space<vmem>>, vector<1x128x128xbf16>
    %16 = vector.shape_cast %15 : vector<1x128x128xbf16> to vector<128x128xbf16>
    %cst_20 = arith.constant dense<0.000000e+00> : vector<16x128xf32>
    %17 = tpu.matmul %14, %16, %cst_20 {dimension_numbers = #tpu.dot_dimension_numbers<[1], [0], [0], [1], [0, 0, 1, 1], [], []>} : vector<16x128xbf16>, vector<128x128xbf16>, vector<16x128xf32> -> vector<16x128xf32>
    %18 = arith.addf %12, %17 : vector<16x128xf32>
    %c0_21 = arith.constant 0 : index
    %c3 = arith.constant 3 : index
    %c0_22 = arith.constant 0 : index
    %c0_23 = arith.constant 0 : index
    %19 = vector.load %arg1[%c0_21, %c3, %c0_22, %c0_23] : memref<1x4x16x128xbf16, #tpu.memory_space<vmem>>, vector<1x1x16x128xbf16>
    %20 = vector.shape_cast %19 : vector<1x1x16x128xbf16> to vector<16x128xbf16>
    %c3_24 = arith.constant 3 : index
    %c0_25 = arith.constant 0 : index
    %c0_26 = arith.constant 0 : index
    %21 = vector.load %arg2[%c3_24, %c0_25, %c0_26] : memref<4x128x128xbf16, #tpu.memory_space<vmem>>, vector<1x128x128xbf16>
    %22 = vector.shape_cast %21 : vector<1x128x128xbf16> to vector<128x128xbf16>
    %cst_27 = arith.constant dense<0.000000e+00> : vector<16x128xf32>
    %23 = tpu.matmul %20, %22, %cst_27 {dimension_numbers = #tpu.dot_dimension_numbers<[1], [0], [0], [1], [0, 0, 1, 1], [], []>} : vector<16x128xbf16>, vector<128x128xbf16>, vector<16x128xf32> -> vector<16x128xf32>
    %24 = arith.addf %18, %23 : vector<16x128xf32>
    %c0_28 = arith.constant 0 : index
    %c0_29 = arith.constant 0 : index
    %25 = vector.load %arg3[%c0_28, %c0_29] : memref<1x128xf32, #tpu.memory_space<vmem>>, vector<1x128xf32>
    %26 = vector.broadcast %25 : vector<1x128xf32> to vector<16x128xf32>
    %27 = arith.addf %24, %26 : vector<16x128xf32>
    %c0_30 = arith.constant 0 : index
    %c0_31 = arith.constant 0 : index
    %c0_32 = arith.constant 0 : index
    %28 = vector.load %arg4[%c0_30, %c0_31, %c0_32] : memref<1x16x128xbf16, #tpu.memory_space<vmem>>, vector<1x16x128xbf16>
    %29 = vector.shape_cast %28 : vector<1x16x128xbf16> to vector<16x128xbf16>
    %30 = arith.extf %29 : vector<16x128xbf16> to vector<16x128xf32>
    %31 = arith.addf %27, %30 : vector<16x128xf32>
    %c0_33 = arith.constant 0 : index
    %c0_34 = arith.constant 0 : index
    %32 = vector.load %arg5[%c0_33, %c0_34] : memref<1x128xf32, #tpu.memory_space<vmem>>, vector<1x128xf32>
    %c0_35 = arith.constant 0 : index
    %c0_36 = arith.constant 0 : index
    %33 = vector.load %arg6[%c0_35, %c0_36] : memref<1x128xf32, #tpu.memory_space<vmem>>, vector<1x128xf32>
    %34 = tpu.iota {dimensions = array<i32: 1>} : vector<16x128xi32>
    %c32_i32 = arith.constant 32 : i32
    %35 = vector.broadcast %c32_i32 : i32 to vector<16x128xi32>
    %36 = arith.cmpi slt, %34, %35 : vector<16x128xi32>
    %cst_37 = arith.constant 0.000000e+00 : f32
    %37 = vector.broadcast %cst_37 : f32 to vector<16x128xf32>
    %38 = arith.select %36, %31, %37 : vector<16x128xi1>, vector<16x128xf32>
    %cst_38 = arith.constant dense<0.000000e+00> : vector<16xf32>
    %39 = vector.multi_reduction <add>, %38, %cst_38 [1] : vector<16x128xf32> to vector<16xf32>
    %40 = vector.shape_cast %39 : vector<16xf32> to vector<16x1xf32>
    %cst_39 = arith.constant 3.125000e-02 : f32
    %41 = vector.broadcast %cst_39 : f32 to vector<16x1xf32>
    %42 = arith.mulf %40, %41 : vector<16x1xf32>
    %43 = vector.broadcast %42 : vector<16x1xf32> to vector<16x128xf32>
    %44 = arith.subf %31, %43 : vector<16x128xf32>
    %cst_40 = arith.constant 0.000000e+00 : f32
    %45 = vector.broadcast %cst_40 : f32 to vector<16x128xf32>
    %46 = arith.select %36, %44, %45 : vector<16x128xi1>, vector<16x128xf32>
    %47 = arith.mulf %46, %46 : vector<16x128xf32>
    %cst_41 = arith.constant dense<0.000000e+00> : vector<16xf32>
    %48 = vector.multi_reduction <add>, %47, %cst_41 [1] : vector<16x128xf32> to vector<16xf32>
    %49 = vector.shape_cast %48 : vector<16xf32> to vector<16x1xf32>
    %cst_42 = arith.constant 3.125000e-02 : f32
    %50 = vector.broadcast %cst_42 : f32 to vector<16x1xf32>
    %51 = arith.mulf %49, %50 : vector<16x1xf32>
    %cst_43 = arith.constant 9.99999974E-6 : f32
    %52 = vector.broadcast %cst_43 : f32 to vector<16x1xf32>
    %53 = arith.addf %51, %52 : vector<16x1xf32>
    %54 = math.rsqrt %53 : vector<16x1xf32>
    %55 = vector.broadcast %54 : vector<16x1xf32> to vector<16x128xf32>
    %56 = arith.mulf %46, %55 : vector<16x128xf32>
    %57 = vector.broadcast %32 : vector<1x128xf32> to vector<16x128xf32>
    %58 = arith.mulf %56, %57 : vector<16x128xf32>
    %59 = vector.broadcast %33 : vector<1x128xf32> to vector<16x128xf32>
    %60 = arith.addf %58, %59 : vector<16x128xf32>
    %61 = arith.truncf %60 : vector<16x128xf32> to vector<16x128xbf16>
    %c0_44 = arith.constant 0 : index
    %c0_45 = arith.constant 0 : index
    %c0_46 = arith.constant 0 : index
    %62 = vector.load %arg7[%c0_44, %c0_45, %c0_46] : memref<1x16x128xbf16, #tpu.memory_space<vmem>>, vector<1x16x128xbf16>
    %63 = vector.shape_cast %62 : vector<1x16x128xbf16> to vector<16x128xbf16>
    %64 = vector.shape_cast %61 : vector<16x128xbf16> to vector<1x16x128xbf16>
    tpu.vector_store %arg7[%c0_44, %c0_45, %c0_46], %64 {strides = array<i32>} : memref<1x16x128xbf16, #tpu.memory_space<vmem>>, vector<1x16x128xbf16>,
    return
  }
  func.func @transform_0(%arg0: i32) -> (i32, i32, i32, i32) {
    %c0_i32 = arith.constant 0 : i32
    %c0_i32_0 = arith.constant 0 : i32
    %c0_i32_1 = arith.constant 0 : i32
    %c0_i32_2 = arith.constant 0 : i32
    return %arg0, %c0_i32, %c0_i32_0, %c0_i32_1 : i32, i32, i32, i32
  }
  func.func @transform_1(%arg0: i32) -> (i32, i32, i32) {
    %c0_i32 = arith.constant 0 : i32
    %c0_i32_0 = arith.constant 0 : i32
    %c0_i32_1 = arith.constant 0 : i32
    %c0_i32_2 = arith.constant 0 : i32
    return %c0_i32, %c0_i32_0, %c0_i32_1 : i32, i32, i32
  }
  func.func @transform_2(%arg0: i32) -> (i32, i32) {
    %c0_i32 = arith.constant 0 : i32
    %c0_i32_0 = arith.constant 0 : i32
    %c0_i32_1 = arith.constant 0 : i32
    return %c0_i32, %c0_i32_0 : i32, i32
  }
  func.func @transform_3(%arg0: i32) -> (i32, i32, i32) {
    %c0_i32 = arith.constant 0 : i32
    %c0_i32_0 = arith.constant 0 : i32
    %c0_i32_1 = arith.constant 0 : i32
    return %arg0, %c0_i32, %c0_i32_0 : i32, i32, i32
  }
  func.func @transform_4(%arg0: i32) -> (i32, i32) {
    %c0_i32 = arith.constant 0 : i32
    %c0_i32_0 = arith.constant 0 : i32
    %c0_i32_1 = arith.constant 0 : i32
    return %c0_i32, %c0_i32_0 : i32, i32
  }
  func.func @transform_5(%arg0: i32) -> (i32, i32) {
    %c0_i32 = arith.constant 0 : i32
    %c0_i32_0 = arith.constant 0 : i32
    %c0_i32_1 = arith.constant 0 : i32
    return %c0_i32, %c0_i32_0 : i32, i32
  }
  func.func @transform_6(%arg0: i32) -> (i32, i32, i32) {
    %c0_i32 = arith.constant 0 : i32
    %c0_i32_0 = arith.constant 0 : i32
    %c0_i32_1 = arith.constant 0 : i32
    return %arg0, %c0_i32, %c0_i32_0 : i32, i32, i32
  }
}

module attributes {stable_mosaic.version = 11 : i64} {
  func.func @_mlp_ln_kernel(%arg0: i32, %arg1: memref<16x128xbf16, #tpu.memory_space<vmem>>, %arg2: memref<128x128xbf16, #tpu.memory_space<vmem>>, %arg3: memref<1x128xf32, #tpu.memory_space<vmem>>, %arg4: memref<128x128xbf16, #tpu.memory_space<vmem>>, %arg5: memref<1x128xf32, #tpu.memory_space<vmem>>, %arg6: memref<1x128xf32, #tpu.memory_space<vmem>>, %arg7: memref<1x128xf32, #tpu.memory_space<vmem>>, %arg8: memref<16x128xbf16, #tpu.memory_space<vmem>>) attributes {dimension_semantics = [#tpu.dimension_semantics<parallel>], iteration_bounds = array<i64: 2>, scalar_prefetch = 0 : i64, scratch_operands = 0 : i64, tpu.core_type = #tpu.core_type<tc>, window_params = [{transform_indices = @transform_0, window_bounds = array<i64: 16, 128>}, {pipeline_mode = #tpu.pipeline_mode<synchronous>, transform_indices = @transform_1, window_bounds = array<i64: 128, 128>}, {pipeline_mode = #tpu.pipeline_mode<synchronous>, transform_indices = @transform_2, window_bounds = array<i64: 1, 128>}, {pipeline_mode = #tpu.pipeline_mode<synchronous>, transform_indices = @transform_3, window_bounds = array<i64: 128, 128>}, {pipeline_mode = #tpu.pipeline_mode<synchronous>, transform_indices = @transform_4, window_bounds = array<i64: 1, 128>}, {pipeline_mode = #tpu.pipeline_mode<synchronous>, transform_indices = @transform_5, window_bounds = array<i64: 1, 128>}, {pipeline_mode = #tpu.pipeline_mode<synchronous>, transform_indices = @transform_6, window_bounds = array<i64: 1, 128>}, {transform_indices = @transform_7, window_bounds = array<i64: 16, 128>}]} {
    %c0 = arith.constant 0 : index
    %c0_0 = arith.constant 0 : index
    %0 = vector.load %arg1[%c0, %c0_0] : memref<16x128xbf16, #tpu.memory_space<vmem>>, vector<16x128xbf16>
    %c0_1 = arith.constant 0 : index
    %c0_2 = arith.constant 0 : index
    %1 = vector.load %arg2[%c0_1, %c0_2] : memref<128x128xbf16, #tpu.memory_space<vmem>>, vector<128x128xbf16>
    %cst = arith.constant dense<0.000000e+00> : vector<16x128xf32>
    %2 = tpu.matmul %0, %1, %cst {dimension_numbers = #tpu.dot_dimension_numbers<[1], [0], [0], [1], [0, 0, 1, 1], [], []>} : vector<16x128xbf16>, vector<128x128xbf16>, vector<16x128xf32> -> vector<16x128xf32>
    %c0_3 = arith.constant 0 : index
    %c0_4 = arith.constant 0 : index
    %3 = vector.load %arg3[%c0_3, %c0_4] : memref<1x128xf32, #tpu.memory_space<vmem>>, vector<1x128xf32>
    %4 = vector.broadcast %3 : vector<1x128xf32> to vector<16x128xf32>
    %5 = arith.addf %2, %4 : vector<16x128xf32>
    %cst_5 = arith.constant 5.000000e-01 : f32
    %6 = vector.broadcast %cst_5 : f32 to vector<16x128xf32>
    %7 = arith.mulf %6, %5 : vector<16x128xf32>
    %cst_6 = arith.constant 0.707106769 : f32
    %8 = vector.broadcast %cst_6 : f32 to vector<16x128xf32>
    %9 = arith.mulf %5, %8 : vector<16x128xf32>
    %cst_7 = arith.constant 0.000000e+00 : f32
    %10 = vector.broadcast %cst_7 : f32 to vector<16x128xf32>
    %11 = arith.cmpf oge, %9, %10 : vector<16x128xf32>
    %cst_8 = arith.constant 1.000000e+00 : f32
    %cst_9 = arith.constant -1.000000e+00 : f32
    %12 = vector.broadcast %cst_8 : f32 to vector<16x128xf32>
    %13 = vector.broadcast %cst_9 : f32 to vector<16x128xf32>
    %14 = arith.select %11, %12, %13 : vector<16x128xi1>, vector<16x128xf32>
    %15 = math.absf %9 : vector<16x128xf32>
    %cst_10 = arith.constant 0.327591091 : f32
    %16 = vector.broadcast %cst_10 : f32 to vector<16x128xf32>
    %17 = arith.mulf %16, %15 : vector<16x128xf32>
    %cst_11 = arith.constant 1.000000e+00 : f32
    %18 = vector.broadcast %cst_11 : f32 to vector<16x128xf32>
    %19 = arith.addf %18, %17 : vector<16x128xf32>
    %cst_12 = arith.constant 1.000000e+00 : f32
    %20 = vector.broadcast %cst_12 : f32 to vector<16x128xf32>
    %21 = arith.divf %20, %19 : vector<16x128xf32>
    %cst_13 = arith.constant 1.06140542 : f32
    %22 = vector.broadcast %cst_13 : f32 to vector<16x128xf32>
    %23 = arith.mulf %22, %21 : vector<16x128xf32>
    %cst_14 = arith.constant -1.45315206 : f32
    %24 = vector.broadcast %cst_14 : f32 to vector<16x128xf32>
    %25 = arith.addf %23, %24 : vector<16x128xf32>
    %26 = arith.mulf %25, %21 : vector<16x128xf32>
    %cst_15 = arith.constant 1.42141378 : f32
    %27 = vector.broadcast %cst_15 : f32 to vector<16x128xf32>
    %28 = arith.addf %26, %27 : vector<16x128xf32>
    %29 = arith.mulf %28, %21 : vector<16x128xf32>
    %cst_16 = arith.constant -0.284496725 : f32
    %30 = vector.broadcast %cst_16 : f32 to vector<16x128xf32>
    %31 = arith.addf %29, %30 : vector<16x128xf32>
    %32 = arith.mulf %31, %21 : vector<16x128xf32>
    %cst_17 = arith.constant 0.254829586 : f32
    %33 = vector.broadcast %cst_17 : f32 to vector<16x128xf32>
    %34 = arith.addf %32, %33 : vector<16x128xf32>
    %35 = arith.mulf %34, %21 : vector<16x128xf32>
    %cst_18 = arith.constant 0.000000e+00 : f32
    %36 = vector.broadcast %cst_18 : f32 to vector<16x128xf32>
    %37 = arith.subf %36, %15 : vector<16x128xf32>
    %38 = arith.mulf %37, %15 : vector<16x128xf32>
    %39 = math.exp %38 : vector<16x128xf32>
    %40 = arith.mulf %35, %39 : vector<16x128xf32>
    %cst_19 = arith.constant 1.000000e+00 : f32
    %41 = vector.broadcast %cst_19 : f32 to vector<16x128xf32>
    %42 = arith.subf %41, %40 : vector<16x128xf32>
    %43 = arith.mulf %14, %42 : vector<16x128xf32>
    %cst_20 = arith.constant 1.000000e+00 : f32
    %44 = vector.broadcast %cst_20 : f32 to vector<16x128xf32>
    %45 = arith.addf %44, %43 : vector<16x128xf32>
    %46 = arith.mulf %7, %45 : vector<16x128xf32>
    %47 = arith.truncf %46 : vector<16x128xf32> to vector<16x128xbf16>
    %c0_21 = arith.constant 0 : index
    %c0_22 = arith.constant 0 : index
    %48 = vector.load %arg4[%c0_21, %c0_22] : memref<128x128xbf16, #tpu.memory_space<vmem>>, vector<128x128xbf16>
    %cst_23 = arith.constant dense<0.000000e+00> : vector<16x128xf32>
    %49 = tpu.matmul %47, %48, %cst_23 {dimension_numbers = #tpu.dot_dimension_numbers<[1], [0], [0], [1], [0, 0, 1, 1], [], []>} : vector<16x128xbf16>, vector<128x128xbf16>, vector<16x128xf32> -> vector<16x128xf32>
    %c0_24 = arith.constant 0 : index
    %c0_25 = arith.constant 0 : index
    %50 = vector.load %arg5[%c0_24, %c0_25] : memref<1x128xf32, #tpu.memory_space<vmem>>, vector<1x128xf32>
    %51 = vector.broadcast %50 : vector<1x128xf32> to vector<16x128xf32>
    %52 = arith.addf %49, %51 : vector<16x128xf32>
    %53 = arith.extf %0 : vector<16x128xbf16> to vector<16x128xf32>
    %54 = arith.addf %52, %53 : vector<16x128xf32>
    %c0_26 = arith.constant 0 : index
    %c0_27 = arith.constant 0 : index
    %55 = vector.load %arg6[%c0_26, %c0_27] : memref<1x128xf32, #tpu.memory_space<vmem>>, vector<1x128xf32>
    %c0_28 = arith.constant 0 : index
    %c0_29 = arith.constant 0 : index
    %56 = vector.load %arg7[%c0_28, %c0_29] : memref<1x128xf32, #tpu.memory_space<vmem>>, vector<1x128xf32>
    %57 = tpu.iota {dimensions = array<i32: 1>} : vector<16x128xi32>
    %c32_i32 = arith.constant 32 : i32
    %58 = vector.broadcast %c32_i32 : i32 to vector<16x128xi32>
    %59 = arith.cmpi slt, %57, %58 : vector<16x128xi32>
    %cst_30 = arith.constant 0.000000e+00 : f32
    %60 = vector.broadcast %cst_30 : f32 to vector<16x128xf32>
    %61 = arith.select %59, %54, %60 : vector<16x128xi1>, vector<16x128xf32>
    %cst_31 = arith.constant dense<0.000000e+00> : vector<16xf32>
    %62 = vector.multi_reduction <add>, %61, %cst_31 [1] : vector<16x128xf32> to vector<16xf32>
    %63 = vector.shape_cast %62 : vector<16xf32> to vector<16x1xf32>
    %cst_32 = arith.constant 3.125000e-02 : f32
    %64 = vector.broadcast %cst_32 : f32 to vector<16x1xf32>
    %65 = arith.mulf %63, %64 : vector<16x1xf32>
    %66 = vector.broadcast %65 : vector<16x1xf32> to vector<16x128xf32>
    %67 = arith.subf %54, %66 : vector<16x128xf32>
    %cst_33 = arith.constant 0.000000e+00 : f32
    %68 = vector.broadcast %cst_33 : f32 to vector<16x128xf32>
    %69 = arith.select %59, %67, %68 : vector<16x128xi1>, vector<16x128xf32>
    %70 = arith.mulf %69, %69 : vector<16x128xf32>
    %cst_34 = arith.constant dense<0.000000e+00> : vector<16xf32>
    %71 = vector.multi_reduction <add>, %70, %cst_34 [1] : vector<16x128xf32> to vector<16xf32>
    %72 = vector.shape_cast %71 : vector<16xf32> to vector<16x1xf32>
    %cst_35 = arith.constant 3.125000e-02 : f32
    %73 = vector.broadcast %cst_35 : f32 to vector<16x1xf32>
    %74 = arith.mulf %72, %73 : vector<16x1xf32>
    %cst_36 = arith.constant 9.99999974E-6 : f32
    %75 = vector.broadcast %cst_36 : f32 to vector<16x1xf32>
    %76 = arith.addf %74, %75 : vector<16x1xf32>
    %77 = math.rsqrt %76 : vector<16x1xf32>
    %78 = vector.broadcast %77 : vector<16x1xf32> to vector<16x128xf32>
    %79 = arith.mulf %69, %78 : vector<16x128xf32>
    %80 = vector.broadcast %55 : vector<1x128xf32> to vector<16x128xf32>
    %81 = arith.mulf %79, %80 : vector<16x128xf32>
    %82 = vector.broadcast %56 : vector<1x128xf32> to vector<16x128xf32>
    %83 = arith.addf %81, %82 : vector<16x128xf32>
    %84 = arith.truncf %83 : vector<16x128xf32> to vector<16x128xbf16>
    %c0_37 = arith.constant 0 : index
    %c0_38 = arith.constant 0 : index
    %85 = vector.load %arg8[%c0_37, %c0_38] : memref<16x128xbf16, #tpu.memory_space<vmem>>, vector<16x128xbf16>
    tpu.vector_store %arg8[%c0_37, %c0_38], %84 {strides = array<i32>} : memref<16x128xbf16, #tpu.memory_space<vmem>>, vector<16x128xbf16>,
    return
  }
  func.func @transform_0(%arg0: i32) -> (i32, i32) {
    %c0_i32 = arith.constant 0 : i32
    %c0_i32_0 = arith.constant 0 : i32
    return %arg0, %c0_i32 : i32, i32
  }
  func.func @transform_1(%arg0: i32) -> (i32, i32) {
    %c0_i32 = arith.constant 0 : i32
    %c0_i32_0 = arith.constant 0 : i32
    %c0_i32_1 = arith.constant 0 : i32
    return %c0_i32, %c0_i32_0 : i32, i32
  }
  func.func @transform_2(%arg0: i32) -> (i32, i32) {
    %c0_i32 = arith.constant 0 : i32
    %c0_i32_0 = arith.constant 0 : i32
    %c0_i32_1 = arith.constant 0 : i32
    return %c0_i32, %c0_i32_0 : i32, i32
  }
  func.func @transform_3(%arg0: i32) -> (i32, i32) {
    %c0_i32 = arith.constant 0 : i32
    %c0_i32_0 = arith.constant 0 : i32
    %c0_i32_1 = arith.constant 0 : i32
    return %c0_i32, %c0_i32_0 : i32, i32
  }
  func.func @transform_4(%arg0: i32) -> (i32, i32) {
    %c0_i32 = arith.constant 0 : i32
    %c0_i32_0 = arith.constant 0 : i32
    %c0_i32_1 = arith.constant 0 : i32
    return %c0_i32, %c0_i32_0 : i32, i32
  }
  func.func @transform_5(%arg0: i32) -> (i32, i32) {
    %c0_i32 = arith.constant 0 : i32
    %c0_i32_0 = arith.constant 0 : i32
    %c0_i32_1 = arith.constant 0 : i32
    return %c0_i32, %c0_i32_0 : i32, i32
  }
  func.func @transform_6(%arg0: i32) -> (i32, i32) {
    %c0_i32 = arith.constant 0 : i32
    %c0_i32_0 = arith.constant 0 : i32
    %c0_i32_1 = arith.constant 0 : i32
    return %c0_i32, %c0_i32_0 : i32, i32
  }
  func.func @transform_7(%arg0: i32) -> (i32, i32) {
    %c0_i32 = arith.constant 0 : i32
    %c0_i32_0 = arith.constant 0 : i32
    return %arg0, %c0_i32 : i32, i32
  }
}

module attributes {stable_mosaic.version = 11 : i64} {
  func.func @_linear_kernel(%arg0: i32, %arg1: memref<64x512xbf16, #tpu.memory_space<vmem>>, %arg2: memref<512x128xbf16, #tpu.memory_space<vmem>>, %arg3: memref<1x128xf32, #tpu.memory_space<vmem>>, %arg4: memref<64x128xbf16, #tpu.memory_space<vmem>>) attributes {dimension_semantics = [#tpu.dimension_semantics<parallel>], iteration_bounds = array<i64: 2>, scalar_prefetch = 0 : i64, scratch_operands = 0 : i64, tpu.core_type = #tpu.core_type<tc>, window_params = [{transform_indices = @transform_0, window_bounds = array<i64: 64, 512>}, {pipeline_mode = #tpu.pipeline_mode<synchronous>, transform_indices = @transform_1, window_bounds = array<i64: 512, 128>}, {pipeline_mode = #tpu.pipeline_mode<synchronous>, transform_indices = @transform_2, window_bounds = array<i64: 1, 128>}, {transform_indices = @transform_3, window_bounds = array<i64: 64, 128>}]} {
    %c0 = arith.constant 0 : index
    %c0_0 = arith.constant 0 : index
    %0 = vector.load %arg1[%c0, %c0_0] : memref<64x512xbf16, #tpu.memory_space<vmem>>, vector<64x512xbf16>
    %c0_1 = arith.constant 0 : index
    %c0_2 = arith.constant 0 : index
    %1 = vector.load %arg2[%c0_1, %c0_2] : memref<512x128xbf16, #tpu.memory_space<vmem>>, vector<512x128xbf16>
    %cst = arith.constant dense<0.000000e+00> : vector<64x128xf32>
    %2 = tpu.matmul %0, %1, %cst {dimension_numbers = #tpu.dot_dimension_numbers<[1], [0], [0], [1], [0, 0, 1, 1], [], []>} : vector<64x512xbf16>, vector<512x128xbf16>, vector<64x128xf32> -> vector<64x128xf32>
    %c0_3 = arith.constant 0 : index
    %c0_4 = arith.constant 0 : index
    %3 = vector.load %arg3[%c0_3, %c0_4] : memref<1x128xf32, #tpu.memory_space<vmem>>, vector<1x128xf32>
    %4 = vector.broadcast %3 : vector<1x128xf32> to vector<64x128xf32>
    %5 = arith.addf %2, %4 : vector<64x128xf32>
    %6 = arith.truncf %5 : vector<64x128xf32> to vector<64x128xbf16>
    %c0_5 = arith.constant 0 : index
    %c0_6 = arith.constant 0 : index
    %7 = vector.load %arg4[%c0_5, %c0_6] : memref<64x128xbf16, #tpu.memory_space<vmem>>, vector<64x128xbf16>
    tpu.vector_store %arg4[%c0_5, %c0_6], %6 {strides = array<i32>} : memref<64x128xbf16, #tpu.memory_space<vmem>>, vector<64x128xbf16>,
    return
  }
  func.func @transform_0(%arg0: i32) -> (i32, i32) {
    %c0_i32 = arith.constant 0 : i32
    %c0_i32_0 = arith.constant 0 : i32
    return %arg0, %c0_i32 : i32, i32
  }
  func.func @transform_1(%arg0: i32) -> (i32, i32) {
    %c0_i32 = arith.constant 0 : i32
    %c0_i32_0 = arith.constant 0 : i32
    %c0_i32_1 = arith.constant 0 : i32
    return %c0_i32, %c0_i32_0 : i32, i32
  }
  func.func @transform_2(%arg0: i32) -> (i32, i32) {
    %c0_i32 = arith.constant 0 : i32
    %c0_i32_0 = arith.constant 0 : i32
    %c0_i32_1 = arith.constant 0 : i32
    return %c0_i32, %c0_i32_0 : i32, i32
  }
  func.func @transform_3(%arg0: i32) -> (i32, i32) {
    %c0_i32 = arith.constant 0 : i32
    %c0_i32_0 = arith.constant 0 : i32
    return %arg0, %c0_i32 : i32, i32
  }
}

module attributes {stable_mosaic.version = 11 : i64} {
  func.func @_attn_single_kernel(%arg0: i32, %arg1: i32, %arg2: memref<1x64x128xbf16, #tpu.memory_space<vmem>>, %arg3: memref<1x64x128xbf16, #tpu.memory_space<vmem>>, %arg4: memref<1x64x128xbf16, #tpu.memory_space<vmem>>, %arg5: memref<1x64x128xbf16, #tpu.memory_space<vmem>>) attributes {dimension_semantics = [#tpu.dimension_semantics<parallel>, #tpu.dimension_semantics<parallel>], iteration_bounds = array<i64: 2, 1>, scalar_prefetch = 0 : i64, scratch_operands = 0 : i64, tpu.core_type = #tpu.core_type<tc>, window_params = [{transform_indices = @transform_0, window_bounds = array<i64: 1, 64, 128>}, {transform_indices = @transform_1, window_bounds = array<i64: 1, 64, 128>}, {transform_indices = @transform_2, window_bounds = array<i64: 1, 64, 128>}, {transform_indices = @transform_3, window_bounds = array<i64: 1, 64, 128>}]} {
    %c0 = arith.constant 0 : index
    %c0_0 = arith.constant 0 : index
    %c0_1 = arith.constant 0 : index
    %0 = vector.load %arg2[%c0, %c0_0, %c0_1] : memref<1x64x128xbf16, #tpu.memory_space<vmem>>, vector<1x64x128xbf16>
    %c0_2 = arith.constant 0 : index
    %c0_3 = arith.constant 0 : index
    %c0_4 = arith.constant 0 : index
    %1 = vector.load %arg3[%c0_2, %c0_3, %c0_4] : memref<1x64x128xbf16, #tpu.memory_space<vmem>>, vector<1x64x128xbf16>
    "tpu.trace_start"() <{level = 10 : i32, message = "gqd,gkd->gqk"}> : () -> ()
    %cst = arith.constant dense<0.000000e+00> : vector<1x64x64xf32>
    %2 = tpu.matmul %0, %1, %cst {dimension_numbers = #tpu.dot_dimension_numbers<[2], [2], [1], [1], [0, 0, 0, 1, 1, 1], [0], [0]>} : vector<1x64x128xbf16>, vector<1x64x128xbf16>, vector<1x64x64xf32> -> vector<1x64x64xf32>
    "tpu.trace_stop"() : () -> ()
    %cst_5 = arith.constant 0.353553385 : f32
    %3 = vector.broadcast %cst_5 : f32 to vector<1x64x64xf32>
    %4 = arith.mulf %2, %3 : vector<1x64x64xf32>
    %cst_6 = arith.constant dense<0xFF800000> : vector<1x64xf32>
    %5 = vector.multi_reduction <maximumf>, %4, %cst_6 [2] : vector<1x64x64xf32> to vector<1x64xf32>
    %6 = vector.shape_cast %5 : vector<1x64xf32> to vector<1x64x1xf32>
    %7 = vector.broadcast %6 : vector<1x64x1xf32> to vector<1x64x64xf32>
    %8 = arith.subf %4, %7 : vector<1x64x64xf32>
    %9 = math.exp %8 : vector<1x64x64xf32>
    %cst_7 = arith.constant dense<0.000000e+00> : vector<1x64xf32>
    %10 = vector.multi_reduction <add>, %9, %cst_7 [2] : vector<1x64x64xf32> to vector<1x64xf32>
    %11 = vector.shape_cast %10 : vector<1x64xf32> to vector<1x64x1xf32>
    %12 = arith.truncf %9 : vector<1x64x64xf32> to vector<1x64x64xbf16>
    %c0_8 = arith.constant 0 : index
    %c0_9 = arith.constant 0 : index
    %c0_10 = arith.constant 0 : index
    %13 = vector.load %arg4[%c0_8, %c0_9, %c0_10] : memref<1x64x128xbf16, #tpu.memory_space<vmem>>, vector<1x64x128xbf16>
    "tpu.trace_start"() <{level = 10 : i32, message = "gqk,gkd->gqd"}> : () -> ()
    %cst_11 = arith.constant dense<0.000000e+00> : vector<1x64x128xf32>
    %14 = tpu.matmul %12, %13, %cst_11 {dimension_numbers = #tpu.dot_dimension_numbers<[2], [1], [1], [2], [0, 0, 0, 1, 1, 2], [0], [0]>} : vector<1x64x64xbf16>, vector<1x64x128xbf16>, vector<1x64x128xf32> -> vector<1x64x128xf32>
    "tpu.trace_stop"() : () -> ()
    %15 = tpu.reciprocal %11 {approx = true} : vector<1x64x1xf32> -> vector<1x64x1xf32>
    %16 = vector.broadcast %15 : vector<1x64x1xf32> to vector<1x64x128xf32>
    %17 = arith.mulf %14, %16 : vector<1x64x128xf32>
    %18 = arith.truncf %17 : vector<1x64x128xf32> to vector<1x64x128xbf16>
    %c0_12 = arith.constant 0 : index
    %c0_13 = arith.constant 0 : index
    %c0_14 = arith.constant 0 : index
    %19 = vector.load %arg5[%c0_12, %c0_13, %c0_14] : memref<1x64x128xbf16, #tpu.memory_space<vmem>>, vector<1x64x128xbf16>
    tpu.vector_store %arg5[%c0_12, %c0_13, %c0_14], %18 {strides = array<i32>} : memref<1x64x128xbf16, #tpu.memory_space<vmem>>, vector<1x64x128xbf16>,
    return
  }
  func.func @transform_0(%arg0: i32, %arg1: i32) -> (i32, i32, i32) {
    %c0_i32 = arith.constant 0 : i32
    %c0_i32_0 = arith.constant 0 : i32
    return %arg0, %arg1, %c0_i32 : i32, i32, i32
  }
  func.func @transform_1(%arg0: i32, %arg1: i32) -> (i32, i32, i32) {
    %c0_i32 = arith.constant 0 : i32
    %c0_i32_0 = arith.constant 0 : i32
    %c0_i32_1 = arith.constant 0 : i32
    return %arg0, %c0_i32, %c0_i32_0 : i32, i32, i32
  }
  func.func @transform_2(%arg0: i32, %arg1: i32) -> (i32, i32, i32) {
    %c0_i32 = arith.constant 0 : i32
    %c0_i32_0 = arith.constant 0 : i32
    %c0_i32_1 = arith.constant 0 : i32
    return %arg0, %c0_i32, %c0_i32_0 : i32, i32, i32
  }
  func.func @transform_3(%arg0: i32, %arg1: i32) -> (i32, i32, i32) {
    %c0_i32 = arith.constant 0 : i32
    %c0_i32_0 = arith.constant 0 : i32
    return %arg0, %arg1, %c0_i32 : i32, i32, i32
  }
}

module attributes {stable_mosaic.version = 11 : i64} {
  func.func @_linear_ln_kernel(%arg0: i32, %arg1: memref<64x128xbf16, #tpu.memory_space<vmem>>, %arg2: memref<128x128xbf16, #tpu.memory_space<vmem>>, %arg3: memref<1x128xf32, #tpu.memory_space<vmem>>, %arg4: memref<64x128xbf16, #tpu.memory_space<vmem>>, %arg5: memref<1x128xf32, #tpu.memory_space<vmem>>, %arg6: memref<1x128xf32, #tpu.memory_space<vmem>>, %arg7: memref<64x128xbf16, #tpu.memory_space<vmem>>) attributes {dimension_semantics = [#tpu.dimension_semantics<parallel>], iteration_bounds = array<i64: 2>, scalar_prefetch = 0 : i64, scratch_operands = 0 : i64, tpu.core_type = #tpu.core_type<tc>, window_params = [{transform_indices = @transform_0, window_bounds = array<i64: 64, 128>}, {pipeline_mode = #tpu.pipeline_mode<synchronous>, transform_indices = @transform_1, window_bounds = array<i64: 128, 128>}, {pipeline_mode = #tpu.pipeline_mode<synchronous>, transform_indices = @transform_2, window_bounds = array<i64: 1, 128>}, {transform_indices = @transform_3, window_bounds = array<i64: 64, 128>}, {pipeline_mode = #tpu.pipeline_mode<synchronous>, transform_indices = @transform_4, window_bounds = array<i64: 1, 128>}, {pipeline_mode = #tpu.pipeline_mode<synchronous>, transform_indices = @transform_5, window_bounds = array<i64: 1, 128>}, {transform_indices = @transform_6, window_bounds = array<i64: 64, 128>}]} {
    %c0 = arith.constant 0 : index
    %c0_0 = arith.constant 0 : index
    %0 = vector.load %arg1[%c0, %c0_0] : memref<64x128xbf16, #tpu.memory_space<vmem>>, vector<64x128xbf16>
    %c0_1 = arith.constant 0 : index
    %c0_2 = arith.constant 0 : index
    %1 = vector.load %arg2[%c0_1, %c0_2] : memref<128x128xbf16, #tpu.memory_space<vmem>>, vector<128x128xbf16>
    %cst = arith.constant dense<0.000000e+00> : vector<64x128xf32>
    %2 = tpu.matmul %0, %1, %cst {dimension_numbers = #tpu.dot_dimension_numbers<[1], [0], [0], [1], [0, 0, 1, 1], [], []>} : vector<64x128xbf16>, vector<128x128xbf16>, vector<64x128xf32> -> vector<64x128xf32>
    %c0_3 = arith.constant 0 : index
    %c0_4 = arith.constant 0 : index
    %3 = vector.load %arg3[%c0_3, %c0_4] : memref<1x128xf32, #tpu.memory_space<vmem>>, vector<1x128xf32>
    %4 = vector.broadcast %3 : vector<1x128xf32> to vector<64x128xf32>
    %5 = arith.addf %2, %4 : vector<64x128xf32>
    %c0_5 = arith.constant 0 : index
    %c0_6 = arith.constant 0 : index
    %6 = vector.load %arg4[%c0_5, %c0_6] : memref<64x128xbf16, #tpu.memory_space<vmem>>, vector<64x128xbf16>
    %7 = arith.extf %6 : vector<64x128xbf16> to vector<64x128xf32>
    %8 = arith.addf %5, %7 : vector<64x128xf32>
    %c0_7 = arith.constant 0 : index
    %c0_8 = arith.constant 0 : index
    %9 = vector.load %arg5[%c0_7, %c0_8] : memref<1x128xf32, #tpu.memory_space<vmem>>, vector<1x128xf32>
    %c0_9 = arith.constant 0 : index
    %c0_10 = arith.constant 0 : index
    %10 = vector.load %arg6[%c0_9, %c0_10] : memref<1x128xf32, #tpu.memory_space<vmem>>, vector<1x128xf32>
    %11 = tpu.iota {dimensions = array<i32: 1>} : vector<64x128xi32>
    %c32_i32 = arith.constant 32 : i32
    %12 = vector.broadcast %c32_i32 : i32 to vector<64x128xi32>
    %13 = arith.cmpi slt, %11, %12 : vector<64x128xi32>
    %cst_11 = arith.constant 0.000000e+00 : f32
    %14 = vector.broadcast %cst_11 : f32 to vector<64x128xf32>
    %15 = arith.select %13, %8, %14 : vector<64x128xi1>, vector<64x128xf32>
    %cst_12 = arith.constant dense<0.000000e+00> : vector<64xf32>
    %16 = vector.multi_reduction <add>, %15, %cst_12 [1] : vector<64x128xf32> to vector<64xf32>
    %17 = vector.shape_cast %16 : vector<64xf32> to vector<64x1xf32>
    %cst_13 = arith.constant 3.125000e-02 : f32
    %18 = vector.broadcast %cst_13 : f32 to vector<64x1xf32>
    %19 = arith.mulf %17, %18 : vector<64x1xf32>
    %20 = vector.broadcast %19 : vector<64x1xf32> to vector<64x128xf32>
    %21 = arith.subf %8, %20 : vector<64x128xf32>
    %cst_14 = arith.constant 0.000000e+00 : f32
    %22 = vector.broadcast %cst_14 : f32 to vector<64x128xf32>
    %23 = arith.select %13, %21, %22 : vector<64x128xi1>, vector<64x128xf32>
    %24 = arith.mulf %23, %23 : vector<64x128xf32>
    %cst_15 = arith.constant dense<0.000000e+00> : vector<64xf32>
    %25 = vector.multi_reduction <add>, %24, %cst_15 [1] : vector<64x128xf32> to vector<64xf32>
    %26 = vector.shape_cast %25 : vector<64xf32> to vector<64x1xf32>
    %cst_16 = arith.constant 3.125000e-02 : f32
    %27 = vector.broadcast %cst_16 : f32 to vector<64x1xf32>
    %28 = arith.mulf %26, %27 : vector<64x1xf32>
    %cst_17 = arith.constant 9.99999974E-6 : f32
    %29 = vector.broadcast %cst_17 : f32 to vector<64x1xf32>
    %30 = arith.addf %28, %29 : vector<64x1xf32>
    %31 = math.rsqrt %30 : vector<64x1xf32>
    %32 = vector.broadcast %31 : vector<64x1xf32> to vector<64x128xf32>
    %33 = arith.mulf %23, %32 : vector<64x128xf32>
    %34 = vector.broadcast %9 : vector<1x128xf32> to vector<64x128xf32>
    %35 = arith.mulf %33, %34 : vector<64x128xf32>
    %36 = vector.broadcast %10 : vector<1x128xf32> to vector<64x128xf32>
    %37 = arith.addf %35, %36 : vector<64x128xf32>
    %38 = arith.truncf %37 : vector<64x128xf32> to vector<64x128xbf16>
    %c0_18 = arith.constant 0 : index
    %c0_19 = arith.constant 0 : index
    %39 = vector.load %arg7[%c0_18, %c0_19] : memref<64x128xbf16, #tpu.memory_space<vmem>>, vector<64x128xbf16>
    tpu.vector_store %arg7[%c0_18, %c0_19], %38 {strides = array<i32>} : memref<64x128xbf16, #tpu.memory_space<vmem>>, vector<64x128xbf16>,
    return
  }
  func.func @transform_0(%arg0: i32) -> (i32, i32) {
    %c0_i32 = arith.constant 0 : i32
    %c0_i32_0 = arith.constant 0 : i32
    return %arg0, %c0_i32 : i32, i32
  }
  func.func @transform_1(%arg0: i32) -> (i32, i32) {
    %c0_i32 = arith.constant 0 : i32
    %c0_i32_0 = arith.constant 0 : i32
    %c0_i32_1 = arith.constant 0 : i32
    return %c0_i32, %c0_i32_0 : i32, i32
  }
  func.func @transform_2(%arg0: i32) -> (i32, i32) {
    %c0_i32 = arith.constant 0 : i32
    %c0_i32_0 = arith.constant 0 : i32
    %c0_i32_1 = arith.constant 0 : i32
    return %c0_i32, %c0_i32_0 : i32, i32
  }
  func.func @transform_3(%arg0: i32) -> (i32, i32) {
    %c0_i32 = arith.constant 0 : i32
    %c0_i32_0 = arith.constant 0 : i32
    return %arg0, %c0_i32 : i32, i32
  }
  func.func @transform_4(%arg0: i32) -> (i32, i32) {
    %c0_i32 = arith.constant 0 : i32
    %c0_i32_0 = arith.constant 0 : i32
    %c0_i32_1 = arith.constant 0 : i32
    return %c0_i32, %c0_i32_0 : i32, i32
  }
  func.func @transform_5(%arg0: i32) -> (i32, i32) {
    %c0_i32 = arith.constant 0 : i32
    %c0_i32_0 = arith.constant 0 : i32
    %c0_i32_1 = arith.constant 0 : i32
    return %c0_i32, %c0_i32_0 : i32, i32
  }
  func.func @transform_6(%arg0: i32) -> (i32, i32) {
    %c0_i32 = arith.constant 0 : i32
    %c0_i32_0 = arith.constant 0 : i32
    return %arg0, %c0_i32 : i32, i32
  }
}

module attributes {stable_mosaic.version = 11 : i64} {
  func.func @_cga_qkv_kernel(%arg0: i32, %arg1: memref<64x128xbf16, #tpu.memory_space<vmem>>, %arg2: memref<64x128xbf16, #tpu.memory_space<vmem>>, %arg3: memref<128x128xbf16, #tpu.memory_space<vmem>>, %arg4: memref<1x128xf32, #tpu.memory_space<vmem>>, %arg5: memref<128x128xbf16, #tpu.memory_space<vmem>>, %arg6: memref<1x128xf32, #tpu.memory_space<vmem>>, %arg7: memref<128x128xbf16, #tpu.memory_space<vmem>>, %arg8: memref<1x128xf32, #tpu.memory_space<vmem>>, %arg9: memref<64x128xbf16, #tpu.memory_space<vmem>>, %arg10: memref<64x128xbf16, #tpu.memory_space<vmem>>, %arg11: memref<64x128xbf16, #tpu.memory_space<vmem>>) attributes {dimension_semantics = [#tpu.dimension_semantics<parallel>], iteration_bounds = array<i64: 2>, scalar_prefetch = 0 : i64, scratch_operands = 0 : i64, tpu.core_type = #tpu.core_type<tc>, window_params = [{transform_indices = @transform_0, window_bounds = array<i64: 64, 128>}, {transform_indices = @transform_1, window_bounds = array<i64: 64, 128>}, {pipeline_mode = #tpu.pipeline_mode<synchronous>, transform_indices = @transform_2, window_bounds = array<i64: 128, 128>}, {pipeline_mode = #tpu.pipeline_mode<synchronous>, transform_indices = @transform_3, window_bounds = array<i64: 1, 128>}, {pipeline_mode = #tpu.pipeline_mode<synchronous>, transform_indices = @transform_4, window_bounds = array<i64: 128, 128>}, {pipeline_mode = #tpu.pipeline_mode<synchronous>, transform_indices = @transform_5, window_bounds = array<i64: 1, 128>}, {pipeline_mode = #tpu.pipeline_mode<synchronous>, transform_indices = @transform_6, window_bounds = array<i64: 128, 128>}, {pipeline_mode = #tpu.pipeline_mode<synchronous>, transform_indices = @transform_7, window_bounds = array<i64: 1, 128>}, {transform_indices = @transform_8, window_bounds = array<i64: 64, 128>}, {transform_indices = @transform_9, window_bounds = array<i64: 64, 128>}, {transform_indices = @transform_10, window_bounds = array<i64: 64, 128>}]} {
    %c0 = arith.constant 0 : index
    %c0_0 = arith.constant 0 : index
    %0 = vector.load %arg1[%c0, %c0_0] : memref<64x128xbf16, #tpu.memory_space<vmem>>, vector<64x128xbf16>
    %c0_1 = arith.constant 0 : index
    %c0_2 = arith.constant 0 : index
    %1 = vector.load %arg2[%c0_1, %c0_2] : memref<64x128xbf16, #tpu.memory_space<vmem>>, vector<64x128xbf16>
    %c0_3 = arith.constant 0 : index
    %c0_4 = arith.constant 0 : index
    %2 = vector.load %arg3[%c0_3, %c0_4] : memref<128x128xbf16, #tpu.memory_space<vmem>>, vector<128x128xbf16>
    %cst = arith.constant dense<0.000000e+00> : vector<64x128xf32>
    %3 = tpu.matmul %0, %2, %cst {dimension_numbers = #tpu.dot_dimension_numbers<[1], [0], [0], [1], [0, 0, 1, 1], [], []>} : vector<64x128xbf16>, vector<128x128xbf16>, vector<64x128xf32> -> vector<64x128xf32>
    %c0_5 = arith.constant 0 : index
    %c0_6 = arith.constant 0 : index
    %4 = vector.load %arg4[%c0_5, %c0_6] : memref<1x128xf32, #tpu.memory_space<vmem>>, vector<1x128xf32>
    %5 = vector.broadcast %4 : vector<1x128xf32> to vector<64x128xf32>
    %6 = arith.addf %3, %5 : vector<64x128xf32>
    %c0_7 = arith.constant 0 : index
    %c0_8 = arith.constant 0 : index
    %7 = vector.load %arg5[%c0_7, %c0_8] : memref<128x128xbf16, #tpu.memory_space<vmem>>, vector<128x128xbf16>
    %cst_9 = arith.constant dense<0.000000e+00> : vector<64x128xf32>
    %8 = tpu.matmul %1, %7, %cst_9 {dimension_numbers = #tpu.dot_dimension_numbers<[1], [0], [0], [1], [0, 0, 1, 1], [], []>} : vector<64x128xbf16>, vector<128x128xbf16>, vector<64x128xf32> -> vector<64x128xf32>
    %c0_10 = arith.constant 0 : index
    %c0_11 = arith.constant 0 : index
    %9 = vector.load %arg6[%c0_10, %c0_11] : memref<1x128xf32, #tpu.memory_space<vmem>>, vector<1x128xf32>
    %10 = vector.broadcast %9 : vector<1x128xf32> to vector<64x128xf32>
    %11 = arith.addf %8, %10 : vector<64x128xf32>
    %c0_12 = arith.constant 0 : index
    %c0_13 = arith.constant 0 : index
    %12 = vector.load %arg7[%c0_12, %c0_13] : memref<128x128xbf16, #tpu.memory_space<vmem>>, vector<128x128xbf16>
    %cst_14 = arith.constant dense<0.000000e+00> : vector<64x128xf32>
    %13 = tpu.matmul %1, %12, %cst_14 {dimension_numbers = #tpu.dot_dimension_numbers<[1], [0], [0], [1], [0, 0, 1, 1], [], []>} : vector<64x128xbf16>, vector<128x128xbf16>, vector<64x128xf32> -> vector<64x128xf32>
    %c0_15 = arith.constant 0 : index
    %c0_16 = arith.constant 0 : index
    %14 = vector.load %arg8[%c0_15, %c0_16] : memref<1x128xf32, #tpu.memory_space<vmem>>, vector<1x128xf32>
    %15 = vector.broadcast %14 : vector<1x128xf32> to vector<64x128xf32>
    %16 = arith.addf %13, %15 : vector<64x128xf32>
    %17 = arith.truncf %6 : vector<64x128xf32> to vector<64x128xbf16>
    %c0_17 = arith.constant 0 : index
    %c0_18 = arith.constant 0 : index
    %18 = vector.load %arg9[%c0_17, %c0_18] : memref<64x128xbf16, #tpu.memory_space<vmem>>, vector<64x128xbf16>
    tpu.vector_store %arg9[%c0_17, %c0_18], %17 {strides = array<i32>} : memref<64x128xbf16, #tpu.memory_space<vmem>>, vector<64x128xbf16>,
    %19 = arith.truncf %11 : vector<64x128xf32> to vector<64x128xbf16>
    %c0_19 = arith.constant 0 : index
    %c0_20 = arith.constant 0 : index
    %20 = vector.load %arg10[%c0_19, %c0_20] : memref<64x128xbf16, #tpu.memory_space<vmem>>, vector<64x128xbf16>
    tpu.vector_store %arg10[%c0_19, %c0_20], %19 {strides = array<i32>} : memref<64x128xbf16, #tpu.memory_space<vmem>>, vector<64x128xbf16>,
    %21 = arith.truncf %16 : vector<64x128xf32> to vector<64x128xbf16>
    %c0_21 = arith.constant 0 : index
    %c0_22 = arith.constant 0 : index
    %22 = vector.load %arg11[%c0_21, %c0_22] : memref<64x128xbf16, #tpu.memory_space<vmem>>, vector<64x128xbf16>
    tpu.vector_store %arg11[%c0_21, %c0_22], %21 {strides = array<i32>} : memref<64x128xbf16, #tpu.memory_space<vmem>>, vector<64x128xbf16>,
    return
  }
  func.func @transform_0(%arg0: i32) -> (i32, i32) {
    %c0_i32 = arith.constant 0 : i32
    %c0_i32_0 = arith.constant 0 : i32
    return %arg0, %c0_i32 : i32, i32
  }
  func.func @transform_1(%arg0: i32) -> (i32, i32) {
    %c0_i32 = arith.constant 0 : i32
    %c0_i32_0 = arith.constant 0 : i32
    return %arg0, %c0_i32 : i32, i32
  }
  func.func @transform_2(%arg0: i32) -> (i32, i32) {
    %c0_i32 = arith.constant 0 : i32
    %c0_i32_0 = arith.constant 0 : i32
    %c0_i32_1 = arith.constant 0 : i32
    return %c0_i32, %c0_i32_0 : i32, i32
  }
  func.func @transform_3(%arg0: i32) -> (i32, i32) {
    %c0_i32 = arith.constant 0 : i32
    %c0_i32_0 = arith.constant 0 : i32
    %c0_i32_1 = arith.constant 0 : i32
    return %c0_i32, %c0_i32_0 : i32, i32
  }
  func.func @transform_4(%arg0: i32) -> (i32, i32) {
    %c0_i32 = arith.constant 0 : i32
    %c0_i32_0 = arith.constant 0 : i32
    %c0_i32_1 = arith.constant 0 : i32
    return %c0_i32, %c0_i32_0 : i32, i32
  }
  func.func @transform_5(%arg0: i32) -> (i32, i32) {
    %c0_i32 = arith.constant 0 : i32
    %c0_i32_0 = arith.constant 0 : i32
    %c0_i32_1 = arith.constant 0 : i32
    return %c0_i32, %c0_i32_0 : i32, i32
  }
  func.func @transform_6(%arg0: i32) -> (i32, i32) {
    %c0_i32 = arith.constant 0 : i32
    %c0_i32_0 = arith.constant 0 : i32
    %c0_i32_1 = arith.constant 0 : i32
    return %c0_i32, %c0_i32_0 : i32, i32
  }
  func.func @transform_7(%arg0: i32) -> (i32, i32) {
    %c0_i32 = arith.constant 0 : i32
    %c0_i32_0 = arith.constant 0 : i32
    %c0_i32_1 = arith.constant 0 : i32
    return %c0_i32, %c0_i32_0 : i32, i32
  }
  func.func @transform_8(%arg0: i32) -> (i32, i32) {
    %c0_i32 = arith.constant 0 : i32
    %c0_i32_0 = arith.constant 0 : i32
    return %arg0, %c0_i32 : i32, i32
  }
  func.func @transform_9(%arg0: i32) -> (i32, i32) {
    %c0_i32 = arith.constant 0 : i32
    %c0_i32_0 = arith.constant 0 : i32
    return %arg0, %c0_i32 : i32, i32
  }
  func.func @transform_10(%arg0: i32) -> (i32, i32) {
    %c0_i32 = arith.constant 0 : i32
    %c0_i32_0 = arith.constant 0 : i32
    return %arg0, %c0_i32 : i32, i32
  }
}

module attributes {stable_mosaic.version = 11 : i64} {
  func.func @_linear_kernel(%arg0: i32, %arg1: memref<256x256xbf16, #tpu.memory_space<vmem>>, %arg2: memref<256x128xbf16, #tpu.memory_space<vmem>>, %arg3: memref<1x128xf32, #tpu.memory_space<vmem>>, %arg4: memref<256x128xbf16, #tpu.memory_space<vmem>>) attributes {dimension_semantics = [#tpu.dimension_semantics<parallel>], iteration_bounds = array<i64: 2>, scalar_prefetch = 0 : i64, scratch_operands = 0 : i64, tpu.core_type = #tpu.core_type<tc>, window_params = [{transform_indices = @transform_0, window_bounds = array<i64: 256, 256>}, {pipeline_mode = #tpu.pipeline_mode<synchronous>, transform_indices = @transform_1, window_bounds = array<i64: 256, 128>}, {pipeline_mode = #tpu.pipeline_mode<synchronous>, transform_indices = @transform_2, window_bounds = array<i64: 1, 128>}, {transform_indices = @transform_3, window_bounds = array<i64: 256, 128>}]} {
    %c0 = arith.constant 0 : index
    %c0_0 = arith.constant 0 : index
    %0 = vector.load %arg1[%c0, %c0_0] : memref<256x256xbf16, #tpu.memory_space<vmem>>, vector<256x256xbf16>
    %c0_1 = arith.constant 0 : index
    %c0_2 = arith.constant 0 : index
    %1 = vector.load %arg2[%c0_1, %c0_2] : memref<256x128xbf16, #tpu.memory_space<vmem>>, vector<256x128xbf16>
    %cst = arith.constant dense<0.000000e+00> : vector<256x128xf32>
    %2 = tpu.matmul %0, %1, %cst {dimension_numbers = #tpu.dot_dimension_numbers<[1], [0], [0], [1], [0, 0, 1, 1], [], []>} : vector<256x256xbf16>, vector<256x128xbf16>, vector<256x128xf32> -> vector<256x128xf32>
    %c0_3 = arith.constant 0 : index
    %c0_4 = arith.constant 0 : index
    %3 = vector.load %arg3[%c0_3, %c0_4] : memref<1x128xf32, #tpu.memory_space<vmem>>, vector<1x128xf32>
    %4 = vector.broadcast %3 : vector<1x128xf32> to vector<256x128xf32>
    %5 = arith.addf %2, %4 : vector<256x128xf32>
    %6 = arith.truncf %5 : vector<256x128xf32> to vector<256x128xbf16>
    %c0_5 = arith.constant 0 : index
    %c0_6 = arith.constant 0 : index
    %7 = vector.load %arg4[%c0_5, %c0_6] : memref<256x128xbf16, #tpu.memory_space<vmem>>, vector<256x128xbf16>
    tpu.vector_store %arg4[%c0_5, %c0_6], %6 {strides = array<i32>} : memref<256x128xbf16, #tpu.memory_space<vmem>>, vector<256x128xbf16>,
    return
  }
  func.func @transform_0(%arg0: i32) -> (i32, i32) {
    %c0_i32 = arith.constant 0 : i32
    %c0_i32_0 = arith.constant 0 : i32
    return %arg0, %c0_i32 : i32, i32
  }
  func.func @transform_1(%arg0: i32) -> (i32, i32) {
    %c0_i32 = arith.constant 0 : i32
    %c0_i32_0 = arith.constant 0 : i32
    %c0_i32_1 = arith.constant 0 : i32
    return %c0_i32, %c0_i32_0 : i32, i32
  }
  func.func @transform_2(%arg0: i32) -> (i32, i32) {
    %c0_i32 = arith.constant 0 : i32
    %c0_i32_0 = arith.constant 0 : i32
    %c0_i32_1 = arith.constant 0 : i32
    return %c0_i32, %c0_i32_0 : i32, i32
  }
  func.func @transform_3(%arg0: i32) -> (i32, i32) {
    %c0_i32 = arith.constant 0 : i32
    %c0_i32_0 = arith.constant 0 : i32
    return %arg0, %c0_i32 : i32, i32
  }
}

module attributes {stable_mosaic.version = 11 : i64} {
  func.func @_cga_qkv_kernel(%arg0: i32, %arg1: memref<256x128xbf16, #tpu.memory_space<vmem>>, %arg2: memref<256x128xbf16, #tpu.memory_space<vmem>>, %arg3: memref<128x128xbf16, #tpu.memory_space<vmem>>, %arg4: memref<1x128xf32, #tpu.memory_space<vmem>>, %arg5: memref<128x128xbf16, #tpu.memory_space<vmem>>, %arg6: memref<1x128xf32, #tpu.memory_space<vmem>>, %arg7: memref<128x128xbf16, #tpu.memory_space<vmem>>, %arg8: memref<1x128xf32, #tpu.memory_space<vmem>>, %arg9: memref<256x128xbf16, #tpu.memory_space<vmem>>, %arg10: memref<256x128xbf16, #tpu.memory_space<vmem>>, %arg11: memref<256x128xbf16, #tpu.memory_space<vmem>>) attributes {dimension_semantics = [#tpu.dimension_semantics<parallel>], iteration_bounds = array<i64: 2>, scalar_prefetch = 0 : i64, scratch_operands = 0 : i64, tpu.core_type = #tpu.core_type<tc>, window_params = [{transform_indices = @transform_0, window_bounds = array<i64: 256, 128>}, {transform_indices = @transform_1, window_bounds = array<i64: 256, 128>}, {pipeline_mode = #tpu.pipeline_mode<synchronous>, transform_indices = @transform_2, window_bounds = array<i64: 128, 128>}, {pipeline_mode = #tpu.pipeline_mode<synchronous>, transform_indices = @transform_3, window_bounds = array<i64: 1, 128>}, {pipeline_mode = #tpu.pipeline_mode<synchronous>, transform_indices = @transform_4, window_bounds = array<i64: 128, 128>}, {pipeline_mode = #tpu.pipeline_mode<synchronous>, transform_indices = @transform_5, window_bounds = array<i64: 1, 128>}, {pipeline_mode = #tpu.pipeline_mode<synchronous>, transform_indices = @transform_6, window_bounds = array<i64: 128, 128>}, {pipeline_mode = #tpu.pipeline_mode<synchronous>, transform_indices = @transform_7, window_bounds = array<i64: 1, 128>}, {transform_indices = @transform_8, window_bounds = array<i64: 256, 128>}, {transform_indices = @transform_9, window_bounds = array<i64: 256, 128>}, {transform_indices = @transform_10, window_bounds = array<i64: 256, 128>}]} {
    %c0 = arith.constant 0 : index
    %c0_0 = arith.constant 0 : index
    %0 = vector.load %arg1[%c0, %c0_0] : memref<256x128xbf16, #tpu.memory_space<vmem>>, vector<256x128xbf16>
    %c0_1 = arith.constant 0 : index
    %c0_2 = arith.constant 0 : index
    %1 = vector.load %arg2[%c0_1, %c0_2] : memref<256x128xbf16, #tpu.memory_space<vmem>>, vector<256x128xbf16>
    %c0_3 = arith.constant 0 : index
    %c0_4 = arith.constant 0 : index
    %2 = vector.load %arg3[%c0_3, %c0_4] : memref<128x128xbf16, #tpu.memory_space<vmem>>, vector<128x128xbf16>
    %cst = arith.constant dense<0.000000e+00> : vector<256x128xf32>
    %3 = tpu.matmul %0, %2, %cst {dimension_numbers = #tpu.dot_dimension_numbers<[1], [0], [0], [1], [0, 0, 1, 1], [], []>} : vector<256x128xbf16>, vector<128x128xbf16>, vector<256x128xf32> -> vector<256x128xf32>
    %c0_5 = arith.constant 0 : index
    %c0_6 = arith.constant 0 : index
    %4 = vector.load %arg4[%c0_5, %c0_6] : memref<1x128xf32, #tpu.memory_space<vmem>>, vector<1x128xf32>
    %5 = vector.broadcast %4 : vector<1x128xf32> to vector<256x128xf32>
    %6 = arith.addf %3, %5 : vector<256x128xf32>
    %c0_7 = arith.constant 0 : index
    %c0_8 = arith.constant 0 : index
    %7 = vector.load %arg5[%c0_7, %c0_8] : memref<128x128xbf16, #tpu.memory_space<vmem>>, vector<128x128xbf16>
    %cst_9 = arith.constant dense<0.000000e+00> : vector<256x128xf32>
    %8 = tpu.matmul %1, %7, %cst_9 {dimension_numbers = #tpu.dot_dimension_numbers<[1], [0], [0], [1], [0, 0, 1, 1], [], []>} : vector<256x128xbf16>, vector<128x128xbf16>, vector<256x128xf32> -> vector<256x128xf32>
    %c0_10 = arith.constant 0 : index
    %c0_11 = arith.constant 0 : index
    %9 = vector.load %arg6[%c0_10, %c0_11] : memref<1x128xf32, #tpu.memory_space<vmem>>, vector<1x128xf32>
    %10 = vector.broadcast %9 : vector<1x128xf32> to vector<256x128xf32>
    %11 = arith.addf %8, %10 : vector<256x128xf32>
    %c0_12 = arith.constant 0 : index
    %c0_13 = arith.constant 0 : index
    %12 = vector.load %arg7[%c0_12, %c0_13] : memref<128x128xbf16, #tpu.memory_space<vmem>>, vector<128x128xbf16>
    %cst_14 = arith.constant dense<0.000000e+00> : vector<256x128xf32>
    %13 = tpu.matmul %1, %12, %cst_14 {dimension_numbers = #tpu.dot_dimension_numbers<[1], [0], [0], [1], [0, 0, 1, 1], [], []>} : vector<256x128xbf16>, vector<128x128xbf16>, vector<256x128xf32> -> vector<256x128xf32>
    %c0_15 = arith.constant 0 : index
    %c0_16 = arith.constant 0 : index
    %14 = vector.load %arg8[%c0_15, %c0_16] : memref<1x128xf32, #tpu.memory_space<vmem>>, vector<1x128xf32>
    %15 = vector.broadcast %14 : vector<1x128xf32> to vector<256x128xf32>
    %16 = arith.addf %13, %15 : vector<256x128xf32>
    %17 = arith.truncf %6 : vector<256x128xf32> to vector<256x128xbf16>
    %c0_17 = arith.constant 0 : index
    %c0_18 = arith.constant 0 : index
    %18 = vector.load %arg9[%c0_17, %c0_18] : memref<256x128xbf16, #tpu.memory_space<vmem>>, vector<256x128xbf16>
    tpu.vector_store %arg9[%c0_17, %c0_18], %17 {strides = array<i32>} : memref<256x128xbf16, #tpu.memory_space<vmem>>, vector<256x128xbf16>,
    %19 = arith.truncf %11 : vector<256x128xf32> to vector<256x128xbf16>
    %c0_19 = arith.constant 0 : index
    %c0_20 = arith.constant 0 : index
    %20 = vector.load %arg10[%c0_19, %c0_20] : memref<256x128xbf16, #tpu.memory_space<vmem>>, vector<256x128xbf16>
    tpu.vector_store %arg10[%c0_19, %c0_20], %19 {strides = array<i32>} : memref<256x128xbf16, #tpu.memory_space<vmem>>, vector<256x128xbf16>,
    %21 = arith.truncf %16 : vector<256x128xf32> to vector<256x128xbf16>
    %c0_21 = arith.constant 0 : index
    %c0_22 = arith.constant 0 : index
    %22 = vector.load %arg11[%c0_21, %c0_22] : memref<256x128xbf16, #tpu.memory_space<vmem>>, vector<256x128xbf16>
    tpu.vector_store %arg11[%c0_21, %c0_22], %21 {strides = array<i32>} : memref<256x128xbf16, #tpu.memory_space<vmem>>, vector<256x128xbf16>,
    return
  }
  func.func @transform_0(%arg0: i32) -> (i32, i32) {
    %c0_i32 = arith.constant 0 : i32
    %c0_i32_0 = arith.constant 0 : i32
    return %arg0, %c0_i32 : i32, i32
  }
  func.func @transform_1(%arg0: i32) -> (i32, i32) {
    %c0_i32 = arith.constant 0 : i32
    %c0_i32_0 = arith.constant 0 : i32
    return %arg0, %c0_i32 : i32, i32
  }
  func.func @transform_2(%arg0: i32) -> (i32, i32) {
    %c0_i32 = arith.constant 0 : i32
    %c0_i32_0 = arith.constant 0 : i32
    %c0_i32_1 = arith.constant 0 : i32
    return %c0_i32, %c0_i32_0 : i32, i32
  }
  func.func @transform_3(%arg0: i32) -> (i32, i32) {
    %c0_i32 = arith.constant 0 : i32
    %c0_i32_0 = arith.constant 0 : i32
    %c0_i32_1 = arith.constant 0 : i32
    return %c0_i32, %c0_i32_0 : i32, i32
  }
  func.func @transform_4(%arg0: i32) -> (i32, i32) {
    %c0_i32 = arith.constant 0 : i32
    %c0_i32_0 = arith.constant 0 : i32
    %c0_i32_1 = arith.constant 0 : i32
    return %c0_i32, %c0_i32_0 : i32, i32
  }
  func.func @transform_5(%arg0: i32) -> (i32, i32) {
    %c0_i32 = arith.constant 0 : i32
    %c0_i32_0 = arith.constant 0 : i32
    %c0_i32_1 = arith.constant 0 : i32
    return %c0_i32, %c0_i32_0 : i32, i32
  }
  func.func @transform_6(%arg0: i32) -> (i32, i32) {
    %c0_i32 = arith.constant 0 : i32
    %c0_i32_0 = arith.constant 0 : i32
    %c0_i32_1 = arith.constant 0 : i32
    return %c0_i32, %c0_i32_0 : i32, i32
  }
  func.func @transform_7(%arg0: i32) -> (i32, i32) {
    %c0_i32 = arith.constant 0 : i32
    %c0_i32_0 = arith.constant 0 : i32
    %c0_i32_1 = arith.constant 0 : i32
    return %c0_i32, %c0_i32_0 : i32, i32
  }
  func.func @transform_8(%arg0: i32) -> (i32, i32) {
    %c0_i32 = arith.constant 0 : i32
    %c0_i32_0 = arith.constant 0 : i32
    return %arg0, %c0_i32 : i32, i32
  }
  func.func @transform_9(%arg0: i32) -> (i32, i32) {
    %c0_i32 = arith.constant 0 : i32
    %c0_i32_0 = arith.constant 0 : i32
    return %arg0, %c0_i32 : i32, i32
  }
  func.func @transform_10(%arg0: i32) -> (i32, i32) {
    %c0_i32 = arith.constant 0 : i32
    %c0_i32_0 = arith.constant 0 : i32
    return %arg0, %c0_i32 : i32, i32
  }
}

module attributes {stable_mosaic.version = 11 : i64} {
  func.func @_attn_single_kernel(%arg0: i32, %arg1: i32, %arg2: memref<1x256x128xbf16, #tpu.memory_space<vmem>>, %arg3: memref<1x256x128xbf16, #tpu.memory_space<vmem>>, %arg4: memref<1x256x128xbf16, #tpu.memory_space<vmem>>, %arg5: memref<1x256x128xbf16, #tpu.memory_space<vmem>>) attributes {dimension_semantics = [#tpu.dimension_semantics<parallel>, #tpu.dimension_semantics<parallel>], iteration_bounds = array<i64: 2, 1>, scalar_prefetch = 0 : i64, scratch_operands = 0 : i64, tpu.core_type = #tpu.core_type<tc>, window_params = [{transform_indices = @transform_0, window_bounds = array<i64: 1, 256, 128>}, {transform_indices = @transform_1, window_bounds = array<i64: 1, 256, 128>}, {transform_indices = @transform_2, window_bounds = array<i64: 1, 256, 128>}, {transform_indices = @transform_3, window_bounds = array<i64: 1, 256, 128>}]} {
    %c0 = arith.constant 0 : index
    %c0_0 = arith.constant 0 : index
    %c0_1 = arith.constant 0 : index
    %0 = vector.load %arg2[%c0, %c0_0, %c0_1] : memref<1x256x128xbf16, #tpu.memory_space<vmem>>, vector<1x256x128xbf16>
    %c0_2 = arith.constant 0 : index
    %c0_3 = arith.constant 0 : index
    %c0_4 = arith.constant 0 : index
    %1 = vector.load %arg3[%c0_2, %c0_3, %c0_4] : memref<1x256x128xbf16, #tpu.memory_space<vmem>>, vector<1x256x128xbf16>
    "tpu.trace_start"() <{level = 10 : i32, message = "gqd,gkd->gqk"}> : () -> ()
    %cst = arith.constant dense<0.000000e+00> : vector<1x256x256xf32>
    %2 = tpu.matmul %0, %1, %cst {dimension_numbers = #tpu.dot_dimension_numbers<[2], [2], [1], [1], [0, 0, 0, 1, 1, 1], [0], [0]>} : vector<1x256x128xbf16>, vector<1x256x128xbf16>, vector<1x256x256xf32> -> vector<1x256x256xf32>
    "tpu.trace_stop"() : () -> ()
    %cst_5 = arith.constant 0.353553385 : f32
    %3 = vector.broadcast %cst_5 : f32 to vector<1x256x256xf32>
    %4 = arith.mulf %2, %3 : vector<1x256x256xf32>
    %cst_6 = arith.constant dense<0xFF800000> : vector<1x256xf32>
    %5 = vector.multi_reduction <maximumf>, %4, %cst_6 [2] : vector<1x256x256xf32> to vector<1x256xf32>
    %6 = vector.shape_cast %5 : vector<1x256xf32> to vector<1x256x1xf32>
    %7 = vector.broadcast %6 : vector<1x256x1xf32> to vector<1x256x256xf32>
    %8 = arith.subf %4, %7 : vector<1x256x256xf32>
    %9 = math.exp %8 : vector<1x256x256xf32>
    %cst_7 = arith.constant dense<0.000000e+00> : vector<1x256xf32>
    %10 = vector.multi_reduction <add>, %9, %cst_7 [2] : vector<1x256x256xf32> to vector<1x256xf32>
    %11 = vector.shape_cast %10 : vector<1x256xf32> to vector<1x256x1xf32>
    %12 = arith.truncf %9 : vector<1x256x256xf32> to vector<1x256x256xbf16>
    %c0_8 = arith.constant 0 : index
    %c0_9 = arith.constant 0 : index
    %c0_10 = arith.constant 0 : index
    %13 = vector.load %arg4[%c0_8, %c0_9, %c0_10] : memref<1x256x128xbf16, #tpu.memory_space<vmem>>, vector<1x256x128xbf16>
    "tpu.trace_start"() <{level = 10 : i32, message = "gqk,gkd->gqd"}> : () -> ()
    %cst_11 = arith.constant dense<0.000000e+00> : vector<1x256x128xf32>
    %14 = tpu.matmul %12, %13, %cst_11 {dimension_numbers = #tpu.dot_dimension_numbers<[2], [1], [1], [2], [0, 0, 0, 1, 1, 2], [0], [0]>} : vector<1x256x256xbf16>, vector<1x256x128xbf16>, vector<1x256x128xf32> -> vector<1x256x128xf32>
    "tpu.trace_stop"() : () -> ()
    %15 = tpu.reciprocal %11 {approx = true} : vector<1x256x1xf32> -> vector<1x256x1xf32>
    %16 = vector.broadcast %15 : vector<1x256x1xf32> to vector<1x256x128xf32>
    %17 = arith.mulf %14, %16 : vector<1x256x128xf32>
    %18 = arith.truncf %17 : vector<1x256x128xf32> to vector<1x256x128xbf16>
    %c0_12 = arith.constant 0 : index
    %c0_13 = arith.constant 0 : index
    %c0_14 = arith.constant 0 : index
    %19 = vector.load %arg5[%c0_12, %c0_13, %c0_14] : memref<1x256x128xbf16, #tpu.memory_space<vmem>>, vector<1x256x128xbf16>
    tpu.vector_store %arg5[%c0_12, %c0_13, %c0_14], %18 {strides = array<i32>} : memref<1x256x128xbf16, #tpu.memory_space<vmem>>, vector<1x256x128xbf16>,
    return
  }
  func.func @transform_0(%arg0: i32, %arg1: i32) -> (i32, i32, i32) {
    %c0_i32 = arith.constant 0 : i32
    %c0_i32_0 = arith.constant 0 : i32
    return %arg0, %arg1, %c0_i32 : i32, i32, i32
  }
  func.func @transform_1(%arg0: i32, %arg1: i32) -> (i32, i32, i32) {
    %c0_i32 = arith.constant 0 : i32
    %c0_i32_0 = arith.constant 0 : i32
    %c0_i32_1 = arith.constant 0 : i32
    return %arg0, %c0_i32, %c0_i32_0 : i32, i32, i32
  }
  func.func @transform_2(%arg0: i32, %arg1: i32) -> (i32, i32, i32) {
    %c0_i32 = arith.constant 0 : i32
    %c0_i32_0 = arith.constant 0 : i32
    %c0_i32_1 = arith.constant 0 : i32
    return %arg0, %c0_i32, %c0_i32_0 : i32, i32, i32
  }
  func.func @transform_3(%arg0: i32, %arg1: i32) -> (i32, i32, i32) {
    %c0_i32 = arith.constant 0 : i32
    %c0_i32_0 = arith.constant 0 : i32
    return %arg0, %arg1, %c0_i32 : i32, i32, i32
  }
}

module attributes {stable_mosaic.version = 11 : i64} {
  func.func @_linear_ln_kernel(%arg0: i32, %arg1: memref<256x128xbf16, #tpu.memory_space<vmem>>, %arg2: memref<128x128xbf16, #tpu.memory_space<vmem>>, %arg3: memref<1x128xf32, #tpu.memory_space<vmem>>, %arg4: memref<256x128xbf16, #tpu.memory_space<vmem>>, %arg5: memref<1x128xf32, #tpu.memory_space<vmem>>, %arg6: memref<1x128xf32, #tpu.memory_space<vmem>>, %arg7: memref<256x128xbf16, #tpu.memory_space<vmem>>) attributes {dimension_semantics = [#tpu.dimension_semantics<parallel>], iteration_bounds = array<i64: 2>, scalar_prefetch = 0 : i64, scratch_operands = 0 : i64, tpu.core_type = #tpu.core_type<tc>, window_params = [{transform_indices = @transform_0, window_bounds = array<i64: 256, 128>}, {pipeline_mode = #tpu.pipeline_mode<synchronous>, transform_indices = @transform_1, window_bounds = array<i64: 128, 128>}, {pipeline_mode = #tpu.pipeline_mode<synchronous>, transform_indices = @transform_2, window_bounds = array<i64: 1, 128>}, {transform_indices = @transform_3, window_bounds = array<i64: 256, 128>}, {pipeline_mode = #tpu.pipeline_mode<synchronous>, transform_indices = @transform_4, window_bounds = array<i64: 1, 128>}, {pipeline_mode = #tpu.pipeline_mode<synchronous>, transform_indices = @transform_5, window_bounds = array<i64: 1, 128>}, {transform_indices = @transform_6, window_bounds = array<i64: 256, 128>}]} {
    %c0 = arith.constant 0 : index
    %c0_0 = arith.constant 0 : index
    %0 = vector.load %arg1[%c0, %c0_0] : memref<256x128xbf16, #tpu.memory_space<vmem>>, vector<256x128xbf16>
    %c0_1 = arith.constant 0 : index
    %c0_2 = arith.constant 0 : index
    %1 = vector.load %arg2[%c0_1, %c0_2] : memref<128x128xbf16, #tpu.memory_space<vmem>>, vector<128x128xbf16>
    %cst = arith.constant dense<0.000000e+00> : vector<256x128xf32>
    %2 = tpu.matmul %0, %1, %cst {dimension_numbers = #tpu.dot_dimension_numbers<[1], [0], [0], [1], [0, 0, 1, 1], [], []>} : vector<256x128xbf16>, vector<128x128xbf16>, vector<256x128xf32> -> vector<256x128xf32>
    %c0_3 = arith.constant 0 : index
    %c0_4 = arith.constant 0 : index
    %3 = vector.load %arg3[%c0_3, %c0_4] : memref<1x128xf32, #tpu.memory_space<vmem>>, vector<1x128xf32>
    %4 = vector.broadcast %3 : vector<1x128xf32> to vector<256x128xf32>
    %5 = arith.addf %2, %4 : vector<256x128xf32>
    %c0_5 = arith.constant 0 : index
    %c0_6 = arith.constant 0 : index
    %6 = vector.load %arg4[%c0_5, %c0_6] : memref<256x128xbf16, #tpu.memory_space<vmem>>, vector<256x128xbf16>
    %7 = arith.extf %6 : vector<256x128xbf16> to vector<256x128xf32>
    %8 = arith.addf %5, %7 : vector<256x128xf32>
    %c0_7 = arith.constant 0 : index
    %c0_8 = arith.constant 0 : index
    %9 = vector.load %arg5[%c0_7, %c0_8] : memref<1x128xf32, #tpu.memory_space<vmem>>, vector<1x128xf32>
    %c0_9 = arith.constant 0 : index
    %c0_10 = arith.constant 0 : index
    %10 = vector.load %arg6[%c0_9, %c0_10] : memref<1x128xf32, #tpu.memory_space<vmem>>, vector<1x128xf32>
    %11 = tpu.iota {dimensions = array<i32: 1>} : vector<256x128xi32>
    %c32_i32 = arith.constant 32 : i32
    %12 = vector.broadcast %c32_i32 : i32 to vector<256x128xi32>
    %13 = arith.cmpi slt, %11, %12 : vector<256x128xi32>
    %cst_11 = arith.constant 0.000000e+00 : f32
    %14 = vector.broadcast %cst_11 : f32 to vector<256x128xf32>
    %15 = arith.select %13, %8, %14 : vector<256x128xi1>, vector<256x128xf32>
    %cst_12 = arith.constant dense<0.000000e+00> : vector<256xf32>
    %16 = vector.multi_reduction <add>, %15, %cst_12 [1] : vector<256x128xf32> to vector<256xf32>
    %17 = vector.shape_cast %16 : vector<256xf32> to vector<256x1xf32>
    %cst_13 = arith.constant 3.125000e-02 : f32
    %18 = vector.broadcast %cst_13 : f32 to vector<256x1xf32>
    %19 = arith.mulf %17, %18 : vector<256x1xf32>
    %20 = vector.broadcast %19 : vector<256x1xf32> to vector<256x128xf32>
    %21 = arith.subf %8, %20 : vector<256x128xf32>
    %cst_14 = arith.constant 0.000000e+00 : f32
    %22 = vector.broadcast %cst_14 : f32 to vector<256x128xf32>
    %23 = arith.select %13, %21, %22 : vector<256x128xi1>, vector<256x128xf32>
    %24 = arith.mulf %23, %23 : vector<256x128xf32>
    %cst_15 = arith.constant dense<0.000000e+00> : vector<256xf32>
    %25 = vector.multi_reduction <add>, %24, %cst_15 [1] : vector<256x128xf32> to vector<256xf32>
    %26 = vector.shape_cast %25 : vector<256xf32> to vector<256x1xf32>
    %cst_16 = arith.constant 3.125000e-02 : f32
    %27 = vector.broadcast %cst_16 : f32 to vector<256x1xf32>
    %28 = arith.mulf %26, %27 : vector<256x1xf32>
    %cst_17 = arith.constant 9.99999974E-6 : f32
    %29 = vector.broadcast %cst_17 : f32 to vector<256x1xf32>
    %30 = arith.addf %28, %29 : vector<256x1xf32>
    %31 = math.rsqrt %30 : vector<256x1xf32>
    %32 = vector.broadcast %31 : vector<256x1xf32> to vector<256x128xf32>
    %33 = arith.mulf %23, %32 : vector<256x128xf32>
    %34 = vector.broadcast %9 : vector<1x128xf32> to vector<256x128xf32>
    %35 = arith.mulf %33, %34 : vector<256x128xf32>
    %36 = vector.broadcast %10 : vector<1x128xf32> to vector<256x128xf32>
    %37 = arith.addf %35, %36 : vector<256x128xf32>
    %38 = arith.truncf %37 : vector<256x128xf32> to vector<256x128xbf16>
    %c0_18 = arith.constant 0 : index
    %c0_19 = arith.constant 0 : index
    %39 = vector.load %arg7[%c0_18, %c0_19] : memref<256x128xbf16, #tpu.memory_space<vmem>>, vector<256x128xbf16>
    tpu.vector_store %arg7[%c0_18, %c0_19], %38 {strides = array<i32>} : memref<256x128xbf16, #tpu.memory_space<vmem>>, vector<256x128xbf16>,
    return
  }
  func.func @transform_0(%arg0: i32) -> (i32, i32) {
    %c0_i32 = arith.constant 0 : i32
    %c0_i32_0 = arith.constant 0 : i32
    return %arg0, %c0_i32 : i32, i32
  }
  func.func @transform_1(%arg0: i32) -> (i32, i32) {
    %c0_i32 = arith.constant 0 : i32
    %c0_i32_0 = arith.constant 0 : i32
    %c0_i32_1 = arith.constant 0 : i32
    return %c0_i32, %c0_i32_0 : i32, i32
  }
  func.func @transform_2(%arg0: i32) -> (i32, i32) {
    %c0_i32 = arith.constant 0 : i32
    %c0_i32_0 = arith.constant 0 : i32
    %c0_i32_1 = arith.constant 0 : i32
    return %c0_i32, %c0_i32_0 : i32, i32
  }
  func.func @transform_3(%arg0: i32) -> (i32, i32) {
    %c0_i32 = arith.constant 0 : i32
    %c0_i32_0 = arith.constant 0 : i32
    return %arg0, %c0_i32 : i32, i32
  }
  func.func @transform_4(%arg0: i32) -> (i32, i32) {
    %c0_i32 = arith.constant 0 : i32
    %c0_i32_0 = arith.constant 0 : i32
    %c0_i32_1 = arith.constant 0 : i32
    return %c0_i32, %c0_i32_0 : i32, i32
  }
  func.func @transform_5(%arg0: i32) -> (i32, i32) {
    %c0_i32 = arith.constant 0 : i32
    %c0_i32_0 = arith.constant 0 : i32
    %c0_i32_1 = arith.constant 0 : i32
    return %c0_i32, %c0_i32_0 : i32, i32
  }
  func.func @transform_6(%arg0: i32) -> (i32, i32) {
    %c0_i32 = arith.constant 0 : i32
    %c0_i32_0 = arith.constant 0 : i32
    return %arg0, %c0_i32 : i32, i32
  }
}

module attributes {stable_mosaic.version = 11 : i64} {
  func.func @_linear_kernel(%arg0: i32, %arg1: memref<256x384xbf16, #tpu.memory_space<vmem>>, %arg2: memref<384x128xbf16, #tpu.memory_space<vmem>>, %arg3: memref<1x128xf32, #tpu.memory_space<vmem>>, %arg4: memref<256x128xf32, #tpu.memory_space<vmem>>) attributes {dimension_semantics = [#tpu.dimension_semantics<parallel>], iteration_bounds = array<i64: 2>, scalar_prefetch = 0 : i64, scratch_operands = 0 : i64, tpu.core_type = #tpu.core_type<tc>, window_params = [{transform_indices = @transform_0, window_bounds = array<i64: 256, 384>}, {pipeline_mode = #tpu.pipeline_mode<synchronous>, transform_indices = @transform_1, window_bounds = array<i64: 384, 128>}, {pipeline_mode = #tpu.pipeline_mode<synchronous>, transform_indices = @transform_2, window_bounds = array<i64: 1, 128>}, {transform_indices = @transform_3, window_bounds = array<i64: 256, 128>}]} {
    %c0 = arith.constant 0 : index
    %c0_0 = arith.constant 0 : index
    %0 = vector.load %arg1[%c0, %c0_0] : memref<256x384xbf16, #tpu.memory_space<vmem>>, vector<256x384xbf16>
    %c0_1 = arith.constant 0 : index
    %c0_2 = arith.constant 0 : index
    %1 = vector.load %arg2[%c0_1, %c0_2] : memref<384x128xbf16, #tpu.memory_space<vmem>>, vector<384x128xbf16>
    %cst = arith.constant dense<0.000000e+00> : vector<256x128xf32>
    %2 = tpu.matmul %0, %1, %cst {dimension_numbers = #tpu.dot_dimension_numbers<[1], [0], [0], [1], [0, 0, 1, 1], [], []>} : vector<256x384xbf16>, vector<384x128xbf16>, vector<256x128xf32> -> vector<256x128xf32>
    %c0_3 = arith.constant 0 : index
    %c0_4 = arith.constant 0 : index
    %3 = vector.load %arg3[%c0_3, %c0_4] : memref<1x128xf32, #tpu.memory_space<vmem>>, vector<1x128xf32>
    %4 = vector.broadcast %3 : vector<1x128xf32> to vector<256x128xf32>
    %5 = arith.addf %2, %4 : vector<256x128xf32>
    %c0_5 = arith.constant 0 : index
    %c0_6 = arith.constant 0 : index
    %6 = vector.load %arg4[%c0_5, %c0_6] : memref<256x128xf32, #tpu.memory_space<vmem>>, vector<256x128xf32>
    tpu.vector_store %arg4[%c0_5, %c0_6], %5 {strides = array<i32>} : memref<256x128xf32, #tpu.memory_space<vmem>>, vector<256x128xf32>,
    return
  }
  func.func @transform_0(%arg0: i32) -> (i32, i32) {
    %c0_i32 = arith.constant 0 : i32
    %c0_i32_0 = arith.constant 0 : i32
    return %arg0, %c0_i32 : i32, i32
  }
  func.func @transform_1(%arg0: i32) -> (i32, i32) {
    %c0_i32 = arith.constant 0 : i32
    %c0_i32_0 = arith.constant 0 : i32
    %c0_i32_1 = arith.constant 0 : i32
    return %c0_i32, %c0_i32_0 : i32, i32
  }
  func.func @transform_2(%arg0: i32) -> (i32, i32) {
    %c0_i32 = arith.constant 0 : i32
    %c0_i32_0 = arith.constant 0 : i32
    %c0_i32_1 = arith.constant 0 : i32
    return %c0_i32, %c0_i32_0 : i32, i32
  }
  func.func @transform_3(%arg0: i32) -> (i32, i32) {
    %c0_i32 = arith.constant 0 : i32
    %c0_i32_0 = arith.constant 0 : i32
    return %arg0, %c0_i32 : i32, i32
  }
}

</mosaic_0001>

<bundles_post_ra>
// kernel: hybrid_encoder_forward.18
= control target key start
LH: loop header
LB: loop body
LE: loop exit
PB: predicated region body
PF: predicated region fallthrough
CT: control target
= control target key end

     0   :  { %s1218_s12 = smov 0   ;;  %s1220_s13 = smov 0   ;;  %s1313_s0 = inlined_call_operand.vmem [shape: bf16[8,16,128], index: 0, kind: input, shape index: {}]   ;;  %s1314_s1 = inlined_call_operand.vmem [shape: bf16[8,16,128], index: 1, kind: input, shape index: {}]   ;;  %s1315_s2 = inlined_call_operand.vmem [shape: bf16[8,16,128], index: 2, kind: input, shape index: {}]   ;;  %s1316_s3 = inlined_call_operand.vmem [shape: bf16[8,16,128], index: 3, kind: output, shape index: {}]  }
   0x1   :  { %s1222_s14 = smov 0  }
   0x2 LB: > { %s25_s15 = sadd.s32 1, %s1190_s13  ;;  %p964_p0 = scmp.ge.s32.totalorder %s1194_s14, 1  ;;  %s1194_s14 = sphi %s1222_s14, %s13_s14   ;;  %s1190_s13 = sphi %s1220_s13, %s1318_s13   ;;  %s1186_s12 = sphi %s1218_s12, %s1317_s12  }
   0x3   : > { %p27_p1 = scmp.ge.s32.totalorder %s25_s15, 2  ;;  %p184_p2 = scmp.lt.s32.totalorder %s1194_s14, 3 }
   0x5   : > { %s1320_s15 = smov (%p27_p1, %s25_s15), 0  ;;  %p185_p3 = pnand %p964_p0, %p184_p2 }
   0x6   : > { %s965_s16 = sshll.u32 (!%p185_p3), %s1186_s12, 2  ;;  %v1196_v0 = vmov (!%p185_p3), 0.0   ;;  %vm1197_vm0 = vmmov (!%p185_p3), 0   ;;  %vm505_vm1 = vcmask (!%p185_p3), 130048  }
   0x7   : > { %188 = sbr.rel (%p185_p3) target bundleno = 632 (0x278), region = 32  ;;  %1054 = vmatprep.subr.bf16.mxu0 (!%p185_p3), %v1196_v0  ;;  %1060 = vmatprep.subr.bf16.mxu1 (!%p185_p3), %v1196_v0  ;;  %p232_p4 = scmp.lt.s32.totalorder (!%p185_p3), %s965_s16, 7 }
   0x8   : > { %1056 = vmatprep.mubr.msk.bf16.mxu0 (!%p185_p3), %vm1197_vm0, %v1196_v0  ;;  %1062 = vmatprep.mubr.msk.bf16.mxu1 (!%p185_p3), %vm1197_vm0, %v1196_v0 }
   0xe   : > { %s1322_s16 = smov (!%p232_p4, %s965_s16), 7 }
   0xf   : > { %s1242_s17 = sshll.u32 %s1322_s16, 3 }
  0x10   : > { %s247_s20 = scalar_lea.vmem %s1314_s1, %s1242_s17  ;;  %s239_s23 = scalar_lea.vmem %s1313_s0, %s1242_s17 }
  0x11   : > { %v1128_v1 = vld [vmem:[%s247_s20] sm:$0xff]   ;;  %v1129_v2 = vld [vmem:[%s247_s20 + $0x8] sm:$0xff]   ;;  %v1132_v5 = vld [vmem:[%s247_s20 + $0x10] sm:$0xff]   ;;  %s1276_s26 = scalar_lea.vmem %s1315_s2, %s1242_s17  ;;  %s265_s29 = scalar_lea.vmem %s1316_s3, %s1242_s17 }
  0x12   : > { %1055 = vmatpush3.bf16.xpose.msra.mxu0 %v1128_v1  ;;  %1061 = vmatpush3.bf16.xpose.msra.mxu1 %v1129_v2  ;;  %v1130_v3 = vld [vmem:[%s239_s23] sm:$0xff]   ;;  %v1131_v4 = vld [vmem:[%s239_s23 + $0x8] sm:$0xff]   ;;  %v1133_v6 = vld [vmem:[%s247_s20 + $0x18] sm:$0xff]  }
  0x13   : > { %1066 = vmatprep.subr.bf16.mxu0 %v1196_v0  ;;  %1072 = vmatprep.subr.bf16.mxu1 %v1196_v0  ;;  %v1134_v7 = vld [vmem:[%s239_s23 + $0x10] sm:$0xff]   ;;  %v1135_v8 = vld [vmem:[%s239_s23 + $0x18] sm:$0xff]   ;;  %v1136_v41 = vld [vmem:[%s1276_s26] sm:$0xff]  }
  0x14   : > { %v1137_v42 = vld [vmem:[%s1276_s26 + $0x8] sm:$0xff]  }
  0x19   : > { %1057 = vmatmul.mubr.bf16.vlgmr.msra.gmra.mrb[0].mxu0 %v1130_v3  ;;  %1063 = vmatmul.mubr.bf16.vlgmr.msra.gmra.mrb[0].mxu1 %v1131_v4 }
  0x1a   : > { %1067 = vmatpush3.bf16.xpose.msra.mxu0 %v1132_v5  ;;  %1073 = vmatpush3.bf16.xpose.msra.mxu1 %v1133_v6 }
  0x1b   : > { %1068 = vmatprep.mubr.msk.bf16.mxu0 %vm1197_vm0, %v1196_v0  ;;  %1074 = vmatprep.mubr.msk.bf16.mxu1 %vm1197_vm0, %v1196_v0 }
  0x1c   : > { %1078 = vmatprep.subr.bf16.mxu0 %v1196_v0  ;;  %1084 = vmatprep.subr.bf16.mxu1 %v1196_v0 }
  0x21   : > { %1069 = vmatmul.mubr.bf16.vlgmr.msra.gmra.mrb[4].mxu0 %v1134_v7  ;;  %1075 = vmatmul.mubr.bf16.vlgmr.msra.gmra.mrb[4].mxu1 %v1135_v8  ;;  %v1138_v8 = vld [vmem:[%s1276_s26 + $0x10] sm:$0xff]  }
  0x22   : > { %1080 = vmatprep.mubr.msk.bf16.mxu0 %vm1197_vm0, %v1196_v0  ;;  %1086 = vmatprep.mubr.msk.bf16.mxu1 %vm1197_vm0, %v1196_v0 }
  0x23   : > { %1079 = vmatpush3.bf16.msra.mxu0 %v1136_v41  ;;  %1085 = vmatpush3.bf16.msra.mxu1 %v1137_v42 }
  0x24   : > { %1090 = vmatprep.subr.bf16.mxu0 %v1196_v0  ;;  %1096 = vmatprep.subr.bf16.mxu1 %v1196_v0 }
  0xec   : > { %v331_v9 = vpop.f32.mrb[0].mxu0  ;;  %v384_v11 = vpop.f32.mrb[0].mxu1 }
  0xed   : > { %v497_v10 = vmul.f32 0.35355338, %v331_v9  ;;  %v1058_v12 = vpop.f32.mrb[1].mxu0  ;;  %v499_v13 = vmul.f32 0.35355338, %v384_v11  ;;  %v1064_v14 = vpop.f32.mrb[1].mxu1 }
  0xee   : > { %v334_v15 = vpop.f32.mrb[2].mxu0  ;;  %v387_v17 = vpop.f32.mrb[2].mxu1 }
  0xef   : > { %v498_v16 = vmul.f32 0.35355338, %v334_v15  ;;  %v1059_v18 = vpop.f32.mrb[3].mxu0  ;;  %v506_v19 = vsel %vm505_vm1, %v497_v10, -inf  ;;  %v500_v20 = vmul.f32 0.35355338, %v387_v17 }
  0xf0   : > { %v1065_v21 = vpop.f32.mrb[3].mxu1  ;;  %v512_v22 = vsel %vm505_vm1, %v499_v13, -inf  ;;  %507 = vmax.xlane.f32.xlu0 %v506_v19 }
  0xf1   : > { %513 = vmax.xlane.f32.xlu1 %v512_v22  ;;  %v509_v23 = vsel %vm505_vm1, %v498_v16, -inf  ;;  %v515_v24 = vsel %vm505_vm1, %v500_v20, -inf }
  0xf4   : > { %510 = vmax.xlane.f32.xlu0 %v509_v23  ;;  %v437_v25 = vpop.f32.mrb[4].mxu0  ;;  %v490_v28 = vpop.f32.mrb[4].mxu1 }
  0xf5   : > { %516 = vmax.xlane.f32.xlu1 %v515_v24  ;;  %v501_v26 = vmul.f32 0.35355338, %v437_v25  ;;  %v1070_v27 = vpop.f32.mrb[5].mxu0  ;;  %v503_v30 = vmul.f32 0.35355338, %v490_v28  ;;  %v1076_v31 = vpop.f32.mrb[5].mxu1 }
  0xf6   : > { %v440_v29 = vpop.f32.mrb[6].mxu0  ;;  %v493_v34 = vpop.f32.mrb[6].mxu1 }
  0xf7   : > { %v502_v32 = vmul.f32 0.35355338, %v440_v29  ;;  %v1071_v33 = vpop.f32.mrb[7].mxu0  ;;  %v518_v35 = vsel %vm505_vm1, %v501_v26, -inf  ;;  %v1077_v36 = vpop.f32.mrb[7].mxu1  ;;  %v524_v39 = vsel %vm505_vm1, %v503_v30, -inf }
  0xf8   : > { %519 = vmax.xlane.f32.xlu0 %v518_v35  ;;  %v504_v37 = vmul.f32 0.35355338, %v493_v34 }
  0xf9   : > { %v521_v38 = vsel %vm505_vm1, %v502_v32, -inf }
  0xfa   : > { %522 = vmax.xlane.f32.xlu1 %v521_v38  ;;  %v527_v40 = vsel %vm505_vm1, %v504_v37, -inf }
  0xfc   : > { %525 = vmax.xlane.f32.xlu0 %v524_v39 }
  0xfe   : > { %528 = vmax.xlane.f32.xlu1 %v527_v40 }
 0x17d   : > { %v508_v43 = vpop.xlane.xlu0 %507 }
 0x17e   : > { %v514_v44 = vpop.xlane.xlu1 %513  ;;  %v530_v45 = vsub.f32 %v497_v10, %v508_v43 }
 0x17f   : > { %v532_v46 = vsub.f32 %v499_v13, %v514_v44  ;;  %v1139_v13 = vld [vmem:[%s1276_s26 + $0x18] sm:$0xff]  }
 0x180   : > { %v538_v47 = vmul.f32 1.442695, %v530_v45 }
 0x181   : > { %v542_v48 = vmul.f32 1.442695, %v532_v46  ;;  %v511_v49 = vpop.xlane.xlu0 %510 }
 0x182   : > { %1140 = vpow2.f32 %v538_v47  ;;  %v517_v50 = vpop.xlane.xlu1 %516  ;;  %v531_v51 = vsub.f32 %v498_v16, %v511_v49 }
 0x183   : > { %v533_v52 = vsub.f32 %v500_v20, %v517_v50  ;;  %1142 = vpow2.f32 %v542_v48 }
 0x184   : > { %v540_v53 = vmul.f32 1.442695, %v531_v51 }
 0x185   : > { %v544_v54 = vmul.f32 1.442695, %v533_v52  ;;  %v520_v55 = vpop.xlane.xlu0 %519 }
 0x186   : > { %1144 = vpow2.f32 %v540_v53  ;;  %v534_v56 = vsub.f32 %v501_v26, %v520_v55 }
 0x187   : > { %1146 = vpow2.f32 %v544_v54  ;;  %v523_v57 = vpop.xlane.xlu1 %522 }
 0x188   : > { %v546_v58 = vmul.f32 1.442695, %v534_v56  ;;  %v535_v59 = vsub.f32 %v502_v32, %v523_v57 }
 0x189   : > { %v526_v60 = vpop.xlane.xlu0 %525 }
 0x18a   : > { %1148 = vpow2.f32 %v546_v58  ;;  %v548_v61 = vmul.f32 1.442695, %v535_v59  ;;  %v536_v62 = vsub.f32 %v503_v30, %v526_v60 }
 0x18b   : > { %v529_v63 = vpop.xlane.xlu1 %528 }
 0x18c   : > { %v1141_v1 = vpop.eup %1140  ;;  %1150 = vpow2.f32 %v548_v61  ;;  %v550_v2 = vmul.f32 1.442695, %v536_v62  ;;  %v537_v3 = vsub.f32 %v504_v37, %v529_v63 }
 0x18d   : > { %v554_v4 = vsel %vm505_vm1, %v1141_v1, 0.0  ;;  %v1143_v5 = vpop.eup %1142 }
 0x18e   : > { %1152 = vpow2.f32 %v550_v2  ;;  %v552_v6 = vmul.f32 1.442695, %v537_v3  ;;  %555 = vadd.xlane.f32.xlu0 %v554_v4  ;;  %v560_v10 = vsel %vm505_vm1, %v1143_v5, 0.0 }
 0x190   : > { %v1145_v7 = vpop.eup %1144  ;;  %1154 = vpow2.f32 %v552_v6 }
 0x191   : > { %v1147_v9 = vpop.eup %1146  ;;  %v557_v11 = vsel %vm505_vm1, %v1145_v7, 0.0  ;;  %v578_v12 = vpack.c.bf16 %v1145_v7, %v1141_v1 }
 0x192   : > { %561 = vadd.xlane.f32.xlu0 %v560_v10  ;;  %558 = vadd.xlane.f32.xlu1 %v557_v11  ;;  %v579_v14 = vpack.c.bf16 %v1147_v9, %v1143_v5  ;;  %v563_v17 = vsel %vm505_vm1, %v1147_v9, 0.0 }
 0x193   : > { %1081 = vmatmul.mubr.msk.bf16.vlgmr.msra.gmra.mrb[8].mxu0 %vm505_vm1, %v578_v12 }
 0x194   : > { %v1149_v15 = vpop.eup %1148  ;;  %1087 = vmatmul.mubr.msk.bf16.vlgmr.msra.gmra.mrb[8].mxu1 %vm505_vm1, %v579_v14  ;;  %1091 = vmatpush3.bf16.msra.mxu0 %v1138_v8 }
 0x195   : > { %1097 = vmatpush3.bf16.msra.mxu1 %v1139_v13  ;;  %v566_v16 = vsel %vm505_vm1, %v1149_v15, 0.0  ;;  %1092 = vmatprep.mubr.msk.bf16.mxu0 %vm1197_vm0, %v1196_v0 }
 0x196   : > { %v1151_v18 = vpop.eup %1150  ;;  %567 = vadd.xlane.f32.xlu0 %v566_v16  ;;  %564 = vadd.xlane.f32.xlu1 %v563_v17 }
 0x197   : > { %1098 = vmatprep.mubr.msk.bf16.mxu1 %vm1197_vm0, %v1196_v0  ;;  %v569_v21 = vsel %vm505_vm1, %v1151_v18, 0.0  ;;  %v580_v22 = vpack.c.bf16 %v1151_v18, %v1149_v15 }
 0x198   : > { %v1153_v19 = vpop.eup %1152 }
 0x199   : > { %v572_v20 = vsel %vm505_vm1, %v1153_v19, 0.0 }
 0x19a   : > { %v1155_v23 = vpop.eup %1154  ;;  %573 = vadd.xlane.f32.xlu0 %v572_v20  ;;  %570 = vadd.xlane.f32.xlu1 %v569_v21 }
 0x19b   : > { %1093 = vmatmul.mubr.msk.bf16.vlgmr.msra.gmra.mrb[12].mxu0 %vm505_vm1, %v580_v22  ;;  %v581_v24 = vpack.c.bf16 %v1155_v23, %v1153_v19  ;;  %v575_v25 = vsel %vm505_vm1, %v1155_v23, 0.0 }
 0x19d   : > { %1099 = vmatmul.mubr.msk.bf16.vlgmr.msra.gmra.mrb[12].mxu1 %vm505_vm1, %v581_v24 }
 0x19e   : > { %576 = vadd.xlane.f32.xlu1 %v575_v25 }
 0x21b   : > { %v556_v26 = vpop.xlane.xlu0 %555 }
 0x21c   : > { %1156 = vrcp.f32 %v556_v26 }
 0x21f   : > { %v559_v27 = vpop.xlane.xlu1 %558  ;;  %v562_v0 = vpop.xlane.xlu0 %561 }
 0x220   : > { %1158 = vrcp.f32 %v562_v0 }
 0x221   : > { %1160 = vrcp.f32 %v559_v27 }
 0x223   : > { %v565_v28 = vpop.xlane.xlu1 %564  ;;  %v568_v29 = vpop.xlane.xlu0 %567 }
 0x224   : > { %1162 = vrcp.f32 %v565_v28 }
 0x225   : > { %1164 = vrcp.f32 %v568_v29 }
 0x226   : > { %v1157_v33 = vpop.eup %1156 }
 0x227   : > { %v571_v30 = vpop.xlane.xlu1 %570  ;;  %v574_v31 = vpop.xlane.xlu0 %573 }
 0x228   : > { %1166 = vrcp.f32 %v571_v30 }
 0x229   : > { %1168 = vrcp.f32 %v574_v31 }
 0x22a   : > { %v1159_v35 = vpop.eup %1158 }
 0x22b   : > { %v577_v32 = vpop.xlane.xlu1 %576  ;;  %v1161_v38 = vpop.eup %1160 }
 0x22c   : > { %1170 = vrcp.f32 %v577_v32 }
 0x22e   : > { %v1163_v41 = vpop.eup %1162 }
 0x22f   : > { %v1165_v52 = vpop.eup %1164 }
 0x232   : > { %v1167_v54 = vpop.eup %1166 }
 0x233   : > { %v1169_v57 = vpop.eup %1168 }
 0x236   : > { %v1171_v62 = vpop.eup %1170 }
 0x266   : > { %v633_v34 = vpop.f32.mrb[8].mxu0 }
 0x267   : > { %v683_v36 = vpop.f32.mrb[8].mxu1  ;;  %v1082_v37 = vpop.f32.mrb[9].mxu0  ;;  %v798_v42 = vmul.f32 %v1157_v33, %v633_v34 }
 0x268   : > { %v1088_v39 = vpop.f32.mrb[9].mxu1  ;;  %v636_v40 = vpop.f32.mrb[10].mxu0  ;;  %v800_v46 = vmul.f32 %v1159_v35, %v683_v36 }
 0x269   : > { %v799_v43 = vmul.f32 %v1161_v38, %v636_v40  ;;  %v686_v44 = vpop.f32.mrb[10].mxu1  ;;  %v1083_v45 = vpop.f32.mrb[11].mxu0 }
 0x26a   : > { %v801_v47 = vmul.f32 %v1163_v41, %v686_v44  ;;  %v1089_v48 = vpop.f32.mrb[11].mxu1 }
 0x26b   : > { %v1018_v49 = vpack.c.bf16 %v799_v43, %v798_v42 }
 0x26c   : > { %v1023_v50 = vpack.c.bf16 %v801_v47, %v800_v46 }
 0x26d   : > { %1019 = vst [vmem:[%s265_s29] sm:$0xff] %v1018_v49  }
 0x26e   : > { %1035 = vst [vmem:[%s265_s29 + $0x8] sm:$0xff] %v1023_v50   ;;  %v733_v51 = vpop.f32.mrb[12].mxu0 }
 0x26f   : > { %v1094_v53 = vpop.f32.mrb[13].mxu0  ;;  %v802_v58 = vmul.f32 %v1165_v52, %v733_v51 }
 0x270   : > { %v736_v55 = vpop.f32.mrb[14].mxu0  ;;  %v783_v56 = vpop.f32.mrb[12].mxu1 }
 0x271   : > { %v803_v59 = vmul.f32 %v1167_v54, %v736_v55  ;;  %v1095_v60 = vpop.f32.mrb[15].mxu0  ;;  %v1100_v61 = vpop.f32.mrb[13].mxu1  ;;  %v804_v2 = vmul.f32 %v1169_v57, %v783_v56 }
 0x272   : > { %v786_v63 = vpop.f32.mrb[14].mxu1 }
 0x273   : > { %v1028_v1 = vpack.c.bf16 %v803_v59, %v802_v58  ;;  %v805_v3 = vmul.f32 %v1171_v62, %v786_v63  ;;  %v1101_v4 = vpop.f32.mrb[15].mxu1 }
 0x275   : > { %1036 = vst [vmem:[%s265_s29 + $0x10] sm:$0xff] %v1028_v1   ;;  %v1033_v5 = vpack.c.bf16 %v805_v3, %v804_v2 }
 0x277   : > { %1037 = vst [vmem:[%s265_s29 + $0x18] sm:$0xff] %v1033_v5  }
 0x278 PF: > { %s13_s14 = sadd.s32 1, %s1194_s14   ;;  %s1317_s12 = smov %s1190_s13 }
 0x279   : > { %p10_p5 = scmp.ge.s32.totalorder %s13_s14, 4   ;;  %s1318_s13 = smov %s1320_s15 }
 0x27b   :  { %12 = sbr.rel (!%p10_p5) target bundleno = 2 (0x2), region = 68 }

// kernel: hybrid_encoder_forward.16
= control target key start
LH: loop header
LB: loop body
LE: loop exit
PB: predicated region body
PF: predicated region fallthrough
CT: control target
= control target key end

     0   :  { %s1258_s12 = smov 0   ;;  %s1486_s0 = inlined_call_operand.vmem [shape: bf16[32,1024], index: 0, kind: input, shape index: {}]   ;;  %s1487_s1 = inlined_call_operand.vmem [shape: bf16[1024,128], index: 1, kind: input, shape index: {}]   ;;  %s1488_s2 = inlined_call_operand.vmem [shape: f32[1,128], index: 2, kind: input, shape index: {}]   ;;  %s1489_s3 = inlined_call_operand.vmem [shape: bf16[32,128], index: 3, kind: output, shape index: {}]  }
   0x1 LB: > { %s975_s13 = sadd.s32 4294967295, %s1236_s12   ;;  %p979_p0 = scmp.ge.s32.totalorder %s1236_s12, 1  ;;  %s1236_s12 = sphi %s1258_s12, %s13_s12  }
   0x2   : > { %p139_p1 = scmp.lt.s32.totalorder %s1236_s12, 3 }
   0x4   : > { %p140_p2 = pnand %p979_p0, %p139_p1 }
   0x5   : > { %v1166_v0 = vld [vmem:[%s1487_s1 + $0x40] sm:$0xff] (!%p140_p2)   ;;  %v1170_v4 = vld [vmem:[%s1487_s1 + $0x48] sm:$0xff] (!%p140_p2)   ;;  %v1174_v8 = vld [vmem:[%s1487_s1 + $0x50] sm:$0xff] (!%p140_p2)   ;;  %s980_s21 = sshll.u32 (!%p140_p2), %s975_s13, 1 }
   0x6   : > { %143 = sbr.rel (%p140_p2) target bundleno = 295 (0x127), region = 32  ;;  %v1167_v1 = vld [vmem:[%s1487_s1 + $0xc0] sm:$0xff] (!%p140_p2)   ;;  %1070 = vmatprep.subr.bf16.mxu0 (!%p140_p2), %v1166_v0  ;;  %v1171_v5 = vld [vmem:[%s1487_s1 + $0xc8] sm:$0xff] (!%p140_p2)   ;;  %v1175_v9 = vld [vmem:[%s1487_s1 + $0xd0] sm:$0xff] (!%p140_p2)   ;;  %p165_p3 = scmp.lt.s32.totalorder (!%p140_p2), %s980_s21, 3 }
   0x7   : > { %v1168_v2 = vld [vmem:[%s1487_s1] sm:$0xff] (!%p140_p2)   ;;  %1092 = vmatprep.subr.bf16.mxu1 (!%p140_p2), %v1167_v1  ;;  %v1172_v6 = vld [vmem:[%s1487_s1 + $0x8] sm:$0xff] (!%p140_p2)   ;;  %v1176_v10 = vld [vmem:[%s1487_s1 + $0x10] sm:$0xff] (!%p140_p2)  }
   0x8   : > { %v1169_v3 = vld [vmem:[%s1487_s1 + $0x80] sm:$0xff] (!%p140_p2)   ;;  %1071 = vmatpush3.bf16.msra.mxu0 (!%p140_p2), %v1168_v2  ;;  %v1173_v7 = vld [vmem:[%s1487_s1 + $0x88] sm:$0xff] (!%p140_p2)   ;;  %v1177_v11 = vld [vmem:[%s1487_s1 + $0x90] sm:$0xff] (!%p140_p2)  }
   0x9   : > { %1093 = vmatpush3.bf16.msra.mxu1 (!%p140_p2), %v1169_v3  ;;  %1072 = vmatprep.subr.bf16.mxu0 (!%p140_p2), %v1170_v4  ;;  %v1178_v12 = vld [vmem:[%s1487_s1 + $0x58] sm:$0xff] (!%p140_p2)   ;;  %v1182_v16 = vld [vmem:[%s1487_s1 + $0x60] sm:$0xff] (!%p140_p2)   ;;  %v1186_v20 = vld [vmem:[%s1487_s1 + $0x68] sm:$0xff] (!%p140_p2)  }
   0xa   : > { %1094 = vmatprep.subr.bf16.mxu1 (!%p140_p2), %v1171_v5  ;;  %v1179_v13 = vld [vmem:[%s1487_s1 + $0xd8] sm:$0xff] (!%p140_p2)   ;;  %v1183_v17 = vld [vmem:[%s1487_s1 + $0xe0] sm:$0xff] (!%p140_p2)   ;;  %v1187_v21 = vld [vmem:[%s1487_s1 + $0xe8] sm:$0xff] (!%p140_p2)  }
   0xb   : > { %v1180_v14 = vld [vmem:[%s1487_s1 + $0x18] sm:$0xff] (!%p140_p2)   ;;  %v1184_v18 = vld [vmem:[%s1487_s1 + $0x20] sm:$0xff] (!%p140_p2)   ;;  %v1188_v22 = vld [vmem:[%s1487_s1 + $0x28] sm:$0xff] (!%p140_p2)  }
   0xc   : > { %1073 = vmatpush3.bf16.msra.mxu0 (!%p140_p2), %v1172_v6  ;;  %v1181_v15 = vld [vmem:[%s1487_s1 + $0x98] sm:$0xff] (!%p140_p2)   ;;  %v1185_v19 = vld [vmem:[%s1487_s1 + $0xa0] sm:$0xff] (!%p140_p2)   ;;  %v1189_v23 = vld [vmem:[%s1487_s1 + $0xa8] sm:$0xff] (!%p140_p2)  }
   0xd   : > { %1095 = vmatpush3.bf16.msra.mxu1 %v1173_v7  ;;  %1074 = vmatprep.subr.bf16.mxu0 %v1174_v8  ;;  %s1491_s21 = smov (!%p165_p3, %s980_s21), 3  ;;  %v1190_v24 = vld [vmem:[%s1487_s1 + $0x70] sm:$0xff]   ;;  %v1194_v28 = vld [vmem:[%s1487_s1 + $0x78] sm:$0xff]   ;;  %v1198_v40 = vld [vmem:[%s1487_s1 + $0x140] sm:$0xff]  }
   0xe   : > { %1096 = vmatprep.subr.bf16.mxu1 %v1175_v9  ;;  %v1191_v25 = vld [vmem:[%s1487_s1 + $0xf0] sm:$0xff]   ;;  %s1062_s18 = sshll.u32 %s1491_s21, 5  ;;  %v1195_v29 = vld [vmem:[%s1487_s1 + $0xf8] sm:$0xff]   ;;  %v1199_v41 = vld [vmem:[%s1487_s1 + $0x1c0] sm:$0xff]  }
   0xf   : > { %v1192_v26 = vld [vmem:[%s1487_s1 + $0x30] sm:$0xff]   ;;  %s1364_s28 = scalar_lea.vmem %s1486_s0, %s1062_s18  ;;  %v1196_v30 = vld [vmem:[%s1487_s1 + $0x38] sm:$0xff]   ;;  %v1200_v42 = vld [vmem:[%s1487_s1 + $0x100] sm:$0xff]  }
  0x10   : > { %1075 = vmatpush3.bf16.msra.mxu0 %v1176_v10  ;;  %v1193_v27 = vld [vmem:[%s1487_s1 + $0xb0] sm:$0xff]   ;;  %v1197_v31 = vld [vmem:[%s1487_s1 + $0xb8] sm:$0xff]   ;;  %v178_v32 = vld [vmem:[%s1364_s28] sm:$0xff] }
  0x11   : > { %1097 = vmatpush3.bf16.msra.mxu1 %v1177_v11  ;;  %1076 = vmatprep.subr.bf16.mxu0 %v1178_v12  ;;  %v182_v33 = vld [vmem:[%s1364_s28 + $0x20] sm:$0xff]  ;;  %v179_v34 = vld [vmem:[%s1364_s28 + $0x8] sm:$0xff]  ;;  %v1206_v48 = vld [vmem:[%s1487_s1 + $0x150] sm:$0xff]  }
  0x12   : > { %1098 = vmatprep.subr.bf16.mxu1 %v1179_v13  ;;  %v986_v35 = vcombine.low %v178_v32, %v182_v33  ;;  %v987_v36 = vcombine.high %v178_v32, %v182_v33  ;;  %v183_v37 = vld [vmem:[%s1364_s28 + $0x28] sm:$0xff]  ;;  %v1201_v43 = vld [vmem:[%s1487_s1 + $0x180] sm:$0xff]   ;;  %v1207_v49 = vld [vmem:[%s1487_s1 + $0x1d0] sm:$0xff]  }
  0x13   : > { %v988_v38 = vcombine.low %v179_v34, %v183_v37  ;;  %v989_v39 = vcombine.high %v179_v34, %v183_v37  ;;  %v1202_v44 = vld [vmem:[%s1487_s1 + $0x148] sm:$0xff]   ;;  %v1208_v50 = vld [vmem:[%s1487_s1 + $0x110] sm:$0xff]   ;;  %v1210_v52 = vld [vmem:[%s1487_s1 + $0x158] sm:$0xff]  }
  0x14   : > { %1077 = vmatpush3.bf16.msra.mxu0 %v1180_v14  ;;  %777 = vmatprep.mubr.bf16.mxu0 %v987_v36  ;;  %v1203_v45 = vld [vmem:[%s1487_s1 + $0x1c8] sm:$0xff]   ;;  %v1209_v51 = vld [vmem:[%s1487_s1 + $0x190] sm:$0xff]   ;;  %v1211_v53 = vld [vmem:[%s1487_s1 + $0x1d8] sm:$0xff]  }
  0x15   : > { %1099 = vmatpush3.bf16.msra.mxu1 %v1181_v15  ;;  %1078 = vmatprep.subr.bf16.mxu0 %v1182_v16  ;;  %v1204_v46 = vld [vmem:[%s1487_s1 + $0x108] sm:$0xff]   ;;  %v1212_v54 = vld [vmem:[%s1487_s1 + $0x118] sm:$0xff]   ;;  %v1214_v56 = vld [vmem:[%s1487_s1 + $0x160] sm:$0xff]  }
  0x16   : > { %1100 = vmatprep.subr.bf16.mxu1 %v1183_v17  ;;  %818 = vmatprep.mubr.bf16.mxu1 %v989_v39  ;;  %v1205_v47 = vld [vmem:[%s1487_s1 + $0x188] sm:$0xff]   ;;  %v1213_v55 = vld [vmem:[%s1487_s1 + $0x198] sm:$0xff]   ;;  %v1215_v57 = vld [vmem:[%s1487_s1 + $0x1e0] sm:$0xff]  }
  0x17   : > { %v1216_v58 = vld [vmem:[%s1487_s1 + $0x120] sm:$0xff]   ;;  %v1218_v60 = vld [vmem:[%s1487_s1 + $0x168] sm:$0xff]   ;;  %v1222_v0 = vld [vmem:[%s1487_s1 + $0x170] sm:$0xff]  }
  0x18   : > { %1079 = vmatpush3.bf16.msra.mxu0 %v1184_v18  ;;  %v1217_v59 = vld [vmem:[%s1487_s1 + $0x1a0] sm:$0xff]   ;;  %v1219_v61 = vld [vmem:[%s1487_s1 + $0x1e8] sm:$0xff]   ;;  %v1223_v1 = vld [vmem:[%s1487_s1 + $0x1f0] sm:$0xff]  }
  0x19   : > { %1101 = vmatpush3.bf16.msra.mxu1 %v1185_v19  ;;  %1080 = vmatprep.subr.bf16.mxu0 %v1186_v20  ;;  %v1220_v62 = vld [vmem:[%s1487_s1 + $0x128] sm:$0xff]   ;;  %v1224_v2 = vld [vmem:[%s1487_s1 + $0x130] sm:$0xff]   ;;  %v1226_v4 = vld [vmem:[%s1487_s1 + $0x178] sm:$0xff]  }
  0x1a   : > { %1102 = vmatprep.subr.bf16.mxu1 %v1187_v21  ;;  %v1221_v63 = vld [vmem:[%s1487_s1 + $0x1a8] sm:$0xff]   ;;  %v1225_v3 = vld [vmem:[%s1487_s1 + $0x1b0] sm:$0xff]   ;;  %v1227_v5 = vld [vmem:[%s1487_s1 + $0x1f8] sm:$0xff]  }
  0x1b   : > { %v1228_v6 = vld [vmem:[%s1487_s1 + $0x138] sm:$0xff]   ;;  %v180_v8 = vld [vmem:[%s1364_s28 + $0x10] sm:$0xff]  ;;  %v985_v18 = vld [vmem:[%s1488_s2] ss:$0 sm:$0xff] }
  0x1c   : > { %1081 = vmatpush3.bf16.msra.mxu0 %v1188_v22  ;;  %v1229_v7 = vld [vmem:[%s1487_s1 + $0x1b8] sm:$0xff]   ;;  %v184_v9 = vld [vmem:[%s1364_s28 + $0x30] sm:$0xff] }
  0x1d   : > { %1103 = vmatpush3.bf16.msra.mxu1 %v1189_v23  ;;  %1082 = vmatprep.subr.bf16.mxu0 %v1190_v24  ;;  %v990_v10 = vcombine.low %v180_v8, %v184_v9  ;;  %v991_v11 = vcombine.high %v180_v8, %v184_v9  ;;  %v181_v12 = vld [vmem:[%s1364_s28 + $0x18] sm:$0xff] }
  0x1e   : > { %1104 = vmatprep.subr.bf16.mxu1 %v1191_v25  ;;  %v185_v13 = vld [vmem:[%s1364_s28 + $0x38] sm:$0xff]  ;;  %s984_s28 = sshll.u32 %s1491_s21, 2 }
  0x1f   : > { %v992_v14 = vcombine.low %v181_v12, %v185_v13  ;;  %v993_v15 = vcombine.high %v181_v12, %v185_v13  ;;  %s175_s29 = scalar_lea.vmem %s1489_s3, %s984_s28 }
  0x20   : > { %1083 = vmatpush3.bf16.msra.mxu0 %v1192_v26 }
  0x21   : > { %1105 = vmatpush3.bf16.msra.mxu1 %v1193_v27  ;;  %1084 = vmatprep.subr.bf16.mxu0 %v1194_v28 }
  0x22   : > { %1106 = vmatprep.subr.bf16.mxu1 %v1195_v29 }
  0x24   : > { %1085 = vmatpush3.bf16.msra.mxu0 %v1196_v30 }
  0x25   : > { %1107 = vmatpush3.bf16.msra.mxu1 %v1197_v31  ;;  %1114 = vmatprep.subr.bf16.mxu0 %v1198_v40 }
  0x26   : > { %1136 = vmatprep.subr.bf16.mxu1 %v1199_v41 }
  0x27   : > { %778 = vmatmul.mubr.bf16.vlgmr.msra.gmra.mrb[0].mxu0 %v986_v35 }
  0x28   : > { %819 = vmatmul.mubr.bf16.vlgmr.msra.gmra.mrb[0].mxu1 %v988_v38  ;;  %1115 = vmatpush3.bf16.msra.mxu0 %v1200_v42 }
  0x29   : > { %1137 = vmatpush3.bf16.msra.mxu1 %v1201_v43  ;;  %1116 = vmatprep.subr.bf16.mxu0 %v1202_v44 }
  0x2a   : > { %1138 = vmatprep.subr.bf16.mxu1 %v1203_v45  ;;  %859 = vmatprep.mubr.bf16.mxu0 %v991_v11 }
  0x2b   : > { %900 = vmatprep.mubr.bf16.mxu1 %v993_v15 }
  0x2c   : > { %1117 = vmatpush3.bf16.msra.mxu0 %v1204_v46 }
  0x2d   : > { %1139 = vmatpush3.bf16.msra.mxu1 %v1205_v47  ;;  %1118 = vmatprep.subr.bf16.mxu0 %v1206_v48 }
  0x2e   : > { %1140 = vmatprep.subr.bf16.mxu1 %v1207_v49 }
  0x30   : > { %1119 = vmatpush3.bf16.msra.mxu0 %v1208_v50 }
  0x31   : > { %1141 = vmatpush3.bf16.msra.mxu1 %v1209_v51  ;;  %1120 = vmatprep.subr.bf16.mxu0 %v1210_v52 }
  0x32   : > { %1142 = vmatprep.subr.bf16.mxu1 %v1211_v53 }
  0x34   : > { %1121 = vmatpush3.bf16.msra.mxu0 %v1212_v54 }
  0x35   : > { %1143 = vmatpush3.bf16.msra.mxu1 %v1213_v55  ;;  %1122 = vmatprep.subr.bf16.mxu0 %v1214_v56 }
  0x36   : > { %1144 = vmatprep.subr.bf16.mxu1 %v1215_v57 }
  0x38   : > { %1123 = vmatpush3.bf16.msra.mxu0 %v1216_v58 }
  0x39   : > { %1145 = vmatpush3.bf16.msra.mxu1 %v1217_v59  ;;  %1124 = vmatprep.subr.bf16.mxu0 %v1218_v60 }
  0x3a   : > { %1146 = vmatprep.subr.bf16.mxu1 %v1219_v61 }
  0x3c   : > { %1125 = vmatpush3.bf16.msra.mxu0 %v1220_v62 }
  0x3d   : > { %1147 = vmatpush3.bf16.msra.mxu1 %v1221_v63  ;;  %1126 = vmatprep.subr.bf16.mxu0 %v1222_v0 }
  0x3e   : > { %1148 = vmatprep.subr.bf16.mxu1 %v1223_v1 }
  0x40   : > { %1127 = vmatpush3.bf16.msra.mxu0 %v1224_v2 }
  0x41   : > { %1149 = vmatpush3.bf16.msra.mxu1 %v1225_v3  ;;  %1128 = vmatprep.subr.bf16.mxu0 %v1226_v4 }
  0x42   : > { %1150 = vmatprep.subr.bf16.mxu1 %v1227_v5 }
  0x44   : > { %1129 = vmatpush3.bf16.msra.mxu0 %v1228_v6 }
  0x45   : > { %1151 = vmatpush3.bf16.msra.mxu1 %v1229_v7 }
  0x47   : > { %860 = vmatmul.mubr.bf16.vlgmr.msra.gmra.mrb[4].mxu0 %v990_v10 }
  0x48   : > { %901 = vmatmul.mubr.bf16.vlgmr.msra.gmra.mrb[4].mxu1 %v992_v14 }
  0xfa   : > { %v1086_v16 = vpop.f32.mrb[0].mxu0 }
  0xfb   : > { %v1108_v17 = vpop.f32.mrb[0].mxu1  ;;  %v1087_v19 = vpop.f32.mrb[1].mxu0 }
  0xfc   : > { %v1088_v20 = vadd.f32 %v1087_v19, %v1086_v16  ;;  %v1109_v21 = vpop.f32.mrb[1].mxu1  ;;  %v1089_v22 = vpop.f32.mrb[2].mxu0 }
  0xfd   : > { %v1110_v23 = vadd.f32 %v1109_v21, %v1108_v17  ;;  %v1111_v24 = vpop.f32.mrb[2].mxu1  ;;  %v1090_v25 = vpop.f32.mrb[3].mxu0 }
  0xfe   : > { %v780_v26 = vadd.f32 %v1088_v20, %v985_v18  ;;  %v1091_v27 = vadd.f32 %v1090_v25, %v1089_v22  ;;  %v1112_v28 = vpop.f32.mrb[3].mxu1 }
  0xff   : > { %v1113_v29 = vadd.f32 %v1112_v28, %v1111_v24 }
 0x100   : > { %v821_v30 = vadd.f32 %v1110_v23, %v780_v26  ;;  %v783_v31 = vadd.f32 %v1091_v27, %v985_v18 }
 0x102   : > { %v824_v32 = vadd.f32 %v1113_v29, %v783_v31 }
 0x11a   : > { %v1130_v33 = vpop.f32.mrb[4].mxu0 }
 0x11b   : > { %v1152_v34 = vpop.f32.mrb[4].mxu1  ;;  %v1131_v35 = vpop.f32.mrb[5].mxu0 }
 0x11c   : > { %v1132_v36 = vadd.f32 %v1131_v35, %v1130_v33  ;;  %v1153_v37 = vpop.f32.mrb[5].mxu1  ;;  %v1133_v38 = vpop.f32.mrb[6].mxu0 }
 0x11d   : > { %v1154_v39 = vadd.f32 %v1153_v37, %v1152_v34  ;;  %v1155_v40 = vpop.f32.mrb[6].mxu1  ;;  %v1134_v41 = vpop.f32.mrb[7].mxu0 }
 0x11e   : > { %v862_v42 = vadd.f32 %v1132_v36, %v821_v30  ;;  %v1135_v43 = vadd.f32 %v1134_v41, %v1133_v38  ;;  %v1156_v44 = vpop.f32.mrb[7].mxu1 }
 0x11f   : > { %v1157_v45 = vadd.f32 %v1156_v44, %v1155_v40 }
 0x120   : > { %v903_v46 = vadd.f32 %v1154_v39, %v862_v42  ;;  %v865_v47 = vadd.f32 %v1135_v43, %v824_v32 }
 0x122   : > { %v906_v48 = vadd.f32 %v1157_v45, %v865_v47 }
 0x124   : > { %v1068_v49 = vpack.c.bf16 %v906_v48, %v903_v46 }
 0x126   : > { %1069 = vst [vmem:[%s175_s29] sm:$0xff] %v1068_v49  }
 0x127 PF: > { %s13_s12 = sadd.s32 1, %s1236_s12  }
 0x128   : > { %p10_p4 = scmp.ge.s32.totalorder %s13_s12, 4  }
 0x12a   :  { %12 = sbr.rel (!%p10_p4) target bundleno = 1 (0x1), region = 62 }

// kernel: hybrid_encoder_forward.17
= control target key start
LH: loop header
LB: loop body
LE: loop exit
PB: predicated region body
PF: predicated region fallthrough
CT: control target
= control target key end

     0   :  { %s2953_s13 = smov 0   ;;  %s3472_s0 = inlined_call_operand.vmem [shape: bf16[2,16,128], index: 0, kind: input, shape index: {}]   ;;  %s3473_s1 = inlined_call_operand.vmem [shape: bf16[16,128], index: 1, kind: input, shape index: {}]   ;;  %s3474_s2 = inlined_call_operand.vmem [shape: bf16[4,128,128], index: 2, kind: input, shape index: {}]   ;;  %s3475_s3 = inlined_call_operand.vmem [shape: f32[4,1,128], index: 3, kind: input, shape index: {}]   ;;  %s3476_s4 = inlined_call_operand.vmem [shape: bf16[4,128,128], index: 4, kind: input, shape index: {}]   ;;  %s3477_s5 = inlined_call_operand.vmem [shape: f32[4,1,128], index: 5, kind: input, shape index: {}]   ;;  %s3478_s6 = inlined_call_operand.vmem [shape: bf16[4,128,128], index: 6, kind: input, shape index: {}]   ;;  %s3479_s7 = inlined_call_operand.vmem [shape: f32[4,1,128], index: 7, kind: input, shape index: {}]   ;;  %s3480_s8 = inlined_call_operand.vmem [shape: bf16[2,4,16,128], index: 8, kind: output, shape index: {0}]   ;;  %s3481_s9 = inlined_call_operand.vmem [shape: bf16[2,4,16,128], index: 9, kind: output, shape index: {1}]   ;;  %s3482_s10 = inlined_call_operand.vmem [shape: bf16[2,4,16,128], index: 10, kind: output, shape index: {2}]  }
   0x1 LB: > { %s2016_s14 = sadd.s32 4294967295, %s2894_s13   ;;  %p2020_p0 = scmp.ge.s32.totalorder %s2894_s13, 1  ;;  %s2894_s13 = sphi %s2953_s13, %s21_s13  }
   0x2   : > { %p317_p1 = scmp.lt.s32.totalorder %s2894_s13, 3 }
   0x4   : > { %p318_p2 = pnand %p2020_p0, %p317_p1 }
   0x5   : > { %v2791_v0 = vld [vmem:[%s3474_s2] sm:$0xff] (!%p318_p2)   ;;  %v2896_v1 = vmov (!%p318_p2), 0.0   ;;  %v2793_v3 = vld [vmem:[%s3474_s2 + $0x8] sm:$0xff] (!%p318_p2)   ;;  %vm2897_vm0 = vmmov (!%p318_p2), 0   ;;  %v2795_v5 = vld [vmem:[%s3474_s2 + $0x10] sm:$0xff] (!%p318_p2)   ;;  %p365_p3 = scmp.lt.s32.totalorder (!%p318_p2), %s2016_s14, 1 }
   0x6   : > { %321 = sbr.rel (%p318_p2) target bundleno = 418 (0x1a2), region = 52  ;;  %2541 = vmatprep.subr.bf16.mxu0 (!%p318_p2), %v2896_v1  ;;  %2561 = vmatprep.subr.bf16.mxu1 (!%p318_p2), %v2896_v1  ;;  %v2792_v2 = vld [vmem:[%s3476_s4] sm:$0xff] (!%p318_p2)   ;;  %v2794_v4 = vld [vmem:[%s3476_s4 + $0x8] sm:$0xff] (!%p318_p2)   ;;  %v2796_v6 = vld [vmem:[%s3476_s4 + $0x10] sm:$0xff] (!%p318_p2)  }
   0x7   : > { %2542 = vmatpush3.bf16.msra.mxu0 (!%p318_p2), %v2791_v0  ;;  %2557 = vmatprep.mubr.msk.bf16.mxu0 (!%p318_p2), %vm2897_vm0, %v2896_v1  ;;  %v2797_v7 = vld [vmem:[%s3474_s2 + $0x18] sm:$0xff] (!%p318_p2)   ;;  %v2799_v9 = vld [vmem:[%s3474_s2 + $0x20] sm:$0xff] (!%p318_p2)   ;;  %v2801_v11 = vld [vmem:[%s3474_s2 + $0x28] sm:$0xff] (!%p318_p2)  }
   0x8   : > { %2562 = vmatpush3.bf16.msra.mxu1 (!%p318_p2), %v2792_v2  ;;  %2543 = vmatprep.subr.bf16.mxu0 (!%p318_p2), %v2896_v1  ;;  %v2798_v8 = vld [vmem:[%s3476_s4 + $0x18] sm:$0xff] (!%p318_p2)   ;;  %v2800_v10 = vld [vmem:[%s3476_s4 + $0x20] sm:$0xff] (!%p318_p2)   ;;  %v2802_v12 = vld [vmem:[%s3476_s4 + $0x28] sm:$0xff] (!%p318_p2)  }
   0x9   : > { %2563 = vmatprep.subr.bf16.mxu1 (!%p318_p2), %v2896_v1  ;;  %2577 = vmatprep.mubr.msk.bf16.mxu1 (!%p318_p2), %vm2897_vm0, %v2896_v1  ;;  %v2803_v13 = vld [vmem:[%s3474_s2 + $0x30] sm:$0xff] (!%p318_p2)   ;;  %v388_v16 = vld [vmem:[%s3473_s1] sm:$0xf] (!%p318_p2)  ;;  %v389_v17 = vld [vmem:[%s3473_s1 + $0x4] sm:$0xf] (!%p318_p2) }
   0xa   : > { %v2804_v18 = vld [vmem:[%s3476_s4 + $0x30] sm:$0xff] (!%p318_p2)   ;;  %v2805_v21 = vld [vmem:[%s3474_s2 + $0x38] sm:$0xff] (!%p318_p2)   ;;  %v2807_v24 = vld [vmem:[%s3478_s6] sm:$0xff] (!%p318_p2)  }
   0xb   : > { %2544 = vmatpush3.bf16.msra.mxu0 (!%p318_p2), %v2793_v3  ;;  %v2806_v22 = vld [vmem:[%s3476_s4 + $0x38] sm:$0xff] (!%p318_p2)   ;;  %v2808_v25 = vld [vmem:[%s3474_s2 + $0x40] sm:$0xff] (!%p318_p2)   ;;  %v2809_v26 = vld [vmem:[%s3478_s6 + $0x8] sm:$0xff] (!%p318_p2)  }
   0xc   : > { %2564 = vmatpush3.bf16.msra.mxu1 (!%p318_p2), %v2794_v4  ;;  %2545 = vmatprep.subr.bf16.mxu0 (!%p318_p2), %v2896_v1  ;;  %v2810_v27 = vld [vmem:[%s3474_s2 + $0x48] sm:$0xff] (!%p318_p2)   ;;  %v2811_v28 = vld [vmem:[%s3478_s6 + $0x10] sm:$0xff] (!%p318_p2)   ;;  %v2813_v30 = vld [vmem:[%s3478_s6 + $0x18] sm:$0xff] (!%p318_p2)  }
   0xd   : > { %2565 = vmatprep.subr.bf16.mxu1 %v2896_v1  ;;  %s3484_s14 = smov (!%p365_p3, %s2016_s14), 1  ;;  %v2812_v29 = vld [vmem:[%s3474_s2 + $0x50] sm:$0xff]   ;;  %v2814_v31 = vld [vmem:[%s3474_s2 + $0x58] sm:$0xff]   ;;  %v2815_v32 = vld [vmem:[%s3478_s6 + $0x20] sm:$0xff]  }
   0xe   : > { %s2336_s15 = sshll.u32 %s3484_s14, 3  ;;  %v2816_v33 = vld [vmem:[%s3474_s2 + $0x60] sm:$0xff]   ;;  %v2817_v34 = vld [vmem:[%s3478_s6 + $0x28] sm:$0xff]   ;;  %v2819_v36 = vld [vmem:[%s3478_s6 + $0x30] sm:$0xff]   ;;  %s2337_s21 = sshll.u32 %s3484_s14, 5 }
   0xf   : > { %2546 = vmatpush3.bf16.msra.mxu0 %v2795_v5  ;;  %s369_s20 = scalar_lea.vmem %s3472_s0, %s2336_s15  ;;  %v2818_v35 = vld [vmem:[%s3474_s2 + $0x68] sm:$0xff]   ;;  %v2820_v37 = vld [vmem:[%s3474_s2 + $0x70] sm:$0xff]   ;;  %v2821_v38 = vld [vmem:[%s3478_s6 + $0x38] sm:$0xff]   ;;  %s3415_s24 = scalar_lea.vmem %s3480_s8, %s2337_s21 }
  0x10   : > { %2566 = vmatpush3.bf16.msra.mxu1 %v2796_v6  ;;  %2547 = vmatprep.subr.bf16.mxu0 %v2896_v1  ;;  %v3022_v14 = vld [vmem:[%s369_s20] sm:$0xf]  ;;  %v3024_v15 = vld [vmem:[%s369_s20 + $0x4] sm:$0xf]  ;;  %v2822_v39 = vld [vmem:[%s3474_s2 + $0x78] sm:$0xff]   ;;  %s3420_s27 = scalar_lea.vmem %s3481_s9, %s2337_s21  ;;  %s3433_s15 = scalar_lea.vmem %s3482_s10, %s2337_s21 }
  0x11   : > { %2567 = vmatprep.subr.bf16.mxu1 %v2896_v1  ;;  %v390_v19 = vadd.bf16 %v388_v16, %v3022_v14  ;;  %v391_v20 = vadd.bf16 %v389_v17, %v3024_v15  ;;  %v3121_v40 = vcombine.low %v3022_v14, %v3024_v15  ;;  %v2824_v41 = vld [vmem:[%s3476_s4 + $0x40] sm:$0xff]   ;;  %v2826_v43 = vld [vmem:[%s3476_s4 + $0x48] sm:$0xff]   ;;  %v2828_v45 = vld [vmem:[%s3476_s4 + $0x50] sm:$0xff]  }
  0x12   : > { %v2825_v42 = vld [vmem:[%s3478_s6 + $0x40] sm:$0xff]   ;;  %v2827_v44 = vld [vmem:[%s3478_s6 + $0x48] sm:$0xff]   ;;  %v2829_v46 = vld [vmem:[%s3478_s6 + $0x50] sm:$0xff]  }
  0x13   : > { %2548 = vmatpush3.bf16.msra.mxu0 %v2797_v7  ;;  %v3047_v23 = vcombine.low %v390_v19, %v391_v20  ;;  %v2830_v47 = vld [vmem:[%s3476_s4 + $0x58] sm:$0xff]   ;;  %v2832_v49 = vld [vmem:[%s3476_s4 + $0x60] sm:$0xff]   ;;  %v2834_v51 = vld [vmem:[%s3476_s4 + $0x68] sm:$0xff]  }
  0x14   : > { %2568 = vmatpush3.bf16.msra.mxu1 %v2798_v8  ;;  %2549 = vmatprep.subr.bf16.mxu0 %v2896_v1  ;;  %v2831_v48 = vld [vmem:[%s3478_s6 + $0x58] sm:$0xff]   ;;  %v2833_v50 = vld [vmem:[%s3478_s6 + $0x60] sm:$0xff]   ;;  %v2835_v52 = vld [vmem:[%s3478_s6 + $0x68] sm:$0xff]  }
  0x15   : > { %2569 = vmatprep.subr.bf16.mxu1 %v2896_v1  ;;  %v2836_v53 = vld [vmem:[%s3476_s4 + $0x70] sm:$0xff]   ;;  %v2838_v55 = vld [vmem:[%s3476_s4 + $0x78] sm:$0xff]   ;;  %v2840_v57 = vld [vmem:[%s3474_s2 + $0x80] sm:$0xff]  }
  0x16   : > { %v2837_v54 = vld [vmem:[%s3478_s6 + $0x70] sm:$0xff]   ;;  %v2839_v56 = vld [vmem:[%s3478_s6 + $0x78] sm:$0xff]   ;;  %v2841_v58 = vld [vmem:[%s3476_s4 + $0x80] sm:$0xff]  }
  0x17   : > { %2550 = vmatpush3.bf16.msra.mxu0 %v2799_v9  ;;  %v2842_v59 = vld [vmem:[%s3474_s2 + $0x88] sm:$0xff]   ;;  %v2844_v61 = vld [vmem:[%s3474_s2 + $0x90] sm:$0xff]   ;;  %v2846_v63 = vld [vmem:[%s3474_s2 + $0x98] sm:$0xff]  }
  0x18   : > { %2570 = vmatpush3.bf16.msra.mxu1 %v2800_v10  ;;  %2551 = vmatprep.subr.bf16.mxu0 %v2896_v1  ;;  %v2843_v60 = vld [vmem:[%s3476_s4 + $0x88] sm:$0xff]   ;;  %v2845_v62 = vld [vmem:[%s3476_s4 + $0x90] sm:$0xff]   ;;  %v2847_v0 = vld [vmem:[%s3476_s4 + $0x98] sm:$0xff]  }
  0x19   : > { %2571 = vmatprep.subr.bf16.mxu1 %v2896_v1  ;;  %v2848_v2 = vld [vmem:[%s3474_s2 + $0xa0] sm:$0xff]   ;;  %v2850_v4 = vld [vmem:[%s3474_s2 + $0xa8] sm:$0xff]   ;;  %v2852_v6 = vld [vmem:[%s3474_s2 + $0xb0] sm:$0xff]  }
  0x1a   : > { %v2849_v3 = vld [vmem:[%s3476_s4 + $0xa0] sm:$0xff]   ;;  %v2851_v5 = vld [vmem:[%s3476_s4 + $0xa8] sm:$0xff]   ;;  %v2853_v7 = vld [vmem:[%s3476_s4 + $0xb0] sm:$0xff]  }
  0x1b   : > { %2552 = vmatpush3.bf16.msra.mxu0 %v2801_v11  ;;  %v2854_v8 = vld [vmem:[%s3474_s2 + $0xb8] sm:$0xff]   ;;  %v2856_v10 = vld [vmem:[%s3478_s6 + $0x80] sm:$0xff]   ;;  %v2860_v14 = vld [vmem:[%s3478_s6 + $0x90] sm:$0xff]  }
  0x1c   : > { %2572 = vmatpush3.bf16.msra.mxu1 %v2802_v12  ;;  %2553 = vmatprep.subr.bf16.mxu0 %v2896_v1  ;;  %v2855_v9 = vld [vmem:[%s3476_s4 + $0xb8] sm:$0xff]   ;;  %v2857_v11 = vld [vmem:[%s3474_s2 + $0xc0] sm:$0xff]   ;;  %v2858_v12 = vld [vmem:[%s3478_s6 + $0x88] sm:$0xff]  }
  0x1d   : > { %2573 = vmatprep.subr.bf16.mxu1 %v2896_v1  ;;  %v2861_v15 = vld [vmem:[%s3474_s2 + $0xd0] sm:$0xff]   ;;  %v2862_v16 = vld [vmem:[%s3478_s6 + $0x98] sm:$0xff]   ;;  %v2865_v19 = vld [vmem:[%s3474_s2 + $0xe0] sm:$0xff]  }
  0x1e   : > { %v2863_v17 = vld [vmem:[%s3474_s2 + $0xd8] sm:$0xff]   ;;  %v2866_v20 = vld [vmem:[%s3478_s6 + $0xa8] sm:$0xff]  }
  0x1f   : > { %2554 = vmatpush3.bf16.msra.mxu0 %v2803_v13  ;;  %v2859_v13 = vld [vmem:[%s3474_s2 + $0xc8] sm:$0xff]  }
  0x20   : > { %2574 = vmatpush3.bf16.msra.mxu1 %v2804_v18  ;;  %2555 = vmatprep.subr.bf16.mxu0 %v2896_v1  ;;  %v2864_v18 = vld [vmem:[%s3478_s6 + $0xa0] sm:$0xff]  }
  0x21   : > { %2575 = vmatprep.subr.bf16.mxu1 %v2896_v1 }
  0x23   : > { %2556 = vmatpush3.bf16.msra.mxu0 %v2805_v21  ;;  %v2867_v21 = vld [vmem:[%s3474_s2 + $0xe8] sm:$0xff]  }
  0x24   : > { %2576 = vmatpush3.bf16.msra.mxu1 %v2806_v22  ;;  %2581 = vmatprep.subr.bf16.mxu0 %v2896_v1  ;;  %v2868_v22 = vld [vmem:[%s3478_s6 + $0xb0] sm:$0xff]  }
  0x25   : > { %2601 = vmatprep.subr.bf16.mxu1 %v2896_v1 }
  0x26   : > { %2558 = vmatmul.mubr.bf16.vlgmr.msra.gmra.mrb[0].mxu0 %v3047_v23 }
  0x27   : > { %2578 = vmatmul.mubr.bf16.vlgmr.msra.gmra.mrb[0].mxu1 %v3047_v23  ;;  %2582 = vmatpush3.bf16.msra.mxu0 %v2807_v24  ;;  %v2869_v24 = vld [vmem:[%s3474_s2 + $0xf0] sm:$0xff]  }
  0x28   : > { %2602 = vmatpush3.bf16.msra.mxu1 %v2808_v25  ;;  %2583 = vmatprep.subr.bf16.mxu0 %v2896_v1  ;;  %v2870_v25 = vld [vmem:[%s3478_s6 + $0xb8] sm:$0xff]  }
  0x29   : > { %2603 = vmatprep.subr.bf16.mxu1 %v2896_v1  ;;  %2597 = vmatprep.mubr.msk.bf16.mxu0 %vm2897_vm0, %v2896_v1 }
  0x2a   : > { %2617 = vmatprep.mubr.msk.bf16.mxu1 %vm2897_vm0, %v2896_v1 }
  0x2b   : > { %2584 = vmatpush3.bf16.msra.mxu0 %v2809_v26  ;;  %v2871_v26 = vld [vmem:[%s3474_s2 + $0xf8] sm:$0xff]  }
  0x2c   : > { %2604 = vmatpush3.bf16.msra.mxu1 %v2810_v27  ;;  %2585 = vmatprep.subr.bf16.mxu0 %v2896_v1  ;;  %v2872_v27 = vld [vmem:[%s3476_s4 + $0xc0] sm:$0xff]  }
  0x2d   : > { %2605 = vmatprep.subr.bf16.mxu1 %v2896_v1 }
  0x2f   : > { %2586 = vmatpush3.bf16.msra.mxu0 %v2811_v28  ;;  %v2873_v28 = vld [vmem:[%s3478_s6 + $0xc0] sm:$0xff]  }
  0x30   : > { %2606 = vmatpush3.bf16.msra.mxu1 %v2812_v29  ;;  %2587 = vmatprep.subr.bf16.mxu0 %v2896_v1  ;;  %v2874_v29 = vld [vmem:[%s3476_s4 + $0xc8] sm:$0xff]  }
  0x31   : > { %2607 = vmatprep.subr.bf16.mxu1 %v2896_v1 }
  0x33   : > { %2588 = vmatpush3.bf16.msra.mxu0 %v2813_v30  ;;  %v2875_v30 = vld [vmem:[%s3478_s6 + $0xc8] sm:$0xff]  }
  0x34   : > { %2608 = vmatpush3.bf16.msra.mxu1 %v2814_v31  ;;  %2589 = vmatprep.subr.bf16.mxu0 %v2896_v1  ;;  %v2876_v31 = vld [vmem:[%s3476_s4 + $0xd0] sm:$0xff]  }
  0x35   : > { %2609 = vmatprep.subr.bf16.mxu1 %v2896_v1 }
  0x37   : > { %2590 = vmatpush3.bf16.msra.mxu0 %v2815_v32  ;;  %v2877_v32 = vld [vmem:[%s3478_s6 + $0xd0] sm:$0xff]  }
  0x38   : > { %2610 = vmatpush3.bf16.msra.mxu1 %v2816_v33  ;;  %2591 = vmatprep.subr.bf16.mxu0 %v2896_v1  ;;  %v2878_v33 = vld [vmem:[%s3476_s4 + $0xd8] sm:$0xff]  }
  0x39   : > { %2611 = vmatprep.subr.bf16.mxu1 %v2896_v1 }
  0x3b   : > { %2592 = vmatpush3.bf16.msra.mxu0 %v2817_v34  ;;  %v2879_v34 = vld [vmem:[%s3478_s6 + $0xd8] sm:$0xff]  }
  0x3c   : > { %2612 = vmatpush3.bf16.msra.mxu1 %v2818_v35  ;;  %2593 = vmatprep.subr.bf16.mxu0 %v2896_v1  ;;  %v2880_v35 = vld [vmem:[%s3476_s4 + $0xe0] sm:$0xff]  }
  0x3d   : > { %2613 = vmatprep.subr.bf16.mxu1 %v2896_v1 }
  0x3f   : > { %2594 = vmatpush3.bf16.msra.mxu0 %v2819_v36  ;;  %v2881_v36 = vld [vmem:[%s3478_s6 + $0xe0] sm:$0xff]  }
  0x40   : > { %2614 = vmatpush3.bf16.msra.mxu1 %v2820_v37  ;;  %2595 = vmatprep.subr.bf16.mxu0 %v2896_v1  ;;  %v2882_v37 = vld [vmem:[%s3476_s4 + $0xe8] sm:$0xff]  }
  0x41   : > { %2615 = vmatprep.subr.bf16.mxu1 %v2896_v1 }
  0x43   : > { %2596 = vmatpush3.bf16.msra.mxu0 %v2821_v38  ;;  %v2883_v38 = vld [vmem:[%s3478_s6 + $0xe8] sm:$0xff]  }
  0x44   : > { %2616 = vmatpush3.bf16.msra.mxu1 %v2822_v39  ;;  %2621 = vmatprep.subr.bf16.mxu0 %v2896_v1  ;;  %v2884_v39 = vld [vmem:[%s3476_s4 + $0xf0] sm:$0xff]  }
  0x45   : > { %2641 = vmatprep.subr.bf16.mxu1 %v2896_v1 }
  0x46   : > { %2598 = vmatmul.mubr.bf16.vlgmr.msra.gmra.mrb[4].mxu0 %v3121_v40 }
  0x47   : > { %2618 = vmatmul.mubr.bf16.vlgmr.msra.gmra.mrb[4].mxu1 %v3047_v23  ;;  %2622 = vmatpush3.bf16.msra.mxu0 %v2824_v41  ;;  %v2885_v41 = vld [vmem:[%s3478_s6 + $0xf0] sm:$0xff]  }
  0x48   : > { %2642 = vmatpush3.bf16.msra.mxu1 %v2825_v42  ;;  %2623 = vmatprep.subr.bf16.mxu0 %v2896_v1  ;;  %v2886_v42 = vld [vmem:[%s3476_s4 + $0xf8] sm:$0xff]  }
  0x49   : > { %2643 = vmatprep.subr.bf16.mxu1 %v2896_v1  ;;  %2637 = vmatprep.mubr.msk.bf16.mxu0 %vm2897_vm0, %v2896_v1 }
  0x4a   : > { %2657 = vmatprep.mubr.msk.bf16.mxu1 %vm2897_vm0, %v2896_v1 }
  0x4b   : > { %2624 = vmatpush3.bf16.msra.mxu0 %v2826_v43  ;;  %v2887_v43 = vld [vmem:[%s3478_s6 + $0xf8] sm:$0xff]  }
  0x4c   : > { %2644 = vmatpush3.bf16.msra.mxu1 %v2827_v44  ;;  %2625 = vmatprep.subr.bf16.mxu0 %v2896_v1  ;;  %v2029_v44 = vld [vmem:[%s3475_s3] ss:$0 sm:$0xff] }
  0x4d   : > { %2645 = vmatprep.subr.bf16.mxu1 %v2896_v1 }
  0x4f   : > { %2626 = vmatpush3.bf16.msra.mxu0 %v2828_v45  ;;  %v2039_v45 = vld [vmem:[%s3477_s5] ss:$0 sm:$0xff] }
  0x50   : > { %2646 = vmatpush3.bf16.msra.mxu1 %v2829_v46  ;;  %2627 = vmatprep.subr.bf16.mxu0 %v2896_v1 }
  0x51   : > { %2647 = vmatprep.subr.bf16.mxu1 %v2896_v1 }
  0x53   : > { %2628 = vmatpush3.bf16.msra.mxu0 %v2830_v47 }
  0x54   : > { %2648 = vmatpush3.bf16.msra.mxu1 %v2831_v48  ;;  %2629 = vmatprep.subr.bf16.mxu0 %v2896_v1 }
  0x55   : > { %2649 = vmatprep.subr.bf16.mxu1 %v2896_v1 }
  0x57   : > { %2630 = vmatpush3.bf16.msra.mxu0 %v2832_v49 }
  0x58   : > { %2650 = vmatpush3.bf16.msra.mxu1 %v2833_v50  ;;  %2631 = vmatprep.subr.bf16.mxu0 %v2896_v1 }
  0x59   : > { %2651 = vmatprep.subr.bf16.mxu1 %v2896_v1 }
  0x5b   : > { %2632 = vmatpush3.bf16.msra.mxu0 %v2834_v51 }
  0x5c   : > { %2652 = vmatpush3.bf16.msra.mxu1 %v2835_v52  ;;  %2633 = vmatprep.subr.bf16.mxu0 %v2896_v1 }
  0x5d   : > { %2653 = vmatprep.subr.bf16.mxu1 %v2896_v1 }
  0x5f   : > { %2634 = vmatpush3.bf16.msra.mxu0 %v2836_v53 }
  0x60   : > { %2654 = vmatpush3.bf16.msra.mxu1 %v2837_v54  ;;  %2635 = vmatprep.subr.bf16.mxu0 %v2896_v1 }
  0x61   : > { %2655 = vmatprep.subr.bf16.mxu1 %v2896_v1 }
  0x63   : > { %2636 = vmatpush3.bf16.msra.mxu0 %v2838_v55 }
  0x64   : > { %2656 = vmatpush3.bf16.msra.mxu1 %v2839_v56  ;;  %2661 = vmatprep.subr.bf16.mxu0 %v2896_v1 }
  0x65   : > { %2681 = vmatprep.subr.bf16.mxu1 %v2896_v1 }
  0x66   : > { %2638 = vmatmul.mubr.bf16.vlgmr.msra.gmra.mrb[8].mxu0 %v3047_v23 }
  0x67   : > { %2658 = vmatmul.mubr.bf16.vlgmr.msra.gmra.mrb[8].mxu1 %v3121_v40  ;;  %2662 = vmatpush3.bf16.msra.mxu0 %v2840_v57  ;;  %v2048_v57 = vld [vmem:[%s3479_s7] ss:$0 sm:$0xff] }
  0x68   : > { %2682 = vmatpush3.bf16.msra.mxu1 %v2841_v58  ;;  %2663 = vmatprep.subr.bf16.mxu0 %v2896_v1  ;;  %v2081_v58 = vld [vmem:[%s3475_s3 + $0x1] ss:$0 sm:$0xff] }
  0x69   : > { %2683 = vmatprep.subr.bf16.mxu1 %v2896_v1  ;;  %2677 = vmatprep.mubr.msk.bf16.mxu0 %vm2897_vm0, %v2896_v1 }
  0x6a   : > { %2697 = vmatprep.mubr.msk.bf16.mxu1 %vm2897_vm0, %v2896_v1 }
  0x6b   : > { %2664 = vmatpush3.bf16.msra.mxu0 %v2842_v59 }
  0x6c   : > { %2684 = vmatpush3.bf16.msra.mxu1 %v2843_v60  ;;  %2665 = vmatprep.subr.bf16.mxu0 %v2896_v1 }
  0x6d   : > { %2685 = vmatprep.subr.bf16.mxu1 %v2896_v1 }
  0x6f   : > { %2666 = vmatpush3.bf16.msra.mxu0 %v2844_v61 }
  0x70   : > { %2686 = vmatpush3.bf16.msra.mxu1 %v2845_v62  ;;  %2667 = vmatprep.subr.bf16.mxu0 %v2896_v1 }
  0x71   : > { %2687 = vmatprep.subr.bf16.mxu1 %v2896_v1 }
  0x73   : > { %2668 = vmatpush3.bf16.msra.mxu0 %v2846_v63 }
  0x74   : > { %2688 = vmatpush3.bf16.msra.mxu1 %v2847_v0  ;;  %2669 = vmatprep.subr.bf16.mxu0 %v2896_v1 }
  0x75   : > { %2689 = vmatprep.subr.bf16.mxu1 %v2896_v1 }
  0x77   : > { %2670 = vmatpush3.bf16.msra.mxu0 %v2848_v2 }
  0x78   : > { %2690 = vmatpush3.bf16.msra.mxu1 %v2849_v3  ;;  %2671 = vmatprep.subr.bf16.mxu0 %v2896_v1 }
  0x79   : > { %2691 = vmatprep.subr.bf16.mxu1 %v2896_v1 }
  0x7b   : > { %2672 = vmatpush3.bf16.msra.mxu0 %v2850_v4 }
  0x7c   : > { %2692 = vmatpush3.bf16.msra.mxu1 %v2851_v5  ;;  %2673 = vmatprep.subr.bf16.mxu0 %v2896_v1 }
  0x7d   : > { %2693 = vmatprep.subr.bf16.mxu1 %v2896_v1 }
  0x7f   : > { %2674 = vmatpush3.bf16.msra.mxu0 %v2852_v6 }
  0x80   : > { %2694 = vmatpush3.bf16.msra.mxu1 %v2853_v7  ;;  %2675 = vmatprep.subr.bf16.mxu0 %v2896_v1 }
  0x81   : > { %2695 = vmatprep.subr.bf16.mxu1 %v2896_v1 }
  0x83   : > { %2676 = vmatpush3.bf16.msra.mxu0 %v2854_v8 }
  0x84   : > { %2696 = vmatpush3.bf16.msra.mxu1 %v2855_v9  ;;  %2701 = vmatprep.subr.bf16.mxu0 %v2896_v1 }
  0x85   : > { %2721 = vmatprep.subr.bf16.mxu1 %v2896_v1 }
  0x86   : > { %2678 = vmatmul.mubr.bf16.vlgmr.msra.gmra.mrb[12].mxu0 %v3047_v23 }
  0x87   : > { %2698 = vmatmul.mubr.bf16.vlgmr.msra.gmra.mrb[12].mxu1 %v3047_v23  ;;  %2702 = vmatpush3.bf16.msra.mxu0 %v2856_v10  ;;  %v2107_v10 = vld [vmem:[%s3477_s5 + $0x1] ss:$0 sm:$0xff] }
  0x88   : > { %2722 = vmatpush3.bf16.msra.mxu1 %v2857_v11  ;;  %2703 = vmatprep.subr.bf16.mxu0 %v2896_v1  ;;  %v2133_v11 = vld [vmem:[%s3479_s7 + $0x1] ss:$0 sm:$0xff] }
  0x89   : > { %2723 = vmatprep.subr.bf16.mxu1 %v2896_v1  ;;  %2717 = vmatprep.mubr.msk.bf16.mxu0 %vm2897_vm0, %v2896_v1 }
  0x8a   : > { %2737 = vmatprep.mubr.msk.bf16.mxu1 %vm2897_vm0, %v2896_v1 }
  0x8b   : > { %2704 = vmatpush3.bf16.msra.mxu0 %v2858_v12 }
  0x8c   : > { %2724 = vmatpush3.bf16.msra.mxu1 %v2859_v13  ;;  %2705 = vmatprep.subr.bf16.mxu0 %v2896_v1 }
  0x8d   : > { %2725 = vmatprep.subr.bf16.mxu1 %v2896_v1 }
  0x8f   : > { %2706 = vmatpush3.bf16.msra.mxu0 %v2860_v14 }
  0x90   : > { %2726 = vmatpush3.bf16.msra.mxu1 %v2861_v15  ;;  %2707 = vmatprep.subr.bf16.mxu0 %v2896_v1 }
  0x91   : > { %2727 = vmatprep.subr.bf16.mxu1 %v2896_v1 }
  0x93   : > { %2708 = vmatpush3.bf16.msra.mxu0 %v2862_v16 }
  0x94   : > { %2728 = vmatpush3.bf16.msra.mxu1 %v2863_v17  ;;  %2709 = vmatprep.subr.bf16.mxu0 %v2896_v1 }
  0x95   : > { %2729 = vmatprep.subr.bf16.mxu1 %v2896_v1 }
  0x97   : > { %2710 = vmatpush3.bf16.msra.mxu0 %v2864_v18 }
  0x98   : > { %2730 = vmatpush3.bf16.msra.mxu1 %v2865_v19  ;;  %2711 = vmatprep.subr.bf16.mxu0 %v2896_v1 }
  0x99   : > { %2731 = vmatprep.subr.bf16.mxu1 %v2896_v1 }
  0x9b   : > { %2712 = vmatpush3.bf16.msra.mxu0 %v2866_v20 }
  0x9c   : > { %2732 = vmatpush3.bf16.msra.mxu1 %v2867_v21  ;;  %2713 = vmatprep.subr.bf16.mxu0 %v2896_v1 }
  0x9d   : > { %2733 = vmatprep.subr.bf16.mxu1 %v2896_v1 }
  0x9f   : > { %2714 = vmatpush3.bf16.msra.mxu0 %v2868_v22 }
  0xa0   : > { %2734 = vmatpush3.bf16.msra.mxu1 %v2869_v24  ;;  %2715 = vmatprep.subr.bf16.mxu0 %v2896_v1 }
  0xa1   : > { %2735 = vmatprep.subr.bf16.mxu1 %v2896_v1 }
  0xa3   : > { %2716 = vmatpush3.bf16.msra.mxu0 %v2870_v25 }
  0xa4   : > { %2736 = vmatpush3.bf16.msra.mxu1 %v2871_v26  ;;  %2741 = vmatprep.subr.bf16.mxu0 %v2896_v1 }
  0xa5   : > { %2761 = vmatprep.subr.bf16.mxu1 %v2896_v1 }
  0xa6   : > { %2718 = vmatmul.mubr.bf16.vlgmr.msra.gmra.mrb[16].mxu0 %v3121_v40 }
  0xa7   : > { %2738 = vmatmul.mubr.bf16.vlgmr.msra.gmra.mrb[16].mxu1 %v3047_v23  ;;  %2742 = vmatpush3.bf16.msra.mxu0 %v2872_v27  ;;  %v2171_v27 = vld [vmem:[%s3475_s3 + $0x2] ss:$0 sm:$0xff] }
  0xa8   : > { %2762 = vmatpush3.bf16.msra.mxu1 %v2873_v28  ;;  %2743 = vmatprep.subr.bf16.mxu0 %v2896_v1  ;;  %v2197_v28 = vld [vmem:[%s3477_s5 + $0x2] ss:$0 sm:$0xff] }
  0xa9   : > { %2763 = vmatprep.subr.bf16.mxu1 %v2896_v1  ;;  %2757 = vmatprep.mubr.msk.bf16.mxu0 %vm2897_vm0, %v2896_v1 }
  0xaa   : > { %2777 = vmatprep.mubr.msk.bf16.mxu1 %vm2897_vm0, %v2896_v1 }
  0xab   : > { %2744 = vmatpush3.bf16.msra.mxu0 %v2874_v29 }
  0xac   : > { %2764 = vmatpush3.bf16.msra.mxu1 %v2875_v30  ;;  %2745 = vmatprep.subr.bf16.mxu0 %v2896_v1 }
  0xad   : > { %2765 = vmatprep.subr.bf16.mxu1 %v2896_v1 }
  0xaf   : > { %2746 = vmatpush3.bf16.msra.mxu0 %v2876_v31 }
  0xb0   : > { %2766 = vmatpush3.bf16.msra.mxu1 %v2877_v32  ;;  %2747 = vmatprep.subr.bf16.mxu0 %v2896_v1 }
  0xb1   : > { %2767 = vmatprep.subr.bf16.mxu1 %v2896_v1 }
  0xb3   : > { %2748 = vmatpush3.bf16.msra.mxu0 %v2878_v33 }
  0xb4   : > { %2768 = vmatpush3.bf16.msra.mxu1 %v2879_v34  ;;  %2749 = vmatprep.subr.bf16.mxu0 %v2896_v1 }
  0xb5   : > { %2769 = vmatprep.subr.bf16.mxu1 %v2896_v1 }
  0xb7   : > { %2750 = vmatpush3.bf16.msra.mxu0 %v2880_v35 }
  0xb8   : > { %2770 = vmatpush3.bf16.msra.mxu1 %v2881_v36  ;;  %2751 = vmatprep.subr.bf16.mxu0 %v2896_v1 }
  0xb9   : > { %2771 = vmatprep.subr.bf16.mxu1 %v2896_v1 }
  0xbb   : > { %2752 = vmatpush3.bf16.msra.mxu0 %v2882_v37 }
  0xbc   : > { %2772 = vmatpush3.bf16.msra.mxu1 %v2883_v38  ;;  %2753 = vmatprep.subr.bf16.mxu0 %v2896_v1 }
  0xbd   : > { %2773 = vmatprep.subr.bf16.mxu1 %v2896_v1 }
  0xbf   : > { %2754 = vmatpush3.bf16.msra.mxu0 %v2884_v39 }
  0xc0   : > { %2774 = vmatpush3.bf16.msra.mxu1 %v2885_v41  ;;  %2755 = vmatprep.subr.bf16.mxu0 %v2896_v1 }
  0xc1   : > { %2775 = vmatprep.subr.bf16.mxu1 %v2896_v1 }
  0xc3   : > { %2756 = vmatpush3.bf16.msra.mxu0 %v2886_v42 }
  0xc4   : > { %2776 = vmatpush3.bf16.msra.mxu1 %v2887_v43 }
  0xc6   : > { %2758 = vmatmul.mubr.bf16.vlgmr.msra.gmra.mrb[20].mxu0 %v3047_v23 }
  0xc7   : > { %2778 = vmatmul.mubr.bf16.vlgmr.msra.gmra.mrb[20].mxu1 %v3121_v40 }
  0xf9   : > { %v503_v46 = vpop.f32.mrb[0].mxu0 }
  0xfa   : > { %v504_v47 = vadd.f32 %v2029_v44, %v503_v46  ;;  %v615_v48 = vpop.f32.mrb[0].mxu1  ;;  %v2559_v49 = vpop.f32.mrb[1].mxu0 }
  0xfb   : > { %v616_v1 = vadd.f32 %v2039_v45, %v615_v48  ;;  %v2579_v50 = vpop.f32.mrb[1].mxu1  ;;  %v506_v51 = vpop.f32.mrb[2].mxu0 }
  0xfc   : > { %v507_v52 = vadd.f32 %v2029_v44, %v506_v51  ;;  %v618_v23 = vpop.f32.mrb[2].mxu1  ;;  %v2560_v53 = vpop.f32.mrb[3].mxu0  ;;  %v2223_v44 = vld [vmem:[%s3479_s7 + $0x2] ss:$0 sm:$0xff] }
  0xfd   : > { %v619_v40 = vadd.f32 %v2039_v45, %v618_v23  ;;  %v2580_v54 = vpop.f32.mrb[3].mxu1  ;;  %v2261_v45 = vld [vmem:[%s3475_s3 + $0x3] ss:$0 sm:$0xff] }
  0xfe   : > { %v2367_v55 = vpack.c.bf16 %v507_v52, %v504_v47 }
  0xff   : > { %v2372_v56 = vpack.c.bf16 %v619_v40, %v616_v1 }
 0x100   : > { %2368 = vst [vmem:[%s3415_s24] sm:$0xff] %v2367_v55  }
 0x101   : > { %2373 = vst [vmem:[%s3420_s27] sm:$0xff] %v2372_v56  }
 0x119   : > { %v733_v59 = vpop.f32.mrb[4].mxu0 }
 0x11a   : > { %v734_v60 = vadd.f32 %v2048_v57, %v733_v59  ;;  %v877_v61 = vpop.f32.mrb[4].mxu1  ;;  %v2599_v62 = vpop.f32.mrb[5].mxu0  ;;  %v2313_v59 = vld [vmem:[%s3479_s7 + $0x3] ss:$0 sm:$0xff] }
 0x11b   : > { %v878_v63 = vadd.f32 %v2081_v58, %v877_v61  ;;  %v2619_v0 = vpop.f32.mrb[5].mxu1  ;;  %v736_v2 = vpop.f32.mrb[6].mxu0 }
 0x11c   : > { %v737_v3 = vadd.f32 %v2048_v57, %v736_v2  ;;  %v880_v4 = vpop.f32.mrb[6].mxu1  ;;  %v2600_v5 = vpop.f32.mrb[7].mxu0  ;;  %v2287_v57 = vld [vmem:[%s3477_s5 + $0x3] ss:$0 sm:$0xff] }
 0x11d   : > { %v881_v6 = vadd.f32 %v2081_v58, %v880_v4  ;;  %v2620_v7 = vpop.f32.mrb[7].mxu1 }
 0x11e   : > { %v2377_v8 = vpack.c.bf16 %v737_v3, %v734_v60 }
 0x11f   : > { %v2382_v9 = vpack.c.bf16 %v881_v6, %v878_v63 }
 0x120   : > { %2378 = vst [vmem:[%s3433_s15] sm:$0xff] %v2377_v8  }
 0x121   : > { %2424 = vst [vmem:[%s3415_s24 + $0x8] sm:$0xff] %v2382_v9  }
 0x139   : > { %v991_v12 = vpop.f32.mrb[8].mxu0 }
 0x13a   : > { %v992_v13 = vadd.f32 %v2107_v10, %v991_v12  ;;  %v1105_v14 = vpop.f32.mrb[8].mxu1  ;;  %v2639_v15 = vpop.f32.mrb[9].mxu0 }
 0x13b   : > { %v1106_v16 = vadd.f32 %v2133_v11, %v1105_v14  ;;  %v2659_v17 = vpop.f32.mrb[9].mxu1  ;;  %v994_v18 = vpop.f32.mrb[10].mxu0 }
 0x13c   : > { %v995_v19 = vadd.f32 %v2107_v10, %v994_v18  ;;  %v1108_v20 = vpop.f32.mrb[10].mxu1  ;;  %v2640_v21 = vpop.f32.mrb[11].mxu0 }
 0x13d   : > { %v1109_v22 = vadd.f32 %v2133_v11, %v1108_v20  ;;  %v2660_v24 = vpop.f32.mrb[11].mxu1 }
 0x13e   : > { %v2387_v25 = vpack.c.bf16 %v995_v19, %v992_v13 }
 0x13f   : > { %v2392_v26 = vpack.c.bf16 %v1109_v22, %v1106_v16 }
 0x140   : > { %2425 = vst [vmem:[%s3420_s27 + $0x8] sm:$0xff] %v2387_v25  }
 0x141   : > { %2426 = vst [vmem:[%s3433_s15 + $0x8] sm:$0xff] %v2392_v26  }
 0x159   : > { %v1252_v29 = vpop.f32.mrb[12].mxu0 }
 0x15a   : > { %v1253_v30 = vadd.f32 %v2171_v27, %v1252_v29  ;;  %v1366_v31 = vpop.f32.mrb[12].mxu1  ;;  %v2679_v32 = vpop.f32.mrb[13].mxu0 }
 0x15b   : > { %v1367_v33 = vadd.f32 %v2197_v28, %v1366_v31  ;;  %v2699_v34 = vpop.f32.mrb[13].mxu1  ;;  %v1255_v35 = vpop.f32.mrb[14].mxu0 }
 0x15c   : > { %v1256_v36 = vadd.f32 %v2171_v27, %v1255_v35  ;;  %v1369_v37 = vpop.f32.mrb[14].mxu1  ;;  %v2680_v38 = vpop.f32.mrb[15].mxu0 }
 0x15d   : > { %v1370_v39 = vadd.f32 %v2197_v28, %v1369_v37  ;;  %v2700_v41 = vpop.f32.mrb[15].mxu1 }
 0x15e   : > { %v2397_v42 = vpack.c.bf16 %v1256_v36, %v1253_v30 }
 0x15f   : > { %v2402_v43 = vpack.c.bf16 %v1370_v39, %v1367_v33 }
 0x160   : > { %2427 = vst [vmem:[%s3415_s24 + $0x10] sm:$0xff] %v2397_v42  }
 0x161   : > { %2428 = vst [vmem:[%s3420_s27 + $0x10] sm:$0xff] %v2402_v43  }
 0x179   : > { %v1480_v46 = vpop.f32.mrb[16].mxu0 }
 0x17a   : > { %v1481_v47 = vadd.f32 %v2223_v44, %v1480_v46  ;;  %v1627_v48 = vpop.f32.mrb[16].mxu1  ;;  %v2719_v49 = vpop.f32.mrb[17].mxu0 }
 0x17b   : > { %v1628_v1 = vadd.f32 %v2261_v45, %v1627_v48  ;;  %v2739_v50 = vpop.f32.mrb[17].mxu1  ;;  %v1483_v51 = vpop.f32.mrb[18].mxu0 }
 0x17c   : > { %v1484_v52 = vadd.f32 %v2223_v44, %v1483_v51  ;;  %v1630_v23 = vpop.f32.mrb[18].mxu1  ;;  %v2720_v53 = vpop.f32.mrb[19].mxu0 }
 0x17d   : > { %v1631_v40 = vadd.f32 %v2261_v45, %v1630_v23  ;;  %v2740_v54 = vpop.f32.mrb[19].mxu1 }
 0x17e   : > { %v2407_v55 = vpack.c.bf16 %v1484_v52, %v1481_v47 }
 0x17f   : > { %v2412_v56 = vpack.c.bf16 %v1631_v40, %v1628_v1 }
 0x180   : > { %2429 = vst [vmem:[%s3433_s15 + $0x10] sm:$0xff] %v2407_v55  }
 0x181   : > { %2430 = vst [vmem:[%s3415_s24 + $0x18] sm:$0xff] %v2412_v56  }
 0x199   : > { %v1741_v58 = vpop.f32.mrb[20].mxu0 }
 0x19a   : > { %v1855_v60 = vpop.f32.mrb[20].mxu1  ;;  %v2759_v61 = vpop.f32.mrb[21].mxu0  ;;  %v1742_v0 = vadd.f32 %v2287_v57, %v1741_v58 }
 0x19b   : > { %v2779_v62 = vpop.f32.mrb[21].mxu1  ;;  %v1744_v63 = vpop.f32.mrb[22].mxu0  ;;  %v1856_v5 = vadd.f32 %v2313_v59, %v1855_v60 }
 0x19c   : > { %v1745_v2 = vadd.f32 %v2287_v57, %v1744_v63  ;;  %v1858_v3 = vpop.f32.mrb[22].mxu1  ;;  %v2760_v4 = vpop.f32.mrb[23].mxu0 }
 0x19d   : > { %v1859_v6 = vadd.f32 %v2313_v59, %v1858_v3  ;;  %v2780_v7 = vpop.f32.mrb[23].mxu1 }
 0x19e   : > { %v2417_v8 = vpack.c.bf16 %v1745_v2, %v1742_v0 }
 0x19f   : > { %v2422_v9 = vpack.c.bf16 %v1859_v6, %v1856_v5 }
 0x1a0   : > { %2431 = vst [vmem:[%s3420_s27 + $0x18] sm:$0xff] %v2417_v8  }
 0x1a1   : > { %2432 = vst [vmem:[%s3433_s15 + $0x18] sm:$0xff] %v2422_v9  }
 0x1a2 PF: > { %s21_s13 = sadd.s32 1, %s2894_s13  }
 0x1a3   : > { %p18_p4 = scmp.ge.s32.totalorder %s21_s13, 4  }
 0x1a5   :  { %20 = sbr.rel (!%p18_p4) target bundleno = 1 (0x1), region = 133 }

// kernel: hybrid_encoder_forward.19
= control target key start
LH: loop header
LB: loop body
LE: loop exit
PB: predicated region body
PF: predicated region fallthrough
CT: control target
= control target key end

     0   :  { %s1207_s21 = smov 0   ;;  %s1390_s0 = inlined_call_operand.vmem [shape: bf16[2,4,16,128], index: 0, kind: input, shape index: {}]   ;;  %s1391_s1 = inlined_call_operand.vmem [shape: bf16[4,128,128], index: 1, kind: input, shape index: {}]   ;;  %s1392_s2 = inlined_call_operand.vmem [shape: f32[1,128], index: 2, kind: input, shape index: {}]   ;;  %s1393_s3 = inlined_call_operand.vmem [shape: bf16[2,16,128], index: 3, kind: input, shape index: {}]   ;;  %s1394_s4 = inlined_call_operand.vmem [shape: f32[1,128], index: 4, kind: input, shape index: {}]   ;;  %s1395_s5 = inlined_call_operand.vmem [shape: f32[1,128], index: 5, kind: input, shape index: {}]   ;;  %s1396_s6 = inlined_call_operand.vmem [shape: bf16[2,16,128], index: 6, kind: output, shape index: {}]  }
   0x1 LB: > { %s874_s22 = sadd.s32 4294967295, %s1168_s21   ;;  %p878_p0 = scmp.ge.s32.totalorder %s1168_s21, 1  ;;  %s1168_s21 = sphi %s1207_s21, %s16_s21  }
   0x2   : > { %p222_p1 = scmp.lt.s32.totalorder %s1168_s21, 3 }
   0x4   : > { %p223_p2 = pnand %p878_p0, %p222_p1 }
   0x5   : > { %v1122_v0 = vld [vmem:[%s1391_s1 + $0x40] sm:$0xff] (!%p223_p2)   ;;  %v1170_v1 = vmov (!%p223_p2), 0.0   ;;  %v1124_v3 = vld [vmem:[%s1391_s1 + $0x48] sm:$0xff] (!%p223_p2)   ;;  %vm1171_vm0 = vmmov (!%p223_p2), 0   ;;  %p257_p3 = scmp.lt.s32.totalorder (!%p223_p2), %s874_s22, 1  ;;  %v1126_v5 = vld [vmem:[%s1391_s1 + $0x50] sm:$0xff] (!%p223_p2)   ;;  %v752_v47 = vlaneseq (!%p223_p2) }
   0x6   : > { %226 = sbr.rel (%p223_p2) target bundleno = 610 (0x262), region = 44  ;;  %1032 = vmatprep.subr.bf16.mxu0 (!%p223_p2), %v1170_v1  ;;  %1052 = vmatprep.subr.bf16.mxu1 (!%p223_p2), %v1170_v1  ;;  %v1123_v2 = vld [vmem:[%s1391_s1] sm:$0xff] (!%p223_p2)   ;;  %v1125_v4 = vld [vmem:[%s1391_s1 + $0x8] sm:$0xff] (!%p223_p2)   ;;  %v1127_v6 = vld [vmem:[%s1391_s1 + $0x10] sm:$0xff] (!%p223_p2)  }
   0x7   : > { %1033 = vmatpush3.bf16.msra.mxu0 (!%p223_p2), %v1122_v0  ;;  %1048 = vmatprep.mubr.msk.bf16.mxu0 (!%p223_p2), %vm1171_vm0, %v1170_v1  ;;  %v1128_v7 = vld [vmem:[%s1391_s1 + $0x58] sm:$0xff] (!%p223_p2)   ;;  %v1130_v9 = vld [vmem:[%s1391_s1 + $0x60] sm:$0xff] (!%p223_p2)   ;;  %v1132_v11 = vld [vmem:[%s1391_s1 + $0x68] sm:$0xff] (!%p223_p2)   ;;  %v753_v56 = vand.u32 (!%p223_p2), 127, %v752_v47 }
   0x8   : > { %1053 = vmatpush3.bf16.msra.mxu1 (!%p223_p2), %v1123_v2  ;;  %1034 = vmatprep.subr.bf16.mxu0 (!%p223_p2), %v1170_v1  ;;  %v1129_v8 = vld [vmem:[%s1391_s1 + $0x18] sm:$0xff] (!%p223_p2)   ;;  %v1131_v10 = vld [vmem:[%s1391_s1 + $0x20] sm:$0xff] (!%p223_p2)   ;;  %v1133_v12 = vld [vmem:[%s1391_s1 + $0x28] sm:$0xff] (!%p223_p2)  }
   0x9   : > { %1054 = vmatprep.subr.bf16.mxu1 (!%p223_p2), %v1170_v1  ;;  %1068 = vmatprep.mubr.msk.bf16.mxu1 (!%p223_p2), %vm1171_vm0, %v1170_v1  ;;  %v1134_v13 = vld [vmem:[%s1391_s1 + $0x70] sm:$0xff] (!%p223_p2)   ;;  %v1136_v15 = vld [vmem:[%s1391_s1 + $0x78] sm:$0xff] (!%p223_p2)   ;;  %v1140_v19 = vld [vmem:[%s1391_s1 + $0x80] sm:$0xff] (!%p223_p2)   ;;  %vm754_vm1 = vcmp.lt.s32.totalorder (!%p223_p2), %v753_v56, 32 }
   0xa   : > { %v1135_v14 = vld [vmem:[%s1391_s1 + $0x30] sm:$0xff] (!%p223_p2)   ;;  %v1137_v16 = vld [vmem:[%s1391_s1 + $0x38] sm:$0xff] (!%p223_p2)   ;;  %v1141_v20 = vld [vmem:[%s1391_s1 + $0xc0] sm:$0xff] (!%p223_p2)  }
   0xb   : > { %1035 = vmatpush3.bf16.msra.mxu0 (!%p223_p2), %v1124_v3  ;;  %v1142_v21 = vld [vmem:[%s1391_s1 + $0x88] sm:$0xff] (!%p223_p2)   ;;  %v1144_v23 = vld [vmem:[%s1391_s1 + $0x90] sm:$0xff] (!%p223_p2)   ;;  %v1146_v25 = vld [vmem:[%s1391_s1 + $0x98] sm:$0xff] (!%p223_p2)  }
   0xc   : > { %1055 = vmatpush3.bf16.msra.mxu1 (!%p223_p2), %v1125_v4  ;;  %1036 = vmatprep.subr.bf16.mxu0 (!%p223_p2), %v1170_v1  ;;  %v1143_v22 = vld [vmem:[%s1391_s1 + $0xc8] sm:$0xff] (!%p223_p2)   ;;  %v1145_v24 = vld [vmem:[%s1391_s1 + $0xd0] sm:$0xff] (!%p223_p2)   ;;  %v1147_v26 = vld [vmem:[%s1391_s1 + $0xd8] sm:$0xff] (!%p223_p2)  }
   0xd   : > { %1056 = vmatprep.subr.bf16.mxu1 %v1170_v1  ;;  %s1398_s22 = smov (!%p257_p3, %s874_s22), 1  ;;  %v1148_v27 = vld [vmem:[%s1391_s1 + $0xa0] sm:$0xff]   ;;  %v1150_v29 = vld [vmem:[%s1391_s1 + $0xa8] sm:$0xff]   ;;  %v1152_v31 = vld [vmem:[%s1391_s1 + $0xb0] sm:$0xff]  }
   0xe   : > { %s982_s15 = sshll.u32 %s1398_s22, 5  ;;  %v1149_v28 = vld [vmem:[%s1391_s1 + $0xe0] sm:$0xff]   ;;  %v1151_v30 = vld [vmem:[%s1391_s1 + $0xe8] sm:$0xff]   ;;  %v1153_v32 = vld [vmem:[%s1391_s1 + $0xf0] sm:$0xff]   ;;  %s983_s27 = sshll.u32 %s1398_s22, 3 }
   0xf   : > { %1037 = vmatpush3.bf16.msra.mxu0 %v1126_v5  ;;  %s1264_s24 = scalar_lea.vmem %s1390_s0, %s982_s15  ;;  %v1154_v33 = vld [vmem:[%s1391_s1 + $0xb8] sm:$0xff]   ;;  %s266_s30 = scalar_lea.vmem %s1393_s3, %s983_s27  ;;  %v975_v53 = vld [vmem:[%s1392_s2] ss:$0 sm:$0xff] }
  0x10   : > { %1057 = vmatpush3.bf16.msra.mxu1 %v1127_v6  ;;  %1038 = vmatprep.subr.bf16.mxu0 %v1170_v1  ;;  %v1138_v17 = vld [vmem:[%s1264_s24 + $0x8] sm:$0xff]   ;;  %v1139_v18 = vld [vmem:[%s1264_s24] sm:$0xff]   ;;  %v1155_v34 = vld [vmem:[%s1391_s1 + $0xf8] sm:$0xff]   ;;  %s271_s14 = scalar_lea.vmem %s1396_s6, %s983_s27 }
  0x11   : > { %1058 = vmatprep.subr.bf16.mxu1 %v1170_v1  ;;  %v1156_v35 = vld [vmem:[%s1264_s24 + $0x10] sm:$0xff]   ;;  %v1157_v36 = vld [vmem:[%s1264_s24 + $0x18] sm:$0xff]   ;;  %v988_v49 = vld [vmem:[%s266_s30] sm:$0xff]  }
  0x12   : > { %v989_v61 = vunpack.c.l.bf16 %v988_v49 }
  0x13   : > { %1039 = vmatpush3.bf16.msra.mxu0 %v1128_v7 }
  0x14   : > { %1059 = vmatpush3.bf16.msra.mxu1 %v1129_v8  ;;  %1040 = vmatprep.subr.bf16.mxu0 %v1170_v1 }
  0x15   : > { %1060 = vmatprep.subr.bf16.mxu1 %v1170_v1 }
  0x17   : > { %1041 = vmatpush3.bf16.msra.mxu0 %v1130_v9 }
  0x18   : > { %1061 = vmatpush3.bf16.msra.mxu1 %v1131_v10  ;;  %1042 = vmatprep.subr.bf16.mxu0 %v1170_v1 }
  0x19   : > { %1062 = vmatprep.subr.bf16.mxu1 %v1170_v1 }
  0x1b   : > { %1043 = vmatpush3.bf16.msra.mxu0 %v1132_v11 }
  0x1c   : > { %1063 = vmatpush3.bf16.msra.mxu1 %v1133_v12  ;;  %1044 = vmatprep.subr.bf16.mxu0 %v1170_v1 }
  0x1d   : > { %1064 = vmatprep.subr.bf16.mxu1 %v1170_v1 }
  0x1f   : > { %1045 = vmatpush3.bf16.msra.mxu0 %v1134_v13 }
  0x20   : > { %1065 = vmatpush3.bf16.msra.mxu1 %v1135_v14  ;;  %1046 = vmatprep.subr.bf16.mxu0 %v1170_v1 }
  0x21   : > { %1066 = vmatprep.subr.bf16.mxu1 %v1170_v1 }
  0x23   : > { %1047 = vmatpush3.bf16.msra.mxu0 %v1136_v15 }
  0x24   : > { %1067 = vmatpush3.bf16.msra.mxu1 %v1137_v16  ;;  %1072 = vmatprep.subr.bf16.mxu0 %v1170_v1 }
  0x25   : > { %1092 = vmatprep.subr.bf16.mxu1 %v1170_v1 }
  0x26   : > { %1049 = vmatmul.mubr.bf16.vlgmr.msra.gmra.mrb[0].mxu0 %v1138_v17 }
  0x27   : > { %1069 = vmatmul.mubr.bf16.vlgmr.msra.gmra.mrb[0].mxu1 %v1139_v18  ;;  %1073 = vmatpush3.bf16.msra.mxu0 %v1140_v19 }
  0x28   : > { %1093 = vmatpush3.bf16.msra.mxu1 %v1141_v20  ;;  %1074 = vmatprep.subr.bf16.mxu0 %v1170_v1 }
  0x29   : > { %1094 = vmatprep.subr.bf16.mxu1 %v1170_v1  ;;  %1088 = vmatprep.mubr.msk.bf16.mxu0 %vm1171_vm0, %v1170_v1 }
  0x2a   : > { %1108 = vmatprep.mubr.msk.bf16.mxu1 %vm1171_vm0, %v1170_v1 }
  0x2b   : > { %1075 = vmatpush3.bf16.msra.mxu0 %v1142_v21 }
  0x2c   : > { %1095 = vmatpush3.bf16.msra.mxu1 %v1143_v22  ;;  %1076 = vmatprep.subr.bf16.mxu0 %v1170_v1 }
  0x2d   : > { %1096 = vmatprep.subr.bf16.mxu1 %v1170_v1 }
  0x2f   : > { %1077 = vmatpush3.bf16.msra.mxu0 %v1144_v23 }
  0x30   : > { %1097 = vmatpush3.bf16.msra.mxu1 %v1145_v24  ;;  %1078 = vmatprep.subr.bf16.mxu0 %v1170_v1 }
  0x31   : > { %1098 = vmatprep.subr.bf16.mxu1 %v1170_v1 }
  0x33   : > { %1079 = vmatpush3.bf16.msra.mxu0 %v1146_v25  ;;  %v976_v25 = vld [vmem:[%s1394_s4] ss:$0 sm:$0xff] }
  0x34   : > { %1099 = vmatpush3.bf16.msra.mxu1 %v1147_v26  ;;  %1080 = vmatprep.subr.bf16.mxu0 %v1170_v1 }
  0x35   : > { %1100 = vmatprep.subr.bf16.mxu1 %v1170_v1 }
  0x37   : > { %1081 = vmatpush3.bf16.msra.mxu0 %v1148_v27 }
  0x38   : > { %1101 = vmatpush3.bf16.msra.mxu1 %v1149_v28  ;;  %1082 = vmatprep.subr.bf16.mxu0 %v1170_v1 }
  0x39   : > { %1102 = vmatprep.subr.bf16.mxu1 %v1170_v1 }
  0x3b   : > { %1083 = vmatpush3.bf16.msra.mxu0 %v1150_v29  ;;  %v977_v29 = vld [vmem:[%s1395_s5] ss:$0 sm:$0xff] }
  0x3c   : > { %1103 = vmatpush3.bf16.msra.mxu1 %v1151_v30  ;;  %1084 = vmatprep.subr.bf16.mxu0 %v1170_v1 }
  0x3d   : > { %1104 = vmatprep.subr.bf16.mxu1 %v1170_v1 }
  0x3f   : > { %1085 = vmatpush3.bf16.msra.mxu0 %v1152_v31 }
  0x40   : > { %1105 = vmatpush3.bf16.msra.mxu1 %v1153_v32  ;;  %1086 = vmatprep.subr.bf16.mxu0 %v1170_v1 }
  0x41   : > { %1106 = vmatprep.subr.bf16.mxu1 %v1170_v1  ;;  %v990_v1 = vunpack.c.h.bf16 %v988_v49 }
  0x43   : > { %1087 = vmatpush3.bf16.msra.mxu0 %v1154_v33 }
  0x44   : > { %1107 = vmatpush3.bf16.msra.mxu1 %v1155_v34 }
  0x46   : > { %1089 = vmatmul.mubr.bf16.vlgmr.msra.gmra.mrb[4].mxu0 %v1156_v35 }
  0x47   : > { %1109 = vmatmul.mubr.bf16.vlgmr.msra.gmra.mrb[4].mxu1 %v1157_v36 }
  0xf9   : > { %v399_v37 = vpop.f32.mrb[0].mxu0 }
  0xfa   : > { %v494_v38 = vpop.f32.mrb[0].mxu1  ;;  %v1050_v39 = vpop.f32.mrb[1].mxu0 }
  0xfb   : > { %v495_v40 = vadd.f32 %v494_v38, %v399_v37  ;;  %v1070_v41 = vpop.f32.mrb[1].mxu1  ;;  %v402_v42 = vpop.f32.mrb[2].mxu0 }
  0xfc   : > { %v497_v43 = vpop.f32.mrb[2].mxu1  ;;  %v1051_v44 = vpop.f32.mrb[3].mxu0 }
  0xfd   : > { %v498_v45 = vadd.f32 %v497_v43, %v402_v42  ;;  %v1071_v46 = vpop.f32.mrb[3].mxu1 }
 0x119   : > { %v609_v48 = vpop.f32.mrb[4].mxu0 }
 0x11a   : > { %v616_v50 = vadd.f32 %v609_v48, %v495_v40  ;;  %v726_v51 = vpop.f32.mrb[4].mxu1  ;;  %v1090_v52 = vpop.f32.mrb[5].mxu0 }
 0x11b   : > { %v1110_v54 = vpop.f32.mrb[5].mxu1  ;;  %v612_v55 = vpop.f32.mrb[6].mxu0 }
 0x11c   : > { %v733_v57 = vadd.f32 %v726_v51, %v616_v50  ;;  %v617_v58 = vadd.f32 %v612_v55, %v498_v45  ;;  %v729_v59 = vpop.f32.mrb[6].mxu1  ;;  %v1091_v60 = vpop.f32.mrb[7].mxu0 }
 0x11d   : > { %v1111_v62 = vpop.f32.mrb[7].mxu1 }
 0x11e   : > { %v742_v63 = vadd.f32 %v975_v53, %v733_v57  ;;  %v734_v0 = vadd.f32 %v729_v59, %v617_v58 }
 0x120   : > { %v743_v2 = vadd.f32 %v975_v53, %v734_v0  ;;  %v748_v3 = vadd.f32 %v989_v61, %v742_v63 }
 0x122   : > { %v755_v4 = vsel %vm754_vm1, %v748_v3, 0.0  ;;  %v749_v5 = vadd.f32 %v990_v1, %v743_v2 }
 0x123   : > { %757 = vadd.xlane.f32.xlu0 %v755_v4 }
 0x124   : > { %v756_v6 = vsel %vm754_vm1, %v749_v5, 0.0 }
 0x127   : > { %759 = vadd.xlane.f32.xlu0 %v756_v6 }
 0x1b0   : > { %v758_v7 = vpop.xlane.xlu0 %757 }
 0x1b1   : > { %v761_v8 = vmul.f32 0.03125, %v758_v7 }
 0x1b3   : > { %v763_v9 = vsub.f32 %v748_v3, %v761_v8 }
 0x1b4   : > { %v760_v10 = vpop.xlane.xlu0 %759 }
 0x1b5   : > { %v762_v11 = vmul.f32 0.03125, %v760_v10  ;;  %v765_v12 = vsel %vm754_vm1, %v763_v9, 0.0 }
 0x1b6   : > { %v767_v13 = vmul.f32 %v765_v12, %v765_v12 }
 0x1b7   : > { %v764_v14 = vsub.f32 %v749_v5, %v762_v11 }
 0x1b8   : > { %769 = vadd.xlane.f32.xlu1 %v767_v13 }
 0x1b9   : > { %v766_v15 = vsel %vm754_vm1, %v764_v14, 0.0 }
 0x1ba   : > { %v768_v16 = vmul.f32 %v766_v15, %v766_v15 }
 0x1bc   : > { %771 = vadd.xlane.f32.xlu1 %v768_v16 }
 0x245   : > { %v770_v17 = vpop.xlane.xlu1 %769 }
 0x246   : > { %v773_v18 = vmul.f32 0.03125, %v770_v17 }
 0x248   : > { %v775_v19 = vadd.f32 1e-05, %v773_v18 }
 0x249   : > { %v772_v20 = vpop.xlane.xlu1 %771 }
 0x24a   : > { %1158 = vrsqrt.f32 %v775_v19  ;;  %v774_v21 = vmul.f32 0.03125, %v772_v20 }
 0x24c   : > { %v776_v22 = vadd.f32 1e-05, %v774_v21 }
 0x24e   : > { %1160 = vrsqrt.f32 %v776_v22 }
 0x254   : > { %v1159_v23 = vpop.eup %1158 }
 0x255   : > { %v779_v24 = vmul.f32 %v1159_v23, %v765_v12 }
 0x257   : > { %v787_v27 = vmul.f32 %v976_v25, %v779_v24 }
 0x258   : > { %v1161_v26 = vpop.eup %1160 }
 0x259   : > { %v780_v28 = vmul.f32 %v1161_v26, %v766_v15  ;;  %v795_v31 = vadd.f32 %v977_v29, %v787_v27 }
 0x25b   : > { %v788_v30 = vmul.f32 %v976_v25, %v780_v28 }
 0x25d   : > { %v796_v32 = vadd.f32 %v977_v29, %v788_v30 }
 0x25f   : > { %v994_v33 = vpack.c.bf16 %v796_v32, %v795_v31 }
 0x261   : > { %995 = vst [vmem:[%s271_s14] sm:$0xff] %v994_v33  }
 0x262 PF: > { %s16_s21 = sadd.s32 1, %s1168_s21  }
 0x263   : > { %p13_p4 = scmp.ge.s32.totalorder %s16_s21, 4  }
 0x265   :  { %15 = sbr.rel (!%p13_p4) target bundleno = 1 (0x1), region = 83 }

// kernel: hybrid_encoder_forward.20
= control target key start
LH: loop header
LB: loop body
LE: loop exit
PB: predicated region body
PF: predicated region fallthrough
CT: control target
= control target key end

     0   :  { %s878_s24 = smov 0   ;;  %s971_s0 = inlined_call_operand.vmem [shape: bf16[32,128], index: 0, kind: input, shape index: {}]   ;;  %s972_s1 = inlined_call_operand.vmem [shape: bf16[128,128], index: 1, kind: input, shape index: {}]   ;;  %s973_s2 = inlined_call_operand.vmem [shape: f32[1,128], index: 2, kind: input, shape index: {}]   ;;  %s974_s3 = inlined_call_operand.vmem [shape: bf16[128,128], index: 3, kind: input, shape index: {}]   ;;  %s975_s4 = inlined_call_operand.vmem [shape: f32[1,128], index: 4, kind: input, shape index: {}]   ;;  %s976_s5 = inlined_call_operand.vmem [shape: f32[1,128], index: 5, kind: input, shape index: {}]   ;;  %s977_s6 = inlined_call_operand.vmem [shape: f32[1,128], index: 6, kind: input, shape index: {}]   ;;  %s978_s7 = inlined_call_operand.vmem [shape: bf16[32,128], index: 7, kind: output, shape index: {}]  }
   0x1 LB: > { %s687_s25 = sadd.s32 4294967295, %s833_s24   ;;  %p691_p0 = scmp.ge.s32.totalorder %s833_s24, 1  ;;  %s833_s24 = sphi %s878_s24, %s17_s24  }
   0x2   : > { %p238_p1 = scmp.lt.s32.totalorder %s833_s24, 3 }
   0x4   : > { %p239_p2 = pnand %p691_p0, %p238_p1 }
   0x5   : > { %v797_v0 = vld [vmem:[%s972_s1] sm:$0xff] (!%p239_p2)   ;;  %v835_v1 = vmov (!%p239_p2), 0.0   ;;  %v798_v2 = vld [vmem:[%s972_s1 + $0x8] sm:$0xff] (!%p239_p2)   ;;  %vm836_vm0 = vmmov (!%p239_p2), 0   ;;  %v799_v3 = vld [vmem:[%s972_s1 + $0x10] sm:$0xff] (!%p239_p2)   ;;  %s692_s9 = sshll.u32 (!%p239_p2), %s687_s25, 1 }
   0x6   : > { %242 = sbr.rel (%p239_p2) target bundleno = 839 (0x347), region = 48  ;;  %746 = vmatprep.subr.bf16.mxu0 (!%p239_p2), %v835_v1  ;;  %766 = vmatprep.subr.bf16.mxu1 (!%p239_p2), %v835_v1  ;;  %v800_v4 = vld [vmem:[%s972_s1 + $0x18] sm:$0xff] (!%p239_p2)   ;;  %p271_p3 = scmp.lt.s32.totalorder (!%p239_p2), %s692_s9, 3  ;;  %v801_v5 = vld [vmem:[%s972_s1 + $0x20] sm:$0xff] (!%p239_p2)   ;;  %v802_v6 = vld [vmem:[%s972_s1 + $0x28] sm:$0xff] (!%p239_p2)   ;;  %v837_v63 = vmov (!%p239_p2), -1.0  }
   0x7   : > { %747 = vmatpush3.bf16.msra.mxu0 (!%p239_p2), %v797_v0  ;;  %762 = vmatprep.mubr.msk.bf16.mxu0 (!%p239_p2), %vm836_vm0, %v835_v1  ;;  %v803_v7 = vld [vmem:[%s972_s1 + $0x30] sm:$0xff] (!%p239_p2)   ;;  %v804_v8 = vld [vmem:[%s972_s1 + $0x38] sm:$0xff] (!%p239_p2)   ;;  %v806_v10 = vld [vmem:[%s974_s3] sm:$0xff] (!%p239_p2)  }
   0x8   : > { %748 = vmatprep.subr.bf16.mxu0 (!%p239_p2), %v835_v1  ;;  %782 = vmatprep.mubr.msk.bf16.mxu1 (!%p239_p2), %vm836_vm0, %v835_v1  ;;  %v807_v11 = vld [vmem:[%s974_s3 + $0x8] sm:$0xff] (!%p239_p2)   ;;  %v808_v12 = vld [vmem:[%s974_s3 + $0x10] sm:$0xff] (!%p239_p2)   ;;  %v809_v13 = vld [vmem:[%s974_s3 + $0x18] sm:$0xff] (!%p239_p2)  }
   0x9   : > { %767 = vmatpush3.bf16.msra.mxu1 (!%p239_p2), %v806_v10  ;;  %v810_v14 = vld [vmem:[%s974_s3 + $0x20] sm:$0xff] (!%p239_p2)   ;;  %v811_v15 = vld [vmem:[%s974_s3 + $0x28] sm:$0xff] (!%p239_p2)   ;;  %v812_v16 = vld [vmem:[%s974_s3 + $0x30] sm:$0xff] (!%p239_p2)  }
   0xa   : > { %768 = vmatprep.subr.bf16.mxu1 (!%p239_p2), %v835_v1  ;;  %v813_v17 = vld [vmem:[%s974_s3 + $0x38] sm:$0xff] (!%p239_p2)   ;;  %v696_v18 = vld [vmem:[%s973_s2] ss:$0 sm:$0xff] (!%p239_p2) }
   0xb   : > { %749 = vmatpush3.bf16.msra.mxu0 (!%p239_p2), %v798_v2 }
   0xc   : > { %750 = vmatprep.subr.bf16.mxu0 (!%p239_p2), %v835_v1 }
   0xd   : > { %s980_s9 = smov (!%p271_p3, %s692_s9), 3  ;;  %769 = vmatpush3.bf16.msra.mxu1 %v807_v11 }
   0xe   : > { %s693_s16 = sshll.u32 %s980_s9, 2  ;;  %770 = vmatprep.subr.bf16.mxu1 %v835_v1 }
   0xf   : > { %751 = vmatpush3.bf16.msra.mxu0 %v799_v3  ;;  %s274_s21 = scalar_lea.vmem %s971_s0, %s693_s16  ;;  %s280_s8 = scalar_lea.vmem %s978_s7, %s693_s16 }
  0x10   : > { %752 = vmatprep.subr.bf16.mxu0 %v835_v1  ;;  %v918_v9 = vld [vmem:[%s274_s21] sm:$0xff]  }
  0x11   : > { %771 = vmatpush3.bf16.msra.mxu1 %v808_v12 }
  0x12   : > { %772 = vmatprep.subr.bf16.mxu1 %v835_v1 }
  0x13   : > { %753 = vmatpush3.bf16.msra.mxu0 %v800_v4 }
  0x14   : > { %754 = vmatprep.subr.bf16.mxu0 %v835_v1 }
  0x15   : > { %773 = vmatpush3.bf16.msra.mxu1 %v809_v13 }
  0x16   : > { %774 = vmatprep.subr.bf16.mxu1 %v835_v1 }
  0x17   : > { %755 = vmatpush3.bf16.msra.mxu0 %v801_v5 }
  0x18   : > { %756 = vmatprep.subr.bf16.mxu0 %v835_v1 }
  0x19   : > { %775 = vmatpush3.bf16.msra.mxu1 %v810_v14  ;;  %v576_v14 = vlaneseq }
  0x1a   : > { %776 = vmatprep.subr.bf16.mxu1 %v835_v1 }
  0x1b   : > { %757 = vmatpush3.bf16.msra.mxu0 %v802_v6 }
  0x1c   : > { %758 = vmatprep.subr.bf16.mxu0 %v835_v1 }
  0x1d   : > { %777 = vmatpush3.bf16.msra.mxu1 %v811_v15  ;;  %v706_v15 = vld [vmem:[%s975_s4] ss:$0 sm:$0xff] }
  0x1e   : > { %778 = vmatprep.subr.bf16.mxu1 %v835_v1 }
  0x1f   : > { %759 = vmatpush3.bf16.msra.mxu0 %v803_v7 }
  0x20   : > { %760 = vmatprep.subr.bf16.mxu0 %v835_v1 }
  0x21   : > { %779 = vmatpush3.bf16.msra.mxu1 %v812_v16  ;;  %v577_v16 = vand.u32 127, %v576_v14 }
  0x22   : > { %780 = vmatprep.subr.bf16.mxu1 %v835_v1 }
  0x23   : > { %761 = vmatpush3.bf16.msra.mxu0 %v804_v8  ;;  %vm578_vm3 = vcmp.lt.s32.totalorder %v577_v16, 32 }
  0x25   : > { %781 = vmatpush3.bf16.msra.mxu1 %v813_v17  ;;  %v570_v17 = vunpack.c.l.bf16 %v918_v9 }
  0x26   : > { %763 = vmatmul.mubr.bf16.vlgmr.msra.gmra.mrb[0].mxu0 %v918_v9 }
  0xf9   : > { %v396_v19 = vpop.f32.mrb[0].mxu0 }
  0xfa   : > { %v397_v20 = vadd.f32 %v696_v18, %v396_v19  ;;  %v764_v21 = vpop.f32.mrb[1].mxu0 }
  0xfb   : > { %v399_v22 = vpop.f32.mrb[2].mxu0 }
  0xfc   : > { %v405_v23 = vmul.f32 0.70710677, %v397_v20  ;;  %v400_v24 = vadd.f32 %v696_v18, %v399_v22  ;;  %v765_v25 = vpop.f32.mrb[3].mxu0  ;;  %v403_v7 = vmul.f32 0.5, %v397_v20  ;;  %v571_v22 = vunpack.c.h.bf16 %v918_v9 }
  0xfe   : > { %v411_v26 = vand.u32 2147483647, %v405_v23  ;;  %v406_v27 = vmul.f32 0.70710677, %v400_v24  ;;  %vm407_vm1 = vcmp.ge.f32.partialorder %v405_v23, 0.0  ;;  %v404_v8 = vmul.f32 0.5, %v400_v24 }
  0xff   : > { %v409_v0 = vsel %vm407_vm1, 1.0, %v837_v63 }
 0x100   : > { %v413_v28 = vmul.f32 0.3275911, %v411_v26  ;;  %v412_v29 = vand.u32 2147483647, %v406_v27  ;;  %v439_v33 = vsub.f32 0.0, %v411_v26  ;;  %vm408_vm2 = vcmp.ge.f32.partialorder %v406_v27, 0.0 }
 0x101   : > { %v410_v4 = vsel %vm408_vm2, 1.0, %v837_v63 }
 0x102   : > { %v415_v30 = vadd.f32 1.0, %v413_v28  ;;  %v414_v31 = vmul.f32 0.3275911, %v412_v29  ;;  %v440_v34 = vsub.f32 0.0, %v412_v29  ;;  %v441_v36 = vmul.f32 %v439_v33, %v411_v26 }
 0x104   : > { %815 = vrcp.f32 %v415_v30  ;;  %v416_v32 = vadd.f32 1.0, %v414_v31  ;;  %v442_v40 = vmul.f32 %v440_v34, %v412_v29  ;;  %v443_v41 = vmul.f32 1.442695, %v441_v36 }
 0x106   : > { %817 = vrcp.f32 %v416_v32  ;;  %v445_v46 = vmul.f32 1.442695, %v442_v40 }
 0x107   : > { %819 = vpow2.f32 %v443_v41 }
 0x108   : > { %821 = vpow2.f32 %v445_v46  ;;  %v715_v46 = vld [vmem:[%s976_s5] ss:$0 sm:$0xff] }
 0x10e   : > { %v816_v35 = vpop.eup %815 }
 0x10f   : > { %v421_v37 = vmul.f32 1.0614054, %v816_v35 }
 0x110   : > { %v818_v38 = vpop.eup %817 }
 0x111   : > { %v423_v39 = vadd.f32 -1.4531521, %v421_v37  ;;  %v422_v42 = vmul.f32 1.0614054, %v818_v38  ;;  %v820_v57 = vpop.eup %819 }
 0x112   : > { %v822_v61 = vpop.eup %821 }
 0x113   : > { %v425_v43 = vmul.f32 %v816_v35, %v423_v39  ;;  %v424_v44 = vadd.f32 -1.4531521, %v422_v42 }
 0x115   : > { %v427_v45 = vadd.f32 1.4214138, %v425_v43  ;;  %v426_v47 = vmul.f32 %v818_v38, %v424_v44 }
 0x117   : > { %v429_v48 = vmul.f32 %v816_v35, %v427_v45  ;;  %v428_v49 = vadd.f32 1.4214138, %v426_v47 }
 0x119   : > { %v431_v50 = vadd.f32 -0.28449672, %v429_v48  ;;  %v430_v51 = vmul.f32 %v818_v38, %v428_v49 }
 0x11b   : > { %v433_v52 = vmul.f32 %v816_v35, %v431_v50  ;;  %v432_v53 = vadd.f32 -0.28449672, %v430_v51  ;;  %v716_v50 = vld [vmem:[%s977_s6] ss:$0 sm:$0xff] }
 0x11d   : > { %v435_v54 = vadd.f32 0.2548296, %v433_v52  ;;  %v434_v55 = vmul.f32 %v818_v38, %v432_v53 }
 0x11f   : > { %v437_v56 = vmul.f32 %v816_v35, %v435_v54  ;;  %v436_v58 = vadd.f32 0.2548296, %v434_v55 }
 0x121   : > { %v447_v59 = vmul.f32 %v820_v57, %v437_v56  ;;  %v438_v60 = vmul.f32 %v818_v38, %v436_v58 }
 0x123   : > { %v449_v62 = vsub.f32 1.0, %v447_v59  ;;  %v448_v1 = vmul.f32 %v822_v61, %v438_v60 }
 0x125   : > { %v451_v2 = vmul.f32 %v449_v62, %v409_v0  ;;  %v450_v3 = vsub.f32 1.0, %v448_v1 }
 0x127   : > { %v453_v5 = vadd.f32 1.0, %v451_v2  ;;  %v452_v6 = vmul.f32 %v450_v3, %v410_v4 }
 0x129   : > { %v454_v10 = vadd.f32 1.0, %v452_v6  ;;  %v455_v11 = vmul.f32 %v453_v5, %v403_v7 }
 0x12b   : > { %v456_v12 = vmul.f32 %v454_v10, %v404_v8 }
 0x12d   : > { %v457_v13 = vpack.c.bf16 %v456_v12, %v455_v11 }
 0x12f   : > { %783 = vmatmul.mubr.bf16.vlgmr.msra.gmra.mrb[0].mxu1 %v457_v13 }
 0x202   : > { %v563_v18 = vpop.f32.mrb[0].mxu1 }
 0x203   : > { %v564_v19 = vadd.f32 %v706_v15, %v563_v18  ;;  %v784_v21 = vpop.f32.mrb[1].mxu1 }
 0x204   : > { %v566_v20 = vpop.f32.mrb[2].mxu1 }
 0x205   : > { %v567_v23 = vadd.f32 %v706_v15, %v566_v20  ;;  %v785_v24 = vpop.f32.mrb[3].mxu1  ;;  %v572_v25 = vadd.f32 %v570_v17, %v564_v19 }
 0x207   : > { %v579_v26 = vsel %vm578_vm3, %v572_v25, 0.0  ;;  %v573_v27 = vadd.f32 %v571_v22, %v567_v23 }
 0x208   : > { %581 = vadd.xlane.f32.xlu0 %v579_v26 }
 0x209   : > { %v580_v28 = vsel %vm578_vm3, %v573_v27, 0.0 }
 0x20c   : > { %583 = vadd.xlane.f32.xlu0 %v580_v28 }
 0x295   : > { %v582_v29 = vpop.xlane.xlu0 %581 }
 0x296   : > { %v585_v30 = vmul.f32 0.03125, %v582_v29 }
 0x298   : > { %v587_v31 = vsub.f32 %v572_v25, %v585_v30 }
 0x299   : > { %v584_v32 = vpop.xlane.xlu0 %583 }
 0x29a   : > { %v586_v33 = vmul.f32 0.03125, %v584_v32  ;;  %v589_v34 = vsel %vm578_vm3, %v587_v31, 0.0 }
 0x29b   : > { %v591_v9 = vmul.f32 %v589_v34, %v589_v34 }
 0x29c   : > { %v588_v35 = vsub.f32 %v573_v27, %v586_v33 }
 0x29d   : > { %593 = vadd.xlane.f32.xlu1 %v591_v9 }
 0x29e   : > { %v590_v36 = vsel %vm578_vm3, %v588_v35, 0.0 }
 0x29f   : > { %v592_v37 = vmul.f32 %v590_v36, %v590_v36 }
 0x2a1   : > { %595 = vadd.xlane.f32.xlu1 %v592_v37 }
 0x32a   : > { %v594_v38 = vpop.xlane.xlu1 %593 }
 0x32b   : > { %v597_v39 = vmul.f32 0.03125, %v594_v38 }
 0x32d   : > { %v599_v40 = vadd.f32 1e-05, %v597_v39 }
 0x32e   : > { %v596_v41 = vpop.xlane.xlu1 %595 }
 0x32f   : > { %823 = vrsqrt.f32 %v599_v40  ;;  %v598_v42 = vmul.f32 0.03125, %v596_v41 }
 0x331   : > { %v600_v43 = vadd.f32 1e-05, %v598_v42 }
 0x333   : > { %825 = vrsqrt.f32 %v600_v43 }
 0x339   : > { %v824_v44 = vpop.eup %823 }
 0x33a   : > { %v603_v45 = vmul.f32 %v824_v44, %v589_v34 }
 0x33c   : > { %v611_v48 = vmul.f32 %v715_v46, %v603_v45 }
 0x33d   : > { %v826_v47 = vpop.eup %825 }
 0x33e   : > { %v604_v49 = vmul.f32 %v826_v47, %v590_v36  ;;  %v619_v52 = vadd.f32 %v716_v50, %v611_v48 }
 0x340   : > { %v612_v51 = vmul.f32 %v715_v46, %v604_v49 }
 0x342   : > { %v620_v53 = vadd.f32 %v716_v50, %v612_v51 }
 0x344   : > { %v726_v54 = vpack.c.bf16 %v620_v53, %v619_v52 }
 0x346   : > { %727 = vst [vmem:[%s280_s8] sm:$0xff] %v726_v54  }
 0x347 PF: > { %s17_s24 = sadd.s32 1, %s833_s24  }
 0x348   : > { %p14_p4 = scmp.ge.s32.totalorder %s17_s24, 4  }
 0x34a   :  { %16 = sbr.rel (!%p14_p4) target bundleno = 1 (0x1), region = 78 }

// kernel: hybrid_encoder_forward.15
= control target key start
LH: loop header
LB: loop body
LE: loop exit
PB: predicated region body
PF: predicated region fallthrough
CT: control target
= control target key end

     0   :  { %s1036_s12 = smov 0   ;;  %s1192_s0 = inlined_call_operand.vmem [shape: bf16[128,512], index: 0, kind: input, shape index: {}]   ;;  %s1193_s1 = inlined_call_operand.vmem [shape: bf16[512,128], index: 1, kind: input, shape index: {}]   ;;  %s1194_s2 = inlined_call_operand.vmem [shape: f32[1,128], index: 2, kind: input, shape index: {}]   ;;  %s1195_s3 = inlined_call_operand.vmem [shape: bf16[128,128], index: 3, kind: output, shape index: {}]  }
   0x1 LB: > { %s763_s13 = sadd.s32 4294967295, %s1014_s12   ;;  %p767_p0 = scmp.ge.s32.totalorder %s1014_s12, 1  ;;  %s1014_s12 = sphi %s1036_s12, %s13_s12  }
   0x2   : > { %p139_p1 = scmp.lt.s32.totalorder %s1014_s12, 3 }
   0x4   : > { %p140_p2 = pnand %p767_p0, %p139_p1 }
   0x5   : > { %v952_v0 = vld [vmem:[%s1193_s1 + $0x40] sm:$0xff] (!%p140_p2)   ;;  %v956_v4 = vld [vmem:[%s1193_s1 + $0x48] sm:$0xff] (!%p140_p2)   ;;  %v960_v8 = vld [vmem:[%s1193_s1 + $0x50] sm:$0xff] (!%p140_p2)   ;;  %s768_s21 = sshll.u32 (!%p140_p2), %s763_s13, 3 }
   0x6   : > { %143 = sbr.rel (%p140_p2) target bundleno = 287 (0x11f), region = 32  ;;  %v953_v1 = vld [vmem:[%s1193_s1 + $0xc0] sm:$0xff] (!%p140_p2)   ;;  %864 = vmatprep.subr.bf16.mxu0 (!%p140_p2), %v952_v0  ;;  %v957_v5 = vld [vmem:[%s1193_s1 + $0xc8] sm:$0xff] (!%p140_p2)   ;;  %v961_v9 = vld [vmem:[%s1193_s1 + $0xd0] sm:$0xff] (!%p140_p2)   ;;  %p165_p3 = scmp.lt.s32.totalorder (!%p140_p2), %s768_s21, 15 }
   0x7   : > { %v954_v2 = vld [vmem:[%s1193_s1] sm:$0xff] (!%p140_p2)   ;;  %904 = vmatprep.subr.bf16.mxu1 (!%p140_p2), %v953_v1  ;;  %v958_v6 = vld [vmem:[%s1193_s1 + $0x8] sm:$0xff] (!%p140_p2)   ;;  %v962_v10 = vld [vmem:[%s1193_s1 + $0x10] sm:$0xff] (!%p140_p2)  }
   0x8   : > { %v955_v3 = vld [vmem:[%s1193_s1 + $0x80] sm:$0xff] (!%p140_p2)   ;;  %865 = vmatpush3.bf16.msra.mxu0 (!%p140_p2), %v954_v2  ;;  %v959_v7 = vld [vmem:[%s1193_s1 + $0x88] sm:$0xff] (!%p140_p2)   ;;  %v963_v11 = vld [vmem:[%s1193_s1 + $0x90] sm:$0xff] (!%p140_p2)  }
   0x9   : > { %905 = vmatpush3.bf16.msra.mxu1 (!%p140_p2), %v955_v3  ;;  %866 = vmatprep.subr.bf16.mxu0 (!%p140_p2), %v956_v4  ;;  %v964_v12 = vld [vmem:[%s1193_s1 + $0x58] sm:$0xff] (!%p140_p2)   ;;  %v968_v16 = vld [vmem:[%s1193_s1 + $0x60] sm:$0xff] (!%p140_p2)   ;;  %v972_v20 = vld [vmem:[%s1193_s1 + $0x68] sm:$0xff] (!%p140_p2)  }
   0xa   : > { %906 = vmatprep.subr.bf16.mxu1 (!%p140_p2), %v957_v5  ;;  %v965_v13 = vld [vmem:[%s1193_s1 + $0xd8] sm:$0xff] (!%p140_p2)   ;;  %v969_v17 = vld [vmem:[%s1193_s1 + $0xe0] sm:$0xff] (!%p140_p2)   ;;  %v973_v21 = vld [vmem:[%s1193_s1 + $0xe8] sm:$0xff] (!%p140_p2)  }
   0xb   : > { %v966_v14 = vld [vmem:[%s1193_s1 + $0x18] sm:$0xff] (!%p140_p2)   ;;  %v970_v18 = vld [vmem:[%s1193_s1 + $0x20] sm:$0xff] (!%p140_p2)   ;;  %v974_v22 = vld [vmem:[%s1193_s1 + $0x28] sm:$0xff] (!%p140_p2)  }
   0xc   : > { %867 = vmatpush3.bf16.msra.mxu0 (!%p140_p2), %v958_v6  ;;  %v967_v15 = vld [vmem:[%s1193_s1 + $0x98] sm:$0xff] (!%p140_p2)   ;;  %v971_v19 = vld [vmem:[%s1193_s1 + $0xa0] sm:$0xff] (!%p140_p2)   ;;  %v975_v23 = vld [vmem:[%s1193_s1 + $0xa8] sm:$0xff] (!%p140_p2)  }
   0xd   : > { %907 = vmatpush3.bf16.msra.mxu1 %v959_v7  ;;  %868 = vmatprep.subr.bf16.mxu0 %v960_v8  ;;  %s1197_s21 = smov (!%p165_p3, %s768_s21), 15  ;;  %v976_v24 = vld [vmem:[%s1193_s1 + $0x70] sm:$0xff]   ;;  %v980_v28 = vld [vmem:[%s1193_s1 + $0x78] sm:$0xff]   ;;  %v1169_v50 = vld [vmem:[%s1194_s2] ss:$0 sm:$0xff] }
   0xe   : > { %908 = vmatprep.subr.bf16.mxu1 %v961_v9  ;;  %v977_v25 = vld [vmem:[%s1193_s1 + $0xf0] sm:$0xff]   ;;  %s832_s18 = sshll.u32 %s1197_s21, 4  ;;  %v981_v29 = vld [vmem:[%s1193_s1 + $0xf8] sm:$0xff]   ;;  %s772_s7 = sshll.u32 %s1197_s21, 2 }
   0xf   : > { %v978_v26 = vld [vmem:[%s1193_s1 + $0x30] sm:$0xff]   ;;  %s1142_s28 = scalar_lea.vmem %s1192_s0, %s832_s18  ;;  %v982_v30 = vld [vmem:[%s1193_s1 + $0x38] sm:$0xff]   ;;  %s1177_s10 = scalar_lea.vmem %s1195_s3, %s772_s7 }
  0x10   : > { %869 = vmatpush3.bf16.msra.mxu0 %v962_v10  ;;  %v979_v27 = vld [vmem:[%s1193_s1 + $0xb0] sm:$0xff]   ;;  %v983_v31 = vld [vmem:[%s1193_s1 + $0xb8] sm:$0xff]  }
  0x11   : > { %909 = vmatpush3.bf16.msra.mxu1 %v963_v11  ;;  %870 = vmatprep.subr.bf16.mxu0 %v964_v12  ;;  %v984_v32 = vld [vmem:[%s1142_s28] ss:$16 sps:$4 sm:$0xff]   ;;  %v986_v33 = vld [vmem:[%s1142_s28 + $0x4] ss:$16 sps:$4 sm:$0xff]   ;;  %v987_v34 = vld [vmem:[%s1142_s28 + $0x8] ss:$16 sps:$4 sm:$0xff]  }
  0x12   : > { %910 = vmatprep.subr.bf16.mxu1 %v965_v13  ;;  %v989_v35 = vld [vmem:[%s1142_s28 + $0xc] ss:$16 sps:$4 sm:$0xff]   ;;  %569 = vmatprep.mubr.bf16.mxu0 %v986_v33  ;;  %v990_v36 = vld [vmem:[%s1142_s28 + $0x24] ss:$16 sps:$4 sm:$0xff]   ;;  %v994_v38 = vld [vmem:[%s1142_s28 + $0x20] ss:$16 sps:$4 sm:$0xff]  }
  0x13   : > { %634 = vmatprep.mubr.bf16.mxu1 %v989_v35  ;;  %v992_v37 = vld [vmem:[%s1142_s28 + $0x2c] ss:$16 sps:$4 sm:$0xff]   ;;  %v995_v39 = vld [vmem:[%s1142_s28 + $0x28] ss:$16 sps:$4 sm:$0xff]   ;;  %v996_v40 = vld [vmem:[%s1142_s28 + $0x44] ss:$16 sps:$4 sm:$0xff]  }
  0x14   : > { %871 = vmatpush3.bf16.msra.mxu0 %v966_v14  ;;  %v998_v41 = vld [vmem:[%s1142_s28 + $0x4c] ss:$16 sps:$4 sm:$0xff]   ;;  %v1000_v42 = vld [vmem:[%s1142_s28 + $0x40] ss:$16 sps:$4 sm:$0xff]   ;;  %v1001_v43 = vld [vmem:[%s1142_s28 + $0x48] ss:$16 sps:$4 sm:$0xff]  }
  0x15   : > { %911 = vmatpush3.bf16.msra.mxu1 %v967_v15  ;;  %872 = vmatprep.subr.bf16.mxu0 %v968_v16  ;;  %v1002_v44 = vld [vmem:[%s1142_s28 + $0x64] ss:$16 sps:$4 sm:$0xff]   ;;  %v1004_v45 = vld [vmem:[%s1142_s28 + $0x6c] ss:$16 sps:$4 sm:$0xff]   ;;  %v1006_v46 = vld [vmem:[%s1142_s28 + $0x60] ss:$16 sps:$4 sm:$0xff]  }
  0x16   : > { %912 = vmatprep.subr.bf16.mxu1 %v969_v17  ;;  %v1007_v47 = vld [vmem:[%s1142_s28 + $0x68] ss:$16 sps:$4 sm:$0xff]  }
  0x18   : > { %873 = vmatpush3.bf16.msra.mxu0 %v970_v18 }
  0x19   : > { %913 = vmatpush3.bf16.msra.mxu1 %v971_v19  ;;  %874 = vmatprep.subr.bf16.mxu0 %v972_v20 }
  0x1a   : > { %914 = vmatprep.subr.bf16.mxu1 %v973_v21 }
  0x1c   : > { %875 = vmatpush3.bf16.msra.mxu0 %v974_v22 }
  0x1d   : > { %915 = vmatpush3.bf16.msra.mxu1 %v975_v23  ;;  %876 = vmatprep.subr.bf16.mxu0 %v976_v24 }
  0x1e   : > { %916 = vmatprep.subr.bf16.mxu1 %v977_v25 }
  0x20   : > { %877 = vmatpush3.bf16.msra.mxu0 %v978_v26 }
  0x21   : > { %917 = vmatpush3.bf16.msra.mxu1 %v979_v27  ;;  %878 = vmatprep.subr.bf16.mxu0 %v980_v28 }
  0x22   : > { %918 = vmatprep.subr.bf16.mxu1 %v981_v29 }
  0x24   : > { %879 = vmatpush3.bf16.msra.mxu0 %v982_v30 }
  0x25   : > { %919 = vmatpush3.bf16.msra.mxu1 %v983_v31 }
  0x27   : > { %570 = vmatmul.mubr.bf16.vlgmr.msra.gmra.mrb[0].mxu0 %v984_v32 }
  0x28   : > { %635 = vmatmul.mubr.bf16.vlgmr.msra.gmra.mrb[0].mxu1 %v987_v34  ;;  %577 = vmatprep.mubr.bf16.mxu0 %v990_v36 }
  0x29   : > { %642 = vmatprep.mubr.bf16.mxu1 %v992_v37 }
  0x2f   : > { %578 = vmatmul.mubr.bf16.gmra.mrb[4].mxu0 %v994_v38 }
  0x30   : > { %643 = vmatmul.mubr.bf16.gmra.mrb[4].mxu1 %v995_v39  ;;  %585 = vmatprep.mubr.bf16.mxu0 %v996_v40 }
  0x31   : > { %650 = vmatprep.mubr.bf16.mxu1 %v998_v41 }
  0x37   : > { %586 = vmatmul.mubr.bf16.gmra.mrb[8].mxu0 %v1000_v42 }
  0x38   : > { %651 = vmatmul.mubr.bf16.gmra.mrb[8].mxu1 %v1001_v43  ;;  %593 = vmatprep.mubr.bf16.mxu0 %v1002_v44 }
  0x39   : > { %658 = vmatprep.mubr.bf16.mxu1 %v1004_v45 }
  0x3f   : > { %594 = vmatmul.mubr.bf16.gmra.mrb[12].mxu0 %v1006_v46 }
  0x40   : > { %659 = vmatmul.mubr.bf16.gmra.mrb[12].mxu1 %v1007_v47 }
  0xfa   : > { %v880_v48 = vpop.f32.mrb[0].mxu0 }
  0xfb   : > { %v920_v49 = vpop.f32.mrb[0].mxu1  ;;  %v881_v51 = vpop.f32.mrb[1].mxu0 }
  0xfc   : > { %v882_v52 = vadd.f32 %v881_v51, %v880_v48  ;;  %v921_v53 = vpop.f32.mrb[1].mxu1  ;;  %v883_v54 = vpop.f32.mrb[2].mxu0 }
  0xfd   : > { %v922_v55 = vadd.f32 %v921_v53, %v920_v49  ;;  %v923_v56 = vpop.f32.mrb[2].mxu1  ;;  %v884_v57 = vpop.f32.mrb[3].mxu0 }
  0xfe   : > { %v572_v58 = vadd.f32 %v882_v52, %v1169_v50  ;;  %v885_v59 = vadd.f32 %v884_v57, %v883_v54  ;;  %v924_v60 = vpop.f32.mrb[3].mxu1 }
  0xff   : > { %v925_v61 = vadd.f32 %v924_v60, %v923_v56 }
 0x100   : > { %v637_v62 = vadd.f32 %v922_v55, %v572_v58  ;;  %v575_v63 = vadd.f32 %v885_v59, %v1169_v50 }
 0x102   : > { %v640_v0 = vadd.f32 %v925_v61, %v575_v63  ;;  %v886_v1 = vpop.f32.mrb[4].mxu0 }
 0x103   : > { %v926_v2 = vpop.f32.mrb[4].mxu1  ;;  %v887_v3 = vpop.f32.mrb[5].mxu0 }
 0x104   : > { %v844_v4 = vpack.c.bf16 %v640_v0, %v637_v62  ;;  %v888_v5 = vadd.f32 %v887_v3, %v886_v1  ;;  %v927_v6 = vpop.f32.mrb[5].mxu1  ;;  %v889_v7 = vpop.f32.mrb[6].mxu0 }
 0x105   : > { %v928_v8 = vadd.f32 %v927_v6, %v926_v2  ;;  %v929_v9 = vpop.f32.mrb[6].mxu1  ;;  %v890_v10 = vpop.f32.mrb[7].mxu0 }
 0x106   : > { %845 = vst [vmem:[%s1177_s10] sm:$0xff] %v844_v4   ;;  %v580_v11 = vadd.f32 %v888_v5, %v1169_v50  ;;  %v891_v12 = vadd.f32 %v890_v10, %v889_v7  ;;  %v930_v13 = vpop.f32.mrb[7].mxu1 }
 0x107   : > { %v931_v14 = vadd.f32 %v930_v13, %v929_v9 }
 0x108   : > { %v645_v15 = vadd.f32 %v928_v8, %v580_v11  ;;  %v583_v16 = vadd.f32 %v891_v12, %v1169_v50 }
 0x10a   : > { %v648_v17 = vadd.f32 %v931_v14, %v583_v16  ;;  %v892_v18 = vpop.f32.mrb[8].mxu0 }
 0x10b   : > { %v932_v19 = vpop.f32.mrb[8].mxu1  ;;  %v893_v20 = vpop.f32.mrb[9].mxu0 }
 0x10c   : > { %v849_v21 = vpack.c.bf16 %v648_v17, %v645_v15  ;;  %v894_v22 = vadd.f32 %v893_v20, %v892_v18  ;;  %v933_v23 = vpop.f32.mrb[9].mxu1  ;;  %v895_v24 = vpop.f32.mrb[10].mxu0 }
 0x10d   : > { %v934_v25 = vadd.f32 %v933_v23, %v932_v19  ;;  %v935_v26 = vpop.f32.mrb[10].mxu1  ;;  %v896_v27 = vpop.f32.mrb[11].mxu0 }
 0x10e   : > { %861 = vst [vmem:[%s1177_s10 + $0x8] sm:$0xff] %v849_v21   ;;  %v588_v28 = vadd.f32 %v894_v22, %v1169_v50  ;;  %v897_v29 = vadd.f32 %v896_v27, %v895_v24  ;;  %v936_v30 = vpop.f32.mrb[11].mxu1 }
 0x10f   : > { %v937_v31 = vadd.f32 %v936_v30, %v935_v26 }
 0x110   : > { %v653_v32 = vadd.f32 %v934_v25, %v588_v28  ;;  %v591_v33 = vadd.f32 %v897_v29, %v1169_v50 }
 0x112   : > { %v656_v34 = vadd.f32 %v937_v31, %v591_v33  ;;  %v898_v35 = vpop.f32.mrb[12].mxu0 }
 0x113   : > { %v938_v36 = vpop.f32.mrb[12].mxu1  ;;  %v899_v37 = vpop.f32.mrb[13].mxu0 }
 0x114   : > { %v854_v38 = vpack.c.bf16 %v656_v34, %v653_v32  ;;  %v900_v39 = vadd.f32 %v899_v37, %v898_v35  ;;  %v939_v40 = vpop.f32.mrb[13].mxu1  ;;  %v901_v41 = vpop.f32.mrb[14].mxu0 }
 0x115   : > { %v940_v42 = vadd.f32 %v939_v40, %v938_v36  ;;  %v941_v43 = vpop.f32.mrb[14].mxu1  ;;  %v902_v44 = vpop.f32.mrb[15].mxu0 }
 0x116   : > { %862 = vst [vmem:[%s1177_s10 + $0x10] sm:$0xff] %v854_v38   ;;  %v596_v45 = vadd.f32 %v900_v39, %v1169_v50  ;;  %v903_v46 = vadd.f32 %v902_v44, %v901_v41  ;;  %v942_v47 = vpop.f32.mrb[15].mxu1 }
 0x117   : > { %v943_v48 = vadd.f32 %v942_v47, %v941_v43 }
 0x118   : > { %v661_v49 = vadd.f32 %v940_v42, %v596_v45  ;;  %v599_v51 = vadd.f32 %v903_v46, %v1169_v50 }
 0x11a   : > { %v664_v52 = vadd.f32 %v943_v48, %v599_v51 }
 0x11c   : > { %v859_v53 = vpack.c.bf16 %v664_v52, %v661_v49 }
 0x11e   : > { %863 = vst [vmem:[%s1177_s10 + $0x18] sm:$0xff] %v859_v53  }
 0x11f PF: > { %s13_s12 = sadd.s32 1, %s1014_s12  }
 0x120   : > { %p10_p4 = scmp.ge.s32.totalorder %s13_s12, 4  }
 0x122   :  { %12 = sbr.rel (!%p10_p4) target bundleno = 1 (0x1), region = 62 }

// kernel: hybrid_encoder_forward.22
= control target key start
LH: loop header
LB: loop body
LE: loop exit
PB: predicated region body
PF: predicated region fallthrough
CT: control target
= control target key end

     0   :  { %s975_s12 = smov 0   ;;  %s977_s13 = smov 0   ;;  %s1040_s0 = inlined_call_operand.vmem [shape: bf16[2,64,128], index: 0, kind: input, shape index: {}]   ;;  %s1041_s1 = inlined_call_operand.vmem [shape: bf16[2,64,128], index: 1, kind: input, shape index: {}]   ;;  %s1042_s2 = inlined_call_operand.vmem [shape: bf16[2,64,128], index: 2, kind: input, shape index: {}]   ;;  %s1043_s3 = inlined_call_operand.vmem [shape: bf16[2,64,128], index: 3, kind: output, shape index: {}]  }
   0x1   :  { %s979_s14 = smov 0  }
   0x2 LB: > { %s25_s15 = sadd.s32 1, %s949_s13  ;;  %p745_p0 = scmp.ge.s32.totalorder %s953_s14, 1  ;;  %s953_s14 = sphi %s979_s14, %s13_s14   ;;  %s949_s13 = sphi %s977_s13, %s1045_s13   ;;  %s945_s12 = sphi %s975_s12, %s1044_s12  }
   0x3   : > { %p27_p1 = scmp.ge.s32.totalorder %s25_s15, 2  ;;  %p178_p2 = scmp.lt.s32.totalorder %s953_s14, 3 }
   0x5   : > { %s1047_s15 = smov (%p27_p1, %s25_s15), 0  ;;  %p179_p3 = pnand %p745_p0, %p178_p2 }
   0x6   : > { %p221_p4 = scmp.lt.s32.totalorder (!%p179_p3), %s945_s12, 1  ;;  %vm388_vm0 = vcmask (!%p179_p3), 523264  }
   0x7   : > { %182 = sbr.rel (%p179_p3) target bundleno = 659 (0x293), region = 32 }
   0xe   : > { %s1049_s12 = smov (!%p221_p4, %s945_s12), 1 }
   0xf   : > { %s993_s16 = sshll.u32 %s1049_s12, 5 }
  0x10   : > { %s234_s19 = scalar_lea.vmem %s1041_s1, %s993_s16  ;;  %s228_s22 = scalar_lea.vmem %s1040_s0, %s993_s16 }
  0x11   : > { %v887_v0 = vld [vmem:[%s234_s19] sm:$0xff]   ;;  %v888_v1 = vld [vmem:[%s234_s19 + $0x8] sm:$0xff]   ;;  %v889_v3 = vld [vmem:[%s234_s19 + $0x10] sm:$0xff]   ;;  %s239_s25 = scalar_lea.vmem %s1042_s2, %s993_s16  ;;  %s248_s28 = scalar_lea.vmem %s1043_s3, %s993_s16 }
  0x12   : > { %831 = vmatprep.subr.bf16.mxu0 %v887_v0  ;;  %v891_v2 = vld [vmem:[%s228_s22] sm:$0xff]   ;;  %v890_v4 = vld [vmem:[%s234_s19 + $0x18] sm:$0xff]   ;;  %v892_v5 = vld [vmem:[%s228_s22 + $0x8] sm:$0xff]  }
  0x13   : > { %832 = vmatpush3.bf16.xpose.msra.mxu0 %v887_v0  ;;  %839 = vmatprep.mubr.bf16.mxu0 %v891_v2  ;;  %v893_v6 = vld [vmem:[%s228_s22 + $0x10] sm:$0xff]   ;;  %v894_v7 = vld [vmem:[%s228_s22 + $0x18] sm:$0xff]   ;;  %v895_v32 = vld [vmem:[%s239_s25] sm:$0xff]  }
  0x14   : > { %833 = vmatprep.subr.bf16.mxu0 %v888_v1  ;;  %847 = vmatprep.subr.bf16.mxu1 %v895_v32  ;;  %v896_v33 = vld [vmem:[%s239_s25 + $0x8] sm:$0xff]   ;;  %v897_v34 = vld [vmem:[%s239_s25 + $0x10] sm:$0xff]   ;;  %v898_v35 = vld [vmem:[%s239_s25 + $0x18] sm:$0xff]  }
  0x15   : > { %848 = vmatpush3.bf16.msra.mxu1 %v895_v32 }
  0x16   : > { %849 = vmatprep.subr.bf16.mxu1 %v896_v33 }
  0x19   : > { %850 = vmatpush3.bf16.msra.mxu1 %v896_v33 }
  0x1a   : > { %851 = vmatprep.subr.bf16.mxu1 %v897_v34 }
  0x1b   : > { %834 = vmatpush3.bf16.xpose.msra.mxu0 %v888_v1 }
  0x1c   : > { %835 = vmatprep.subr.bf16.mxu0 %v889_v3 }
  0x1d   : > { %852 = vmatpush3.bf16.msra.mxu1 %v897_v34 }
  0x1e   : > { %853 = vmatprep.subr.bf16.mxu1 %v898_v35 }
  0x21   : > { %854 = vmatpush3.bf16.msra.mxu1 %v898_v35 }
  0x23   : > { %836 = vmatpush3.bf16.xpose.msra.mxu0 %v889_v3 }
  0x24   : > { %837 = vmatprep.subr.bf16.mxu0 %v890_v4 }
  0x2b   : > { %838 = vmatpush3.bf16.xpose.msra.mxu0 %v890_v4 }
  0x32   : > { %840 = vmatmul.mubr.bf16.vlgmr.msra.gmra.mrb[0].mxu0 %v892_v5 }
  0x33   : > { %843 = vmatprep.mubr.bf16.mxu0 %v893_v6 }
  0x3a   : > { %844 = vmatmul.mubr.bf16.gmra.mrb[4].mxu0 %v894_v7 }
 0x105   : > { %v841_v8 = vpop.f32.mrb[0].mxu0 }
 0x106   : > { %v382_v9 = vmul.f32 0.35355338, %v841_v8  ;;  %v349_v10 = vpop.f32.mrb[1].mxu0 }
 0x107   : > { %v380_v11 = vmul.f32 0.35355338, %v349_v10  ;;  %v842_v12 = vpop.f32.mrb[2].mxu0 }
 0x108   : > { %v383_v13 = vmul.f32 0.35355338, %v842_v12  ;;  %v352_v14 = vpop.f32.mrb[3].mxu0  ;;  %v395_v15 = vsel %vm388_vm0, %v382_v9, -inf }
 0x109   : > { %v381_v16 = vmul.f32 0.35355338, %v352_v14  ;;  %396 = vmax.xlane.f32.xlu1 %v395_v15  ;;  %v389_v17 = vsel %vm388_vm0, %v380_v11, -inf }
 0x10a   : > { %390 = vmax.xlane.f32.xlu0 %v389_v17  ;;  %v398_v18 = vsel %vm388_vm0, %v383_v13, -inf }
 0x10b   : > { %v392_v20 = vsel %vm388_vm0, %v381_v16, -inf }
 0x10d   : > { %399 = vmax.xlane.f32.xlu1 %v398_v18  ;;  %v845_v19 = vpop.f32.mrb[4].mxu0 }
 0x10e   : > { %393 = vmax.xlane.f32.xlu0 %v392_v20  ;;  %v365_v21 = vpop.f32.mrb[5].mxu0  ;;  %v386_v25 = vmul.f32 0.35355338, %v845_v19 }
 0x10f   : > { %v384_v22 = vmul.f32 0.35355338, %v365_v21  ;;  %v846_v23 = vpop.f32.mrb[6].mxu0 }
 0x110   : > { %v368_v24 = vpop.f32.mrb[7].mxu0  ;;  %v387_v28 = vmul.f32 0.35355338, %v846_v23  ;;  %v407_v30 = vsel %vm388_vm0, %v386_v25, -inf }
 0x111   : > { %v385_v26 = vmul.f32 0.35355338, %v368_v24  ;;  %v401_v27 = vsel %vm388_vm0, %v384_v22, -inf }
 0x112   : > { %402 = vmax.xlane.f32.xlu0 %v401_v27  ;;  %v410_v31 = vsel %vm388_vm0, %v387_v28, -inf }
 0x113   : > { %v404_v29 = vsel %vm388_vm0, %v385_v26, -inf }
 0x114   : > { %405 = vmax.xlane.f32.xlu1 %v404_v29 }
 0x116   : > { %408 = vmax.xlane.f32.xlu0 %v407_v30 }
 0x118   : > { %411 = vmax.xlane.f32.xlu1 %v410_v31 }
 0x196   : > { %v397_v36 = vpop.xlane.xlu1 %396 }
 0x197   : > { %v415_v37 = vsub.f32 %v382_v9, %v397_v36  ;;  %v391_v38 = vpop.xlane.xlu0 %390 }
 0x198   : > { %v413_v39 = vsub.f32 %v380_v11, %v391_v38 }
 0x199   : > { %v425_v40 = vmul.f32 1.442695, %v415_v37 }
 0x19a   : > { %v421_v41 = vmul.f32 1.442695, %v413_v39  ;;  %v400_v42 = vpop.xlane.xlu1 %399 }
 0x19b   : > { %899 = vpow2.f32 %v425_v40  ;;  %v416_v43 = vsub.f32 %v383_v13, %v400_v42  ;;  %v394_v44 = vpop.xlane.xlu0 %393 }
 0x19c   : > { %v414_v45 = vsub.f32 %v381_v16, %v394_v44  ;;  %901 = vpow2.f32 %v421_v41 }
 0x19d   : > { %v427_v46 = vmul.f32 1.442695, %v416_v43 }
 0x19e   : > { %v423_v47 = vmul.f32 1.442695, %v414_v45 }
 0x19f   : > { %903 = vpow2.f32 %v427_v46  ;;  %v403_v48 = vpop.xlane.xlu0 %402 }
 0x1a0   : > { %905 = vpow2.f32 %v423_v47  ;;  %v417_v49 = vsub.f32 %v384_v22, %v403_v48 }
 0x1a1   : > { %v406_v50 = vpop.xlane.xlu1 %405 }
 0x1a2   : > { %v429_v51 = vmul.f32 1.442695, %v417_v49  ;;  %v418_v52 = vsub.f32 %v385_v26, %v406_v50 }
 0x1a3   : > { %v409_v53 = vpop.xlane.xlu0 %408 }
 0x1a4   : > { %907 = vpow2.f32 %v429_v51  ;;  %v431_v54 = vmul.f32 1.442695, %v418_v52  ;;  %v419_v55 = vsub.f32 %v386_v25, %v409_v53 }
 0x1a5   : > { %v900_v56 = vpop.eup %899  ;;  %v412_v57 = vpop.xlane.xlu1 %411 }
 0x1a6   : > { %909 = vpow2.f32 %v431_v54  ;;  %v433_v58 = vmul.f32 1.442695, %v419_v55  ;;  %v420_v59 = vsub.f32 %v387_v28, %v412_v57  ;;  %v443_v60 = vsel %vm388_vm0, %v900_v56, 0.0  ;;  %v902_v61 = vpop.eup %901 }
 0x1a7   : > { %444 = vadd.xlane.f32.xlu0 %v443_v60  ;;  %v437_v1 = vsel %vm388_vm0, %v902_v61, 0.0 }
 0x1a8   : > { %911 = vpow2.f32 %v433_v58  ;;  %v435_v62 = vmul.f32 1.442695, %v420_v59 }
 0x1a9   : > { %v904_v63 = vpop.eup %903 }
 0x1aa   : > { %v906_v0 = vpop.eup %905  ;;  %913 = vpow2.f32 %v435_v62  ;;  %v446_v2 = vsel %vm388_vm0, %v904_v63, 0.0  ;;  %v462_v4 = vpack.c.bf16 %v904_v63, %v900_v56 }
 0x1ab   : > { %438 = vadd.xlane.f32.xlu0 %v437_v1  ;;  %447 = vadd.xlane.f32.xlu1 %v446_v2  ;;  %v461_v3 = vpack.c.bf16 %v906_v0, %v902_v61  ;;  %v440_v6 = vsel %vm388_vm0, %v906_v0, 0.0 }
 0x1ad   : > { %855 = vmatprep.mubr.msk.bf16.mxu1 %vm388_vm0, %v461_v3 }
 0x1ae   : > { %v908_v5 = vpop.eup %907  ;;  %856 = vmatmul.mubr.msk.bf16.vlgmr.msra.gmra.mrb[0].mxu1 %vm388_vm0, %v462_v4 }
 0x1af   : > { %441 = vadd.xlane.f32.xlu1 %v440_v6  ;;  %v449_v7 = vsel %vm388_vm0, %v908_v5, 0.0 }
 0x1b0   : > { %v910_v8 = vpop.eup %909  ;;  %450 = vadd.xlane.f32.xlu0 %v449_v7 }
 0x1b1   : > { %v463_v9 = vpack.c.bf16 %v910_v8, %v908_v5  ;;  %v452_v10 = vsel %vm388_vm0, %v910_v8, 0.0 }
 0x1b2   : > { %v912_v11 = vpop.eup %911 }
 0x1b3   : > { %859 = vmatprep.mubr.msk.bf16.mxu1 %vm388_vm0, %v463_v9  ;;  %453 = vadd.xlane.f32.xlu1 %v452_v10  ;;  %v455_v12 = vsel %vm388_vm0, %v912_v11, 0.0 }
 0x1b4   : > { %v914_v13 = vpop.eup %913  ;;  %456 = vadd.xlane.f32.xlu0 %v455_v12 }
 0x1b5   : > { %v464_v14 = vpack.c.bf16 %v914_v13, %v912_v11  ;;  %v458_v15 = vsel %vm388_vm0, %v914_v13, 0.0 }
 0x1b7   : > { %860 = vmatmul.mubr.msk.bf16.gmra.mrb[4].mxu1 %vm388_vm0, %v464_v14  ;;  %459 = vadd.xlane.f32.xlu1 %v458_v15 }
 0x234   : > { %v445_v16 = vpop.xlane.xlu0 %444 }
 0x235   : > { %915 = vrcp.f32 %v445_v16 }
 0x238   : > { %v448_v17 = vpop.xlane.xlu1 %447  ;;  %v439_v18 = vpop.xlane.xlu0 %438 }
 0x239   : > { %917 = vrcp.f32 %v439_v18 }
 0x23a   : > { %919 = vrcp.f32 %v448_v17 }
 0x23c   : > { %v442_v19 = vpop.xlane.xlu1 %441 }
 0x23d   : > { %v451_v20 = vpop.xlane.xlu0 %450  ;;  %921 = vrcp.f32 %v442_v19 }
 0x23e   : > { %923 = vrcp.f32 %v451_v20 }
 0x23f   : > { %v916_v24 = vpop.eup %915 }
 0x240   : > { %v454_v21 = vpop.xlane.xlu1 %453 }
 0x241   : > { %v457_v22 = vpop.xlane.xlu0 %456 }
 0x242   : > { %925 = vrcp.f32 %v457_v22 }
 0x243   : > { %v918_v26 = vpop.eup %917 }
 0x244   : > { %v460_v23 = vpop.xlane.xlu1 %459  ;;  %v920_v28 = vpop.eup %919 }
 0x245   : > { %927 = vrcp.f32 %v460_v23 }
 0x246   : > { %929 = vrcp.f32 %v454_v21 }
 0x247   : > { %v922_v30 = vpop.eup %921 }
 0x248   : > { %v924_v38 = vpop.eup %923 }
 0x24c   : > { %v926_v40 = vpop.eup %925 }
 0x24f   : > { %v928_v42 = vpop.eup %927 }
 0x250   : > { %v930_v44 = vpop.eup %929 }
 0x281   : > { %v857_v25 = vpop.f32.mrb[0].mxu1 }
 0x282   : > { %v543_v27 = vpop.f32.mrb[1].mxu1  ;;  %v584_v31 = vmul.f32 %v916_v24, %v857_v25 }
 0x283   : > { %v858_v29 = vpop.f32.mrb[2].mxu1  ;;  %v582_v34 = vmul.f32 %v918_v26, %v543_v27 }
 0x284   : > { %v585_v32 = vmul.f32 %v920_v28, %v858_v29  ;;  %v546_v33 = vpop.f32.mrb[3].mxu1 }
 0x285   : > { %v583_v35 = vmul.f32 %v922_v30, %v546_v33 }
 0x286   : > { %v800_v36 = vpack.c.bf16 %v585_v32, %v584_v31 }
 0x287   : > { %v795_v37 = vpack.c.bf16 %v583_v35, %v582_v34 }
 0x288   : > { %812 = vst [vmem:[%s248_s28 + $0x8] sm:$0xff] %v800_v36  }
 0x289   : > { %796 = vst [vmem:[%s248_s28] sm:$0xff] %v795_v37  }
 0x28a   : > { %v861_v39 = vpop.f32.mrb[4].mxu1 }
 0x28b   : > { %v559_v41 = vpop.f32.mrb[5].mxu1  ;;  %v588_v45 = vmul.f32 %v926_v40, %v861_v39 }
 0x28c   : > { %v862_v43 = vpop.f32.mrb[6].mxu1  ;;  %v586_v48 = vmul.f32 %v924_v38, %v559_v41 }
 0x28d   : > { %v589_v46 = vmul.f32 %v928_v42, %v862_v43  ;;  %v562_v47 = vpop.f32.mrb[7].mxu1 }
 0x28e   : > { %v587_v49 = vmul.f32 %v930_v44, %v562_v47 }
 0x28f   : > { %v810_v50 = vpack.c.bf16 %v589_v46, %v588_v45 }
 0x290   : > { %v805_v51 = vpack.c.bf16 %v587_v49, %v586_v48 }
 0x291   : > { %814 = vst [vmem:[%s248_s28 + $0x18] sm:$0xff] %v810_v50  }
 0x292   : > { %813 = vst [vmem:[%s248_s28 + $0x10] sm:$0xff] %v805_v51  }
 0x293 PF: > { %s13_s14 = sadd.s32 1, %s953_s14   ;;  %s1044_s12 = smov %s949_s13 }
 0x294   : > { %p10_p5 = scmp.ge.s32.totalorder %s13_s14, 4   ;;  %s1045_s13 = smov %s1047_s15 }
 0x296   :  { %12 = sbr.rel (!%p10_p5) target bundleno = 2 (0x2), region = 68 }

// kernel: hybrid_encoder_forward.23
= control target key start
LH: loop header
LB: loop body
LE: loop exit
PB: predicated region body
PF: predicated region fallthrough
CT: control target
= control target key end

     0   :  { %s932_s21 = smov 0   ;;  %s1077_s0 = inlined_call_operand.vmem [shape: bf16[128,128], index: 0, kind: input, shape index: {}]   ;;  %s1078_s1 = inlined_call_operand.vmem [shape: bf16[128,128], index: 1, kind: input, shape index: {}]   ;;  %s1079_s2 = inlined_call_operand.vmem [shape: f32[1,128], index: 2, kind: input, shape index: {}]   ;;  %s1080_s3 = inlined_call_operand.vmem [shape: bf16[128,128], index: 3, kind: input, shape index: {}]   ;;  %s1081_s4 = inlined_call_operand.vmem [shape: f32[1,128], index: 4, kind: input, shape index: {}]   ;;  %s1082_s5 = inlined_call_operand.vmem [shape: f32[1,128], index: 5, kind: input, shape index: {}]   ;;  %s1083_s6 = inlined_call_operand.vmem [shape: bf16[128,128], index: 6, kind: output, shape index: {}]  }
   0x1 LB: > { %s715_s22 = sadd.s32 4294967295, %s895_s21   ;;  %p719_p0 = scmp.ge.s32.totalorder %s895_s21, 1  ;;  %s895_s21 = sphi %s932_s21, %s16_s21  }
   0x2   : > { %p224_p1 = scmp.lt.s32.totalorder %s895_s21, 3 }
   0x4   : > { %p225_p2 = pnand %p719_p0, %p224_p1 }
   0x5   : > { %v861_v0 = vld [vmem:[%s1078_s1] sm:$0xff] (!%p225_p2)   ;;  %s720_s25 = sshll.u32 (!%p225_p2), %s715_s22, 3  ;;  %v862_v1 = vld [vmem:[%s1078_s1 + $0x8] sm:$0xff] (!%p225_p2)   ;;  %v863_v2 = vld [vmem:[%s1078_s1 + $0x10] sm:$0xff] (!%p225_p2)   ;;  %v472_v12 = vlaneseq (!%p225_p2) }
   0x6   : > { %228 = sbr.rel (%p225_p2) target bundleno = 587 (0x24b), region = 44  ;;  %p260_p3 = scmp.lt.s32.totalorder (!%p225_p2), %s720_s25, 15  ;;  %813 = vmatprep.subr.bf16.mxu0 (!%p225_p2), %v861_v0  ;;  %837 = vmatprep.subr.bf16.mxu1 (!%p225_p2), %v861_v0  ;;  %v864_v3 = vld [vmem:[%s1078_s1 + $0x18] sm:$0xff] (!%p225_p2)   ;;  %v865_v6 = vld [vmem:[%s1078_s1 + $0x20] sm:$0xff] (!%p225_p2)   ;;  %v866_v7 = vld [vmem:[%s1078_s1 + $0x28] sm:$0xff] (!%p225_p2)  }
   0x7   : > { %814 = vmatpush3.bf16.msra.mxu0 (!%p225_p2), %v861_v0  ;;  %845 = vmatpush3.bf16.msra.mxu1 (!%p225_p2), %v861_v0  ;;  %v867_v8 = vld [vmem:[%s1078_s1 + $0x30] sm:$0xff] (!%p225_p2)   ;;  %v868_v9 = vld [vmem:[%s1078_s1 + $0x38] sm:$0xff] (!%p225_p2)   ;;  %v726_v16 = vld [vmem:[%s1079_s2] ss:$0 sm:$0xff] (!%p225_p2)  ;;  %v988_v17 = vand.u32 (!%p225_p2), 127, %v472_v12 }
   0x8   : > { %815 = vmatprep.subr.bf16.mxu0 (!%p225_p2), %v862_v1  ;;  %838 = vmatprep.subr.bf16.mxu1 (!%p225_p2), %v862_v1 }
   0x9   : > { %vm474_vm0 = vcmp.lt.s32.totalorder (!%p225_p2), %v988_v17, 32 }
   0xb   : > { %816 = vmatpush3.bf16.msra.mxu0 (!%p225_p2), %v862_v1  ;;  %846 = vmatpush3.bf16.msra.mxu1 (!%p225_p2), %v862_v1 }
   0xc   : > { %817 = vmatprep.subr.bf16.mxu0 (!%p225_p2), %v863_v2  ;;  %839 = vmatprep.subr.bf16.mxu1 (!%p225_p2), %v863_v2 }
   0xd   : > { %s1085_s25 = smov (!%p260_p3, %s720_s25), 15 }
   0xe   : > { %s949_s30 = sshll.u32 %s1085_s25, 2 }
   0xf   : > { %s955_s9 = scalar_lea.vmem %s1077_s0, %s949_s30  ;;  %818 = vmatpush3.bf16.msra.mxu0 %v863_v2  ;;  %847 = vmatpush3.bf16.msra.mxu1 %v863_v2  ;;  %s980_s23 = scalar_lea.vmem %s1080_s3, %s949_s30 }
  0x10   : > { %v869_v4 = vld [vmem:[%s955_s9] sm:$0xff]   ;;  %v871_v5 = vld [vmem:[%s955_s9 + $0x10] sm:$0xff]   ;;  %819 = vmatprep.subr.bf16.mxu0 %v864_v3  ;;  %840 = vmatprep.subr.bf16.mxu1 %v864_v3  ;;  %v870_v10 = vld [vmem:[%s955_s9 + $0x8] sm:$0xff]  }
  0x11   : > { %829 = vmatprep.mubr.bf16.mxu0 %v869_v4  ;;  %833 = vmatprep.mubr.bf16.mxu1 %v871_v5  ;;  %v872_v11 = vld [vmem:[%s955_s9 + $0x18] sm:$0xff]   ;;  %v795_v13 = vld [vmem:[%s980_s23 + $0x8] sm:$0xff]   ;;  %v760_v14 = vld [vmem:[%s980_s23] sm:$0xff]   ;;  %s275_s9 = scalar_lea.vmem %s1083_s6, %s949_s30 }
  0x12   : > { %v796_v15 = vld [vmem:[%s980_s23 + $0x10] sm:$0xff]   ;;  %v765_v18 = vunpack.c.l.bf16 %v795_v13  ;;  %v761_v21 = vunpack.c.l.bf16 %v760_v14  ;;  %v766_v26 = vunpack.c.h.bf16 %v795_v13  ;;  %v762_v43 = vunpack.c.h.bf16 %v760_v14  ;;  %v797_v44 = vld [vmem:[%s980_s23 + $0x18] sm:$0xff]  }
  0x13   : > { %820 = vmatpush3.bf16.msra.mxu0 %v864_v3  ;;  %848 = vmatpush3.bf16.msra.mxu1 %v864_v3  ;;  %v769_v22 = vunpack.c.l.bf16 %v796_v15  ;;  %v770_v40 = vunpack.c.h.bf16 %v796_v15  ;;  %v774_v49 = vunpack.c.h.bf16 %v797_v44  ;;  %v773_v52 = vunpack.c.l.bf16 %v797_v44 }
  0x14   : > { %821 = vmatprep.subr.bf16.mxu0 %v865_v6  ;;  %841 = vmatprep.subr.bf16.mxu1 %v865_v6 }
  0x17   : > { %822 = vmatpush3.bf16.msra.mxu0 %v865_v6  ;;  %849 = vmatpush3.bf16.msra.mxu1 %v865_v6 }
  0x18   : > { %823 = vmatprep.subr.bf16.mxu0 %v866_v7  ;;  %842 = vmatprep.subr.bf16.mxu1 %v866_v7 }
  0x1b   : > { %824 = vmatpush3.bf16.msra.mxu0 %v866_v7  ;;  %850 = vmatpush3.bf16.msra.mxu1 %v866_v7 }
  0x1c   : > { %825 = vmatprep.subr.bf16.mxu0 %v867_v8  ;;  %843 = vmatprep.subr.bf16.mxu1 %v867_v8 }
  0x1f   : > { %826 = vmatpush3.bf16.msra.mxu0 %v867_v8  ;;  %851 = vmatpush3.bf16.msra.mxu1 %v867_v8 }
  0x20   : > { %827 = vmatprep.subr.bf16.mxu0 %v868_v9  ;;  %844 = vmatprep.subr.bf16.mxu1 %v868_v9 }
  0x23   : > { %828 = vmatpush3.bf16.msra.mxu0 %v868_v9  ;;  %852 = vmatpush3.bf16.msra.mxu1 %v868_v9 }
  0x26   : > { %830 = vmatmul.mubr.bf16.vlgmr.msra.gmra.mrb[0].mxu0 %v870_v10  ;;  %834 = vmatmul.mubr.bf16.vlgmr.msra.gmra.mrb[0].mxu1 %v872_v11 }
  0xf9   : > { %v831_v19 = vpop.f32.mrb[0].mxu0  ;;  %v835_v20 = vpop.f32.mrb[0].mxu1 }
  0xfa   : > { %v424_v23 = vadd.f32 %v831_v19, %v726_v16  ;;  %v415_v24 = vpop.f32.mrb[1].mxu0  ;;  %v431_v25 = vpop.f32.mrb[1].mxu1  ;;  %v440_v50 = vadd.f32 %v835_v20, %v726_v16 }
  0xfb   : > { %v416_v27 = vadd.f32 %v726_v16, %v415_v24  ;;  %v832_v28 = vpop.f32.mrb[2].mxu0  ;;  %v432_v29 = vadd.f32 %v726_v16, %v431_v25  ;;  %v836_v30 = vpop.f32.mrb[2].mxu1 }
  0xfc   : > { %v427_v31 = vadd.f32 %v832_v28, %v726_v16  ;;  %v418_v32 = vpop.f32.mrb[3].mxu0  ;;  %v434_v33 = vpop.f32.mrb[3].mxu1  ;;  %v464_v34 = vadd.f32 %v765_v18, %v424_v23  ;;  %v443_v46 = vadd.f32 %v836_v30, %v726_v16  ;;  %v468_v56 = vadd.f32 %v773_v52, %v440_v50 }
  0xfd   : > { %v462_v35 = vadd.f32 %v761_v21, %v416_v27  ;;  %v466_v36 = vadd.f32 %v769_v22, %v432_v29  ;;  %v435_v37 = vadd.f32 %v726_v16, %v434_v33  ;;  %v419_v41 = vadd.f32 %v726_v16, %v418_v32 }
  0xfe   : > { %v477_v38 = vsel %vm474_vm0, %v464_v34, 0.0  ;;  %v465_v39 = vadd.f32 %v766_v26, %v427_v31  ;;  %v469_v54 = vadd.f32 %v774_v49, %v443_v46  ;;  %v481_v58 = vsel %vm474_vm0, %v468_v56, 0.0 }
  0xff   : > { %487 = vadd.xlane.f32.xlu1 %v477_v38  ;;  %v475_v42 = vsel %vm474_vm0, %v462_v35, 0.0  ;;  %v479_v45 = vsel %vm474_vm0, %v466_v36, 0.0  ;;  %v467_v48 = vadd.f32 %v770_v40, %v435_v37  ;;  %v463_v51 = vadd.f32 %v762_v43, %v419_v41 }
 0x100   : > { %483 = vadd.xlane.f32.xlu0 %v475_v42  ;;  %v478_v47 = vsel %vm474_vm0, %v465_v39, 0.0  ;;  %v482_v57 = vsel %vm474_vm0, %v469_v54, 0.0 }
 0x101   : > { %v480_v53 = vsel %vm474_vm0, %v467_v48, 0.0  ;;  %v476_v55 = vsel %vm474_vm0, %v463_v51, 0.0 }
 0x103   : > { %489 = vadd.xlane.f32.xlu1 %v478_v47 }
 0x104   : > { %491 = vadd.xlane.f32.xlu0 %v479_v45 }
 0x107   : > { %493 = vadd.xlane.f32.xlu1 %v480_v53 }
 0x108   : > { %485 = vadd.xlane.f32.xlu0 %v476_v55 }
 0x10b   : > { %497 = vadd.xlane.f32.xlu1 %v482_v57 }
 0x10c   : > { %495 = vadd.xlane.f32.xlu0 %v481_v58  ;;  %v739_v58 = vld [vmem:[%s1081_s4] ss:$0 sm:$0xff] }
 0x18c   : > { %v488_v59 = vpop.xlane.xlu1 %487 }
 0x18d   : > { %v501_v60 = vmul.f32 0.03125, %v488_v59  ;;  %v484_v61 = vpop.xlane.xlu0 %483 }
 0x18e   : > { %v499_v62 = vmul.f32 0.03125, %v484_v61 }
 0x18f   : > { %v509_v63 = vsub.f32 %v464_v34, %v501_v60 }
 0x190   : > { %v507_v0 = vsub.f32 %v462_v35, %v499_v62  ;;  %v490_v1 = vpop.xlane.xlu1 %489 }
 0x191   : > { %v502_v2 = vmul.f32 0.03125, %v490_v1  ;;  %v492_v3 = vpop.xlane.xlu0 %491  ;;  %v1010_v4 = vsel %vm474_vm0, %v509_v63, 0.0 }
 0x192   : > { %v503_v5 = vmul.f32 0.03125, %v492_v3  ;;  %v525_v6 = vmul.f32 %v1010_v4, %v1010_v4  ;;  %v1016_v8 = vsel %vm474_vm0, %v507_v0, 0.0 }
 0x193   : > { %v510_v7 = vsub.f32 %v465_v39, %v502_v2  ;;  %v523_v16 = vmul.f32 %v1016_v8, %v1016_v8  ;;  %v740_v2 = vld [vmem:[%s1082_s5] ss:$0 sm:$0xff] }
 0x194   : > { %v511_v9 = vsub.f32 %v466_v36, %v503_v5  ;;  %v494_v10 = vpop.xlane.xlu1 %493  ;;  %535 = vadd.xlane.f32.xlu0 %v525_v6 }
 0x195   : > { %v504_v11 = vmul.f32 0.03125, %v494_v10  ;;  %v486_v12 = vpop.xlane.xlu0 %485  ;;  %v1020_v13 = vsel %vm474_vm0, %v510_v7, 0.0 }
 0x196   : > { %v500_v14 = vmul.f32 0.03125, %v486_v12  ;;  %v526_v15 = vmul.f32 %v1020_v13, %v1020_v13  ;;  %v1028_v18 = vsel %vm474_vm0, %v511_v9, 0.0 }
 0x197   : > { %v512_v19 = vsub.f32 %v467_v48, %v504_v11  ;;  %v527_v25 = vmul.f32 %v1028_v18, %v1028_v18 }
 0x198   : > { %v508_v20 = vsub.f32 %v463_v51, %v500_v14  ;;  %537 = vadd.xlane.f32.xlu1 %v526_v15  ;;  %v498_v21 = vpop.xlane.xlu1 %497  ;;  %531 = vadd.xlane.f32.xlu0 %v523_v16 }
 0x199   : > { %v506_v22 = vmul.f32 0.03125, %v498_v21  ;;  %v496_v23 = vpop.xlane.xlu0 %495  ;;  %v1040_v30 = vsel %vm474_vm0, %v512_v19, 0.0 }
 0x19a   : > { %v505_v24 = vmul.f32 0.03125, %v496_v23  ;;  %v1034_v26 = vsel %vm474_vm0, %v508_v20, 0.0  ;;  %v528_v32 = vmul.f32 %v1040_v30, %v1040_v30 }
 0x19b   : > { %v524_v27 = vmul.f32 %v1034_v26, %v1034_v26  ;;  %v514_v28 = vsub.f32 %v469_v54, %v506_v22 }
 0x19c   : > { %v513_v29 = vsub.f32 %v468_v56, %v505_v24  ;;  %539 = vadd.xlane.f32.xlu0 %v527_v25 }
 0x19d   : > { %533 = vadd.xlane.f32.xlu1 %v524_v27  ;;  %v1052_v34 = vsel %vm474_vm0, %v514_v28, 0.0 }
 0x19e   : > { %v1044_v31 = vsel %vm474_vm0, %v513_v29, 0.0  ;;  %v530_v35 = vmul.f32 %v1052_v34, %v1052_v34 }
 0x19f   : > { %v529_v33 = vmul.f32 %v1044_v31, %v1044_v31 }
 0x1a1   : > { %541 = vadd.xlane.f32.xlu1 %v528_v32  ;;  %543 = vadd.xlane.f32.xlu0 %v529_v33 }
 0x1a5   : > { %545 = vadd.xlane.f32.xlu1 %v530_v35 }
 0x221   : > { %v536_v36 = vpop.xlane.xlu0 %535 }
 0x222   : > { %v549_v37 = vmul.f32 0.03125, %v536_v36 }
 0x224   : > { %v557_v38 = vadd.f32 1e-05, %v549_v37 }
 0x225   : > { %v538_v39 = vpop.xlane.xlu1 %537  ;;  %v532_v40 = vpop.xlane.xlu0 %531 }
 0x226   : > { %873 = vrsqrt.f32 %v557_v38  ;;  %v550_v41 = vmul.f32 0.03125, %v538_v39  ;;  %v547_v42 = vmul.f32 0.03125, %v532_v40 }
 0x228   : > { %v558_v43 = vadd.f32 1e-05, %v550_v41  ;;  %v555_v44 = vadd.f32 1e-05, %v547_v42 }
 0x229   : > { %v540_v45 = vpop.xlane.xlu0 %539 }
 0x22a   : > { %875 = vrsqrt.f32 %v558_v43  ;;  %v551_v17 = vmul.f32 0.03125, %v540_v45  ;;  %v534_v46 = vpop.xlane.xlu1 %533 }
 0x22b   : > { %877 = vrsqrt.f32 %v555_v44  ;;  %v548_v47 = vmul.f32 0.03125, %v534_v46 }
 0x22c   : > { %v559_v48 = vadd.f32 1e-05, %v551_v17 }
 0x22d   : > { %v556_v49 = vadd.f32 1e-05, %v548_v47 }
 0x22e   : > { %879 = vrsqrt.f32 %v559_v48  ;;  %v542_v50 = vpop.xlane.xlu1 %541  ;;  %v544_v51 = vpop.xlane.xlu0 %543 }
 0x22f   : > { %881 = vrsqrt.f32 %v556_v49  ;;  %v552_v52 = vmul.f32 0.03125, %v542_v50  ;;  %v553_v53 = vmul.f32 0.03125, %v544_v51 }
 0x230   : > { %v874_v54 = vpop.eup %873 }
 0x231   : > { %v573_v55 = vmul.f32 %v874_v54, %v1010_v4  ;;  %v560_v56 = vadd.f32 1e-05, %v552_v52  ;;  %v561_v57 = vadd.f32 1e-05, %v553_v53 }
 0x232   : > { %v546_v59 = vpop.xlane.xlu1 %545 }
 0x233   : > { %883 = vrsqrt.f32 %v560_v56  ;;  %v554_v60 = vmul.f32 0.03125, %v546_v59  ;;  %v587_v63 = vmul.f32 %v739_v58, %v573_v55 }
 0x234   : > { %v876_v61 = vpop.eup %875  ;;  %885 = vrsqrt.f32 %v561_v57 }
 0x235   : > { %v878_v62 = vpop.eup %877  ;;  %v574_v0 = vmul.f32 %v876_v61, %v1020_v13  ;;  %v562_v1 = vadd.f32 1e-05, %v554_v60  ;;  %v601_v7 = vadd.f32 %v740_v2, %v587_v63 }
 0x236   : > { %v571_v3 = vmul.f32 %v878_v62, %v1016_v8 }
 0x237   : > { %v588_v4 = vmul.f32 %v739_v58, %v574_v0  ;;  %887 = vrsqrt.f32 %v562_v1 }
 0x238   : > { %v880_v5 = vpop.eup %879  ;;  %v585_v10 = vmul.f32 %v739_v58, %v571_v3 }
 0x239   : > { %v882_v6 = vpop.eup %881  ;;  %v602_v9 = vadd.f32 %v740_v2, %v588_v4  ;;  %v575_v11 = vmul.f32 %v880_v5, %v1028_v18 }
 0x23a   : > { %v572_v12 = vmul.f32 %v882_v6, %v1034_v26  ;;  %v599_v16 = vadd.f32 %v740_v2, %v585_v10 }
 0x23b   : > { %v783_v13 = vpack.c.bf16 %v602_v9, %v601_v7  ;;  %v589_v19 = vmul.f32 %v739_v58, %v575_v11 }
 0x23c   : > { %v586_v14 = vmul.f32 %v739_v58, %v572_v12 }
 0x23d   : > { %v884_v15 = vpop.eup %883  ;;  %798 = vst [vmem:[%s275_s9 + $0x8] sm:$0xff] %v783_v13   ;;  %v603_v27 = vadd.f32 %v740_v2, %v589_v19 }
 0x23e   : > { %v886_v8 = vpop.eup %885  ;;  %v600_v20 = vadd.f32 %v740_v2, %v586_v14  ;;  %v576_v21 = vmul.f32 %v884_v15, %v1040_v30 }
 0x23f   : > { %v577_v22 = vmul.f32 %v886_v8, %v1044_v31 }
 0x240   : > { %v778_v23 = vpack.c.bf16 %v600_v20, %v599_v16  ;;  %v590_v24 = vmul.f32 %v739_v58, %v576_v21 }
 0x241   : > { %v888_v25 = vpop.eup %887  ;;  %v591_v28 = vmul.f32 %v739_v58, %v577_v22 }
 0x242   : > { %779 = vst [vmem:[%s275_s9] sm:$0xff] %v778_v23   ;;  %v604_v18 = vadd.f32 %v740_v2, %v590_v24  ;;  %v578_v26 = vmul.f32 %v888_v25, %v1052_v34 }
 0x243   : > { %v605_v33 = vadd.f32 %v740_v2, %v591_v28 }
 0x244   : > { %v788_v29 = vpack.c.bf16 %v604_v18, %v603_v27  ;;  %v592_v32 = vmul.f32 %v739_v58, %v578_v26 }
 0x246   : > { %799 = vst [vmem:[%s275_s9 + $0x10] sm:$0xff] %v788_v29   ;;  %v606_v35 = vadd.f32 %v740_v2, %v592_v32 }
 0x248   : > { %v793_v36 = vpack.c.bf16 %v606_v35, %v605_v33 }
 0x24a   : > { %800 = vst [vmem:[%s275_s9 + $0x18] sm:$0xff] %v793_v36  }
 0x24b PF: > { %s16_s21 = sadd.s32 1, %s895_s21  }
 0x24c   : > { %p13_p4 = scmp.ge.s32.totalorder %s16_s21, 4  }
 0x24e   :  { %15 = sbr.rel (!%p13_p4) target bundleno = 1 (0x1), region = 77 }

// kernel: hybrid_encoder_forward.21
= control target key start
LH: loop header
LB: loop body
LE: loop exit
PB: predicated region body
PF: predicated region fallthrough
CT: control target
= control target key end

     0   :  { %s1537_s13 = smov 0   ;;  %s1675_s0 = inlined_call_operand.vmem [shape: bf16[128,128], index: 0, kind: input, shape index: {}]   ;;  %s1676_s1 = inlined_call_operand.vmem [shape: bf16[128,128], index: 1, kind: input, shape index: {}]   ;;  %s1677_s2 = inlined_call_operand.vmem [shape: bf16[128,128], index: 2, kind: input, shape index: {}]   ;;  %s1678_s3 = inlined_call_operand.vmem [shape: f32[1,128], index: 3, kind: input, shape index: {}]   ;;  %s1679_s4 = inlined_call_operand.vmem [shape: bf16[128,128], index: 4, kind: input, shape index: {}]   ;;  %s1680_s5 = inlined_call_operand.vmem [shape: f32[1,128], index: 5, kind: input, shape index: {}]   ;;  %s1681_s6 = inlined_call_operand.vmem [shape: bf16[128,128], index: 6, kind: input, shape index: {}]   ;;  %s1682_s7 = inlined_call_operand.vmem [shape: f32[1,128], index: 7, kind: input, shape index: {}]   ;;  %s1683_s8 = inlined_call_operand.vmem [shape: bf16[128,128], index: 8, kind: output, shape index: {0}]   ;;  %s1684_s9 = inlined_call_operand.vmem [shape: bf16[128,128], index: 9, kind: output, shape index: {1}]   ;;  %s1685_s10 = inlined_call_operand.vmem [shape: bf16[128,128], index: 10, kind: output, shape index: {2}]  }
   0x1 LB: > { %s1141_s14 = sadd.s32 4294967295, %s1480_s13   ;;  %p1145_p0 = scmp.ge.s32.totalorder %s1480_s13, 1  ;;  %s1480_s13 = sphi %s1537_s13, %s21_s13  }
   0x2   : > { %p329_p1 = scmp.lt.s32.totalorder %s1480_s13, 3 }
   0x4   : > { %p330_p2 = pnand %p1145_p0, %p329_p1 }
   0x5   : > { %v1442_v0 = vld [vmem:[%s1677_s2] sm:$0xff] (!%p330_p2)   ;;  %s1146_s17 = sshll.u32 (!%p330_p2), %s1141_s14, 3  ;;  %v1444_v2 = vld [vmem:[%s1677_s2 + $0x8] sm:$0xff] (!%p330_p2)   ;;  %v1446_v4 = vld [vmem:[%s1677_s2 + $0x10] sm:$0xff] (!%p330_p2)  }
   0x6   : > { %333 = sbr.rel (%p330_p2) target bundleno = 291 (0x123), region = 52  ;;  %v1443_v1 = vld [vmem:[%s1679_s4] sm:$0xff] (!%p330_p2)   ;;  %1346 = vmatprep.subr.bf16.mxu0 (!%p330_p2), %v1442_v0  ;;  %p383_p3 = scmp.lt.s32.totalorder (!%p330_p2), %s1146_s17, 15  ;;  %v1445_v3 = vld [vmem:[%s1679_s4 + $0x8] sm:$0xff] (!%p330_p2)   ;;  %v1447_v5 = vld [vmem:[%s1679_s4 + $0x10] sm:$0xff] (!%p330_p2)  }
   0x7   : > { %1370 = vmatprep.subr.bf16.mxu1 (!%p330_p2), %v1443_v1  ;;  %1347 = vmatpush3.bf16.msra.mxu0 (!%p330_p2), %v1442_v0  ;;  %v1448_v6 = vld [vmem:[%s1677_s2 + $0x18] sm:$0xff] (!%p330_p2)   ;;  %v1450_v8 = vld [vmem:[%s1677_s2 + $0x20] sm:$0xff] (!%p330_p2)   ;;  %v1452_v10 = vld [vmem:[%s1677_s2 + $0x28] sm:$0xff] (!%p330_p2)  }
   0x8   : > { %1371 = vmatpush3.bf16.msra.mxu1 (!%p330_p2), %v1443_v1  ;;  %1348 = vmatprep.subr.bf16.mxu0 (!%p330_p2), %v1444_v2  ;;  %v1449_v7 = vld [vmem:[%s1679_s4 + $0x18] sm:$0xff] (!%p330_p2)   ;;  %v1451_v9 = vld [vmem:[%s1679_s4 + $0x20] sm:$0xff] (!%p330_p2)   ;;  %v1453_v11 = vld [vmem:[%s1679_s4 + $0x28] sm:$0xff] (!%p330_p2)  }
   0x9   : > { %1372 = vmatprep.subr.bf16.mxu1 (!%p330_p2), %v1445_v3  ;;  %v1454_v14 = vld [vmem:[%s1677_s2 + $0x30] sm:$0xff] (!%p330_p2)   ;;  %v1456_v16 = vld [vmem:[%s1677_s2 + $0x38] sm:$0xff] (!%p330_p2)   ;;  %v1462_v18 = vld [vmem:[%s1681_s6] sm:$0xff] (!%p330_p2)  }
   0xa   : > { %v1455_v15 = vld [vmem:[%s1679_s4 + $0x30] sm:$0xff] (!%p330_p2)   ;;  %v1457_v17 = vld [vmem:[%s1679_s4 + $0x38] sm:$0xff] (!%p330_p2)   ;;  %v1463_v21 = vld [vmem:[%s1681_s6 + $0x8] sm:$0xff] (!%p330_p2)  }
   0xb   : > { %1349 = vmatpush3.bf16.msra.mxu0 (!%p330_p2), %v1444_v2  ;;  %v1464_v24 = vld [vmem:[%s1681_s6 + $0x10] sm:$0xff] (!%p330_p2)   ;;  %v1465_v27 = vld [vmem:[%s1681_s6 + $0x18] sm:$0xff] (!%p330_p2)   ;;  %v1466_v28 = vld [vmem:[%s1681_s6 + $0x20] sm:$0xff] (!%p330_p2)  }
   0xc   : > { %1373 = vmatpush3.bf16.msra.mxu1 (!%p330_p2), %v1445_v3  ;;  %1350 = vmatprep.subr.bf16.mxu0 (!%p330_p2), %v1446_v4  ;;  %v1469_v29 = vld [vmem:[%s1681_s6 + $0x28] sm:$0xff] (!%p330_p2)   ;;  %v1472_v30 = vld [vmem:[%s1681_s6 + $0x30] sm:$0xff] (!%p330_p2)   ;;  %v1473_v31 = vld [vmem:[%s1681_s6 + $0x38] sm:$0xff] (!%p330_p2)  }
   0xd   : > { %s1687_s17 = smov (!%p383_p3, %s1146_s17), 15  ;;  %1374 = vmatprep.subr.bf16.mxu1 %v1447_v5  ;;  %v1156_v32 = vld [vmem:[%s1678_s3] ss:$0 sm:$0xff] }
   0xe   : > { %s1569_s12 = sshll.u32 %s1687_s17, 2  ;;  %v1169_v33 = vld [vmem:[%s1680_s5] ss:$0 sm:$0xff] }
   0xf   : > { %1351 = vmatpush3.bf16.msra.mxu0 %v1446_v4  ;;  %s1581_s21 = scalar_lea.vmem %s1675_s0, %s1569_s12  ;;  %s1590_s25 = scalar_lea.vmem %s1676_s1, %s1569_s12 }
  0x10   : > { %1375 = vmatpush3.bf16.msra.mxu1 %v1447_v5  ;;  %1352 = vmatprep.subr.bf16.mxu0 %v1448_v6  ;;  %v1458_v12 = vld [vmem:[%s1581_s21] sm:$0xff]   ;;  %v1460_v19 = vld [vmem:[%s1581_s21 + $0x8] sm:$0xff]   ;;  %v1467_v22 = vld [vmem:[%s1581_s21 + $0x10] sm:$0xff]   ;;  %s1649_s23 = scalar_lea.vmem %s1683_s8, %s1569_s12  ;;  %s1655_s27 = scalar_lea.vmem %s1684_s9, %s1569_s12 }
  0x11   : > { %1376 = vmatprep.subr.bf16.mxu1 %v1449_v7  ;;  %v1459_v13 = vld [vmem:[%s1590_s25] sm:$0xff]   ;;  %1362 = vmatprep.mubr.bf16.mxu0 %v1458_v12  ;;  %v1461_v20 = vld [vmem:[%s1590_s25 + $0x8] sm:$0xff]   ;;  %v1468_v23 = vld [vmem:[%s1590_s25 + $0x10] sm:$0xff]   ;;  %s410_s30 = scalar_lea.vmem %s1685_s10, %s1569_s12 }
  0x12   : > { %1386 = vmatprep.mubr.bf16.mxu1 %v1459_v13  ;;  %v1470_v25 = vld [vmem:[%s1581_s21 + $0x18] sm:$0xff]  }
  0x13   : > { %1353 = vmatpush3.bf16.msra.mxu0 %v1448_v6  ;;  %v1471_v26 = vld [vmem:[%s1590_s25 + $0x18] sm:$0xff]  }
  0x14   : > { %1377 = vmatpush3.bf16.msra.mxu1 %v1449_v7  ;;  %1354 = vmatprep.subr.bf16.mxu0 %v1450_v8 }
  0x15   : > { %1378 = vmatprep.subr.bf16.mxu1 %v1451_v9 }
  0x17   : > { %1355 = vmatpush3.bf16.msra.mxu0 %v1450_v8 }
  0x18   : > { %1379 = vmatpush3.bf16.msra.mxu1 %v1451_v9  ;;  %1356 = vmatprep.subr.bf16.mxu0 %v1452_v10 }
  0x19   : > { %1380 = vmatprep.subr.bf16.mxu1 %v1453_v11 }
  0x1b   : > { %1357 = vmatpush3.bf16.msra.mxu0 %v1452_v10 }
  0x1c   : > { %1381 = vmatpush3.bf16.msra.mxu1 %v1453_v11  ;;  %1358 = vmatprep.subr.bf16.mxu0 %v1454_v14  ;;  %v1182_v11 = vld [vmem:[%s1682_s7] ss:$0 sm:$0xff] }
  0x1d   : > { %1382 = vmatprep.subr.bf16.mxu1 %v1455_v15 }
  0x1f   : > { %1359 = vmatpush3.bf16.msra.mxu0 %v1454_v14 }
  0x20   : > { %1383 = vmatpush3.bf16.msra.mxu1 %v1455_v15  ;;  %1360 = vmatprep.subr.bf16.mxu0 %v1456_v16 }
  0x21   : > { %1384 = vmatprep.subr.bf16.mxu1 %v1457_v17 }
  0x23   : > { %1361 = vmatpush3.bf16.msra.mxu0 %v1456_v16 }
  0x24   : > { %1385 = vmatpush3.bf16.msra.mxu1 %v1457_v17  ;;  %1394 = vmatprep.subr.bf16.mxu0 %v1462_v18 }
  0x25   : > { %1418 = vmatprep.subr.bf16.mxu1 %v1462_v18 }
  0x26   : > { %1363 = vmatmul.mubr.bf16.vlgmr.msra.gmra.mrb[0].mxu0 %v1460_v19 }
  0x27   : > { %1387 = vmatmul.mubr.bf16.vlgmr.msra.gmra.mrb[0].mxu1 %v1461_v20  ;;  %1395 = vmatpush3.bf16.msra.mxu0 %v1462_v18 }
  0x28   : > { %1426 = vmatpush3.bf16.msra.mxu1 %v1462_v18  ;;  %1396 = vmatprep.subr.bf16.mxu0 %v1463_v21 }
  0x29   : > { %1419 = vmatprep.subr.bf16.mxu1 %v1463_v21  ;;  %1366 = vmatprep.mubr.bf16.mxu0 %v1467_v22 }
  0x2a   : > { %1390 = vmatprep.mubr.bf16.mxu1 %v1468_v23 }
  0x2b   : > { %1397 = vmatpush3.bf16.msra.mxu0 %v1463_v21 }
  0x2c   : > { %1427 = vmatpush3.bf16.msra.mxu1 %v1463_v21  ;;  %1398 = vmatprep.subr.bf16.mxu0 %v1464_v24 }
  0x2d   : > { %1420 = vmatprep.subr.bf16.mxu1 %v1464_v24 }
  0x2e   : > { %1367 = vmatmul.mubr.bf16.gmra.mrb[4].mxu0 %v1470_v25 }
  0x2f   : > { %1399 = vmatpush3.bf16.msra.mxu0 %v1464_v24  ;;  %1391 = vmatmul.mubr.bf16.gmra.mrb[4].mxu1 %v1471_v26 }
  0x30   : > { %1428 = vmatpush3.bf16.msra.mxu1 %v1464_v24  ;;  %1400 = vmatprep.subr.bf16.mxu0 %v1465_v27 }
  0x31   : > { %1421 = vmatprep.subr.bf16.mxu1 %v1465_v27  ;;  %1410 = vmatprep.mubr.bf16.mxu0 %v1459_v13 }
  0x32   : > { %1414 = vmatprep.mubr.bf16.mxu1 %v1468_v23 }
  0x33   : > { %1401 = vmatpush3.bf16.msra.mxu0 %v1465_v27 }
  0x34   : > { %1429 = vmatpush3.bf16.msra.mxu1 %v1465_v27  ;;  %1402 = vmatprep.subr.bf16.mxu0 %v1466_v28 }
  0x35   : > { %1422 = vmatprep.subr.bf16.mxu1 %v1466_v28 }
  0x37   : > { %1403 = vmatpush3.bf16.msra.mxu0 %v1466_v28 }
  0x38   : > { %1430 = vmatpush3.bf16.msra.mxu1 %v1466_v28  ;;  %1404 = vmatprep.subr.bf16.mxu0 %v1469_v29 }
  0x39   : > { %1423 = vmatprep.subr.bf16.mxu1 %v1469_v29 }
  0x3b   : > { %1405 = vmatpush3.bf16.msra.mxu0 %v1469_v29 }
  0x3c   : > { %1431 = vmatpush3.bf16.msra.mxu1 %v1469_v29  ;;  %1406 = vmatprep.subr.bf16.mxu0 %v1472_v30 }
  0x3d   : > { %1424 = vmatprep.subr.bf16.mxu1 %v1472_v30 }
  0x3f   : > { %1407 = vmatpush3.bf16.msra.mxu0 %v1472_v30 }
  0x40   : > { %1432 = vmatpush3.bf16.msra.mxu1 %v1472_v30  ;;  %1408 = vmatprep.subr.bf16.mxu0 %v1473_v31 }
  0x41   : > { %1425 = vmatprep.subr.bf16.mxu1 %v1473_v31 }
  0x43   : > { %1409 = vmatpush3.bf16.msra.mxu0 %v1473_v31 }
  0x44   : > { %1433 = vmatpush3.bf16.msra.mxu1 %v1473_v31 }
  0x46   : > { %1411 = vmatmul.mubr.bf16.vlgmr.msra.gmra.mrb[8].mxu0 %v1461_v20 }
  0x47   : > { %1415 = vmatmul.mubr.bf16.vlgmr.msra.gmra.mrb[8].mxu1 %v1471_v26 }
  0xf9   : > { %v1364_v34 = vpop.f32.mrb[0].mxu0 }
  0xfa   : > { %v567_v35 = vadd.f32 %v1364_v34, %v1156_v32  ;;  %v1388_v36 = vpop.f32.mrb[0].mxu1  ;;  %v558_v37 = vpop.f32.mrb[1].mxu0 }
  0xfb   : > { %v727_v38 = vadd.f32 %v1388_v36, %v1169_v33  ;;  %v718_v39 = vpop.f32.mrb[1].mxu1  ;;  %v1365_v40 = vpop.f32.mrb[2].mxu0  ;;  %v559_v44 = vadd.f32 %v1156_v32, %v558_v37 }
  0xfc   : > { %v570_v41 = vadd.f32 %v1365_v40, %v1156_v32  ;;  %v1389_v42 = vpop.f32.mrb[2].mxu1  ;;  %v561_v43 = vpop.f32.mrb[3].mxu0  ;;  %v719_v48 = vadd.f32 %v1169_v33, %v718_v39 }
  0xfd   : > { %v730_v45 = vadd.f32 %v1389_v42, %v1169_v33  ;;  %v562_v46 = vadd.f32 %v1156_v32, %v561_v43  ;;  %v721_v47 = vpop.f32.mrb[3].mxu1 }
  0xfe   : > { %v1249_v49 = vpack.c.bf16 %v570_v41, %v567_v35  ;;  %v722_v50 = vadd.f32 %v1169_v33, %v721_v47 }
  0xff   : > { %v1269_v51 = vpack.c.bf16 %v730_v45, %v727_v38  ;;  %v1244_v52 = vpack.c.bf16 %v562_v46, %v559_v44 }
 0x100   : > { %1301 = vst [vmem:[%s1649_s23 + $0x8] sm:$0xff] %v1249_v49   ;;  %v1264_v53 = vpack.c.bf16 %v722_v50, %v719_v48 }
 0x101   : > { %1304 = vst [vmem:[%s1655_s27 + $0x8] sm:$0xff] %v1269_v51   ;;  %1245 = vst [vmem:[%s1649_s23] sm:$0xff] %v1244_v52   ;;  %v1368_v54 = vpop.f32.mrb[4].mxu0 }
 0x102   : > { %1265 = vst [vmem:[%s1655_s27] sm:$0xff] %v1264_v53   ;;  %v583_v55 = vadd.f32 %v1368_v54, %v1156_v32  ;;  %v1392_v56 = vpop.f32.mrb[4].mxu1  ;;  %v574_v57 = vpop.f32.mrb[5].mxu0 }
 0x103   : > { %v743_v58 = vadd.f32 %v1392_v56, %v1169_v33  ;;  %v575_v59 = vadd.f32 %v1156_v32, %v574_v57  ;;  %v734_v60 = vpop.f32.mrb[5].mxu1  ;;  %v1369_v61 = vpop.f32.mrb[6].mxu0 }
 0x104   : > { %v735_v62 = vadd.f32 %v1169_v33, %v734_v60  ;;  %v586_v63 = vadd.f32 %v1369_v61, %v1156_v32  ;;  %v1393_v0 = vpop.f32.mrb[6].mxu1  ;;  %v577_v1 = vpop.f32.mrb[7].mxu0 }
 0x105   : > { %v746_v2 = vadd.f32 %v1393_v0, %v1169_v33  ;;  %v578_v3 = vadd.f32 %v1156_v32, %v577_v1  ;;  %v737_v4 = vpop.f32.mrb[7].mxu1 }
 0x106   : > { %v1259_v5 = vpack.c.bf16 %v586_v63, %v583_v55  ;;  %v738_v6 = vadd.f32 %v1169_v33, %v737_v4 }
 0x107   : > { %v1279_v7 = vpack.c.bf16 %v746_v2, %v743_v58  ;;  %v1254_v8 = vpack.c.bf16 %v578_v3, %v575_v59 }
 0x108   : > { %1303 = vst [vmem:[%s1649_s23 + $0x18] sm:$0xff] %v1259_v5   ;;  %v1274_v9 = vpack.c.bf16 %v738_v6, %v735_v62 }
 0x109   : > { %1306 = vst [vmem:[%s1655_s27 + $0x18] sm:$0xff] %v1279_v7   ;;  %1302 = vst [vmem:[%s1649_s23 + $0x10] sm:$0xff] %v1254_v8  }
 0x10a   : > { %1305 = vst [vmem:[%s1655_s27 + $0x10] sm:$0xff] %v1274_v9  }
 0x119   : > { %v1412_v10 = vpop.f32.mrb[8].mxu0 }
 0x11a   : > { %v1416_v12 = vpop.f32.mrb[8].mxu1  ;;  %v854_v13 = vpop.f32.mrb[9].mxu0  ;;  %v863_v16 = vadd.f32 %v1412_v10, %v1182_v11 }
 0x11b   : > { %v870_v14 = vpop.f32.mrb[9].mxu1  ;;  %v1413_v15 = vpop.f32.mrb[10].mxu0  ;;  %v879_v20 = vadd.f32 %v1416_v12, %v1182_v11  ;;  %v855_v21 = vadd.f32 %v1182_v11, %v854_v13 }
 0x11c   : > { %v866_v17 = vadd.f32 %v1413_v15, %v1182_v11  ;;  %v1417_v18 = vpop.f32.mrb[10].mxu1  ;;  %v857_v19 = vpop.f32.mrb[11].mxu0  ;;  %v871_v25 = vadd.f32 %v1182_v11, %v870_v14 }
 0x11d   : > { %v882_v22 = vadd.f32 %v1417_v18, %v1182_v11  ;;  %v858_v23 = vadd.f32 %v1182_v11, %v857_v19  ;;  %v873_v24 = vpop.f32.mrb[11].mxu1 }
 0x11e   : > { %v1289_v26 = vpack.c.bf16 %v866_v17, %v863_v16  ;;  %v874_v27 = vadd.f32 %v1182_v11, %v873_v24 }
 0x11f   : > { %v1299_v28 = vpack.c.bf16 %v882_v22, %v879_v20  ;;  %v1284_v29 = vpack.c.bf16 %v858_v23, %v855_v21 }
 0x120   : > { %1307 = vst [vmem:[%s410_s30 + $0x8] sm:$0xff] %v1289_v26   ;;  %v1294_v30 = vpack.c.bf16 %v874_v27, %v871_v25 }
 0x121   : > { %1309 = vst [vmem:[%s410_s30 + $0x18] sm:$0xff] %v1299_v28   ;;  %1285 = vst [vmem:[%s410_s30] sm:$0xff] %v1284_v29  }
 0x122   : > { %1308 = vst [vmem:[%s410_s30 + $0x10] sm:$0xff] %v1294_v30  }
 0x123 PF: > { %s21_s13 = sadd.s32 1, %s1480_s13  }
 0x124   : > { %p18_p4 = scmp.ge.s32.totalorder %s21_s13, 4  }
 0x126   :  { %20 = sbr.rel (!%p18_p4) target bundleno = 1 (0x1), region = 109 }

// kernel: hybrid_encoder_forward.14
= control target key start
LH: loop header
LB: loop body
LE: loop exit
PB: predicated region body
PF: predicated region fallthrough
CT: control target
= control target key end

     0   :  { %s1331_s12 = smov 0   ;;  %s1489_s0 = inlined_call_operand.vmem [shape: bf16[512,256], index: 0, kind: input, shape index: {}]   ;;  %s1490_s1 = inlined_call_operand.vmem [shape: bf16[256,128], index: 1, kind: input, shape index: {}]   ;;  %s1491_s2 = inlined_call_operand.vmem [shape: f32[1,128], index: 2, kind: input, shape index: {}]   ;;  %s1492_s3 = inlined_call_operand.vmem [shape: bf16[512,128], index: 3, kind: output, shape index: {}]  }
   0x1 LB: > { %s882_s13 = sadd.s32 4294967295, %s1309_s12   ;;  %p886_p0 = scmp.ge.s32.totalorder %s1309_s12, 1  ;;  %s1309_s12 = sphi %s1331_s12, %s13_s12  }
   0x2   : > { %p139_p1 = scmp.lt.s32.totalorder %s1309_s12, 3 }
   0x4   : > { %p140_p2 = pnand %p886_p0, %p139_p1 }
   0x5   : > { %v1239_v0 = vld [vmem:[%s1490_s1 + $0x40] sm:$0xff] (!%p140_p2)   ;;  %s887_s16 = sshll.u32 (!%p140_p2), %s882_s13, 5  ;;  %v1241_v2 = vld [vmem:[%s1490_s1 + $0x48] sm:$0xff] (!%p140_p2)   ;;  %v1243_v4 = vld [vmem:[%s1490_s1 + $0x50] sm:$0xff] (!%p140_p2)  }
   0x6   : > { %143 = sbr.rel (%p140_p2) target bundleno = 316 (0x13c), region = 32  ;;  %v1240_v1 = vld [vmem:[%s1490_s1] sm:$0xff] (!%p140_p2)   ;;  %1103 = vmatprep.subr.bf16.mxu0 (!%p140_p2), %v1239_v0  ;;  %1215 = vmatprep.subr.bf16.mxu1 (!%p140_p2), %v1239_v0  ;;  %v1242_v3 = vld [vmem:[%s1490_s1 + $0x8] sm:$0xff] (!%p140_p2)   ;;  %p165_p3 = scmp.lt.s32.totalorder (!%p140_p2), %s887_s16, 63  ;;  %v1244_v5 = vld [vmem:[%s1490_s1 + $0x10] sm:$0xff] (!%p140_p2)  }
   0x7   : > { %1104 = vmatpush3.bf16.msra.mxu0 (!%p140_p2), %v1240_v1  ;;  %1223 = vmatpush3.bf16.msra.mxu1 (!%p140_p2), %v1240_v1  ;;  %v1245_v6 = vld [vmem:[%s1490_s1 + $0x58] sm:$0xff] (!%p140_p2)   ;;  %v1247_v8 = vld [vmem:[%s1490_s1 + $0x60] sm:$0xff] (!%p140_p2)   ;;  %v1249_v10 = vld [vmem:[%s1490_s1 + $0x68] sm:$0xff] (!%p140_p2)  }
   0x8   : > { %1105 = vmatprep.subr.bf16.mxu0 (!%p140_p2), %v1241_v2  ;;  %1216 = vmatprep.subr.bf16.mxu1 (!%p140_p2), %v1241_v2  ;;  %v1246_v7 = vld [vmem:[%s1490_s1 + $0x18] sm:$0xff] (!%p140_p2)   ;;  %v1248_v9 = vld [vmem:[%s1490_s1 + $0x20] sm:$0xff] (!%p140_p2)   ;;  %v1250_v13 = vld [vmem:[%s1490_s1 + $0x28] sm:$0xff] (!%p140_p2)  }
   0x9   : > { %v1251_v14 = vld [vmem:[%s1490_s1 + $0x70] sm:$0xff] (!%p140_p2)   ;;  %v1253_v16 = vld [vmem:[%s1490_s1 + $0x78] sm:$0xff] (!%p140_p2)   ;;  %v1430_v56 = vld [vmem:[%s1491_s2] ss:$0 sm:$0xff] (!%p140_p2) }
   0xa   : > { %v1252_v15 = vld [vmem:[%s1490_s1 + $0x30] sm:$0xff] (!%p140_p2)   ;;  %v1254_v17 = vld [vmem:[%s1490_s1 + $0x38] sm:$0xff] (!%p140_p2)  }
   0xb   : > { %1106 = vmatpush3.bf16.msra.mxu0 (!%p140_p2), %v1242_v3  ;;  %1224 = vmatpush3.bf16.msra.mxu1 (!%p140_p2), %v1242_v3 }
   0xc   : > { %1107 = vmatprep.subr.bf16.mxu0 (!%p140_p2), %v1243_v4  ;;  %1217 = vmatprep.subr.bf16.mxu1 (!%p140_p2), %v1243_v4 }
   0xd   : > { %s1494_s16 = smov (!%p165_p3, %s887_s16), 63 }
   0xe   : > { %s975_s4 = sshll.u32 %s1494_s16, 3  ;;  %s891_s28 = sshll.u32 %s1494_s16, 2 }
   0xf   : > { %1108 = vmatpush3.bf16.msra.mxu0 %v1244_v5  ;;  %1225 = vmatpush3.bf16.msra.mxu1 %v1244_v5  ;;  %s1372_s9 = scalar_lea.vmem %s1489_s0, %s975_s4  ;;  %s1440_s4 = scalar_lea.vmem %s1492_s3, %s891_s28 }
  0x10   : > { %1109 = vmatprep.subr.bf16.mxu0 %v1245_v6  ;;  %1218 = vmatprep.subr.bf16.mxu1 %v1245_v6  ;;  %v1257_v11 = vld [vmem:[%s1372_s9 + $0x4] ss:$8 sps:$4 sm:$0xff]   ;;  %v1255_v18 = vld [vmem:[%s1372_s9] ss:$8 sps:$4 sm:$0xff]   ;;  %v1261_v20 = vld [vmem:[%s1372_s9 + $0x14] ss:$8 sps:$4 sm:$0xff]  }
  0x11   : > { %v1260_v12 = vld [vmem:[%s1372_s9 + $0x84] ss:$8 sps:$4 sm:$0xff]   ;;  %537 = vmatprep.mubr.bf16.mxu0 %v1257_v11  ;;  %v1258_v19 = vld [vmem:[%s1372_s9 + $0x80] ss:$8 sps:$4 sm:$0xff]   ;;  %v1263_v21 = vld [vmem:[%s1372_s9 + $0x94] ss:$8 sps:$4 sm:$0xff]  }
  0x12   : > { %601 = vmatprep.mubr.bf16.mxu1 %v1260_v12  ;;  %v1265_v22 = vld [vmem:[%s1372_s9 + $0x10] ss:$8 sps:$4 sm:$0xff]   ;;  %v1267_v24 = vld [vmem:[%s1372_s9 + $0x24] ss:$8 sps:$4 sm:$0xff]   ;;  %v1271_v26 = vld [vmem:[%s1372_s9 + $0x20] ss:$8 sps:$4 sm:$0xff]  }
  0x13   : > { %1110 = vmatpush3.bf16.msra.mxu0 %v1246_v7  ;;  %1226 = vmatpush3.bf16.msra.mxu1 %v1246_v7  ;;  %v1266_v23 = vld [vmem:[%s1372_s9 + $0x90] ss:$8 sps:$4 sm:$0xff]   ;;  %v1269_v25 = vld [vmem:[%s1372_s9 + $0xa4] ss:$8 sps:$4 sm:$0xff]   ;;  %v1272_v27 = vld [vmem:[%s1372_s9 + $0xa0] ss:$8 sps:$4 sm:$0xff]  }
  0x14   : > { %1111 = vmatprep.subr.bf16.mxu0 %v1247_v8  ;;  %1219 = vmatprep.subr.bf16.mxu1 %v1247_v8  ;;  %v1273_v28 = vld [vmem:[%s1372_s9 + $0x34] ss:$8 sps:$4 sm:$0xff]   ;;  %v1277_v30 = vld [vmem:[%s1372_s9 + $0x30] ss:$8 sps:$4 sm:$0xff]   ;;  %v1279_v32 = vld [vmem:[%s1372_s9 + $0x44] ss:$8 sps:$4 sm:$0xff]  }
  0x15   : > { %v1275_v29 = vld [vmem:[%s1372_s9 + $0xb4] ss:$8 sps:$4 sm:$0xff]   ;;  %v1278_v31 = vld [vmem:[%s1372_s9 + $0xb0] ss:$8 sps:$4 sm:$0xff]   ;;  %v1281_v33 = vld [vmem:[%s1372_s9 + $0xc4] ss:$8 sps:$4 sm:$0xff]  }
  0x16   : > { %v1283_v34 = vld [vmem:[%s1372_s9 + $0x40] ss:$8 sps:$4 sm:$0xff]   ;;  %v1285_v36 = vld [vmem:[%s1372_s9 + $0x54] ss:$8 sps:$4 sm:$0xff]   ;;  %v1289_v38 = vld [vmem:[%s1372_s9 + $0x50] ss:$8 sps:$4 sm:$0xff]  }
  0x17   : > { %1112 = vmatpush3.bf16.msra.mxu0 %v1248_v9  ;;  %1227 = vmatpush3.bf16.msra.mxu1 %v1248_v9  ;;  %v1284_v35 = vld [vmem:[%s1372_s9 + $0xc0] ss:$8 sps:$4 sm:$0xff]   ;;  %v1287_v37 = vld [vmem:[%s1372_s9 + $0xd4] ss:$8 sps:$4 sm:$0xff]   ;;  %v1290_v39 = vld [vmem:[%s1372_s9 + $0xd0] ss:$8 sps:$4 sm:$0xff]  }
  0x18   : > { %1113 = vmatprep.subr.bf16.mxu0 %v1249_v10  ;;  %1220 = vmatprep.subr.bf16.mxu1 %v1249_v10  ;;  %v1291_v40 = vld [vmem:[%s1372_s9 + $0x64] ss:$8 sps:$4 sm:$0xff]   ;;  %v1295_v42 = vld [vmem:[%s1372_s9 + $0x60] ss:$8 sps:$4 sm:$0xff]   ;;  %v1297_v44 = vld [vmem:[%s1372_s9 + $0x74] ss:$8 sps:$4 sm:$0xff]  }
  0x19   : > { %v1293_v41 = vld [vmem:[%s1372_s9 + $0xe4] ss:$8 sps:$4 sm:$0xff]   ;;  %v1296_v43 = vld [vmem:[%s1372_s9 + $0xe0] ss:$8 sps:$4 sm:$0xff]   ;;  %v1299_v45 = vld [vmem:[%s1372_s9 + $0xf4] ss:$8 sps:$4 sm:$0xff]  }
  0x1a   : > { %v1301_v46 = vld [vmem:[%s1372_s9 + $0x70] ss:$8 sps:$4 sm:$0xff]  }
  0x1b   : > { %1114 = vmatpush3.bf16.msra.mxu0 %v1250_v13  ;;  %1228 = vmatpush3.bf16.msra.mxu1 %v1250_v13  ;;  %v1302_v47 = vld [vmem:[%s1372_s9 + $0xf0] ss:$8 sps:$4 sm:$0xff]  }
  0x1c   : > { %1115 = vmatprep.subr.bf16.mxu0 %v1251_v14  ;;  %1221 = vmatprep.subr.bf16.mxu1 %v1251_v14 }
  0x1f   : > { %1116 = vmatpush3.bf16.msra.mxu0 %v1252_v15  ;;  %1229 = vmatpush3.bf16.msra.mxu1 %v1252_v15 }
  0x20   : > { %1117 = vmatprep.subr.bf16.mxu0 %v1253_v16  ;;  %1222 = vmatprep.subr.bf16.mxu1 %v1253_v16 }
  0x23   : > { %1118 = vmatpush3.bf16.msra.mxu0 %v1254_v17  ;;  %1230 = vmatpush3.bf16.msra.mxu1 %v1254_v17 }
  0x26   : > { %538 = vmatmul.mubr.bf16.vlgmr.msra.gmra.mrb[0].mxu0 %v1255_v18  ;;  %602 = vmatmul.mubr.bf16.vlgmr.msra.gmra.mrb[0].mxu1 %v1258_v19 }
  0x27   : > { %545 = vmatprep.mubr.bf16.mxu0 %v1261_v20  ;;  %609 = vmatprep.mubr.bf16.mxu1 %v1263_v21 }
  0x2e   : > { %546 = vmatmul.mubr.bf16.gmra.mrb[4].mxu0 %v1265_v22  ;;  %610 = vmatmul.mubr.bf16.gmra.mrb[4].mxu1 %v1266_v23 }
  0x2f   : > { %553 = vmatprep.mubr.bf16.mxu0 %v1267_v24  ;;  %617 = vmatprep.mubr.bf16.mxu1 %v1269_v25 }
  0x36   : > { %554 = vmatmul.mubr.bf16.gmra.mrb[8].mxu0 %v1271_v26  ;;  %618 = vmatmul.mubr.bf16.gmra.mrb[8].mxu1 %v1272_v27 }
  0x37   : > { %561 = vmatprep.mubr.bf16.mxu0 %v1273_v28  ;;  %625 = vmatprep.mubr.bf16.mxu1 %v1275_v29 }
  0x3e   : > { %562 = vmatmul.mubr.bf16.gmra.mrb[12].mxu0 %v1277_v30  ;;  %626 = vmatmul.mubr.bf16.gmra.mrb[12].mxu1 %v1278_v31 }
  0x3f   : > { %569 = vmatprep.mubr.bf16.mxu0 %v1279_v32  ;;  %633 = vmatprep.mubr.bf16.mxu1 %v1281_v33 }
  0x46   : > { %570 = vmatmul.mubr.bf16.gmra.mrb[16].mxu0 %v1283_v34  ;;  %634 = vmatmul.mubr.bf16.gmra.mrb[16].mxu1 %v1284_v35 }
  0x47   : > { %577 = vmatprep.mubr.bf16.mxu0 %v1285_v36  ;;  %641 = vmatprep.mubr.bf16.mxu1 %v1287_v37 }
  0x4e   : > { %578 = vmatmul.mubr.bf16.gmra.mrb[20].mxu0 %v1289_v38  ;;  %642 = vmatmul.mubr.bf16.gmra.mrb[20].mxu1 %v1290_v39 }
  0x4f   : > { %585 = vmatprep.mubr.bf16.mxu0 %v1291_v40  ;;  %649 = vmatprep.mubr.bf16.mxu1 %v1293_v41 }
  0x56   : > { %586 = vmatmul.mubr.bf16.gmra.mrb[24].mxu0 %v1295_v42  ;;  %650 = vmatmul.mubr.bf16.gmra.mrb[24].mxu1 %v1296_v43 }
  0x57   : > { %593 = vmatprep.mubr.bf16.mxu0 %v1297_v44  ;;  %657 = vmatprep.mubr.bf16.mxu1 %v1299_v45 }
  0x5e   : > { %594 = vmatmul.mubr.bf16.gmra.mrb[28].mxu0 %v1301_v46  ;;  %658 = vmatmul.mubr.bf16.gmra.mrb[28].mxu1 %v1302_v47 }
  0xf9   : > { %v1119_v48 = vpop.f32.mrb[0].mxu0  ;;  %v1167_v49 = vpop.f32.mrb[0].mxu1 }
  0xfa   : > { %v1120_v50 = vpop.f32.mrb[1].mxu0  ;;  %v1168_v51 = vpop.f32.mrb[1].mxu1 }
  0xfb   : > { %v1121_v52 = vadd.f32 %v1120_v50, %v1119_v48  ;;  %v1169_v53 = vadd.f32 %v1168_v51, %v1167_v49  ;;  %v1122_v54 = vpop.f32.mrb[2].mxu0  ;;  %v1170_v55 = vpop.f32.mrb[2].mxu1 }
  0xfc   : > { %v1123_v57 = vpop.f32.mrb[3].mxu0  ;;  %v1171_v58 = vpop.f32.mrb[3].mxu1 }
  0xfd   : > { %v1124_v59 = vadd.f32 %v1123_v57, %v1122_v54  ;;  %v1172_v60 = vadd.f32 %v1171_v58, %v1170_v55  ;;  %v540_v61 = vadd.f32 %v1121_v52, %v1430_v56  ;;  %v604_v62 = vadd.f32 %v1169_v53, %v1430_v56 }
  0xff   : > { %v543_v63 = vadd.f32 %v1124_v59, %v1430_v56  ;;  %v607_v0 = vadd.f32 %v1172_v60, %v1430_v56 }
 0x101   : > { %v1011_v1 = vpack.c.bf16 %v543_v63, %v540_v61  ;;  %v1051_v2 = vpack.c.bf16 %v607_v0, %v604_v62  ;;  %v1125_v3 = vpop.f32.mrb[4].mxu0  ;;  %v1173_v4 = vpop.f32.mrb[4].mxu1 }
 0x102   : > { %v1126_v5 = vpop.f32.mrb[5].mxu0  ;;  %v1174_v6 = vpop.f32.mrb[5].mxu1 }
 0x103   : > { %1012 = vst [vmem:[%s1440_s4] sm:$0xff] %v1011_v1   ;;  %1095 = vst [vmem:[%s1440_s4 + $0x40] sm:$0xff] %v1051_v2   ;;  %v1127_v7 = vadd.f32 %v1126_v5, %v1125_v3  ;;  %v1175_v8 = vadd.f32 %v1174_v6, %v1173_v4  ;;  %v1128_v9 = vpop.f32.mrb[6].mxu0  ;;  %v1176_v10 = vpop.f32.mrb[6].mxu1 }
 0x104   : > { %v1129_v11 = vpop.f32.mrb[7].mxu0  ;;  %v1177_v12 = vpop.f32.mrb[7].mxu1 }
 0x105   : > { %v1130_v13 = vadd.f32 %v1129_v11, %v1128_v9  ;;  %v1178_v14 = vadd.f32 %v1177_v12, %v1176_v10  ;;  %v548_v15 = vadd.f32 %v1127_v7, %v1430_v56  ;;  %v612_v16 = vadd.f32 %v1175_v8, %v1430_v56 }
 0x107   : > { %v551_v17 = vadd.f32 %v1130_v13, %v1430_v56  ;;  %v615_v18 = vadd.f32 %v1178_v14, %v1430_v56 }
 0x109   : > { %v1016_v19 = vpack.c.bf16 %v551_v17, %v548_v15  ;;  %v1056_v20 = vpack.c.bf16 %v615_v18, %v612_v16  ;;  %v1131_v21 = vpop.f32.mrb[8].mxu0  ;;  %v1179_v22 = vpop.f32.mrb[8].mxu1 }
 0x10a   : > { %v1132_v23 = vpop.f32.mrb[9].mxu0  ;;  %v1180_v24 = vpop.f32.mrb[9].mxu1 }
 0x10b   : > { %1088 = vst [vmem:[%s1440_s4 + $0x8] sm:$0xff] %v1016_v19   ;;  %1096 = vst [vmem:[%s1440_s4 + $0x48] sm:$0xff] %v1056_v20   ;;  %v1133_v25 = vadd.f32 %v1132_v23, %v1131_v21  ;;  %v1181_v26 = vadd.f32 %v1180_v24, %v1179_v22  ;;  %v1134_v27 = vpop.f32.mrb[10].mxu0  ;;  %v1182_v28 = vpop.f32.mrb[10].mxu1 }
 0x10c   : > { %v1135_v29 = vpop.f32.mrb[11].mxu0  ;;  %v1183_v30 = vpop.f32.mrb[11].mxu1 }
 0x10d   : > { %v1136_v31 = vadd.f32 %v1135_v29, %v1134_v27  ;;  %v1184_v32 = vadd.f32 %v1183_v30, %v1182_v28  ;;  %v556_v33 = vadd.f32 %v1133_v25, %v1430_v56  ;;  %v620_v34 = vadd.f32 %v1181_v26, %v1430_v56 }
 0x10f   : > { %v559_v35 = vadd.f32 %v1136_v31, %v1430_v56  ;;  %v623_v36 = vadd.f32 %v1184_v32, %v1430_v56 }
 0x111   : > { %v1021_v37 = vpack.c.bf16 %v559_v35, %v556_v33  ;;  %v1061_v38 = vpack.c.bf16 %v623_v36, %v620_v34  ;;  %v1137_v39 = vpop.f32.mrb[12].mxu0  ;;  %v1185_v40 = vpop.f32.mrb[12].mxu1 }
 0x112   : > { %v1138_v41 = vpop.f32.mrb[13].mxu0  ;;  %v1186_v42 = vpop.f32.mrb[13].mxu1 }
 0x113   : > { %1089 = vst [vmem:[%s1440_s4 + $0x10] sm:$0xff] %v1021_v37   ;;  %1097 = vst [vmem:[%s1440_s4 + $0x50] sm:$0xff] %v1061_v38   ;;  %v1139_v43 = vadd.f32 %v1138_v41, %v1137_v39  ;;  %v1187_v44 = vadd.f32 %v1186_v42, %v1185_v40  ;;  %v1140_v45 = vpop.f32.mrb[14].mxu0  ;;  %v1188_v46 = vpop.f32.mrb[14].mxu1 }
 0x114   : > { %v1141_v47 = vpop.f32.mrb[15].mxu0  ;;  %v1189_v48 = vpop.f32.mrb[15].mxu1 }
 0x115   : > { %v1142_v49 = vadd.f32 %v1141_v47, %v1140_v45  ;;  %v1190_v50 = vadd.f32 %v1189_v48, %v1188_v46  ;;  %v564_v51 = vadd.f32 %v1139_v43, %v1430_v56  ;;  %v628_v52 = vadd.f32 %v1187_v44, %v1430_v56 }
 0x117   : > { %v567_v53 = vadd.f32 %v1142_v49, %v1430_v56  ;;  %v631_v54 = vadd.f32 %v1190_v50, %v1430_v56 }
 0x119   : > { %v1026_v55 = vpack.c.bf16 %v567_v53, %v564_v51  ;;  %v1066_v57 = vpack.c.bf16 %v631_v54, %v628_v52  ;;  %v1143_v58 = vpop.f32.mrb[16].mxu0  ;;  %v1191_v59 = vpop.f32.mrb[16].mxu1 }
 0x11a   : > { %v1144_v60 = vpop.f32.mrb[17].mxu0  ;;  %v1192_v61 = vpop.f32.mrb[17].mxu1 }
 0x11b   : > { %1090 = vst [vmem:[%s1440_s4 + $0x18] sm:$0xff] %v1026_v55   ;;  %1098 = vst [vmem:[%s1440_s4 + $0x58] sm:$0xff] %v1066_v57   ;;  %v1145_v62 = vadd.f32 %v1144_v60, %v1143_v58  ;;  %v1193_v63 = vadd.f32 %v1192_v61, %v1191_v59  ;;  %v1146_v0 = vpop.f32.mrb[18].mxu0  ;;  %v1194_v1 = vpop.f32.mrb[18].mxu1 }
 0x11c   : > { %v1147_v2 = vpop.f32.mrb[19].mxu0  ;;  %v1195_v3 = vpop.f32.mrb[19].mxu1 }
 0x11d   : > { %v1148_v4 = vadd.f32 %v1147_v2, %v1146_v0  ;;  %v1196_v5 = vadd.f32 %v1195_v3, %v1194_v1  ;;  %v572_v6 = vadd.f32 %v1145_v62, %v1430_v56  ;;  %v636_v7 = vadd.f32 %v1193_v63, %v1430_v56 }
 0x11f   : > { %v575_v8 = vadd.f32 %v1148_v4, %v1430_v56  ;;  %v639_v9 = vadd.f32 %v1196_v5, %v1430_v56 }
 0x121   : > { %v1031_v10 = vpack.c.bf16 %v575_v8, %v572_v6  ;;  %v1071_v11 = vpack.c.bf16 %v639_v9, %v636_v7  ;;  %v1149_v12 = vpop.f32.mrb[20].mxu0  ;;  %v1197_v13 = vpop.f32.mrb[20].mxu1 }
 0x122   : > { %v1150_v14 = vpop.f32.mrb[21].mxu0  ;;  %v1198_v15 = vpop.f32.mrb[21].mxu1 }
 0x123   : > { %1091 = vst [vmem:[%s1440_s4 + $0x20] sm:$0xff] %v1031_v10   ;;  %1099 = vst [vmem:[%s1440_s4 + $0x60] sm:$0xff] %v1071_v11   ;;  %v1151_v16 = vadd.f32 %v1150_v14, %v1149_v12  ;;  %v1199_v17 = vadd.f32 %v1198_v15, %v1197_v13  ;;  %v1152_v18 = vpop.f32.mrb[22].mxu0  ;;  %v1200_v19 = vpop.f32.mrb[22].mxu1 }
 0x124   : > { %v1153_v20 = vpop.f32.mrb[23].mxu0  ;;  %v1201_v21 = vpop.f32.mrb[23].mxu1 }
 0x125   : > { %v1154_v22 = vadd.f32 %v1153_v20, %v1152_v18  ;;  %v1202_v23 = vadd.f32 %v1201_v21, %v1200_v19  ;;  %v580_v24 = vadd.f32 %v1151_v16, %v1430_v56  ;;  %v644_v25 = vadd.f32 %v1199_v17, %v1430_v56 }
 0x127   : > { %v583_v26 = vadd.f32 %v1154_v22, %v1430_v56  ;;  %v647_v27 = vadd.f32 %v1202_v23, %v1430_v56 }
 0x129   : > { %v1036_v28 = vpack.c.bf16 %v583_v26, %v580_v24  ;;  %v1076_v29 = vpack.c.bf16 %v647_v27, %v644_v25  ;;  %v1155_v30 = vpop.f32.mrb[24].mxu0  ;;  %v1203_v31 = vpop.f32.mrb[24].mxu1 }
 0x12a   : > { %v1156_v32 = vpop.f32.mrb[25].mxu0  ;;  %v1204_v33 = vpop.f32.mrb[25].mxu1 }
 0x12b   : > { %1092 = vst [vmem:[%s1440_s4 + $0x28] sm:$0xff] %v1036_v28   ;;  %1100 = vst [vmem:[%s1440_s4 + $0x68] sm:$0xff] %v1076_v29   ;;  %v1157_v34 = vadd.f32 %v1156_v32, %v1155_v30  ;;  %v1205_v35 = vadd.f32 %v1204_v33, %v1203_v31  ;;  %v1158_v36 = vpop.f32.mrb[26].mxu0  ;;  %v1206_v37 = vpop.f32.mrb[26].mxu1 }
 0x12c   : > { %v1159_v38 = vpop.f32.mrb[27].mxu0  ;;  %v1207_v39 = vpop.f32.mrb[27].mxu1 }
 0x12d   : > { %v1160_v40 = vadd.f32 %v1159_v38, %v1158_v36  ;;  %v1208_v41 = vadd.f32 %v1207_v39, %v1206_v37  ;;  %v588_v42 = vadd.f32 %v1157_v34, %v1430_v56  ;;  %v652_v43 = vadd.f32 %v1205_v35, %v1430_v56 }
 0x12f   : > { %v591_v44 = vadd.f32 %v1160_v40, %v1430_v56  ;;  %v655_v45 = vadd.f32 %v1208_v41, %v1430_v56 }
 0x131   : > { %v1041_v46 = vpack.c.bf16 %v591_v44, %v588_v42  ;;  %v1081_v47 = vpack.c.bf16 %v655_v45, %v652_v43  ;;  %v1161_v48 = vpop.f32.mrb[28].mxu0  ;;  %v1209_v49 = vpop.f32.mrb[28].mxu1 }
 0x132   : > { %v1162_v50 = vpop.f32.mrb[29].mxu0  ;;  %v1210_v51 = vpop.f32.mrb[29].mxu1 }
 0x133   : > { %1093 = vst [vmem:[%s1440_s4 + $0x30] sm:$0xff] %v1041_v46   ;;  %1101 = vst [vmem:[%s1440_s4 + $0x70] sm:$0xff] %v1081_v47   ;;  %v1163_v52 = vadd.f32 %v1162_v50, %v1161_v48  ;;  %v1211_v53 = vadd.f32 %v1210_v51, %v1209_v49  ;;  %v1164_v54 = vpop.f32.mrb[30].mxu0  ;;  %v1212_v55 = vpop.f32.mrb[30].mxu1 }
 0x134   : > { %v1165_v57 = vpop.f32.mrb[31].mxu0  ;;  %v1213_v58 = vpop.f32.mrb[31].mxu1 }
 0x135   : > { %v1166_v59 = vadd.f32 %v1165_v57, %v1164_v54  ;;  %v1214_v60 = vadd.f32 %v1213_v58, %v1212_v55  ;;  %v596_v61 = vadd.f32 %v1163_v52, %v1430_v56  ;;  %v660_v62 = vadd.f32 %v1211_v53, %v1430_v56 }
 0x137   : > { %v599_v63 = vadd.f32 %v1166_v59, %v1430_v56  ;;  %v663_v0 = vadd.f32 %v1214_v60, %v1430_v56 }
 0x139   : > { %v1046_v1 = vpack.c.bf16 %v599_v63, %v596_v61  ;;  %v1086_v2 = vpack.c.bf16 %v663_v0, %v660_v62 }
 0x13b   : > { %1094 = vst [vmem:[%s1440_s4 + $0x38] sm:$0xff] %v1046_v1   ;;  %1102 = vst [vmem:[%s1440_s4 + $0x78] sm:$0xff] %v1086_v2  }
 0x13c PF: > { %s13_s12 = sadd.s32 1, %s1309_s12  }
 0x13d   : > { %p10_p4 = scmp.ge.s32.totalorder %s13_s12, 4  }
 0x13f   :  { %12 = sbr.rel (!%p10_p4) target bundleno = 1 (0x1), region = 62 }

// kernel: hybrid_encoder_forward.25
= control target key start
LH: loop header
LB: loop body
LE: loop exit
PB: predicated region body
PF: predicated region fallthrough
CT: control target
= control target key end

     0   :  { %s2498_s12 = smov 0   ;;  %s2500_s13 = smov 0   ;;  %s2871_s0 = inlined_call_operand.vmem [shape: bf16[2,256,128], index: 0, kind: input, shape index: {}]   ;;  %s2872_s1 = inlined_call_operand.vmem [shape: bf16[2,256,128], index: 1, kind: input, shape index: {}]   ;;  %s2873_s2 = inlined_call_operand.vmem [shape: bf16[2,256,128], index: 2, kind: input, shape index: {}]   ;;  %s2874_s3 = inlined_call_operand.vmem [shape: bf16[2,256,128], index: 3, kind: output, shape index: {}]  }
   0x1   :  { %s2502_s14 = smov 0  }
   0x2 LB: > { %s25_s15 = sadd.s32 1, %s2472_s13  ;;  %p1808_p0 = scmp.ge.s32.totalorder %s2476_s14, 1  ;;  %s2476_s14 = sphi %s2502_s14, %s13_s14   ;;  %s2472_s13 = sphi %s2500_s13, %s2915_s13   ;;  %s2468_s12 = sphi %s2498_s12, %s2914_s12  }
   0x3   : > { %p27_p1 = scmp.ge.s32.totalorder %s25_s15, 2  ;;  %p178_p2 = scmp.lt.s32.totalorder %s2476_s14, 3 }
   0x5   : > { %s2917_s15 = smov (%p27_p1, %s25_s15), 0  ;;  %p179_p3 = pnand %p1808_p0, %p178_p2 }
   0x7   : > { %182 = sbr.rel (%p179_p3) target bundleno = 808 (0x328), region = 32 }
   0xe   : > { %p221_p4 = scmp.lt.s32.totalorder %s2468_s12, 1 }
  0x10   : > { %s2919_s12 = smov (!%p221_p4, %s2468_s12), 1 }
  0x11   : > { %s2516_s16 = sshll.u32 %s2919_s12, 7 }
  0x12   : > { %s2522_s19 = scalar_lea.vmem %s2872_s1, %s2516_s16  ;;  %s2533_s22 = scalar_lea.vmem %s2871_s0, %s2516_s16 }
  0x13   : > { %v2214_v0 = vld [vmem:[%s2522_s19 + $0x40] sm:$0xff]   ;;  %v2216_v2 = vld [vmem:[%s2522_s19 + $0x48] sm:$0xff]   ;;  %v2218_v4 = vld [vmem:[%s2522_s19 + $0x50] sm:$0xff]   ;;  %s2566_s25 = scalar_lea.vmem %s2873_s2, %s2516_s16  ;;  %s2844_s28 = scalar_lea.vmem %s2874_s3, %s2516_s16 }
  0x14   : > { %v2215_v1 = vld [vmem:[%s2522_s19] sm:$0xff]   ;;  %2030 = vmatprep.subr.bf16.mxu0 %v2214_v0  ;;  %v2217_v3 = vld [vmem:[%s2522_s19 + $0x8] sm:$0xff]   ;;  %v2219_v5 = vld [vmem:[%s2522_s19 + $0x10] sm:$0xff]  }
  0x15   : > { %2031 = vmatpush3.bf16.xpose.msra.mxu0 %v2215_v1  ;;  %v2220_v6 = vld [vmem:[%s2522_s19 + $0x58] sm:$0xff]   ;;  %v2230_v7 = vld [vmem:[%s2533_s22] sm:$0xff]   ;;  %v2224_v11 = vld [vmem:[%s2522_s19 + $0x68] sm:$0xff]  }
  0x16   : > { %2032 = vmatprep.subr.bf16.mxu0 %v2216_v2  ;;  %2046 = vmatprep.mubr.bf16.mxu0 %v2230_v7  ;;  %v2221_v8 = vld [vmem:[%s2522_s19 + $0x18] sm:$0xff]   ;;  %v2222_v9 = vld [vmem:[%s2522_s19 + $0x60] sm:$0xff]   ;;  %v2225_v12 = vld [vmem:[%s2522_s19 + $0x28] sm:$0xff]  }
  0x17   : > { %v2223_v10 = vld [vmem:[%s2522_s19 + $0x20] sm:$0xff]   ;;  %v2226_v13 = vld [vmem:[%s2522_s19 + $0x70] sm:$0xff]   ;;  %v2228_v15 = vld [vmem:[%s2522_s19 + $0x78] sm:$0xff]  }
  0x18   : > { %v2227_v14 = vld [vmem:[%s2522_s19 + $0x30] sm:$0xff]   ;;  %v2229_v16 = vld [vmem:[%s2522_s19 + $0x38] sm:$0xff]   ;;  %v2231_v17 = vld [vmem:[%s2533_s22 + $0x8] sm:$0xff]  }
  0x19   : > { %v2232_v18 = vld [vmem:[%s2533_s22 + $0x10] sm:$0xff]   ;;  %v2233_v19 = vld [vmem:[%s2533_s22 + $0x18] sm:$0xff]   ;;  %v2234_v20 = vld [vmem:[%s2533_s22 + $0x20] sm:$0xff]  }
  0x1a   : > { %v2235_v21 = vld [vmem:[%s2533_s22 + $0x28] sm:$0xff]   ;;  %v2236_v22 = vld [vmem:[%s2533_s22 + $0x30] sm:$0xff]   ;;  %v2237_v23 = vld [vmem:[%s2533_s22 + $0x38] sm:$0xff]  }
  0x1b   : > { %v2238_v24 = vld [vmem:[%s2533_s22 + $0x40] sm:$0xff]   ;;  %v2239_v25 = vld [vmem:[%s2533_s22 + $0x48] sm:$0xff]   ;;  %v2240_v26 = vld [vmem:[%s2533_s22 + $0x50] sm:$0xff]  }
  0x1c   : > { %v2241_v27 = vld [vmem:[%s2533_s22 + $0x58] sm:$0xff]   ;;  %v2242_v28 = vld [vmem:[%s2533_s22 + $0x60] sm:$0xff]   ;;  %v2243_v29 = vld [vmem:[%s2533_s22 + $0x68] sm:$0xff]  }
  0x1d   : > { %2033 = vmatpush3.bf16.xpose.msra.mxu0 %v2217_v3  ;;  %v2244_v30 = vld [vmem:[%s2533_s22 + $0x70] sm:$0xff]   ;;  %v2245_v31 = vld [vmem:[%s2533_s22 + $0x78] sm:$0xff]   ;;  %v2246_v35 = vld [vmem:[%s2566_s25 + $0x40] sm:$0xff]  }
  0x1e   : > { %2034 = vmatprep.subr.bf16.mxu0 %v2218_v4  ;;  %v2247_v38 = vld [vmem:[%s2566_s25] sm:$0xff]   ;;  %2078 = vmatprep.subr.bf16.mxu1 %v2246_v35  ;;  %v2248_v41 = vld [vmem:[%s2566_s25 + $0x48] sm:$0xff]   ;;  %v2250_v45 = vld [vmem:[%s2566_s25 + $0x50] sm:$0xff]  }
  0x1f   : > { %2079 = vmatpush3.bf16.msra.mxu1 %v2247_v38  ;;  %v2249_v44 = vld [vmem:[%s2566_s25 + $0x8] sm:$0xff]   ;;  %v2251_v48 = vld [vmem:[%s2566_s25 + $0x10] sm:$0xff]   ;;  %v2252_v3 = vld [vmem:[%s2566_s25 + $0x58] sm:$0xff]  }
  0x20   : > { %2080 = vmatprep.subr.bf16.mxu1 %v2248_v41 }
  0x23   : > { %2081 = vmatpush3.bf16.msra.mxu1 %v2249_v44 }
  0x24   : > { %2082 = vmatprep.subr.bf16.mxu1 %v2250_v45 }
  0x25   : > { %2035 = vmatpush3.bf16.xpose.msra.mxu0 %v2219_v5  ;;  %v2253_v5 = vld [vmem:[%s2566_s25 + $0x18] sm:$0xff]  }
  0x26   : > { %2036 = vmatprep.subr.bf16.mxu0 %v2220_v6 }
  0x27   : > { %2083 = vmatpush3.bf16.msra.mxu1 %v2251_v48 }
  0x28   : > { %2084 = vmatprep.subr.bf16.mxu1 %v2252_v3 }
  0x2b   : > { %2085 = vmatpush3.bf16.msra.mxu1 %v2253_v5 }
  0x2d   : > { %2037 = vmatpush3.bf16.xpose.msra.mxu0 %v2221_v8 }
  0x2e   : > { %2038 = vmatprep.subr.bf16.mxu0 %v2222_v9  ;;  %v2254_v9 = vld [vmem:[%s2566_s25 + $0x60] sm:$0xff]  }
  0x2f   : > { %2086 = vmatprep.subr.bf16.mxu1 %v2254_v9 }
  0x35   : > { %2039 = vmatpush3.bf16.xpose.msra.mxu0 %v2223_v10 }
  0x36   : > { %2040 = vmatprep.subr.bf16.mxu0 %v2224_v11 }
  0x3d   : > { %2041 = vmatpush3.bf16.xpose.msra.mxu0 %v2225_v12  ;;  %v2255_v12 = vld [vmem:[%s2566_s25 + $0x20] sm:$0xff]  }
  0x3e   : > { %2042 = vmatprep.subr.bf16.mxu0 %v2226_v13  ;;  %2087 = vmatpush3.bf16.msra.mxu1 %v2255_v12 }
  0x45   : > { %2043 = vmatpush3.bf16.xpose.msra.mxu0 %v2227_v14 }
  0x46   : > { %2044 = vmatprep.subr.bf16.mxu0 %v2228_v15 }
  0x4d   : > { %2045 = vmatpush3.bf16.xpose.msra.mxu0 %v2229_v16 }
  0x54   : > { %2047 = vmatmul.mubr.bf16.vlgmr.msra.gmra.mrb[0].mxu0 %v2230_v7 }
  0x55   : > { %2048 = vmatprep.mubr.bf16.mxu0 %v2231_v17 }
  0x5c   : > { %2049 = vmatmul.mubr.bf16.gmra.mrb[4].mxu0 %v2231_v17  ;;  %v2256_v17 = vld [vmem:[%s2566_s25 + $0x68] sm:$0xff]  }
  0x5d   : > { %2050 = vmatprep.mubr.bf16.mxu0 %v2232_v18  ;;  %2088 = vmatprep.subr.bf16.mxu1 %v2256_v17 }
  0x64   : > { %2051 = vmatmul.mubr.bf16.gmra.mrb[8].mxu0 %v2232_v18 }
  0x65   : > { %2052 = vmatprep.mubr.bf16.mxu0 %v2233_v19 }
  0x6c   : > { %2053 = vmatmul.mubr.bf16.gmra.mrb[12].mxu0 %v2233_v19  ;;  %v2257_v19 = vld [vmem:[%s2566_s25 + $0x28] sm:$0xff]  }
  0x6d   : > { %2054 = vmatprep.mubr.bf16.mxu0 %v2234_v20  ;;  %2089 = vmatpush3.bf16.msra.mxu1 %v2257_v19 }
  0x74   : > { %2055 = vmatmul.mubr.bf16.gmra.mrb[16].mxu0 %v2234_v20 }
  0x75   : > { %2056 = vmatprep.mubr.bf16.mxu0 %v2235_v21 }
  0x7c   : > { %2057 = vmatmul.mubr.bf16.gmra.mrb[20].mxu0 %v2235_v21 }
  0x7d   : > { %2058 = vmatprep.mubr.bf16.mxu0 %v2236_v22 }
  0x84   : > { %2059 = vmatmul.mubr.bf16.gmra.mrb[24].mxu0 %v2236_v22 }
  0x85   : > { %2060 = vmatprep.mubr.bf16.mxu0 %v2237_v23 }
  0x8c   : > { %2061 = vmatmul.mubr.bf16.gmra.mrb[28].mxu0 %v2237_v23  ;;  %v2258_v23 = vld [vmem:[%s2566_s25 + $0x70] sm:$0xff]  }
  0x8d   : > { %2062 = vmatprep.mubr.bf16.mxu0 %v2238_v24  ;;  %2090 = vmatprep.subr.bf16.mxu1 %v2258_v23 }
  0x94   : > { %2063 = vmatmul.mubr.bf16.gmra.mrb[32].mxu0 %v2238_v24 }
  0x95   : > { %2064 = vmatprep.mubr.bf16.mxu0 %v2239_v25 }
  0x9c   : > { %2065 = vmatmul.mubr.bf16.gmra.mrb[36].mxu0 %v2239_v25 }
  0x9d   : > { %2066 = vmatprep.mubr.bf16.mxu0 %v2240_v26 }
  0xa4   : > { %2067 = vmatmul.mubr.bf16.gmra.mrb[40].mxu0 %v2240_v26  ;;  %v2259_v26 = vld [vmem:[%s2566_s25 + $0x30] sm:$0xff]  }
  0xa5   : > { %2068 = vmatprep.mubr.bf16.mxu0 %v2241_v27  ;;  %2091 = vmatpush3.bf16.msra.mxu1 %v2259_v26 }
  0xac   : > { %2069 = vmatmul.mubr.bf16.gmra.mrb[44].mxu0 %v2241_v27 }
  0xad   : > { %2070 = vmatprep.mubr.bf16.mxu0 %v2242_v28 }
  0xb4   : > { %2071 = vmatmul.mubr.bf16.gmra.mrb[48].mxu0 %v2242_v28 }
  0xb5   : > { %2072 = vmatprep.mubr.bf16.mxu0 %v2243_v29 }
  0xbc   : > { %2073 = vmatmul.mubr.bf16.gmra.mrb[52].mxu0 %v2243_v29 }
  0xbd   : > { %2074 = vmatprep.mubr.bf16.mxu0 %v2244_v30 }
  0xc4   : > { %2075 = vmatmul.mubr.bf16.gmra.mrb[56].mxu0 %v2244_v30 }
  0xc5   : > { %2076 = vmatprep.mubr.bf16.mxu0 %v2245_v31 }
  0xcc   : > { %2077 = vmatmul.mubr.bf16.gmra.mrb[60].mxu0 %v2245_v31  ;;  %v2260_v31 = vld [vmem:[%s2566_s25 + $0x78] sm:$0xff]  }
  0xcd   : > { %2092 = vmatprep.subr.bf16.mxu1 %v2260_v31 }
 0x127   : > { %v541_v32 = vpop.f32.mrb[0].mxu0 }
 0x128   : > { %v2568_v33 = vmul.f32 0.35355338, %v541_v32  ;;  %v543_v34 = vpop.f32.mrb[1].mxu0 }
 0x129   : > { %v2571_v36 = vmul.f32 0.35355338, %v543_v34  ;;  %v545_v37 = vpop.f32.mrb[2].mxu0  ;;  %v2261_v34 = vld [vmem:[%s2566_s25 + $0x38] sm:$0xff]  }
 0x12a   : > { %v2574_v39 = vmul.f32 0.35355338, %v545_v37  ;;  %v547_v40 = vpop.f32.mrb[3].mxu0  ;;  %2093 = vmatpush3.bf16.msra.mxu1 %v2261_v34 }
 0x12b   : > { %v2577_v42 = vmul.f32 0.35355338, %v547_v40  ;;  %v764_v43 = vmax.f32 %v2568_v33, %v2571_v36 }
 0x12d   : > { %765 = vmax.xlane.f32.xlu0 %v764_v43  ;;  %v767_v47 = vmax.f32 %v2574_v39, %v2577_v42 }
 0x12f   : > { %v551_v46 = vpop.f32.mrb[4].mxu0 }
 0x130   : > { %v2586_v49 = vmul.f32 0.35355338, %v551_v46  ;;  %v553_v50 = vpop.f32.mrb[5].mxu0 }
 0x131   : > { %v2588_v51 = vmul.f32 0.35355338, %v553_v50  ;;  %768 = vmax.xlane.f32.xlu0 %v767_v47  ;;  %v555_v52 = vpop.f32.mrb[6].mxu0 }
 0x132   : > { %v2590_v53 = vmul.f32 0.35355338, %v555_v52  ;;  %v557_v54 = vpop.f32.mrb[7].mxu0 }
 0x133   : > { %v2592_v55 = vmul.f32 0.35355338, %v557_v54  ;;  %v770_v56 = vmax.f32 %v2586_v49, %v2588_v51 }
 0x135   : > { %771 = vmax.xlane.f32.xlu1 %v770_v56  ;;  %v773_v58 = vmax.f32 %v2590_v53, %v2592_v55 }
 0x137   : > { %v561_v57 = vpop.f32.mrb[8].mxu0 }
 0x138   : > { %v2598_v59 = vmul.f32 0.35355338, %v561_v57  ;;  %v563_v60 = vpop.f32.mrb[9].mxu0 }
 0x139   : > { %v2600_v61 = vmul.f32 0.35355338, %v563_v60  ;;  %774 = vmax.xlane.f32.xlu1 %v773_v58  ;;  %v565_v62 = vpop.f32.mrb[10].mxu0 }
 0x13a   : > { %v2602_v63 = vmul.f32 0.35355338, %v565_v62  ;;  %v567_v0 = vpop.f32.mrb[11].mxu0 }
 0x13b   : > { %v2604_v1 = vmul.f32 0.35355338, %v567_v0  ;;  %v776_v2 = vmax.f32 %v2598_v59, %v2600_v61 }
 0x13d   : > { %777 = vmax.xlane.f32.xlu0 %v776_v2  ;;  %v779_v4 = vmax.f32 %v2602_v63, %v2604_v1 }
 0x13f   : > { %780 = vmax.xlane.f32.xlu1 %v779_v4  ;;  %v571_v6 = vpop.f32.mrb[12].mxu0 }
 0x140   : > { %v2612_v7 = vmul.f32 0.35355338, %v571_v6  ;;  %v573_v8 = vpop.f32.mrb[13].mxu0 }
 0x141   : > { %v2615_v10 = vmul.f32 0.35355338, %v573_v8  ;;  %v575_v11 = vpop.f32.mrb[14].mxu0 }
 0x142   : > { %v2618_v13 = vmul.f32 0.35355338, %v575_v11  ;;  %v577_v14 = vpop.f32.mrb[15].mxu0 }
 0x143   : > { %v2620_v15 = vmul.f32 0.35355338, %v577_v14  ;;  %v782_v16 = vmax.f32 %v2612_v7, %v2615_v10 }
 0x145   : > { %783 = vmax.xlane.f32.xlu0 %v782_v16  ;;  %v785_v18 = vmax.f32 %v2618_v13, %v2620_v15 }
 0x147   : > { %786 = vmax.xlane.f32.xlu1 %v785_v18  ;;  %v581_v20 = vpop.f32.mrb[16].mxu0 }
 0x148   : > { %v2628_v21 = vmul.f32 0.35355338, %v581_v20  ;;  %v583_v22 = vpop.f32.mrb[17].mxu0 }
 0x149   : > { %v2631_v24 = vmul.f32 0.35355338, %v583_v22  ;;  %v585_v25 = vpop.f32.mrb[18].mxu0 }
 0x14a   : > { %v2634_v27 = vmul.f32 0.35355338, %v585_v25  ;;  %v587_v28 = vpop.f32.mrb[19].mxu0 }
 0x14b   : > { %v2636_v29 = vmul.f32 0.35355338, %v587_v28  ;;  %v788_v30 = vmax.f32 %v2628_v21, %v2631_v24 }
 0x14d   : > { %789 = vmax.xlane.f32.xlu0 %v788_v30  ;;  %v791_v32 = vmax.f32 %v2634_v27, %v2636_v29 }
 0x14f   : > { %792 = vmax.xlane.f32.xlu1 %v791_v32  ;;  %v591_v35 = vpop.f32.mrb[20].mxu0 }
 0x150   : > { %v2644_v37 = vmul.f32 0.35355338, %v591_v35  ;;  %v593_v38 = vpop.f32.mrb[21].mxu0 }
 0x151   : > { %v2646_v40 = vmul.f32 0.35355338, %v593_v38  ;;  %v595_v41 = vpop.f32.mrb[22].mxu0 }
 0x152   : > { %v2648_v43 = vmul.f32 0.35355338, %v595_v41  ;;  %v597_v44 = vpop.f32.mrb[23].mxu0 }
 0x153   : > { %v2650_v45 = vmul.f32 0.35355338, %v597_v44  ;;  %v794_v46 = vmax.f32 %v2644_v37, %v2646_v40 }
 0x155   : > { %795 = vmax.xlane.f32.xlu0 %v794_v46  ;;  %v797_v47 = vmax.f32 %v2648_v43, %v2650_v45 }
 0x157   : > { %798 = vmax.xlane.f32.xlu1 %v797_v47  ;;  %v601_v48 = vpop.f32.mrb[24].mxu0 }
 0x158   : > { %v2656_v50 = vmul.f32 0.35355338, %v601_v48  ;;  %v603_v52 = vpop.f32.mrb[25].mxu0 }
 0x159   : > { %v2658_v54 = vmul.f32 0.35355338, %v603_v52  ;;  %v605_v56 = vpop.f32.mrb[26].mxu0 }
 0x15a   : > { %v2660_v57 = vmul.f32 0.35355338, %v605_v56  ;;  %v607_v58 = vpop.f32.mrb[27].mxu0 }
 0x15b   : > { %v2662_v60 = vmul.f32 0.35355338, %v607_v58  ;;  %v800_v62 = vmax.f32 %v2656_v50, %v2658_v54 }
 0x15d   : > { %801 = vmax.xlane.f32.xlu0 %v800_v62  ;;  %v803_v0 = vmax.f32 %v2660_v57, %v2662_v60 }
 0x15f   : > { %804 = vmax.xlane.f32.xlu1 %v803_v0  ;;  %v611_v2 = vpop.f32.mrb[28].mxu0 }
 0x160   : > { %v2668_v3 = vmul.f32 0.35355338, %v611_v2  ;;  %v613_v4 = vpop.f32.mrb[29].mxu0 }
 0x161   : > { %v2670_v5 = vmul.f32 0.35355338, %v613_v4  ;;  %v615_v6 = vpop.f32.mrb[30].mxu0 }
 0x162   : > { %v2672_v8 = vmul.f32 0.35355338, %v615_v6  ;;  %v617_v9 = vpop.f32.mrb[31].mxu0 }
 0x163   : > { %v2674_v11 = vmul.f32 0.35355338, %v617_v9  ;;  %v806_v12 = vmax.f32 %v2668_v3, %v2670_v5 }
 0x165   : > { %807 = vmax.xlane.f32.xlu0 %v806_v12  ;;  %v809_v14 = vmax.f32 %v2672_v8, %v2674_v11 }
 0x167   : > { %810 = vmax.xlane.f32.xlu1 %v809_v14  ;;  %v621_v16 = vpop.f32.mrb[32].mxu0 }
 0x168   : > { %v2680_v17 = vmul.f32 0.35355338, %v621_v16  ;;  %v623_v18 = vpop.f32.mrb[33].mxu0 }
 0x169   : > { %v2682_v19 = vmul.f32 0.35355338, %v623_v18  ;;  %v625_v20 = vpop.f32.mrb[34].mxu0 }
 0x16a   : > { %v2684_v22 = vmul.f32 0.35355338, %v625_v20  ;;  %v627_v23 = vpop.f32.mrb[35].mxu0 }
 0x16b   : > { %v2686_v25 = vmul.f32 0.35355338, %v627_v23  ;;  %v812_v26 = vmax.f32 %v2680_v17, %v2682_v19 }
 0x16d   : > { %813 = vmax.xlane.f32.xlu0 %v812_v26  ;;  %v815_v28 = vmax.f32 %v2684_v22, %v2686_v25 }
 0x16f   : > { %816 = vmax.xlane.f32.xlu1 %v815_v28  ;;  %v631_v30 = vpop.f32.mrb[36].mxu0 }
 0x170   : > { %v2692_v31 = vmul.f32 0.35355338, %v631_v30  ;;  %v633_v32 = vpop.f32.mrb[37].mxu0 }
 0x171   : > { %v2694_v34 = vmul.f32 0.35355338, %v633_v32  ;;  %v635_v35 = vpop.f32.mrb[38].mxu0 }
 0x172   : > { %v2696_v38 = vmul.f32 0.35355338, %v635_v35  ;;  %v637_v41 = vpop.f32.mrb[39].mxu0 }
 0x173   : > { %v2698_v44 = vmul.f32 0.35355338, %v637_v41  ;;  %v818_v46 = vmax.f32 %v2692_v31, %v2694_v34 }
 0x175   : > { %819 = vmax.xlane.f32.xlu0 %v818_v46  ;;  %v821_v47 = vmax.f32 %v2696_v38, %v2698_v44 }
 0x177   : > { %822 = vmax.xlane.f32.xlu1 %v821_v47  ;;  %v641_v48 = vpop.f32.mrb[40].mxu0 }
 0x178   : > { %v2704_v52 = vmul.f32 0.35355338, %v641_v48  ;;  %v643_v56 = vpop.f32.mrb[41].mxu0 }
 0x179   : > { %v2706_v58 = vmul.f32 0.35355338, %v643_v56  ;;  %v645_v62 = vpop.f32.mrb[42].mxu0 }
 0x17a   : > { %v2708_v0 = vmul.f32 0.35355338, %v645_v62  ;;  %v647_v2 = vpop.f32.mrb[43].mxu0 }
 0x17b   : > { %v2710_v4 = vmul.f32 0.35355338, %v647_v2  ;;  %v824_v6 = vmax.f32 %v2704_v52, %v2706_v58 }
 0x17d   : > { %825 = vmax.xlane.f32.xlu0 %v824_v6  ;;  %v827_v9 = vmax.f32 %v2708_v0, %v2710_v4 }
 0x17f   : > { %828 = vmax.xlane.f32.xlu1 %v827_v9  ;;  %v651_v12 = vpop.f32.mrb[44].mxu0 }
 0x180   : > { %v2716_v14 = vmul.f32 0.35355338, %v651_v12  ;;  %v653_v16 = vpop.f32.mrb[45].mxu0 }
 0x181   : > { %v2718_v18 = vmul.f32 0.35355338, %v653_v16  ;;  %v655_v20 = vpop.f32.mrb[46].mxu0 }
 0x182   : > { %v2720_v23 = vmul.f32 0.35355338, %v655_v20  ;;  %v657_v26 = vpop.f32.mrb[47].mxu0 }
 0x183   : > { %v2722_v28 = vmul.f32 0.35355338, %v657_v26  ;;  %v830_v30 = vmax.f32 %v2716_v14, %v2718_v18 }
 0x185   : > { %831 = vmax.xlane.f32.xlu0 %v830_v30  ;;  %v833_v32 = vmax.f32 %v2720_v23, %v2722_v28 }
 0x187   : > { %834 = vmax.xlane.f32.xlu1 %v833_v32  ;;  %v661_v35 = vpop.f32.mrb[48].mxu0 }
 0x188   : > { %v2728_v41 = vmul.f32 0.35355338, %v661_v35  ;;  %v663_v46 = vpop.f32.mrb[49].mxu0 }
 0x189   : > { %v2730_v47 = vmul.f32 0.35355338, %v663_v46  ;;  %v665_v48 = vpop.f32.mrb[50].mxu0 }
 0x18a   : > { %v2732_v56 = vmul.f32 0.35355338, %v665_v48  ;;  %v667_v62 = vpop.f32.mrb[51].mxu0 }
 0x18b   : > { %v2734_v2 = vmul.f32 0.35355338, %v667_v62  ;;  %v836_v6 = vmax.f32 %v2728_v41, %v2730_v47 }
 0x18c   : > { %2888 = vst [vmem:[#allocation2_spill] sm:$0xff] %v2732_v56 }
 0x18d   : > { %2889 = vst [vmem:[#allocation3_spill] sm:$0xff] %v2734_v2  ;;  %837 = vmax.xlane.f32.xlu0 %v836_v6  ;;  %v839_v9 = vmax.f32 %v2732_v56, %v2734_v2 }
 0x18f   : > { %840 = vmax.xlane.f32.xlu1 %v839_v9  ;;  %v671_v12 = vpop.f32.mrb[52].mxu0 }
 0x190   : > { %v2740_v16 = vmul.f32 0.35355338, %v671_v12  ;;  %v673_v20 = vpop.f32.mrb[53].mxu0 }
 0x191   : > { %v2742_v26 = vmul.f32 0.35355338, %v673_v20  ;;  %v675_v30 = vpop.f32.mrb[54].mxu0 }
 0x192   : > { %2890 = vst [vmem:[#allocation4_spill] sm:$0xff] %v2740_v16  ;;  %v2744_v32 = vmul.f32 0.35355338, %v675_v30  ;;  %v677_v35 = vpop.f32.mrb[55].mxu0 }
 0x193   : > { %2891 = vst [vmem:[#allocation5_spill] sm:$0xff] %v2742_v26  ;;  %v2746_v46 = vmul.f32 0.35355338, %v677_v35  ;;  %v842_v48 = vmax.f32 %v2740_v16, %v2742_v26 }
 0x194   : > { %2892 = vst [vmem:[#allocation6_spill] sm:$0xff] %v2744_v32 }
 0x195   : > { %2893 = vst [vmem:[#allocation7_spill] sm:$0xff] %v2746_v46  ;;  %843 = vmax.xlane.f32.xlu0 %v842_v48  ;;  %v845_v62 = vmax.f32 %v2744_v32, %v2746_v46 }
 0x197   : > { %846 = vmax.xlane.f32.xlu1 %v845_v62  ;;  %v681_v6 = vpop.f32.mrb[56].mxu0 }
 0x198   : > { %v2752_v9 = vmul.f32 0.35355338, %v681_v6  ;;  %v683_v12 = vpop.f32.mrb[57].mxu0 }
 0x199   : > { %v2754_v20 = vmul.f32 0.35355338, %v683_v12  ;;  %v685_v2 = vpop.f32.mrb[58].mxu0 }
 0x19a   : > { %2894 = vst [vmem:[#allocation8_spill] sm:$0xff] %v2752_v9  ;;  %v2756_v30 = vmul.f32 0.35355338, %v685_v2  ;;  %v687_v56 = vpop.f32.mrb[59].mxu0 }
 0x19b   : > { %2895 = vst [vmem:[#allocation9_spill] sm:$0xff] %v2754_v20  ;;  %v2758_v35 = vmul.f32 0.35355338, %v687_v56  ;;  %v848_v26 = vmax.f32 %v2752_v9, %v2754_v20 }
 0x19c   : > { %2896 = vst [vmem:[#allocation10_spill] sm:$0xff] %v2756_v30 }
 0x19d   : > { %2897 = vst [vmem:[#allocation11_spill] sm:$0xff] %v2758_v35  ;;  %849 = vmax.xlane.f32.xlu0 %v848_v26  ;;  %v851_v48 = vmax.f32 %v2756_v30, %v2758_v35 }
 0x19f   : > { %852 = vmax.xlane.f32.xlu1 %v851_v48  ;;  %v691_v62 = vpop.f32.mrb[60].mxu0 }
 0x1a0   : > { %v2764_v6 = vmul.f32 0.35355338, %v691_v62  ;;  %v693_v46 = vpop.f32.mrb[61].mxu0 }
 0x1a1   : > { %v2766_v12 = vmul.f32 0.35355338, %v693_v46  ;;  %v695_v32 = vpop.f32.mrb[62].mxu0 }
 0x1a2   : > { %2898 = vst [vmem:[#allocation12_spill] sm:$0xff] %v2764_v6  ;;  %v2768_v2 = vmul.f32 0.35355338, %v695_v32  ;;  %v697_v16 = vpop.f32.mrb[63].mxu0 }
 0x1a3   : > { %2899 = vst [vmem:[#allocation13_spill] sm:$0xff] %v2766_v12  ;;  %v2770_v56 = vmul.f32 0.35355338, %v697_v16  ;;  %v854_v20 = vmax.f32 %v2764_v6, %v2766_v12 }
 0x1a5   : > { %2900 = vst [vmem:[#allocation14_spill] sm:$0xff] %v2770_v56  ;;  %855 = vmax.xlane.f32.xlu0 %v854_v20  ;;  %v857_v26 = vmax.f32 %v2768_v2, %v2770_v56 }
 0x1a7   : > { %858 = vmax.xlane.f32.xlu1 %v857_v26 }
 0x1ba   : > { %v766_v48 = vpop.xlane.xlu0 %765 }
 0x1bb   : > { %v860_v62 = vsub.f32 %v2568_v33, %v766_v48  ;;  %v861_v46 = vsub.f32 %v2571_v36, %v766_v48 }
 0x1bd   : > { %v924_v35 = vmul.f32 1.442695, %v860_v62  ;;  %v926_v30 = vmul.f32 1.442695, %v861_v46 }
 0x1be   : > { %v769_v32 = vpop.xlane.xlu0 %768 }
 0x1bf   : > { %2262 = vpow2.f32 %v924_v35  ;;  %v862_v16 = vsub.f32 %v2574_v39, %v769_v32  ;;  %v863_v9 = vsub.f32 %v2577_v42, %v769_v32 }
 0x1c0   : > { %2264 = vpow2.f32 %v926_v30 }
 0x1c1   : > { %v928_v12 = vmul.f32 1.442695, %v862_v16  ;;  %v930_v20 = vmul.f32 1.442695, %v863_v9 }
 0x1c2   : > { %v772_v6 = vpop.xlane.xlu1 %771 }
 0x1c3   : > { %2266 = vpow2.f32 %v928_v12  ;;  %v864_v26 = vsub.f32 %v2586_v49, %v772_v6  ;;  %v865_v56 = vsub.f32 %v2588_v51, %v772_v6 }
 0x1c4   : > { %2268 = vpow2.f32 %v930_v20 }
 0x1c5   : > { %v932_v33 = vmul.f32 1.442695, %v864_v26  ;;  %v934_v36 = vmul.f32 1.442695, %v865_v56 }
 0x1c6   : > { %v775_v48 = vpop.xlane.xlu1 %774 }
 0x1c7   : > { %2270 = vpow2.f32 %v932_v33  ;;  %v866_v35 = vsub.f32 %v2590_v53, %v775_v48  ;;  %v867_v39 = vsub.f32 %v2592_v55, %v775_v48 }
 0x1c8   : > { %2272 = vpow2.f32 %v934_v36 }
 0x1c9   : > { %v2263_v42 = vpop.eup %2262  ;;  %v936_v30 = vmul.f32 1.442695, %v866_v35  ;;  %v938_v62 = vmul.f32 1.442695, %v867_v39 }
 0x1ca   : > { %v2265_v9 = vpop.eup %2264  ;;  %v778_v46 = vpop.xlane.xlu0 %777 }
 0x1cb   : > { %2274 = vpow2.f32 %v936_v30  ;;  %v868_v49 = vsub.f32 %v2598_v59, %v778_v46  ;;  %v869_v51 = vsub.f32 %v2600_v61, %v778_v46  ;;  %v1052_v6 = vadd.f32 %v2265_v9, %v2263_v42 }
 0x1cc   : > { %2276 = vpow2.f32 %v938_v62  ;;  %v781_v12 = vpop.xlane.xlu1 %780 }
 0x1cd   : > { %v2267_v56 = vpop.eup %2266  ;;  %v940_v32 = vmul.f32 1.442695, %v868_v49  ;;  %v942_v16 = vmul.f32 1.442695, %v869_v51  ;;  %v870_v53 = vsub.f32 %v2602_v63, %v781_v12  ;;  %v871_v55 = vsub.f32 %v2604_v1, %v781_v12  ;;  %1053 = vadd.xlane.f32.xlu0 %v1052_v6 }
 0x1ce   : > { %v2269_v20 = vpop.eup %2268  ;;  %v1148_v26 = vpack.c.bf16 %v2267_v56, %v2263_v42 }
 0x1cf   : > { %2278 = vpow2.f32 %v940_v32  ;;  %v944_v33 = vmul.f32 1.442695, %v870_v53  ;;  %v946_v36 = vmul.f32 1.442695, %v871_v55  ;;  %v1149_v48 = vpack.c.bf16 %v2269_v20, %v2265_v9 }
 0x1d0   : > { %2280 = vpow2.f32 %v942_v16  ;;  %v1055_v59 = vadd.f32 %v2269_v20, %v2267_v56 }
 0x1d1   : > { %v2271_v61 = vpop.eup %2270  ;;  %2282 = vpow2.f32 %v944_v33  ;;  %1340 = vmatprep.mubr.bf16.mxu1 %v1149_v48 }
 0x1d2   : > { %v2273_v35 = vpop.eup %2272  ;;  %2284 = vpow2.f32 %v946_v36  ;;  %1056 = vadd.xlane.f32.xlu1 %v1055_v59  ;;  %1341 = vmatmul.mubr.bf16.vlgmr.msra.gmra.mrb[0].mxu1 %v1148_v26  ;;  %v784_v39 = vpop.xlane.xlu0 %783 }
 0x1d3   : > { %v872_v63 = vsub.f32 %v2612_v7, %v784_v39  ;;  %v873_v1 = vsub.f32 %v2615_v10, %v784_v39  ;;  %v1058_v30 = vadd.f32 %v2273_v35, %v2271_v61 }
 0x1d4   : > { %v787_v42 = vpop.xlane.xlu1 %786 }
 0x1d5   : > { %v2275_v62 = vpop.eup %2274  ;;  %v948_v46 = vmul.f32 1.442695, %v872_v63  ;;  %v950_v49 = vmul.f32 1.442695, %v873_v1  ;;  %v874_v9 = vsub.f32 %v2618_v13, %v787_v42  ;;  %v875_v51 = vsub.f32 %v2620_v15, %v787_v42  ;;  %1059 = vadd.xlane.f32.xlu0 %v1058_v30 }
 0x1d6   : > { %v2277_v6 = vpop.eup %2276  ;;  %v1150_v12 = vpack.c.bf16 %v2275_v62, %v2271_v61 }
 0x1d7   : > { %2286 = vpow2.f32 %v948_v46  ;;  %v952_v56 = vmul.f32 1.442695, %v874_v9  ;;  %v954_v32 = vmul.f32 1.442695, %v875_v51  ;;  %v1151_v16 = vpack.c.bf16 %v2277_v6, %v2273_v35 }
 0x1d8   : > { %2288 = vpow2.f32 %v950_v49  ;;  %v1061_v7 = vadd.f32 %v2277_v6, %v2275_v62 }
 0x1d9   : > { %v2279_v53 = vpop.eup %2278  ;;  %2290 = vpow2.f32 %v952_v56  ;;  %1348 = vmatprep.mubr.bf16.mxu1 %v1151_v16 }
 0x1da   : > { %v2281_v10 = vpop.eup %2280  ;;  %2292 = vpow2.f32 %v954_v32  ;;  %1062 = vadd.xlane.f32.xlu1 %v1061_v7  ;;  %1349 = vmatmul.mubr.bf16.gmra.mrb[4].mxu1 %v1150_v12  ;;  %v790_v55 = vpop.xlane.xlu0 %789 }
 0x1db   : > { %v2283_v13 = vpop.eup %2282  ;;  %v876_v15 = vsub.f32 %v2628_v21, %v790_v55  ;;  %v877_v20 = vsub.f32 %v2631_v24, %v790_v55  ;;  %v1064_v26 = vadd.f32 %v2281_v10, %v2279_v53 }
 0x1dc   : > { %v2285_v33 = vpop.eup %2284  ;;  %v793_v36 = vpop.xlane.xlu1 %792  ;;  %v1152_v21 = vpack.c.bf16 %v2283_v13, %v2279_v53 }
 0x1dd   : > { %v956_v48 = vmul.f32 1.442695, %v876_v15  ;;  %v958_v59 = vmul.f32 1.442695, %v877_v20  ;;  %v878_v61 = vsub.f32 %v2634_v27, %v793_v36  ;;  %v879_v35 = vsub.f32 %v2636_v29, %v793_v36  ;;  %1065 = vadd.xlane.f32.xlu0 %v1064_v26 }
 0x1de   : > { %v1153_v39 = vpack.c.bf16 %v2285_v33, %v2281_v10  ;;  %v1067_v63 = vadd.f32 %v2285_v33, %v2283_v13 }
 0x1df   : > { %2294 = vpow2.f32 %v956_v48  ;;  %v960_v1 = vmul.f32 1.442695, %v878_v61  ;;  %v962_v30 = vmul.f32 1.442695, %v879_v35 }
 0x1e0   : > { %2296 = vpow2.f32 %v958_v59  ;;  %1356 = vmatprep.mubr.bf16.mxu1 %v1153_v39  ;;  %1068 = vadd.xlane.f32.xlu1 %v1067_v63 }
 0x1e1   : > { %v2287_v24 = vpop.eup %2286  ;;  %2298 = vpow2.f32 %v960_v1 }
 0x1e2   : > { %v2289_v42 = vpop.eup %2288  ;;  %2300 = vpow2.f32 %v962_v30  ;;  %1357 = vmatmul.mubr.bf16.gmra.mrb[8].mxu1 %v1152_v21  ;;  %v796_v62 = vpop.xlane.xlu0 %795 }
 0x1e3   : > { %v2291_v46 = vpop.eup %2290  ;;  %v880_v27 = vsub.f32 %v2644_v37, %v796_v62  ;;  %v881_v29 = vsub.f32 %v2646_v40, %v796_v62  ;;  %v1070_v49 = vadd.f32 %v2289_v42, %v2287_v24 }
 0x1e4   : > { %v2293_v9 = vpop.eup %2292  ;;  %v799_v51 = vpop.xlane.xlu1 %798  ;;  %v1154_v37 = vpack.c.bf16 %v2291_v46, %v2287_v24 }
 0x1e5   : > { %v964_v6 = vmul.f32 1.442695, %v880_v27  ;;  %v966_v12 = vmul.f32 1.442695, %v881_v29  ;;  %v882_v56 = vsub.f32 %v2648_v43, %v799_v51  ;;  %v883_v32 = vsub.f32 %v2650_v45, %v799_v51  ;;  %1071 = vadd.xlane.f32.xlu0 %v1070_v49 }
 0x1e6   : > { %v1155_v16 = vpack.c.bf16 %v2293_v9, %v2289_v42  ;;  %v1073_v7 = vadd.f32 %v2293_v9, %v2291_v46 }
 0x1e7   : > { %2302 = vpow2.f32 %v964_v6  ;;  %v968_v53 = vmul.f32 1.442695, %v882_v56  ;;  %v970_v10 = vmul.f32 1.442695, %v883_v32 }
 0x1e8   : > { %2304 = vpow2.f32 %v966_v12  ;;  %1364 = vmatprep.mubr.bf16.mxu1 %v1155_v16  ;;  %1074 = vadd.xlane.f32.xlu1 %v1073_v7 }
 0x1e9   : > { %v2295_v40 = vpop.eup %2294  ;;  %2306 = vpow2.f32 %v968_v53 }
 0x1ea   : > { %v2297_v55 = vpop.eup %2296  ;;  %2308 = vpow2.f32 %v970_v10  ;;  %1365 = vmatmul.mubr.bf16.gmra.mrb[12].mxu1 %v1154_v37  ;;  %v802_v13 = vpop.xlane.xlu0 %801 }
 0x1eb   : > { %v2299_v15 = vpop.eup %2298  ;;  %v884_v43 = vsub.f32 %v2656_v50, %v802_v13  ;;  %v885_v45 = vsub.f32 %v2658_v54, %v802_v13  ;;  %v1076_v20 = vadd.f32 %v2297_v55, %v2295_v40 }
 0x1ec   : > { %v2301_v26 = vpop.eup %2300  ;;  %v805_v33 = vpop.xlane.xlu1 %804  ;;  %v1156_v50 = vpack.c.bf16 %v2299_v15, %v2295_v40 }
 0x1ed   : > { %v972_v36 = vmul.f32 1.442695, %v884_v43  ;;  %v974_v48 = vmul.f32 1.442695, %v885_v45  ;;  %v886_v59 = vsub.f32 %v2660_v57, %v805_v33  ;;  %v887_v61 = vsub.f32 %v2662_v60, %v805_v33  ;;  %1077 = vadd.xlane.f32.xlu0 %v1076_v20 }
 0x1ee   : > { %v1157_v35 = vpack.c.bf16 %v2301_v26, %v2297_v55  ;;  %v1079_v39 = vadd.f32 %v2301_v26, %v2299_v15 }
 0x1ef   : > { %2310 = vpow2.f32 %v972_v36  ;;  %v976_v63 = vmul.f32 1.442695, %v886_v59  ;;  %v978_v1 = vmul.f32 1.442695, %v887_v61 }
 0x1f0   : > { %2312 = vpow2.f32 %v974_v48  ;;  %1372 = vmatprep.mubr.bf16.mxu1 %v1157_v35  ;;  %1080 = vadd.xlane.f32.xlu1 %v1079_v39 }
 0x1f1   : > { %v2303_v54 = vpop.eup %2302  ;;  %2314 = vpow2.f32 %v976_v63 }
 0x1f2   : > { %v2305_v30 = vpop.eup %2304  ;;  %2316 = vpow2.f32 %v978_v1  ;;  %1373 = vmatmul.mubr.bf16.gmra.mrb[16].mxu1 %v1156_v50  ;;  %v808_v21 = vpop.xlane.xlu0 %807 }
 0x1f3   : > { %v2307_v24 = vpop.eup %2306  ;;  %v888_v57 = vsub.f32 %v2668_v3, %v808_v21  ;;  %v889_v60 = vsub.f32 %v2670_v5, %v808_v21  ;;  %v1082_v42 = vadd.f32 %v2305_v30, %v2303_v54 }
 0x1f4   : > { %v2309_v62 = vpop.eup %2308  ;;  %v811_v46 = vpop.xlane.xlu1 %810  ;;  %v1158_v3 = vpack.c.bf16 %v2307_v24, %v2303_v54 }
 0x1f5   : > { %v980_v27 = vmul.f32 1.442695, %v888_v57  ;;  %v982_v29 = vmul.f32 1.442695, %v889_v60  ;;  %v890_v49 = vsub.f32 %v2672_v8, %v811_v46  ;;  %v891_v9 = vsub.f32 %v2674_v11, %v811_v46  ;;  %1083 = vadd.xlane.f32.xlu0 %v1082_v42 }
 0x1f6   : > { %v1159_v51 = vpack.c.bf16 %v2309_v62, %v2305_v30  ;;  %v1085_v6 = vadd.f32 %v2309_v62, %v2307_v24 }
 0x1f7   : > { %2318 = vpow2.f32 %v980_v27  ;;  %v984_v12 = vmul.f32 1.442695, %v890_v49  ;;  %v986_v56 = vmul.f32 1.442695, %v891_v9 }
 0x1f8   : > { %2320 = vpow2.f32 %v982_v29  ;;  %1380 = vmatprep.mubr.bf16.mxu1 %v1159_v51  ;;  %1086 = vadd.xlane.f32.xlu1 %v1085_v6 }
 0x1f9   : > { %v2311_v5 = vpop.eup %2310  ;;  %2322 = vpow2.f32 %v984_v12 }
 0x1fa   : > { %v2313_v32 = vpop.eup %2312  ;;  %2324 = vpow2.f32 %v986_v56  ;;  %1381 = vmatmul.mubr.bf16.gmra.mrb[20].mxu1 %v1158_v3  ;;  %v814_v16 = vpop.xlane.xlu0 %813 }
 0x1fb   : > { %v2315_v7 = vpop.eup %2314  ;;  %v892_v8 = vsub.f32 %v2680_v17, %v814_v16  ;;  %v893_v11 = vsub.f32 %v2682_v19, %v814_v16  ;;  %v1088_v53 = vadd.f32 %v2313_v32, %v2311_v5 }
 0x1fc   : > { %v2317_v10 = vpop.eup %2316  ;;  %v817_v37 = vpop.xlane.xlu1 %816  ;;  %v1160_v17 = vpack.c.bf16 %v2315_v7, %v2311_v5 }
 0x1fd   : > { %v988_v40 = vmul.f32 1.442695, %v892_v8  ;;  %v990_v55 = vmul.f32 1.442695, %v893_v11  ;;  %v894_v13 = vsub.f32 %v2684_v22, %v817_v37  ;;  %v895_v15 = vsub.f32 %v2686_v25, %v817_v37  ;;  %1089 = vadd.xlane.f32.xlu0 %v1088_v53 }
 0x1fe   : > { %v1161_v43 = vpack.c.bf16 %v2317_v10, %v2313_v32  ;;  %v1091_v45 = vadd.f32 %v2317_v10, %v2315_v7 }
 0x1ff   : > { %2326 = vpow2.f32 %v988_v40  ;;  %v992_v20 = vmul.f32 1.442695, %v894_v13  ;;  %v994_v26 = vmul.f32 1.442695, %v895_v15 }
 0x200   : > { %2328 = vpow2.f32 %v990_v55  ;;  %1388 = vmatprep.mubr.bf16.mxu1 %v1161_v43  ;;  %1092 = vadd.xlane.f32.xlu1 %v1091_v45 }
 0x201   : > { %v2319_v19 = vpop.eup %2318  ;;  %2330 = vpow2.f32 %v992_v20 }
 0x202   : > { %v2321_v33 = vpop.eup %2320  ;;  %2332 = vpow2.f32 %v994_v26  ;;  %1389 = vmatmul.mubr.bf16.gmra.mrb[24].mxu1 %v1160_v17  ;;  %v820_v36 = vpop.xlane.xlu0 %819 }
 0x203   : > { %v2323_v48 = vpop.eup %2322  ;;  %v896_v22 = vsub.f32 %v2692_v31, %v820_v36  ;;  %v897_v25 = vsub.f32 %v2694_v34, %v820_v36  ;;  %v1094_v59 = vadd.f32 %v2321_v33, %v2319_v19 }
 0x204   : > { %v2325_v61 = vpop.eup %2324  ;;  %v823_v35 = vpop.xlane.xlu1 %822  ;;  %v1162_v31 = vpack.c.bf16 %v2323_v48, %v2319_v19 }
 0x205   : > { %v996_v39 = vmul.f32 1.442695, %v896_v22  ;;  %v998_v63 = vmul.f32 1.442695, %v897_v25  ;;  %v898_v1 = vsub.f32 %v2696_v38, %v823_v35  ;;  %v899_v50 = vsub.f32 %v2698_v44, %v823_v35  ;;  %1095 = vadd.xlane.f32.xlu0 %v1094_v59  ;;  %v2901_v22 = vld [vmem:[#allocation2_spill] sm:$0xff]  ;;  %v2902_v59 = vld [vmem:[#allocation3_spill] sm:$0xff] }
 0x206   : > { %v1163_v54 = vpack.c.bf16 %v2325_v61, %v2321_v33  ;;  %v1097_v30 = vadd.f32 %v2325_v61, %v2323_v48 }
 0x207   : > { %2334 = vpow2.f32 %v996_v39  ;;  %v1000_v21 = vmul.f32 1.442695, %v898_v1  ;;  %v1002_v24 = vmul.f32 1.442695, %v899_v50 }
 0x208   : > { %2336 = vpow2.f32 %v998_v63  ;;  %1396 = vmatprep.mubr.bf16.mxu1 %v1163_v54  ;;  %1098 = vadd.xlane.f32.xlu1 %v1097_v30 }
 0x209   : > { %v2327_v34 = vpop.eup %2326  ;;  %2338 = vpow2.f32 %v1000_v21  ;;  %v2903_v21 = vld [vmem:[#allocation4_spill] sm:$0xff] }
 0x20a   : > { %v2329_v57 = vpop.eup %2328  ;;  %2340 = vpow2.f32 %v1002_v24  ;;  %1397 = vmatmul.mubr.bf16.gmra.mrb[28].mxu1 %v1162_v31  ;;  %v826_v60 = vpop.xlane.xlu0 %825  ;;  %v2904_v31 = vld [vmem:[#allocation5_spill] sm:$0xff] }
 0x20b   : > { %v2331_v42 = vpop.eup %2330  ;;  %v900_v38 = vsub.f32 %v2704_v52, %v826_v60  ;;  %v901_v44 = vsub.f32 %v2706_v58, %v826_v60  ;;  %v1100_v62 = vadd.f32 %v2329_v57, %v2327_v34 }
 0x20c   : > { %v2333_v46 = vpop.eup %2332  ;;  %v829_v27 = vpop.xlane.xlu1 %828  ;;  %v1164_v52 = vpack.c.bf16 %v2331_v42, %v2327_v34 }
 0x20d   : > { %v1004_v29 = vmul.f32 1.442695, %v900_v38  ;;  %v1006_v49 = vmul.f32 1.442695, %v901_v44  ;;  %v902_v9 = vsub.f32 %v2708_v0, %v829_v27  ;;  %v903_v51 = vsub.f32 %v2710_v4, %v829_v27  ;;  %1101 = vadd.xlane.f32.xlu0 %v1100_v62  ;;  %v2905_v62 = vld [vmem:[#allocation6_spill] sm:$0xff]  ;;  %v2906_v27 = vld [vmem:[#allocation7_spill] sm:$0xff] }
 0x20e   : > { %v1165_v6 = vpack.c.bf16 %v2333_v46, %v2329_v57  ;;  %v1103_v12 = vadd.f32 %v2333_v46, %v2331_v42 }
 0x20f   : > { %2342 = vpow2.f32 %v1004_v29  ;;  %v1008_v56 = vmul.f32 1.442695, %v902_v9  ;;  %v1010_v3 = vmul.f32 1.442695, %v903_v51 }
 0x210   : > { %2344 = vpow2.f32 %v1006_v49  ;;  %1404 = vmatprep.mubr.bf16.mxu1 %v1165_v6  ;;  %1104 = vadd.xlane.f32.xlu1 %v1103_v12 }
 0x211   : > { %v2335_v58 = vpop.eup %2334  ;;  %2346 = vpow2.f32 %v1008_v56 }
 0x212   : > { %v2337_v5 = vpop.eup %2336  ;;  %2348 = vpow2.f32 %v1010_v3  ;;  %1405 = vmatmul.mubr.bf16.gmra.mrb[32].mxu1 %v1164_v52  ;;  %v832_v32 = vpop.xlane.xlu0 %831 }
 0x213   : > { %v2339_v16 = vpop.eup %2338  ;;  %v904_v0 = vsub.f32 %v2716_v14, %v832_v32  ;;  %v905_v4 = vsub.f32 %v2718_v18, %v832_v32  ;;  %v1106_v7 = vadd.f32 %v2337_v5, %v2335_v58 }
 0x214   : > { %v2341_v8 = vpop.eup %2340  ;;  %v835_v11 = vpop.xlane.xlu1 %834  ;;  %v1166_v14 = vpack.c.bf16 %v2339_v16, %v2335_v58 }
 0x215   : > { %v1012_v53 = vmul.f32 1.442695, %v904_v0  ;;  %v1014_v10 = vmul.f32 1.442695, %v905_v4  ;;  %v906_v37 = vsub.f32 %v2720_v23, %v835_v11  ;;  %v907_v40 = vsub.f32 %v2722_v28, %v835_v11  ;;  %1107 = vadd.xlane.f32.xlu0 %v1106_v7 }
 0x216   : > { %v1167_v55 = vpack.c.bf16 %v2341_v8, %v2337_v5  ;;  %v1109_v13 = vadd.f32 %v2341_v8, %v2339_v16  ;;  %v2907_v5 = vld [vmem:[#allocation8_spill] sm:$0xff]  ;;  %v2908_v16 = vld [vmem:[#allocation9_spill] sm:$0xff] }
 0x217   : > { %2350 = vpow2.f32 %v1012_v53  ;;  %v1016_v15 = vmul.f32 1.442695, %v906_v37  ;;  %v1018_v43 = vmul.f32 1.442695, %v907_v40  ;;  %v2910_v40 = vld [vmem:[#allocation11_spill] sm:$0xff] }
 0x218   : > { %2352 = vpow2.f32 %v1014_v10  ;;  %1412 = vmatprep.mubr.bf16.mxu1 %v1167_v55  ;;  %1110 = vadd.xlane.f32.xlu1 %v1109_v13  ;;  %v2909_v10 = vld [vmem:[#allocation10_spill] sm:$0xff] }
 0x219   : > { %v2343_v18 = vpop.eup %2342  ;;  %2354 = vpow2.f32 %v1016_v15 }
 0x21a   : > { %v2345_v45 = vpop.eup %2344  ;;  %2356 = vpow2.f32 %v1018_v43  ;;  %1413 = vmatmul.mubr.bf16.gmra.mrb[36].mxu1 %v1166_v14  ;;  %v838_v20 = vpop.xlane.xlu0 %837 }
 0x21b   : > { %v2347_v26 = vpop.eup %2346  ;;  %v908_v23 = vsub.f32 %v2728_v41, %v838_v20  ;;  %v909_v28 = vsub.f32 %v2730_v47, %v838_v20  ;;  %v1112_v17 = vadd.f32 %v2345_v45, %v2343_v18 }
 0x21c   : > { %v2349_v19 = vpop.eup %2348  ;;  %v841_v33 = vpop.xlane.xlu1 %840  ;;  %v1168_v41 = vpack.c.bf16 %v2347_v26, %v2343_v18 }
 0x21d   : > { %v1020_v36 = vmul.f32 1.442695, %v908_v23  ;;  %v1022_v48 = vmul.f32 1.442695, %v909_v28  ;;  %v910_v25 = vsub.f32 %v2901_v22, %v841_v33  ;;  %v911_v61 = vsub.f32 %v2902_v59, %v841_v33  ;;  %1113 = vadd.xlane.f32.xlu0 %v1112_v17  ;;  %v2911_v28 = vld [vmem:[#allocation12_spill] sm:$0xff] }
 0x21e   : > { %v1169_v35 = vpack.c.bf16 %v2349_v19, %v2345_v45  ;;  %v1115_v39 = vadd.f32 %v2349_v19, %v2347_v26  ;;  %v2912_v19 = vld [vmem:[#allocation13_spill] sm:$0xff] }
 0x21f   : > { %2358 = vpow2.f32 %v1020_v36  ;;  %v1024_v63 = vmul.f32 1.442695, %v910_v25  ;;  %v1026_v1 = vmul.f32 1.442695, %v911_v61 }
 0x220   : > { %2360 = vpow2.f32 %v1022_v48  ;;  %1420 = vmatprep.mubr.bf16.mxu1 %v1169_v35  ;;  %1116 = vadd.xlane.f32.xlu1 %v1115_v39  ;;  %v2913_v35 = vld [vmem:[#allocation14_spill] sm:$0xff] }
 0x221   : > { %v2351_v47 = vpop.eup %2350  ;;  %2362 = vpow2.f32 %v1024_v63 }
 0x222   : > { %v2353_v50 = vpop.eup %2352  ;;  %2364 = vpow2.f32 %v1026_v1  ;;  %1421 = vmatmul.mubr.bf16.gmra.mrb[40].mxu1 %v1168_v41  ;;  %v844_v54 = vpop.xlane.xlu0 %843 }
 0x223   : > { %v2355_v30 = vpop.eup %2354  ;;  %v912_v24 = vsub.f32 %v2903_v21, %v844_v54  ;;  %v913_v34 = vsub.f32 %v2904_v31, %v844_v54  ;;  %v1118_v57 = vadd.f32 %v2353_v50, %v2351_v47 }
 0x224   : > { %v2357_v60 = vpop.eup %2356  ;;  %v847_v42 = vpop.xlane.xlu1 %846  ;;  %v1170_v12 = vpack.c.bf16 %v2355_v30, %v2351_v47 }
 0x225   : > { %v1028_v38 = vmul.f32 1.442695, %v912_v24  ;;  %v1030_v44 = vmul.f32 1.442695, %v913_v34  ;;  %v914_v46 = vsub.f32 %v2905_v62, %v847_v42  ;;  %v915_v29 = vsub.f32 %v2906_v27, %v847_v42  ;;  %1119 = vadd.xlane.f32.xlu0 %v1118_v57 }
 0x226   : > { %v1171_v49 = vpack.c.bf16 %v2357_v60, %v2353_v50  ;;  %v1121_v9 = vadd.f32 %v2357_v60, %v2355_v30 }
 0x227   : > { %2366 = vpow2.f32 %v1028_v38  ;;  %v1032_v51 = vmul.f32 1.442695, %v914_v46  ;;  %v1034_v6 = vmul.f32 1.442695, %v915_v29 }
 0x228   : > { %2368 = vpow2.f32 %v1030_v44  ;;  %1428 = vmatprep.mubr.bf16.mxu1 %v1171_v49  ;;  %1122 = vadd.xlane.f32.xlu1 %v1121_v9 }
 0x229   : > { %v2359_v56 = vpop.eup %2358  ;;  %2370 = vpow2.f32 %v1032_v51 }
 0x22a   : > { %v2361_v3 = vpop.eup %2360  ;;  %2372 = vpow2.f32 %v1034_v6  ;;  %1429 = vmatmul.mubr.bf16.gmra.mrb[44].mxu1 %v1170_v12  ;;  %v850_v52 = vpop.xlane.xlu0 %849 }
 0x22b   : > { %v2363_v58 = vpop.eup %2362  ;;  %v916_v32 = vsub.f32 %v2907_v5, %v850_v52  ;;  %v917_v0 = vsub.f32 %v2908_v16, %v850_v52  ;;  %v1124_v4 = vadd.f32 %v2361_v3, %v2359_v56 }
 0x22c   : > { %v2365_v7 = vpop.eup %2364  ;;  %v853_v8 = vpop.xlane.xlu1 %852  ;;  %v1172_v18 = vpack.c.bf16 %v2363_v58, %v2359_v56 }
 0x22d   : > { %v1036_v11 = vmul.f32 1.442695, %v916_v32  ;;  %v1038_v53 = vmul.f32 1.442695, %v917_v0  ;;  %v918_v37 = vsub.f32 %v2909_v10, %v853_v8  ;;  %v919_v55 = vsub.f32 %v2910_v40, %v853_v8  ;;  %1125 = vadd.xlane.f32.xlu0 %v1124_v4 }
 0x22e   : > { %v1173_v13 = vpack.c.bf16 %v2365_v7, %v2361_v3  ;;  %v1127_v15 = vadd.f32 %v2365_v7, %v2363_v58 }
 0x22f   : > { %2374 = vpow2.f32 %v1036_v11  ;;  %v1040_v43 = vmul.f32 1.442695, %v918_v37  ;;  %v1042_v14 = vmul.f32 1.442695, %v919_v55 }
 0x230   : > { %2376 = vpow2.f32 %v1038_v53  ;;  %1436 = vmatprep.mubr.bf16.mxu1 %v1173_v13  ;;  %1128 = vadd.xlane.f32.xlu1 %v1127_v15 }
 0x231   : > { %v2367_v45 = vpop.eup %2366  ;;  %2378 = vpow2.f32 %v1040_v43 }
 0x232   : > { %v2369_v20 = vpop.eup %2368  ;;  %2380 = vpow2.f32 %v1042_v14  ;;  %1437 = vmatmul.mubr.bf16.gmra.mrb[48].mxu1 %v1172_v18  ;;  %v856_v26 = vpop.xlane.xlu0 %855 }
 0x233   : > { %v2371_v23 = vpop.eup %2370  ;;  %v920_v17 = vsub.f32 %v2911_v28, %v856_v26  ;;  %v921_v33 = vsub.f32 %v2912_v19, %v856_v26  ;;  %v1130_v36 = vadd.f32 %v2369_v20, %v2367_v45 }
 0x234   : > { %v2373_v48 = vpop.eup %2372  ;;  %v859_v22 = vpop.xlane.xlu1 %858  ;;  %v1174_v50 = vpack.c.bf16 %v2371_v23, %v2367_v45 }
 0x235   : > { %v1044_v25 = vmul.f32 1.442695, %v920_v17  ;;  %v1046_v59 = vmul.f32 1.442695, %v921_v33  ;;  %1131 = vadd.xlane.f32.xlu0 %v1130_v36  ;;  %v922_v61 = vsub.f32 %v2768_v2, %v859_v22  ;;  %v923_v39 = vsub.f32 %v2913_v35, %v859_v22 }
 0x236   : > { %v1175_v63 = vpack.c.bf16 %v2373_v48, %v2369_v20  ;;  %v1133_v1 = vadd.f32 %v2373_v48, %v2371_v23 }
 0x237   : > { %2382 = vpow2.f32 %v1044_v25  ;;  %v1048_v41 = vmul.f32 1.442695, %v922_v61  ;;  %v1050_v47 = vmul.f32 1.442695, %v923_v39 }
 0x238   : > { %2384 = vpow2.f32 %v1046_v59  ;;  %1444 = vmatprep.mubr.bf16.mxu1 %v1175_v63  ;;  %1134 = vadd.xlane.f32.xlu1 %v1133_v1 }
 0x239   : > { %v2375_v54 = vpop.eup %2374  ;;  %2386 = vpow2.f32 %v1048_v41 }
 0x23a   : > { %v2377_v30 = vpop.eup %2376  ;;  %2388 = vpow2.f32 %v1050_v47  ;;  %1445 = vmatmul.mubr.bf16.gmra.mrb[52].mxu1 %v1174_v50 }
 0x23b   : > { %v2379_v21 = vpop.eup %2378  ;;  %v1136_v24 = vadd.f32 %v2377_v30, %v2375_v54 }
 0x23c   : > { %v2381_v31 = vpop.eup %2380  ;;  %v1176_v57 = vpack.c.bf16 %v2379_v21, %v2375_v54 }
 0x23d   : > { %1137 = vadd.xlane.f32.xlu0 %v1136_v24  ;;  %v1177_v2 = vpack.c.bf16 %v2381_v31, %v2377_v30  ;;  %v1139_v34 = vadd.f32 %v2381_v31, %v2379_v21 }
 0x23f   : > { %1452 = vmatprep.mubr.bf16.mxu1 %v1177_v2  ;;  %1140 = vadd.xlane.f32.xlu1 %v1139_v34 }
 0x241   : > { %v2383_v60 = vpop.eup %2382 }
 0x242   : > { %v2385_v42 = vpop.eup %2384  ;;  %1453 = vmatmul.mubr.bf16.gmra.mrb[56].mxu1 %v1176_v57 }
 0x243   : > { %v2387_v38 = vpop.eup %2386  ;;  %v1142_v44 = vadd.f32 %v2385_v42, %v2383_v60 }
 0x244   : > { %v2389_v62 = vpop.eup %2388  ;;  %v1178_v29 = vpack.c.bf16 %v2387_v38, %v2383_v60 }
 0x245   : > { %1143 = vadd.xlane.f32.xlu0 %v1142_v44  ;;  %v1179_v46 = vpack.c.bf16 %v2389_v62, %v2385_v42  ;;  %v1145_v27 = vadd.f32 %v2389_v62, %v2387_v38 }
 0x247   : > { %1460 = vmatprep.mubr.bf16.mxu1 %v1179_v46  ;;  %1146 = vadd.xlane.f32.xlu1 %v1145_v27 }
 0x24a   : > { %1461 = vmatmul.mubr.bf16.gmra.mrb[60].mxu1 %v1178_v29 }
 0x25a   : > { %v1054_v49 = vpop.xlane.xlu0 %1053 }
 0x25b   : > { %2390 = vrcp.f32 %v1054_v49 }
 0x25f   : > { %v1057_v9 = vpop.xlane.xlu1 %1056 }
 0x260   : > { %2392 = vrcp.f32 %v1057_v9 }
 0x262   : > { %v1060_v51 = vpop.xlane.xlu0 %1059 }
 0x263   : > { %2394 = vrcp.f32 %v1060_v51 }
 0x265   : > { %v2391_v5 = vpop.eup %2390 }
 0x267   : > { %v1063_v6 = vpop.xlane.xlu1 %1062 }
 0x268   : > { %2396 = vrcp.f32 %v1063_v6 }
 0x26a   : > { %v2393_v16 = vpop.eup %2392  ;;  %v1066_v7 = vpop.xlane.xlu0 %1065 }
 0x26b   : > { %2398 = vrcp.f32 %v1066_v7 }
 0x26d   : > { %v1069_v8 = vpop.xlane.xlu1 %1068  ;;  %v2395_v13 = vpop.eup %2394 }
 0x26e   : > { %2400 = vrcp.f32 %v1069_v8 }
 0x272   : > { %v2397_v43 = vpop.eup %2396  ;;  %v1072_v45 = vpop.xlane.xlu0 %1071 }
 0x273   : > { %2402 = vrcp.f32 %v1072_v45 }
 0x275   : > { %v1075_v20 = vpop.xlane.xlu1 %1074  ;;  %v2399_v36 = vpop.eup %2398 }
 0x276   : > { %2404 = vrcp.f32 %v1075_v20 }
 0x278   : > { %v2401_v22 = vpop.eup %2400 }
 0x27a   : > { %v1078_v61 = vpop.xlane.xlu0 %1077 }
 0x27b   : > { %2406 = vrcp.f32 %v1078_v61 }
 0x27d   : > { %v1081_v35 = vpop.xlane.xlu1 %1080  ;;  %v2403_v54 = vpop.eup %2402 }
 0x27e   : > { %2408 = vrcp.f32 %v1081_v35 }
 0x280   : > { %v2405_v21 = vpop.eup %2404 }
 0x282   : > { %v1084_v2 = vpop.xlane.xlu0 %1083 }
 0x283   : > { %2410 = vrcp.f32 %v1084_v2 }
 0x285   : > { %v1087_v34 = vpop.xlane.xlu1 %1086  ;;  %v2407_v46 = vpop.eup %2406 }
 0x286   : > { %2412 = vrcp.f32 %v1087_v34 }
 0x288   : > { %v2409_v29 = vpop.eup %2408 }
 0x28a   : > { %v1090_v51 = vpop.xlane.xlu0 %1089 }
 0x28b   : > { %2414 = vrcp.f32 %v1090_v51 }
 0x28d   : > { %v1093_v6 = vpop.xlane.xlu1 %1092 }
 0x28e   : > { %2416 = vrcp.f32 %v1093_v6 }
 0x292   : > { %v1096_v8 = vpop.xlane.xlu0 %1095 }
 0x293   : > { %2418 = vrcp.f32 %v1096_v8 }
 0x29a   : > { %v1102_v20 = vpop.xlane.xlu0 %1101 }
 0x2a2   : > { %v1108_v35 = vpop.xlane.xlu0 %1107 }
 0x2a5   : > { %v2094_v12 = vpop.f32.mrb[0].mxu1 }
 0x2a6   : > { %v2095_v56 = vpop.f32.mrb[1].mxu1 }
 0x2a7   : > { %v2096_v3 = vadd.f32 %v2095_v56, %v2094_v12  ;;  %v2097_v52 = vpop.f32.mrb[2].mxu1 }
 0x2a8   : > { %v2098_v58 = vpop.f32.mrb[3].mxu1 }
 0x2a9   : > { %v2099_v32 = vadd.f32 %v2098_v58, %v2097_v52  ;;  %v1501_v0 = vmul.f32 %v2391_v5, %v2096_v3 }
 0x2aa   : > { %v1114_v34 = vpop.xlane.xlu0 %1113 }
 0x2ab   : > { %v1502_v4 = vmul.f32 %v2393_v16, %v2099_v32  ;;  %v2411_v32 = vpop.eup %2410 }
 0x2ad   : > { %v1938_v11 = vpack.c.bf16 %v1502_v4, %v1501_v0  ;;  %v2100_v53 = vpop.f32.mrb[4].mxu1  ;;  %v2413_v0 = vpop.eup %2412 }
 0x2ae   : > { %v2101_v10 = vpop.f32.mrb[5].mxu1 }
 0x2af   : > { %1939 = vst [vmem:[%s2844_s28] sm:$0xff] %v1938_v11   ;;  %v2102_v37 = vadd.f32 %v2101_v10, %v2100_v53  ;;  %v2103_v40 = vpop.f32.mrb[6].mxu1  ;;  %v1099_v11 = vpop.xlane.xlu1 %1098 }
 0x2b0   : > { %v2104_v55 = vpop.f32.mrb[7].mxu1  ;;  %2420 = vrcp.f32 %v1099_v11 }
 0x2b1   : > { %v2105_v15 = vadd.f32 %v2104_v55, %v2103_v40  ;;  %v1503_v14 = vmul.f32 %v2395_v13, %v2102_v37  ;;  %2422 = vrcp.f32 %v1102_v20 }
 0x2b2   : > { %v1120_v6 = vpop.xlane.xlu0 %1119 }
 0x2b3   : > { %v1504_v18 = vmul.f32 %v2397_v43, %v2105_v15  ;;  %v2415_v15 = vpop.eup %2414 }
 0x2b5   : > { %v1943_v26 = vpack.c.bf16 %v1504_v18, %v1503_v14  ;;  %v2106_v23 = vpop.f32.mrb[8].mxu1  ;;  %v2417_v14 = vpop.eup %2416 }
 0x2b6   : > { %v2107_v28 = vpop.f32.mrb[9].mxu1 }
 0x2b7   : > { %2015 = vst [vmem:[%s2844_s28 + $0x8] sm:$0xff] %v1943_v26   ;;  %v2108_v17 = vadd.f32 %v2107_v28, %v2106_v23  ;;  %v2109_v19 = vpop.f32.mrb[10].mxu1  ;;  %v1105_v26 = vpop.xlane.xlu1 %1104 }
 0x2b8   : > { %v2110_v33 = vpop.f32.mrb[11].mxu1  ;;  %2424 = vrcp.f32 %v1105_v26 }
 0x2b9   : > { %v2111_v48 = vadd.f32 %v2110_v33, %v2109_v19  ;;  %v1505_v25 = vmul.f32 %v2399_v36, %v2108_v17  ;;  %2426 = vrcp.f32 %v1108_v35 }
 0x2ba   : > { %v1126_v11 = vpop.xlane.xlu0 %1125 }
 0x2bb   : > { %v1506_v59 = vmul.f32 %v2401_v22, %v2111_v48  ;;  %v2419_v48 = vpop.eup %2418 }
 0x2bd   : > { %v1948_v39 = vpack.c.bf16 %v1506_v59, %v1505_v25  ;;  %v2112_v63 = vpop.f32.mrb[12].mxu1  ;;  %v2421_v25 = vpop.eup %2420 }
 0x2be   : > { %v2113_v1 = vpop.f32.mrb[13].mxu1 }
 0x2bf   : > { %2016 = vst [vmem:[%s2844_s28 + $0x10] sm:$0xff] %v1948_v39   ;;  %v2114_v41 = vadd.f32 %v2113_v1, %v2112_v63  ;;  %v2115_v47 = vpop.f32.mrb[14].mxu1  ;;  %v1111_v39 = vpop.xlane.xlu1 %1110 }
 0x2c0   : > { %v2116_v50 = vpop.f32.mrb[15].mxu1  ;;  %2428 = vrcp.f32 %v1111_v39 }
 0x2c1   : > { %v2117_v30 = vadd.f32 %v2116_v50, %v2115_v47  ;;  %v1507_v24 = vmul.f32 %v2403_v54, %v2114_v41  ;;  %2430 = vrcp.f32 %v1114_v34 }
 0x2c2   : > { %v1132_v26 = vpop.xlane.xlu0 %1131 }
 0x2c3   : > { %v1508_v31 = vmul.f32 %v2405_v21, %v2117_v30  ;;  %v2423_v30 = vpop.eup %2422 }
 0x2c5   : > { %v1953_v57 = vpack.c.bf16 %v1508_v31, %v1507_v24  ;;  %v2118_v60 = vpop.f32.mrb[16].mxu1  ;;  %v2425_v24 = vpop.eup %2424 }
 0x2c6   : > { %v2119_v42 = vpop.f32.mrb[17].mxu1 }
 0x2c7   : > { %2017 = vst [vmem:[%s2844_s28 + $0x18] sm:$0xff] %v1953_v57   ;;  %v2120_v38 = vadd.f32 %v2119_v42, %v2118_v60  ;;  %v2121_v44 = vpop.f32.mrb[18].mxu1  ;;  %v1117_v57 = vpop.xlane.xlu1 %1116 }
 0x2c8   : > { %v2122_v62 = vpop.f32.mrb[19].mxu1  ;;  %2432 = vrcp.f32 %v1117_v57 }
 0x2c9   : > { %v2123_v27 = vadd.f32 %v2122_v62, %v2121_v44  ;;  %v1509_v49 = vmul.f32 %v2407_v46, %v2120_v38  ;;  %2434 = vrcp.f32 %v1120_v6 }
 0x2ca   : > { %v1138_v39 = vpop.xlane.xlu0 %1137 }
 0x2cb   : > { %v1510_v9 = vmul.f32 %v2409_v29, %v2123_v27  ;;  %v2427_v27 = vpop.eup %2426 }
 0x2cd   : > { %v1958_v12 = vpack.c.bf16 %v1510_v9, %v1509_v49  ;;  %v2124_v56 = vpop.f32.mrb[20].mxu1  ;;  %v2429_v49 = vpop.eup %2428 }
 0x2ce   : > { %v2125_v3 = vpop.f32.mrb[21].mxu1 }
 0x2cf   : > { %2018 = vst [vmem:[%s2844_s28 + $0x20] sm:$0xff] %v1958_v12   ;;  %v2126_v52 = vadd.f32 %v2125_v3, %v2124_v56  ;;  %v2127_v58 = vpop.f32.mrb[22].mxu1  ;;  %v1123_v12 = vpop.xlane.xlu1 %1122 }
 0x2d0   : > { %v2128_v5 = vpop.f32.mrb[23].mxu1  ;;  %2436 = vrcp.f32 %v1123_v12 }
 0x2d1   : > { %v2129_v16 = vadd.f32 %v2128_v5, %v2127_v58  ;;  %v1511_v4 = vmul.f32 %v2411_v32, %v2126_v52  ;;  %2438 = vrcp.f32 %v1126_v11 }
 0x2d2   : > { %v1144_v57 = vpop.xlane.xlu0 %1143 }
 0x2d3   : > { %v1512_v7 = vmul.f32 %v2413_v0, %v2129_v16  ;;  %v2431_v16 = vpop.eup %2430 }
 0x2d5   : > { %v1963_v53 = vpack.c.bf16 %v1512_v7, %v1511_v4  ;;  %v2130_v10 = vpop.f32.mrb[24].mxu1  ;;  %v2433_v4 = vpop.eup %2432 }
 0x2d6   : > { %v2131_v37 = vpop.f32.mrb[25].mxu1 }
 0x2d7   : > { %2019 = vst [vmem:[%s2844_s28 + $0x28] sm:$0xff] %v1963_v53   ;;  %v2132_v40 = vadd.f32 %v2131_v37, %v2130_v10  ;;  %v2133_v55 = vpop.f32.mrb[26].mxu1  ;;  %v1129_v53 = vpop.xlane.xlu1 %1128 }
 0x2d8   : > { %v2134_v13 = vpop.f32.mrb[27].mxu1  ;;  %2440 = vrcp.f32 %v1129_v53 }
 0x2d9   : > { %v2135_v43 = vadd.f32 %v2134_v13, %v2133_v55  ;;  %v1513_v18 = vmul.f32 %v2415_v15, %v2132_v40  ;;  %2442 = vrcp.f32 %v1132_v26 }
 0x2db   : > { %v1514_v45 = vmul.f32 %v2417_v14, %v2135_v43  ;;  %v2435_v43 = vpop.eup %2434 }
 0x2dd   : > { %v1968_v23 = vpack.c.bf16 %v1514_v45, %v1513_v18  ;;  %v2136_v28 = vpop.f32.mrb[28].mxu1  ;;  %v2437_v18 = vpop.eup %2436 }
 0x2de   : > { %v2137_v17 = vpop.f32.mrb[29].mxu1 }
 0x2df   : > { %2020 = vst [vmem:[%s2844_s28 + $0x30] sm:$0xff] %v1968_v23   ;;  %v2138_v19 = vadd.f32 %v2137_v17, %v2136_v28  ;;  %v2139_v33 = vpop.f32.mrb[30].mxu1  ;;  %v1135_v23 = vpop.xlane.xlu1 %1134 }
 0x2e0   : > { %v2140_v36 = vpop.f32.mrb[31].mxu1  ;;  %2444 = vrcp.f32 %v1135_v23 }
 0x2e1   : > { %v2141_v22 = vadd.f32 %v2140_v36, %v2139_v33  ;;  %v1515_v59 = vmul.f32 %v2419_v48, %v2138_v19  ;;  %2446 = vrcp.f32 %v1138_v39 }
 0x2e3   : > { %v1516_v61 = vmul.f32 %v2421_v25, %v2141_v22  ;;  %v2439_v22 = vpop.eup %2438 }
 0x2e5   : > { %v1973_v63 = vpack.c.bf16 %v1516_v61, %v1515_v59  ;;  %v2142_v1 = vpop.f32.mrb[32].mxu1  ;;  %v2441_v59 = vpop.eup %2440 }
 0x2e6   : > { %v2143_v41 = vpop.f32.mrb[33].mxu1 }
 0x2e7   : > { %2021 = vst [vmem:[%s2844_s28 + $0x38] sm:$0xff] %v1973_v63   ;;  %v2144_v47 = vadd.f32 %v2143_v41, %v2142_v1  ;;  %v2145_v50 = vpop.f32.mrb[34].mxu1  ;;  %v1141_v63 = vpop.xlane.xlu1 %1140 }
 0x2e8   : > { %v2146_v54 = vpop.f32.mrb[35].mxu1  ;;  %2448 = vrcp.f32 %v1141_v63 }
 0x2e9   : > { %v2147_v21 = vadd.f32 %v2146_v54, %v2145_v50  ;;  %v1517_v31 = vmul.f32 %v2423_v30, %v2144_v47  ;;  %2450 = vrcp.f32 %v1144_v57 }
 0x2eb   : > { %v1518_v2 = vmul.f32 %v2425_v24, %v2147_v21  ;;  %v2443_v21 = vpop.eup %2442 }
 0x2ed   : > { %v1978_v60 = vpack.c.bf16 %v1518_v2, %v1517_v31  ;;  %v2148_v42 = vpop.f32.mrb[36].mxu1  ;;  %v2445_v31 = vpop.eup %2444 }
 0x2ee   : > { %v2149_v38 = vpop.f32.mrb[37].mxu1 }
 0x2ef   : > { %2022 = vst [vmem:[%s2844_s28 + $0x40] sm:$0xff] %v1978_v60   ;;  %v2150_v44 = vadd.f32 %v2149_v38, %v2148_v42  ;;  %v2151_v62 = vpop.f32.mrb[38].mxu1  ;;  %v1147_v60 = vpop.xlane.xlu1 %1146 }
 0x2f0   : > { %v2152_v46 = vpop.f32.mrb[39].mxu1  ;;  %2452 = vrcp.f32 %v1147_v60 }
 0x2f1   : > { %v2153_v29 = vadd.f32 %v2152_v46, %v2151_v62  ;;  %v1519_v9 = vmul.f32 %v2427_v27, %v2150_v44 }
 0x2f3   : > { %v1520_v51 = vmul.f32 %v2429_v49, %v2153_v29  ;;  %v2447_v29 = vpop.eup %2446 }
 0x2f5   : > { %v1983_v56 = vpack.c.bf16 %v1520_v51, %v1519_v9  ;;  %v2154_v3 = vpop.f32.mrb[40].mxu1  ;;  %v2449_v9 = vpop.eup %2448 }
 0x2f6   : > { %v2155_v52 = vpop.f32.mrb[41].mxu1 }
 0x2f7   : > { %2023 = vst [vmem:[%s2844_s28 + $0x48] sm:$0xff] %v1983_v56   ;;  %v2156_v58 = vadd.f32 %v2155_v52, %v2154_v3  ;;  %v2157_v5 = vpop.f32.mrb[42].mxu1 }
 0x2f8   : > { %v2158_v32 = vpop.f32.mrb[43].mxu1 }
 0x2f9   : > { %v2159_v0 = vadd.f32 %v2158_v32, %v2157_v5  ;;  %v1521_v7 = vmul.f32 %v2431_v16, %v2156_v58  ;;  %v2451_v32 = vpop.eup %2450 }
 0x2fb   : > { %v1522_v8 = vmul.f32 %v2433_v4, %v2159_v0  ;;  %v2453_v0 = vpop.eup %2452 }
 0x2fd   : > { %v1988_v10 = vpack.c.bf16 %v1522_v8, %v1521_v7  ;;  %v2160_v37 = vpop.f32.mrb[44].mxu1 }
 0x2fe   : > { %v2161_v40 = vpop.f32.mrb[45].mxu1 }
 0x2ff   : > { %2024 = vst [vmem:[%s2844_s28 + $0x50] sm:$0xff] %v1988_v10   ;;  %v2162_v55 = vadd.f32 %v2161_v40, %v2160_v37  ;;  %v2163_v13 = vpop.f32.mrb[46].mxu1 }
 0x300   : > { %v2164_v15 = vpop.f32.mrb[47].mxu1 }
 0x301   : > { %v2165_v14 = vadd.f32 %v2164_v15, %v2163_v13  ;;  %v1523_v45 = vmul.f32 %v2435_v43, %v2162_v55 }
 0x303   : > { %v1524_v20 = vmul.f32 %v2437_v18, %v2165_v14 }
 0x305   : > { %v1993_v28 = vpack.c.bf16 %v1524_v20, %v1523_v45  ;;  %v2166_v17 = vpop.f32.mrb[48].mxu1 }
 0x306   : > { %v2167_v19 = vpop.f32.mrb[49].mxu1 }
 0x307   : > { %2025 = vst [vmem:[%s2844_s28 + $0x58] sm:$0xff] %v1993_v28   ;;  %v2168_v33 = vadd.f32 %v2167_v19, %v2166_v17  ;;  %v2169_v36 = vpop.f32.mrb[50].mxu1 }
 0x308   : > { %v2170_v48 = vpop.f32.mrb[51].mxu1 }
 0x309   : > { %v2171_v25 = vadd.f32 %v2170_v48, %v2169_v36  ;;  %v1525_v61 = vmul.f32 %v2439_v22, %v2168_v33 }
 0x30b   : > { %v1526_v35 = vmul.f32 %v2441_v59, %v2171_v25 }
 0x30d   : > { %v1998_v1 = vpack.c.bf16 %v1526_v35, %v1525_v61  ;;  %v2172_v41 = vpop.f32.mrb[52].mxu1 }
 0x30e   : > { %v2173_v47 = vpop.f32.mrb[53].mxu1 }
 0x30f   : > { %2026 = vst [vmem:[%s2844_s28 + $0x60] sm:$0xff] %v1998_v1   ;;  %v2174_v50 = vadd.f32 %v2173_v47, %v2172_v41  ;;  %v2175_v54 = vpop.f32.mrb[54].mxu1 }
 0x310   : > { %v2176_v30 = vpop.f32.mrb[55].mxu1 }
 0x311   : > { %v2177_v24 = vadd.f32 %v2176_v30, %v2175_v54  ;;  %v1527_v2 = vmul.f32 %v2443_v21, %v2174_v50 }
 0x313   : > { %v1528_v34 = vmul.f32 %v2445_v31, %v2177_v24 }
 0x315   : > { %v2003_v42 = vpack.c.bf16 %v1528_v34, %v1527_v2  ;;  %v2178_v38 = vpop.f32.mrb[56].mxu1 }
 0x316   : > { %v2179_v44 = vpop.f32.mrb[57].mxu1 }
 0x317   : > { %2027 = vst [vmem:[%s2844_s28 + $0x68] sm:$0xff] %v2003_v42   ;;  %v2180_v62 = vadd.f32 %v2179_v44, %v2178_v38  ;;  %v2181_v46 = vpop.f32.mrb[58].mxu1 }
 0x318   : > { %v2182_v27 = vpop.f32.mrb[59].mxu1 }
 0x319   : > { %v2183_v49 = vadd.f32 %v2182_v27, %v2181_v46  ;;  %v1529_v51 = vmul.f32 %v2447_v29, %v2180_v62 }
 0x31b   : > { %v1530_v6 = vmul.f32 %v2449_v9, %v2183_v49 }
 0x31d   : > { %v2008_v12 = vpack.c.bf16 %v1530_v6, %v1529_v51  ;;  %v2184_v56 = vpop.f32.mrb[60].mxu1 }
 0x31e   : > { %v2185_v3 = vpop.f32.mrb[61].mxu1 }
 0x31f   : > { %2028 = vst [vmem:[%s2844_s28 + $0x70] sm:$0xff] %v2008_v12   ;;  %v2186_v52 = vadd.f32 %v2185_v3, %v2184_v56  ;;  %v2187_v58 = vpop.f32.mrb[62].mxu1 }
 0x320   : > { %v2188_v5 = vpop.f32.mrb[63].mxu1 }
 0x321   : > { %v2189_v16 = vadd.f32 %v2188_v5, %v2187_v58  ;;  %v1531_v4 = vmul.f32 %v2451_v32, %v2186_v52 }
 0x323   : > { %v1532_v7 = vmul.f32 %v2453_v0, %v2189_v16 }
 0x325   : > { %v2013_v8 = vpack.c.bf16 %v1532_v7, %v1531_v4 }
 0x327   : > { %2029 = vst [vmem:[%s2844_s28 + $0x78] sm:$0xff] %v2013_v8  }
 0x328 PF: > { %s13_s14 = sadd.s32 1, %s2476_s14   ;;  %s2914_s12 = smov %s2472_s13 }
 0x329   : > { %p10_p5 = scmp.ge.s32.totalorder %s13_s14, 4   ;;  %s2915_s13 = smov %s2917_s15 }
 0x32b   :  { %12 = sbr.rel (!%p10_p5) target bundleno = 2 (0x2), region = 68 }

// kernel: hybrid_encoder_forward.26
= control target key start
LH: loop header
LB: loop body
LE: loop exit
PB: predicated region body
PF: predicated region fallthrough
CT: control target
= control target key end

     0   :  { %s1964_s21 = smov 0   ;;  %s2621_s0 = inlined_call_operand.vmem [shape: bf16[512,128], index: 0, kind: input, shape index: {}]   ;;  %s2622_s1 = inlined_call_operand.vmem [shape: bf16[128,128], index: 1, kind: input, shape index: {}]   ;;  %s2623_s2 = inlined_call_operand.vmem [shape: f32[1,128], index: 2, kind: input, shape index: {}]   ;;  %s2624_s3 = inlined_call_operand.vmem [shape: bf16[512,128], index: 3, kind: input, shape index: {}]   ;;  %s2625_s4 = inlined_call_operand.vmem [shape: f32[1,128], index: 4, kind: input, shape index: {}]   ;;  %s2626_s5 = inlined_call_operand.vmem [shape: f32[1,128], index: 5, kind: input, shape index: {}]   ;;  %s2627_s6 = inlined_call_operand.vmem [shape: bf16[512,128], index: 6, kind: output, shape index: {}]  }
   0x1 LB: > { %s1459_s22 = sadd.s32 4294967295, %s1927_s21   ;;  %p1463_p0 = scmp.ge.s32.totalorder %s1927_s21, 1  ;;  %s1927_s21 = sphi %s1964_s21, %s16_s21  }
   0x2   : > { %p224_p1 = scmp.lt.s32.totalorder %s1927_s21, 3 }
   0x4   : > { %p225_p2 = pnand %p1463_p0, %p224_p1 }
   0x5   : > { %v1833_v0 = vld [vmem:[%s2622_s1] sm:$0xff] (!%p225_p2)   ;;  %s1464_s25 = sshll.u32 (!%p225_p2), %s1459_s22, 5  ;;  %v1834_v1 = vld [vmem:[%s2622_s1 + $0x8] sm:$0xff] (!%p225_p2)   ;;  %v1835_v2 = vld [vmem:[%s2622_s1 + $0x10] sm:$0xff] (!%p225_p2)   ;;  %v736_v24 = vlaneseq (!%p225_p2) }
   0x6   : > { %228 = sbr.rel (%p225_p2) target bundleno = 634 (0x27a), region = 44  ;;  %p260_p3 = scmp.lt.s32.totalorder (!%p225_p2), %s1464_s25, 63  ;;  %1761 = vmatprep.subr.bf16.mxu0 (!%p225_p2), %v1833_v0  ;;  %1809 = vmatprep.subr.bf16.mxu1 (!%p225_p2), %v1833_v0  ;;  %v1836_v3 = vld [vmem:[%s2622_s1 + $0x18] sm:$0xff] (!%p225_p2)   ;;  %v1837_v6 = vld [vmem:[%s2622_s1 + $0x20] sm:$0xff] (!%p225_p2)   ;;  %v1838_v7 = vld [vmem:[%s2622_s1 + $0x28] sm:$0xff] (!%p225_p2)  }
   0x7   : > { %1762 = vmatpush3.bf16.msra.mxu0 (!%p225_p2), %v1833_v0  ;;  %1817 = vmatpush3.bf16.msra.mxu1 (!%p225_p2), %v1833_v0  ;;  %v1839_v8 = vld [vmem:[%s2622_s1 + $0x30] sm:$0xff] (!%p225_p2)   ;;  %v1840_v9 = vld [vmem:[%s2622_s1 + $0x38] sm:$0xff] (!%p225_p2)   ;;  %v2031_v27 = vld [vmem:[%s2623_s2] ss:$0 sm:$0xff] (!%p225_p2)  ;;  %v2033_v28 = vand.u32 (!%p225_p2), 127, %v736_v24 }
   0x8   : > { %1763 = vmatprep.subr.bf16.mxu0 (!%p225_p2), %v1834_v1  ;;  %1810 = vmatprep.subr.bf16.mxu1 (!%p225_p2), %v1834_v1 }
   0x9   : > { %vm738_vm0 = vcmp.lt.s32.totalorder (!%p225_p2), %v2033_v28, 32 }
   0xb   : > { %1764 = vmatpush3.bf16.msra.mxu0 (!%p225_p2), %v1834_v1  ;;  %1818 = vmatpush3.bf16.msra.mxu1 (!%p225_p2), %v1834_v1 }
   0xc   : > { %1765 = vmatprep.subr.bf16.mxu0 (!%p225_p2), %v1835_v2  ;;  %1811 = vmatprep.subr.bf16.mxu1 (!%p225_p2), %v1835_v2 }
   0xd   : > { %s2629_s25 = smov (!%p260_p3, %s1464_s25), 63 }
   0xe   : > { %s1981_s30 = sshll.u32 %s2629_s25, 2 }
   0xf   : > { %s1987_s9 = scalar_lea.vmem %s2621_s0, %s1981_s30  ;;  %1766 = vmatpush3.bf16.msra.mxu0 %v1835_v2  ;;  %1819 = vmatpush3.bf16.msra.mxu1 %v1835_v2  ;;  %s2024_s23 = scalar_lea.vmem %s2624_s3, %s1981_s30 }
  0x10   : > { %v1841_v4 = vld [vmem:[%s1987_s9] sm:$0xff]   ;;  %1767 = vmatprep.subr.bf16.mxu0 %v1836_v3  ;;  %1812 = vmatprep.subr.bf16.mxu1 %v1836_v3  ;;  %v1843_v10 = vld [vmem:[%s1987_s9 + $0x8] sm:$0xff]   ;;  %v1845_v12 = vld [vmem:[%s1987_s9 + $0x10] sm:$0xff]  }
  0x11   : > { %v1842_v5 = vld [vmem:[%s1987_s9 + $0x40] sm:$0xff]   ;;  %1777 = vmatprep.mubr.bf16.mxu0 %v1841_v4  ;;  %v1844_v11 = vld [vmem:[%s1987_s9 + $0x48] sm:$0xff]   ;;  %v1847_v13 = vld [vmem:[%s1987_s9 + $0x50] sm:$0xff]  }
  0x12   : > { %1793 = vmatprep.mubr.bf16.mxu1 %v1842_v5  ;;  %v1846_v14 = vld [vmem:[%s1987_s9 + $0x18] sm:$0xff]   ;;  %v1849_v16 = vld [vmem:[%s1987_s9 + $0x20] sm:$0xff]   ;;  %v1850_v18 = vld [vmem:[%s1987_s9 + $0x28] sm:$0xff]  }
  0x13   : > { %1768 = vmatpush3.bf16.msra.mxu0 %v1836_v3  ;;  %1820 = vmatpush3.bf16.msra.mxu1 %v1836_v3  ;;  %v1848_v15 = vld [vmem:[%s1987_s9 + $0x58] sm:$0xff]   ;;  %v1851_v17 = vld [vmem:[%s1987_s9 + $0x60] sm:$0xff]   ;;  %v1852_v19 = vld [vmem:[%s1987_s9 + $0x68] sm:$0xff]  }
  0x14   : > { %1769 = vmatprep.subr.bf16.mxu0 %v1837_v6  ;;  %1813 = vmatprep.subr.bf16.mxu1 %v1837_v6  ;;  %v1853_v20 = vld [vmem:[%s1987_s9 + $0x30] sm:$0xff]   ;;  %v1854_v22 = vld [vmem:[%s1987_s9 + $0x38] sm:$0xff]   ;;  %v1715_v25 = vld [vmem:[%s2024_s23 + $0x48] sm:$0xff]  }
  0x15   : > { %v1855_v21 = vld [vmem:[%s1987_s9 + $0x70] sm:$0xff]   ;;  %v1856_v23 = vld [vmem:[%s1987_s9 + $0x78] sm:$0xff]   ;;  %v1707_v26 = vld [vmem:[%s2024_s23 + $0x8] sm:$0xff]   ;;  %v1601_v30 = vunpack.c.l.bf16 %v1715_v25  ;;  %v1602_v51 = vunpack.c.h.bf16 %v1715_v25  ;;  %s2513_s9 = scalar_lea.vmem %s2627_s6, %s1981_s30 }
  0x16   : > { %v1564_v29 = vld [vmem:[%s2024_s23] sm:$0xff]   ;;  %v1569_v31 = vunpack.c.l.bf16 %v1707_v26  ;;  %v1570_v38 = vunpack.c.h.bf16 %v1707_v26  ;;  %v1709_v63 = vld [vmem:[%s2024_s23 + $0x18] sm:$0xff]  }
  0x17   : > { %1770 = vmatpush3.bf16.msra.mxu0 %v1837_v6  ;;  %1821 = vmatpush3.bf16.msra.mxu1 %v1837_v6  ;;  %v1565_v39 = vunpack.c.l.bf16 %v1564_v29  ;;  %v1714_v40 = vld [vmem:[%s2024_s23 + $0x40] sm:$0xff]   ;;  %v1566_v62 = vunpack.c.h.bf16 %v1564_v29 }
  0x18   : > { %1771 = vmatprep.subr.bf16.mxu0 %v1838_v7  ;;  %1814 = vmatprep.subr.bf16.mxu1 %v1838_v7  ;;  %v1597_v52 = vunpack.c.l.bf16 %v1714_v40  ;;  %v1598_v61 = vunpack.c.h.bf16 %v1714_v40 }
  0x1b   : > { %1772 = vmatpush3.bf16.msra.mxu0 %v1838_v7  ;;  %1822 = vmatpush3.bf16.msra.mxu1 %v1838_v7 }
  0x1c   : > { %1773 = vmatprep.subr.bf16.mxu0 %v1839_v8  ;;  %1815 = vmatprep.subr.bf16.mxu1 %v1839_v8 }
  0x1f   : > { %1774 = vmatpush3.bf16.msra.mxu0 %v1839_v8  ;;  %1823 = vmatpush3.bf16.msra.mxu1 %v1839_v8 }
  0x20   : > { %1775 = vmatprep.subr.bf16.mxu0 %v1840_v9  ;;  %1816 = vmatprep.subr.bf16.mxu1 %v1840_v9 }
  0x23   : > { %1776 = vmatpush3.bf16.msra.mxu0 %v1840_v9  ;;  %1824 = vmatpush3.bf16.msra.mxu1 %v1840_v9 }
  0x26   : > { %1778 = vmatmul.mubr.bf16.vlgmr.msra.gmra.mrb[0].mxu0 %v1843_v10  ;;  %1794 = vmatmul.mubr.bf16.vlgmr.msra.gmra.mrb[0].mxu1 %v1844_v11 }
  0x27   : > { %1781 = vmatprep.mubr.bf16.mxu0 %v1845_v12  ;;  %1797 = vmatprep.mubr.bf16.mxu1 %v1847_v13  ;;  %v1578_v12 = vunpack.c.h.bf16 %v1709_v63  ;;  %v1577_v13 = vunpack.c.l.bf16 %v1709_v63 }
  0x2e   : > { %1782 = vmatmul.mubr.bf16.gmra.mrb[4].mxu0 %v1846_v14  ;;  %1798 = vmatmul.mubr.bf16.gmra.mrb[4].mxu1 %v1848_v15  ;;  %v1717_v14 = vld [vmem:[%s2024_s23 + $0x58] sm:$0xff]  }
  0x2f   : > { %1785 = vmatprep.mubr.bf16.mxu0 %v1849_v16  ;;  %1801 = vmatprep.mubr.bf16.mxu1 %v1851_v17 }
  0x36   : > { %1786 = vmatmul.mubr.bf16.gmra.mrb[8].mxu0 %v1850_v18  ;;  %1802 = vmatmul.mubr.bf16.gmra.mrb[8].mxu1 %v1852_v19  ;;  %v1610_v19 = vunpack.c.h.bf16 %v1717_v14 }
  0x37   : > { %1789 = vmatprep.mubr.bf16.mxu0 %v1853_v20  ;;  %1805 = vmatprep.mubr.bf16.mxu1 %v1855_v21  ;;  %v1609_v20 = vunpack.c.l.bf16 %v1717_v14 }
  0x3e   : > { %1790 = vmatmul.mubr.bf16.gmra.mrb[12].mxu0 %v1854_v22  ;;  %1806 = vmatmul.mubr.bf16.gmra.mrb[12].mxu1 %v1856_v23 }
  0xf9   : > { %v1779_v32 = vpop.f32.mrb[0].mxu0  ;;  %v1795_v33 = vpop.f32.mrb[0].mxu1 }
  0xfa   : > { %v520_v34 = vadd.f32 %v1779_v32, %v2031_v27  ;;  %v584_v35 = vadd.f32 %v1795_v33, %v2031_v27  ;;  %v511_v36 = vpop.f32.mrb[1].mxu0  ;;  %v575_v37 = vpop.f32.mrb[1].mxu1  ;;  %v1708_v33 = vld [vmem:[%s2024_s23 + $0x10] sm:$0xff]  }
  0xfb   : > { %v512_v41 = vadd.f32 %v2031_v27, %v511_v36  ;;  %v1780_v42 = vpop.f32.mrb[2].mxu0  ;;  %v1796_v43 = vpop.f32.mrb[2].mxu1  ;;  %v576_v49 = vadd.f32 %v2031_v27, %v575_v37 }
  0xfc   : > { %v523_v44 = vadd.f32 %v1780_v42, %v2031_v27  ;;  %v514_v45 = vpop.f32.mrb[3].mxu0  ;;  %v578_v46 = vpop.f32.mrb[3].mxu1  ;;  %v2042_v47 = vadd.f32 %v1601_v30, %v584_v35  ;;  %v2044_v48 = vadd.f32 %v1569_v31, %v520_v34  ;;  %v587_v50 = vadd.f32 %v1796_v43, %v2031_v27 }
  0xfd   : > { %v2056_v56 = vadd.f32 %v1565_v39, %v512_v41  ;;  %v515_v57 = vadd.f32 %v2031_v27, %v514_v45  ;;  %v579_v58 = vadd.f32 %v2031_v27, %v578_v46  ;;  %v2069_v3 = vadd.f32 %v1597_v52, %v576_v49  ;;  %v1716_v46 = vld [vmem:[%s2024_s23 + $0x50] sm:$0xff]  }
  0xfe   : > { %v757_v53 = vsel %vm738_vm0, %v2042_v47, 0.0  ;;  %v741_v54 = vsel %vm738_vm0, %v2044_v48, 0.0  ;;  %v2054_v55 = vadd.f32 %v1570_v38, %v523_v44  ;;  %v2067_v2 = vadd.f32 %v1602_v51, %v587_v50 }
  0xff   : > { %807 = vadd.xlane.f32.xlu0 %v757_v53  ;;  %775 = vadd.xlane.f32.xlu1 %v741_v54  ;;  %v739_v1 = vsel %vm738_vm0, %v2056_v56, 0.0  ;;  %v755_v16 = vsel %vm738_vm0, %v2069_v3, 0.0  ;;  %v2080_v17 = vadd.f32 %v1598_v61, %v579_v58  ;;  %v2082_v18 = vadd.f32 %v1566_v62, %v515_v57  ;;  %v1711_v53 = vld [vmem:[%s2024_s23 + $0x28] sm:$0xff]  }
 0x100   : > { %v742_v0 = vsel %vm738_vm0, %v2054_v55, 0.0  ;;  %v758_v15 = vsel %vm738_vm0, %v2067_v2, 0.0  ;;  %v1574_v44 = vunpack.c.h.bf16 %v1708_v33  ;;  %v1573_v45 = vunpack.c.l.bf16 %v1708_v33 }
 0x101   : > { %v1783_v59 = vpop.f32.mrb[4].mxu0  ;;  %v1799_v60 = vpop.f32.mrb[4].mxu1  ;;  %v756_v29 = vsel %vm738_vm0, %v2080_v17, 0.0  ;;  %v740_v30 = vsel %vm738_vm0, %v2082_v18, 0.0  ;;  %v1606_v51 = vunpack.c.h.bf16 %v1716_v46  ;;  %v1605_v52 = vunpack.c.l.bf16 %v1716_v46 }
 0x102   : > { %v527_v4 = vpop.f32.mrb[5].mxu0  ;;  %v591_v5 = vpop.f32.mrb[5].mxu1  ;;  %v536_v8 = vadd.f32 %v1783_v59, %v2031_v27  ;;  %v600_v21 = vadd.f32 %v1799_v60, %v2031_v27 }
 0x103   : > { %777 = vadd.xlane.f32.xlu1 %v742_v0  ;;  %771 = vadd.xlane.f32.xlu0 %v739_v1  ;;  %v1784_v6 = vpop.f32.mrb[6].mxu0  ;;  %v1800_v7 = vpop.f32.mrb[6].mxu1  ;;  %v528_v42 = vadd.f32 %v2031_v27, %v527_v4  ;;  %v592_v58 = vadd.f32 %v2031_v27, %v591_v5  ;;  %v1586_v5 = vunpack.c.h.bf16 %v1711_v53 }
 0x104   : > { %v539_v9 = vadd.f32 %v1784_v6, %v2031_v27  ;;  %v530_v10 = vpop.f32.mrb[7].mxu0  ;;  %v594_v11 = vpop.f32.mrb[7].mxu1  ;;  %v603_v22 = vadd.f32 %v1800_v7, %v2031_v27  ;;  %v2088_v24 = vadd.f32 %v1577_v13, %v536_v8  ;;  %v2109_v39 = vadd.f32 %v1609_v20, %v600_v21  ;;  %v1719_v8 = vld [vmem:[%s2024_s23 + $0x68] sm:$0xff]  }
 0x105   : > { %v531_v43 = vadd.f32 %v2031_v27, %v530_v10  ;;  %v595_v59 = vadd.f32 %v2031_v27, %v594_v11  ;;  %v2129_v61 = vadd.f32 %v1573_v45, %v528_v42  ;;  %v1585_v7 = vunpack.c.l.bf16 %v1711_v53 }
 0x106   : > { %v2086_v23 = vadd.f32 %v1578_v12, %v539_v9  ;;  %v745_v37 = vsel %vm738_vm0, %v2088_v24, 0.0  ;;  %v2107_v38 = vadd.f32 %v1610_v19, %v603_v22  ;;  %v761_v50 = vsel %vm738_vm0, %v2109_v39, 0.0 }
 0x107   : > { %809 = vadd.xlane.f32.xlu1 %v758_v15  ;;  %803 = vadd.xlane.f32.xlu0 %v755_v16  ;;  %v2127_v60 = vadd.f32 %v1574_v44, %v531_v43  ;;  %v743_v12 = vsel %vm738_vm0, %v2129_v61, 0.0  ;;  %v2148_v13 = vadd.f32 %v1606_v51, %v595_v59  ;;  %v2150_v14 = vadd.f32 %v1605_v52, %v592_v58  ;;  %v1718_v44 = vld [vmem:[%s2024_s23 + $0x60] sm:$0xff]   ;;  %v1713_v51 = vld [vmem:[%s2024_s23 + $0x38] sm:$0xff]  }
 0x108   : > { %v746_v36 = vsel %vm738_vm0, %v2086_v23, 0.0  ;;  %v762_v49 = vsel %vm738_vm0, %v2107_v38, 0.0  ;;  %v1618_v15 = vunpack.c.h.bf16 %v1719_v8  ;;  %v1617_v16 = vunpack.c.l.bf16 %v1719_v8  ;;  %v1712_v8 = vld [vmem:[%s2024_s23 + $0x30] sm:$0xff]  }
 0x109   : > { %v1787_v25 = vpop.f32.mrb[8].mxu0  ;;  %v1803_v26 = vpop.f32.mrb[8].mxu1  ;;  %v744_v11 = vsel %vm738_vm0, %v2127_v60, 0.0 }
 0x10a   : > { %v2096_v31 = vpop.f32.mrb[9].mxu0  ;;  %v2098_v32 = vpop.f32.mrb[9].mxu1  ;;  %v552_v4 = vadd.f32 %v1787_v25, %v2031_v27  ;;  %v616_v19 = vadd.f32 %v1803_v26, %v2031_v27  ;;  %v760_v25 = vsel %vm738_vm0, %v2148_v13, 0.0 }
 0x10b   : > { %805 = vadd.xlane.f32.xlu1 %v756_v29  ;;  %773 = vadd.xlane.f32.xlu0 %v740_v30  ;;  %v1788_v34 = vpop.f32.mrb[10].mxu0  ;;  %v1804_v35 = vpop.f32.mrb[10].mxu1  ;;  %v759_v29 = vsel %vm738_vm0, %v2150_v14, 0.0  ;;  %v1710_v30 = vld [vmem:[%s2024_s23 + $0x20] sm:$0xff]  }
 0x10c   : > { %v546_v40 = vpop.f32.mrb[11].mxu0  ;;  %v2111_v41 = vpop.f32.mrb[11].mxu1  ;;  %v555_v6 = vadd.f32 %v1788_v34, %v2031_v27  ;;  %v619_v20 = vadd.f32 %v1804_v35, %v2031_v27  ;;  %v2156_v22 = vadd.f32 %v1585_v7, %v552_v4  ;;  %v2173_v35 = vadd.f32 %v1617_v16, %v616_v19 }
 0x10d   : > { %v1582_v42 = vunpack.c.h.bf16 %v1710_v30  ;;  %v1581_v43 = vunpack.c.l.bf16 %v1710_v30  ;;  %v1594_v4 = vunpack.c.h.bf16 %v1713_v51 }
 0x10e   : > { %v2154_v21 = vadd.f32 %v1586_v5, %v555_v6  ;;  %v749_v33 = vsel %vm738_vm0, %v2156_v22, 0.0  ;;  %v2171_v34 = vadd.f32 %v1618_v15, %v619_v20  ;;  %v765_v46 = vsel %vm738_vm0, %v2173_v35, 0.0 }
 0x10f   : > { %785 = vadd.xlane.f32.xlu1 %v746_v36  ;;  %783 = vadd.xlane.f32.xlu0 %v745_v37  ;;  %v544_v36 = vadd.f32 %v2031_v27, %v2096_v31  ;;  %v547_v37 = vadd.f32 %v2031_v27, %v546_v40  ;;  %v608_v31 = vadd.f32 %v2031_v27, %v2098_v32  ;;  %v1593_v6 = vunpack.c.l.bf16 %v1713_v51 }
 0x110   : > { %v750_v26 = vsel %vm738_vm0, %v2154_v21, 0.0  ;;  %v766_v45 = vsel %vm738_vm0, %v2171_v34, 0.0  ;;  %v611_v40 = vadd.f32 %v2031_v27, %v2111_v41  ;;  %v1589_v15 = vunpack.c.l.bf16 %v1712_v8 }
 0x111   : > { %v1791_v54 = vpop.f32.mrb[12].mxu0  ;;  %v2123_v57 = vpop.f32.mrb[12].mxu1  ;;  %v2190_v52 = vadd.f32 %v1582_v42, %v547_v37  ;;  %v2192_v53 = vadd.f32 %v1581_v43, %v544_v36  ;;  %v1721_v42 = vld [vmem:[%s2024_s23 + $0x78] sm:$0xff]  }
 0x112   : > { %v2131_v62 = vpop.f32.mrb[13].mxu0  ;;  %v2133_v63 = vpop.f32.mrb[13].mxu1  ;;  %v568_v58 = vadd.f32 %v1791_v54, %v2031_v27 }
 0x113   : > { %817 = vadd.xlane.f32.xlu1 %v762_v49  ;;  %815 = vadd.xlane.f32.xlu0 %v761_v50  ;;  %v1792_v0 = vpop.f32.mrb[14].mxu0  ;;  %v2135_v1 = vpop.f32.mrb[14].mxu1  ;;  %v1614_v49 = vunpack.c.h.bf16 %v1718_v44  ;;  %v1613_v50 = vunpack.c.l.bf16 %v1718_v44  ;;  %v748_v32 = vsel %vm738_vm0, %v2190_v52, 0.0  ;;  %v747_v41 = vsel %vm738_vm0, %v2192_v53, 0.0 }
 0x114   : > { %v562_v9 = vpop.f32.mrb[15].mxu0  ;;  %v2140_v10 = vpop.f32.mrb[15].mxu1  ;;  %v571_v59 = vadd.f32 %v1792_v0, %v2031_v27  ;;  %v2209_v0 = vadd.f32 %v1593_v6, %v568_v58  ;;  %v560_v16 = vadd.f32 %v2031_v27, %v2131_v62  ;;  %v1626_v44 = vunpack.c.h.bf16 %v1721_v42 }
 0x115   : > { %v2202_v5 = vadd.f32 %v1614_v49, %v611_v40  ;;  %v2204_v7 = vadd.f32 %v1613_v50, %v608_v31  ;;  %v563_v19 = vadd.f32 %v2031_v27, %v562_v9  ;;  %v635_v49 = vadd.f32 %v2135_v1, %v2031_v27 }
 0x116   : > { %v2207_v54 = vadd.f32 %v1594_v4, %v571_v59  ;;  %v753_v9 = vsel %vm738_vm0, %v2209_v0, 0.0  ;;  %v2233_v37 = vadd.f32 %v1589_v15, %v560_v16 }
 0x117   : > { %781 = vadd.xlane.f32.xlu1 %v744_v11  ;;  %779 = vadd.xlane.f32.xlu0 %v743_v12  ;;  %v1720_v11 = vld [vmem:[%s2024_s23 + $0x70] sm:$0xff]   ;;  %v1590_v12 = vunpack.c.h.bf16 %v1712_v8  ;;  %v764_v20 = vsel %vm738_vm0, %v2202_v5, 0.0  ;;  %v2256_v31 = vadd.f32 %v1626_v44, %v635_v49 }
 0x118   : > { %v1621_v30 = vunpack.c.l.bf16 %v1720_v11  ;;  %v754_v62 = vsel %vm738_vm0, %v2207_v54, 0.0  ;;  %v751_v50 = vsel %vm738_vm0, %v2233_v37, 0.0 }
 0x119   : > { %v2231_v36 = vadd.f32 %v1590_v12, %v563_v19  ;;  %v770_v1 = vsel %vm738_vm0, %v2256_v31, 0.0 }
 0x11b   : > { %813 = vadd.xlane.f32.xlu1 %v760_v25  ;;  %811 = vadd.xlane.f32.xlu0 %v759_v29  ;;  %v763_v25 = vsel %vm738_vm0, %v2204_v7, 0.0  ;;  %v1622_v29 = vunpack.c.h.bf16 %v1720_v11 }
 0x11f   : > { %793 = vadd.xlane.f32.xlu1 %v750_v26  ;;  %791 = vadd.xlane.f32.xlu0 %v749_v33  ;;  %v624_v26 = vadd.f32 %v2031_v27, %v2133_v63  ;;  %v627_v33 = vadd.f32 %v2031_v27, %v2140_v10  ;;  %v752_v10 = vsel %vm738_vm0, %v2231_v36, 0.0 }
 0x121   : > { %v2236_v43 = vadd.f32 %v1622_v29, %v627_v33  ;;  %v2238_v63 = vadd.f32 %v1621_v30, %v624_v26 }
 0x123   : > { %825 = vadd.xlane.f32.xlu1 %v766_v45  ;;  %823 = vadd.xlane.f32.xlu0 %v765_v46  ;;  %v1625_v45 = vunpack.c.l.bf16 %v1721_v42  ;;  %v632_v46 = vadd.f32 %v2123_v57, %v2031_v27  ;;  %v768_v51 = vsel %vm738_vm0, %v2236_v43, 0.0  ;;  %v767_v57 = vsel %vm738_vm0, %v2238_v63, 0.0 }
 0x125   : > { %v2258_v27 = vadd.f32 %v1625_v45, %v632_v46 }
 0x127   : > { %789 = vadd.xlane.f32.xlu1 %v748_v32  ;;  %787 = vadd.xlane.f32.xlu0 %v747_v41  ;;  %v769_v40 = vsel %vm738_vm0, %v2258_v27, 0.0 }
 0x12b   : > { %821 = vadd.xlane.f32.xlu1 %v764_v20  ;;  %819 = vadd.xlane.f32.xlu0 %v763_v25 }
 0x12f   : > { %801 = vadd.xlane.f32.xlu1 %v754_v62  ;;  %799 = vadd.xlane.f32.xlu0 %v753_v9 }
 0x133   : > { %797 = vadd.xlane.f32.xlu1 %v752_v10  ;;  %795 = vadd.xlane.f32.xlu0 %v751_v50 }
 0x137   : > { %829 = vadd.xlane.f32.xlu1 %v768_v51  ;;  %827 = vadd.xlane.f32.xlu0 %v767_v57 }
 0x13b   : > { %833 = vadd.xlane.f32.xlu1 %v770_v1  ;;  %831 = vadd.xlane.f32.xlu0 %v769_v40 }
 0x18c   : > { %v808_v58 = vpop.xlane.xlu0 %807  ;;  %v776_v59 = vpop.xlane.xlu1 %775 }
 0x18d   : > { %v853_v4 = vmul.f32 0.03125, %v808_v58  ;;  %v837_v6 = vmul.f32 0.03125, %v776_v59 }
 0x18f   : > { %v885_v32 = vsub.f32 %v2042_v47, %v853_v4  ;;  %v869_v41 = vsub.f32 %v2044_v48, %v837_v6 }
 0x190   : > { %v778_v8 = vpop.xlane.xlu1 %777  ;;  %v772_v11 = vpop.xlane.xlu0 %771 }
 0x191   : > { %v838_v12 = vmul.f32 0.03125, %v778_v8  ;;  %v835_v15 = vmul.f32 0.03125, %v772_v11  ;;  %v2270_v16 = vsel %vm738_vm0, %v869_v41, 0.0  ;;  %v2278_v47 = vsel %vm738_vm0, %v885_v32, 0.0 }
 0x192   : > { %v933_v19 = vmul.f32 %v2270_v16, %v2270_v16 }
 0x193   : > { %v870_v20 = vsub.f32 %v2054_v55, %v838_v12  ;;  %v867_v25 = vsub.f32 %v2056_v56, %v835_v15  ;;  %v949_v55 = vmul.f32 %v2278_v47, %v2278_v47 }
 0x194   : > { %v810_v48 = vpop.xlane.xlu1 %809  ;;  %967 = vadd.xlane.f32.xlu0 %v933_v19  ;;  %v804_v29 = vpop.xlane.xlu0 %803 }
 0x195   : > { %v854_v30 = vmul.f32 0.03125, %v810_v48  ;;  %v851_v26 = vmul.f32 0.03125, %v804_v29  ;;  %v2282_v62 = vsel %vm738_vm0, %v870_v20, 0.0  ;;  %v2292_v42 = vsel %vm738_vm0, %v867_v25, 0.0 }
 0x196   : > { %v934_v9 = vmul.f32 %v2282_v62, %v2282_v62 }
 0x197   : > { %v886_v56 = vsub.f32 %v2067_v2, %v854_v30  ;;  %v883_v33 = vsub.f32 %v2069_v3, %v851_v26  ;;  %v931_v2 = vmul.f32 %v2292_v42, %v2292_v42 }
 0x198   : > { %v806_v44 = vpop.xlane.xlu1 %805  ;;  %969 = vadd.xlane.f32.xlu1 %v934_v9  ;;  %999 = vadd.xlane.f32.xlu0 %v949_v55  ;;  %v774_v45 = vpop.xlane.xlu0 %773 }
 0x199   : > { %v852_v46 = vmul.f32 0.03125, %v806_v44  ;;  %v836_v49 = vmul.f32 0.03125, %v774_v45  ;;  %v2296_v10 = vsel %vm738_vm0, %v886_v56, 0.0  ;;  %v2306_v57 = vsel %vm738_vm0, %v883_v33, 0.0 }
 0x19a   : > { %v950_v50 = vmul.f32 %v2296_v10, %v2296_v10  ;;  %v947_v6 = vmul.f32 %v2306_v57, %v2306_v57 }
 0x19b   : > { %v884_v3 = vsub.f32 %v2080_v17, %v852_v46  ;;  %v868_v51 = vsub.f32 %v2082_v18, %v836_v49 }
 0x19c   : > { %v786_v1 = vpop.xlane.xlu1 %785  ;;  %1001 = vadd.xlane.f32.xlu1 %v950_v50  ;;  %963 = vadd.xlane.f32.xlu0 %v931_v2  ;;  %v784_v40 = vpop.xlane.xlu0 %783 }
 0x19d   : > { %v842_v58 = vmul.f32 0.03125, %v786_v1  ;;  %v841_v59 = vmul.f32 0.03125, %v784_v40  ;;  %v2310_v4 = vsel %vm738_vm0, %v868_v51, 0.0  ;;  %v2320_v41 = vsel %vm738_vm0, %v884_v3, 0.0 }
 0x19e   : > { %v932_v17 = vmul.f32 %v2310_v4, %v2310_v4  ;;  %v948_v20 = vmul.f32 %v2320_v41, %v2320_v41 }
 0x19f   : > { %v874_v18 = vsub.f32 %v2086_v23, %v842_v58  ;;  %v873_v32 = vsub.f32 %v2088_v24, %v841_v59 }
 0x1a0   : > { %v818_v8 = vpop.xlane.xlu1 %817  ;;  %995 = vadd.xlane.f32.xlu0 %v947_v6  ;;  %965 = vadd.xlane.f32.xlu1 %v932_v17  ;;  %v816_v11 = vpop.xlane.xlu0 %815 }
 0x1a1   : > { %v858_v12 = vmul.f32 0.03125, %v818_v8  ;;  %v857_v15 = vmul.f32 0.03125, %v816_v11  ;;  %v2324_v19 = vsel %vm738_vm0, %v873_v32, 0.0  ;;  %v2334_v48 = vsel %vm738_vm0, %v874_v18, 0.0 }
 0x1a2   : > { %v937_v23 = vmul.f32 %v2324_v19, %v2324_v19  ;;  %v938_v56 = vmul.f32 %v2334_v48, %v2334_v48 }
 0x1a3   : > { %v890_v24 = vsub.f32 %v2107_v38, %v858_v12  ;;  %v889_v25 = vsub.f32 %v2109_v39, %v857_v15 }
 0x1a4   : > { %v782_v29 = vpop.xlane.xlu1 %781  ;;  %997 = vadd.xlane.f32.xlu1 %v948_v20  ;;  %975 = vadd.xlane.f32.xlu0 %v937_v23  ;;  %v780_v30 = vpop.xlane.xlu0 %779 }
 0x1a5   : > { %v840_v26 = vmul.f32 0.03125, %v782_v29  ;;  %v839_v9 = vmul.f32 0.03125, %v780_v30  ;;  %v2338_v55 = vsel %vm738_vm0, %v889_v25, 0.0  ;;  %v2348_v44 = vsel %vm738_vm0, %v890_v24, 0.0 }
 0x1a6   : > { %v953_v38 = vmul.f32 %v2338_v55, %v2338_v55  ;;  %v954_v3 = vmul.f32 %v2348_v44, %v2348_v44 }
 0x1a7   : > { %v872_v39 = vsub.f32 %v2127_v60, %v840_v26  ;;  %v871_v33 = vsub.f32 %v2129_v61, %v839_v9 }
 0x1a8   : > { %v814_v45 = vpop.xlane.xlu1 %813  ;;  %977 = vadd.xlane.f32.xlu1 %v938_v56  ;;  %1007 = vadd.xlane.f32.xlu0 %v953_v38  ;;  %v812_v46 = vpop.xlane.xlu0 %811 }
 0x1a9   : > { %v856_v49 = vmul.f32 0.03125, %v814_v45  ;;  %v855_v50 = vmul.f32 0.03125, %v812_v46  ;;  %v2352_v2 = vsel %vm738_vm0, %v871_v33, 0.0  ;;  %v2362_v1 = vsel %vm738_vm0, %v872_v39, 0.0 }
 0x1aa   : > { %v935_v60 = vmul.f32 %v2352_v2, %v2352_v2  ;;  %v936_v18 = vmul.f32 %v2362_v1, %v2362_v1 }
 0x1ab   : > { %v888_v61 = vsub.f32 %v2148_v13, %v856_v49  ;;  %v887_v51 = vsub.f32 %v2150_v14, %v855_v50 }
 0x1ac   : > { %v794_v40 = vpop.xlane.xlu1 %793  ;;  %1009 = vadd.xlane.f32.xlu1 %v954_v3  ;;  %971 = vadd.xlane.f32.xlu0 %v935_v60  ;;  %v792_v58 = vpop.xlane.xlu0 %791 }
 0x1ad   : > { %v846_v59 = vmul.f32 0.03125, %v794_v40  ;;  %v845_v6 = vmul.f32 0.03125, %v792_v58  ;;  %v2366_v17 = vsel %vm738_vm0, %v887_v51, 0.0  ;;  %v2376_v8 = vsel %vm738_vm0, %v888_v61, 0.0 }
 0x1ae   : > { %v951_v13 = vmul.f32 %v2366_v17, %v2366_v17  ;;  %v952_v24 = vmul.f32 %v2376_v8, %v2376_v8 }
 0x1af   : > { %v878_v14 = vsub.f32 %v2154_v21, %v846_v59  ;;  %v877_v32 = vsub.f32 %v2156_v22, %v845_v6 }
 0x1b0   : > { %v826_v11 = vpop.xlane.xlu1 %825  ;;  %973 = vadd.xlane.f32.xlu1 %v936_v18  ;;  %1003 = vadd.xlane.f32.xlu0 %v951_v13  ;;  %v824_v12 = vpop.xlane.xlu0 %823 }
 0x1b1   : > { %v862_v15 = vmul.f32 0.03125, %v826_v11  ;;  %v861_v20 = vmul.f32 0.03125, %v824_v12  ;;  %v2380_v23 = vsel %vm738_vm0, %v877_v32, 0.0  ;;  %v2390_v29 = vsel %vm738_vm0, %v878_v14, 0.0 }
 0x1b2   : > { %v941_v21 = vmul.f32 %v2380_v23, %v2380_v23  ;;  %v942_v39 = vmul.f32 %v2390_v29, %v2390_v29 }
 0x1b3   : > { %v894_v22 = vsub.f32 %v2171_v34, %v862_v15  ;;  %v893_v25 = vsub.f32 %v2173_v35, %v861_v20 }
 0x1b4   : > { %v790_v30 = vpop.xlane.xlu1 %789  ;;  %1005 = vadd.xlane.f32.xlu1 %v952_v24  ;;  %983 = vadd.xlane.f32.xlu0 %v941_v21  ;;  %v788_v26 = vpop.xlane.xlu0 %787 }
 0x1b5   : > { %v844_v9 = vmul.f32 0.03125, %v790_v30  ;;  %v843_v56 = vmul.f32 0.03125, %v788_v26  ;;  %v2394_v38 = vsel %vm738_vm0, %v893_v25, 0.0  ;;  %v2404_v45 = vsel %vm738_vm0, %v894_v22, 0.0 }
 0x1b6   : > { %v957_v34 = vmul.f32 %v2394_v38, %v2394_v38  ;;  %v958_v61 = vmul.f32 %v2404_v45, %v2404_v45 }
 0x1b7   : > { %v876_v35 = vsub.f32 %v2190_v52, %v844_v9  ;;  %v875_v33 = vsub.f32 %v2192_v53, %v843_v56 }
 0x1b8   : > { %v822_v46 = vpop.xlane.xlu1 %821  ;;  %985 = vadd.xlane.f32.xlu1 %v942_v39  ;;  %1015 = vadd.xlane.f32.xlu0 %v957_v34  ;;  %v820_v49 = vpop.xlane.xlu0 %819 }
 0x1b9   : > { %v860_v50 = vmul.f32 0.03125, %v822_v46  ;;  %v859_v3 = vmul.f32 0.03125, %v820_v49  ;;  %v2408_v60 = vsel %vm738_vm0, %v875_v33, 0.0  ;;  %v2418_v40 = vsel %vm738_vm0, %v876_v35, 0.0 }
 0x1ba   : > { %v939_v52 = vmul.f32 %v2408_v60, %v2408_v60  ;;  %v940_v14 = vmul.f32 %v2418_v40, %v2418_v40 }
 0x1bb   : > { %v892_v53 = vsub.f32 %v2202_v5, %v860_v50  ;;  %v891_v51 = vsub.f32 %v2204_v7, %v859_v3 }
 0x1bc   : > { %v802_v58 = vpop.xlane.xlu1 %801  ;;  %1017 = vadd.xlane.f32.xlu1 %v958_v61  ;;  %979 = vadd.xlane.f32.xlu0 %v939_v52  ;;  %v800_v59 = vpop.xlane.xlu0 %799 }
 0x1bd   : > { %v850_v6 = vmul.f32 0.03125, %v802_v58  ;;  %v849_v18 = vmul.f32 0.03125, %v800_v59  ;;  %v2422_v13 = vsel %vm738_vm0, %v891_v51, 0.0  ;;  %v2432_v11 = vsel %vm738_vm0, %v892_v53, 0.0 }
 0x1be   : > { %v955_v5 = vmul.f32 %v2422_v13, %v2422_v13  ;;  %v956_v22 = vmul.f32 %v2432_v11, %v2432_v11 }
 0x1bf   : > { %v882_v7 = vsub.f32 %v2207_v54, %v850_v6  ;;  %v881_v32 = vsub.f32 %v2209_v0, %v849_v18 }
 0x1c0   : > { %v798_v12 = vpop.xlane.xlu1 %797  ;;  %981 = vadd.xlane.f32.xlu1 %v940_v14  ;;  %1011 = vadd.xlane.f32.xlu0 %v955_v5  ;;  %v796_v15 = vpop.xlane.xlu0 %795 }
 0x1c1   : > { %v848_v20 = vmul.f32 0.03125, %v798_v12  ;;  %v847_v24 = vmul.f32 0.03125, %v796_v15  ;;  %v2436_v21 = vsel %vm738_vm0, %v881_v32, 0.0  ;;  %v2446_v30 = vsel %vm738_vm0, %v882_v7, 0.0 }
 0x1c2   : > { %v945_v54 = vmul.f32 %v2436_v21, %v2436_v21  ;;  %v946_v35 = vmul.f32 %v2446_v30, %v2446_v30 }
 0x1c3   : > { %v880_v0 = vsub.f32 %v2231_v36, %v848_v20  ;;  %v879_v25 = vsub.f32 %v2233_v37, %v847_v24 }
 0x1c4   : > { %v830_v26 = vpop.xlane.xlu1 %829  ;;  %1013 = vadd.xlane.f32.xlu1 %v956_v22  ;;  %991 = vadd.xlane.f32.xlu0 %v945_v54  ;;  %v828_v9 = vpop.xlane.xlu0 %827 }
 0x1c5   : > { %v864_v56 = vmul.f32 0.03125, %v830_v26  ;;  %v863_v39 = vmul.f32 0.03125, %v828_v9  ;;  %v2450_v34 = vsel %vm738_vm0, %v879_v25, 0.0  ;;  %v2460_v46 = vsel %vm738_vm0, %v880_v0, 0.0 }
 0x1c6   : > { %v943_v36 = vmul.f32 %v2450_v34, %v2450_v34  ;;  %v944_v53 = vmul.f32 %v2460_v46, %v2460_v46 }
 0x1c7   : > { %v896_v37 = vsub.f32 %v2236_v43, %v864_v56  ;;  %v895_v33 = vsub.f32 %v2238_v63, %v863_v39 }
 0x1c8   : > { %v834_v49 = vpop.xlane.xlu1 %833  ;;  %993 = vadd.xlane.f32.xlu1 %v946_v35  ;;  %987 = vadd.xlane.f32.xlu0 %v943_v36  ;;  %v832_v50 = vpop.xlane.xlu0 %831 }
 0x1c9   : > { %v866_v3 = vmul.f32 0.03125, %v834_v49  ;;  %v865_v61 = vmul.f32 0.03125, %v832_v50  ;;  %v2464_v52 = vsel %vm738_vm0, %v895_v33, 0.0  ;;  %v2474_v58 = vsel %vm738_vm0, %v896_v37, 0.0 }
 0x1ca   : > { %v959_v43 = vmul.f32 %v2464_v52, %v2464_v52  ;;  %v960_v6 = vmul.f32 %v2474_v58, %v2474_v58 }
 0x1cb   : > { %v898_v63 = vsub.f32 %v2256_v31, %v866_v3  ;;  %v897_v51 = vsub.f32 %v2258_v27, %v865_v61 }
 0x1cc   : > { %989 = vadd.xlane.f32.xlu1 %v944_v53  ;;  %1019 = vadd.xlane.f32.xlu0 %v959_v43  ;;  %v2494_v53 = vld [vmem:[%s2625_s4] ss:$0 sm:$0xff] }
 0x1cd   : > { %v2478_v59 = vsel %vm738_vm0, %v897_v51, 0.0  ;;  %v2486_v31 = vsel %vm738_vm0, %v898_v63, 0.0 }
 0x1ce   : > { %v961_v18 = vmul.f32 %v2478_v59, %v2478_v59  ;;  %v962_v27 = vmul.f32 %v2486_v31, %v2486_v31 }
 0x1d0   : > { %1021 = vadd.xlane.f32.xlu1 %v960_v6  ;;  %1023 = vadd.xlane.f32.xlu0 %v961_v18 }
 0x1d4   : > { %1025 = vadd.xlane.f32.xlu1 %v962_v27 }
 0x221   : > { %v968_v14 = vpop.xlane.xlu0 %967 }
 0x222   : > { %v1029_v5 = vmul.f32 0.03125, %v968_v14 }
 0x224   : > { %v1061_v7 = vadd.f32 1e-05, %v1029_v5 }
 0x225   : > { %v970_v32 = vpop.xlane.xlu1 %969  ;;  %v1000_v12 = vpop.xlane.xlu0 %999 }
 0x226   : > { %1857 = vrsqrt.f32 %v1061_v7  ;;  %v1030_v15 = vmul.f32 0.03125, %v970_v32  ;;  %v1045_v20 = vmul.f32 0.03125, %v1000_v12  ;;  %v2501_v32 = vld [vmem:[%s2626_s5] ss:$0 sm:$0xff] }
 0x228   : > { %v1062_v24 = vadd.f32 1e-05, %v1030_v15  ;;  %v1077_v22 = vadd.f32 1e-05, %v1045_v20 }
 0x229   : > { %v1002_v54 = vpop.xlane.xlu1 %1001  ;;  %v964_v28 = vpop.xlane.xlu0 %963 }
 0x22a   : > { %1859 = vrsqrt.f32 %v1062_v24  ;;  %v1046_v0 = vmul.f32 0.03125, %v1002_v54  ;;  %v1027_v25 = vmul.f32 0.03125, %v964_v28 }
 0x22b   : > { %1861 = vrsqrt.f32 %v1077_v22 }
 0x22c   : > { %v1078_v26 = vadd.f32 1e-05, %v1046_v0  ;;  %v1059_v9 = vadd.f32 1e-05, %v1027_v25 }
 0x22d   : > { %v966_v56 = vpop.xlane.xlu1 %965  ;;  %v996_v39 = vpop.xlane.xlu0 %995 }
 0x22e   : > { %1863 = vrsqrt.f32 %v1078_v26  ;;  %v1028_v35 = vmul.f32 0.03125, %v966_v56  ;;  %v1043_v36 = vmul.f32 0.03125, %v996_v39 }
 0x22f   : > { %1865 = vrsqrt.f32 %v1059_v9 }
 0x230   : > { %v1858_v37 = vpop.eup %1857  ;;  %v1060_v33 = vadd.f32 1e-05, %v1028_v35  ;;  %v1075_v49 = vadd.f32 1e-05, %v1043_v36 }
 0x231   : > { %v1125_v50 = vmul.f32 %v1858_v37, %v2270_v16  ;;  %v998_v3 = vpop.xlane.xlu1 %997  ;;  %v976_v61 = vpop.xlane.xlu0 %975 }
 0x232   : > { %1867 = vrsqrt.f32 %v1060_v33  ;;  %v1044_v43 = vmul.f32 0.03125, %v998_v3  ;;  %v1033_v63 = vmul.f32 0.03125, %v976_v61 }
 0x233   : > { %1869 = vrsqrt.f32 %v1075_v49  ;;  %v1163_v14 = vmul.f32 %v2494_v53, %v1125_v50 }
 0x234   : > { %v1860_v51 = vpop.eup %1859  ;;  %v1076_v6 = vadd.f32 1e-05, %v1044_v43  ;;  %v1065_v18 = vadd.f32 1e-05, %v1033_v63 }
 0x235   : > { %v1862_v27 = vpop.eup %1861  ;;  %v1126_v5 = vmul.f32 %v1860_v51, %v2282_v62  ;;  %v978_v16 = vpop.xlane.xlu1 %977  ;;  %v1201_v0 = vadd.f32 %v2501_v32, %v1163_v14 }
 0x236   : > { %v1008_v7 = vpop.xlane.xlu0 %1007  ;;  %v1141_v12 = vmul.f32 %v1862_v27, %v2278_v47  ;;  %1871 = vrsqrt.f32 %v1076_v6  ;;  %v1034_v15 = vmul.f32 0.03125, %v978_v16 }
 0x237   : > { %v1049_v20 = vmul.f32 0.03125, %v1008_v7  ;;  %v1164_v24 = vmul.f32 %v2494_v53, %v1126_v5  ;;  %1873 = vrsqrt.f32 %v1065_v18 }
 0x238   : > { %v1864_v22 = vpop.eup %1863  ;;  %v1066_v54 = vadd.f32 1e-05, %v1034_v15  ;;  %v1179_v26 = vmul.f32 %v2494_v53, %v1141_v12 }
 0x239   : > { %v1081_v28 = vadd.f32 1e-05, %v1049_v20  ;;  %v1866_v62 = vpop.eup %1865  ;;  %v1202_v25 = vadd.f32 %v2501_v32, %v1164_v24  ;;  %v1142_v9 = vmul.f32 %v1864_v22, %v2296_v10  ;;  %v1010_v47 = vpop.xlane.xlu1 %1009 }
 0x23a   : > { %v972_v56 = vpop.xlane.xlu0 %971  ;;  %v1123_v39 = vmul.f32 %v1866_v62, %v2292_v42  ;;  %1875 = vrsqrt.f32 %v1066_v54  ;;  %v1050_v35 = vmul.f32 0.03125, %v1010_v47  ;;  %v1217_v61 = vadd.f32 %v2501_v32, %v1179_v26 }
 0x23b   : > { %v1635_v36 = vpack.c.bf16 %v1202_v25, %v1201_v0  ;;  %v1180_v37 = vmul.f32 %v2494_v53, %v1142_v9  ;;  %1877 = vrsqrt.f32 %v1081_v28  ;;  %v1031_v33 = vmul.f32 0.03125, %v972_v56 }
 0x23c   : > { %v1868_v49 = vpop.eup %1867  ;;  %v1161_v10 = vmul.f32 %v2494_v53, %v1123_v39  ;;  %v1082_v50 = vadd.f32 1e-05, %v1050_v35 }
 0x23d   : > { %v1870_v3 = vpop.eup %1869  ;;  %1722 = vst [vmem:[%s2513_s9 + $0x8] sm:$0xff] %v1635_v36   ;;  %v1218_v43 = vadd.f32 %v2501_v32, %v1180_v37  ;;  %v1124_v42 = vmul.f32 %v1868_v49, %v2310_v4  ;;  %v1063_v63 = vadd.f32 1e-05, %v1031_v33  ;;  %v974_v51 = vpop.xlane.xlu1 %973 }
 0x23e   : > { %v1004_v6 = vpop.xlane.xlu0 %1003  ;;  %v1139_v18 = vmul.f32 %v1870_v3, %v2306_v57  ;;  %1879 = vrsqrt.f32 %v1082_v50  ;;  %v1032_v27 = vmul.f32 0.03125, %v974_v51  ;;  %v1199_v12 = vadd.f32 %v2501_v32, %v1161_v10 }
 0x23f   : > { %v1675_v14 = vpack.c.bf16 %v1218_v43, %v1217_v61  ;;  %v1162_v5 = vmul.f32 %v2494_v53, %v1124_v42  ;;  %1881 = vrsqrt.f32 %v1063_v63  ;;  %v1047_v16 = vmul.f32 0.03125, %v1004_v6 }
 0x240   : > { %v1872_v7 = vpop.eup %1871  ;;  %v1064_v15 = vadd.f32 1e-05, %v1032_v27  ;;  %v1177_v24 = vmul.f32 %v2494_v53, %v1139_v18 }
 0x241   : > { %v1874_v20 = vpop.eup %1873  ;;  %1730 = vst [vmem:[%s2513_s9 + $0x48] sm:$0xff] %v1675_v14   ;;  %v1200_v4 = vadd.f32 %v2501_v32, %v1162_v5  ;;  %v1140_v57 = vmul.f32 %v1872_v7, %v2320_v41  ;;  %v1079_v22 = vadd.f32 1e-05, %v1047_v16  ;;  %v1006_v54 = vpop.xlane.xlu1 %1005 }
 0x242   : > { %v984_v28 = vpop.xlane.xlu0 %983  ;;  %v1129_v62 = vmul.f32 %v1874_v20, %v2324_v19  ;;  %1883 = vrsqrt.f32 %v1064_v15  ;;  %v1048_v0 = vmul.f32 0.03125, %v1006_v54  ;;  %v1215_v41 = vadd.f32 %v2501_v32, %v1177_v24 }
 0x243   : > { %v1630_v25 = vpack.c.bf16 %v1200_v4, %v1199_v12  ;;  %v1178_v26 = vmul.f32 %v2494_v53, %v1140_v57  ;;  %1885 = vrsqrt.f32 %v1079_v22  ;;  %v1037_v9 = vmul.f32 0.03125, %v984_v28 }
 0x244   : > { %v1876_v47 = vpop.eup %1875  ;;  %v1167_v56 = vmul.f32 %v2494_v53, %v1129_v62  ;;  %v1080_v39 = vadd.f32 1e-05, %v1048_v0 }
 0x245   : > { %v1878_v35 = vpop.eup %1877  ;;  %1631 = vst [vmem:[%s2513_s9] sm:$0xff] %v1630_v25   ;;  %v1216_v36 = vadd.f32 %v2501_v32, %v1178_v26  ;;  %v1130_v19 = vmul.f32 %v1876_v47, %v2334_v48  ;;  %v1069_v37 = vadd.f32 1e-05, %v1037_v9  ;;  %v986_v33 = vpop.xlane.xlu1 %985 }
 0x246   : > { %v1016_v49 = vpop.xlane.xlu0 %1015  ;;  %v1145_v10 = vmul.f32 %v1878_v35, %v2338_v55  ;;  %1887 = vrsqrt.f32 %v1080_v39  ;;  %v1038_v50 = vmul.f32 0.03125, %v986_v33  ;;  %v1205_v63 = vadd.f32 %v2501_v32, %v1167_v56 }
 0x247   : > { %v1670_v3 = vpack.c.bf16 %v1216_v36, %v1215_v41  ;;  %v1168_v61 = vmul.f32 %v2494_v53, %v1130_v19  ;;  %1889 = vrsqrt.f32 %v1069_v37  ;;  %v1053_v43 = vmul.f32 0.03125, %v1016_v49 }
 0x248   : > { %v1880_v42 = vpop.eup %1879  ;;  %v1070_v51 = vadd.f32 1e-05, %v1038_v50  ;;  %v1183_v18 = vmul.f32 %v2494_v53, %v1145_v10 }
 0x249   : > { %v1882_v6 = vpop.eup %1881  ;;  %1729 = vst [vmem:[%s2513_s9 + $0x40] sm:$0xff] %v1670_v3   ;;  %v1206_v48 = vadd.f32 %v2501_v32, %v1168_v61  ;;  %v1146_v55 = vmul.f32 %v1880_v42, %v2348_v44  ;;  %v1085_v27 = vadd.f32 1e-05, %v1053_v43  ;;  %v1018_v14 = vpop.xlane.xlu1 %1017 }
 0x24a   : > { %v980_v5 = vpop.xlane.xlu0 %979  ;;  %v1127_v16 = vmul.f32 %v1882_v6, %v2352_v2  ;;  %1891 = vrsqrt.f32 %v1070_v51  ;;  %v1054_v7 = vmul.f32 0.03125, %v1018_v14  ;;  %v1221_v44 = vadd.f32 %v2501_v32, %v1183_v18 }
 0x24b   : > { %v1645_v12 = vpack.c.bf16 %v1206_v48, %v1205_v63  ;;  %v1184_v15 = vmul.f32 %v2494_v53, %v1146_v55  ;;  %1893 = vrsqrt.f32 %v1085_v27  ;;  %v1035_v20 = vmul.f32 0.03125, %v980_v5 }
 0x24c   : > { %v1884_v4 = vpop.eup %1883  ;;  %v1165_v24 = vmul.f32 %v2494_v53, %v1127_v16  ;;  %v1086_v57 = vadd.f32 1e-05, %v1054_v7 }
 0x24d   : > { %v1886_v22 = vpop.eup %1885  ;;  %1724 = vst [vmem:[%s2513_s9 + $0x18] sm:$0xff] %v1645_v12   ;;  %v1222_v54 = vadd.f32 %v2501_v32, %v1184_v15  ;;  %v1128_v2 = vmul.f32 %v1884_v4, %v2362_v1  ;;  %v1067_v28 = vadd.f32 1e-05, %v1035_v20  ;;  %v982_v62 = vpop.xlane.xlu1 %981 }
 0x24e   : > { %v1012_v0 = vpop.xlane.xlu0 %1011  ;;  %v1143_v25 = vmul.f32 %v1886_v22, %v2366_v17  ;;  %1895 = vrsqrt.f32 %v1086_v57  ;;  %v1036_v26 = vmul.f32 0.03125, %v982_v62  ;;  %v1203_v35 = vadd.f32 %v2501_v32, %v1165_v24 }
 0x24f   : > { %v1685_v9 = vpack.c.bf16 %v1222_v54, %v1221_v44  ;;  %v1166_v47 = vmul.f32 %v2494_v53, %v1128_v2  ;;  %1897 = vrsqrt.f32 %v1067_v28  ;;  %v1051_v56 = vmul.f32 0.03125, %v1012_v0 }
 0x250   : > { %v1888_v39 = vpop.eup %1887  ;;  %v1068_v41 = vadd.f32 1e-05, %v1036_v26  ;;  %v1181_v19 = vmul.f32 %v2494_v53, %v1143_v25 }
 0x251   : > { %v1890_v36 = vpop.eup %1889  ;;  %1732 = vst [vmem:[%s2513_s9 + $0x58] sm:$0xff] %v1685_v9   ;;  %v1204_v1 = vadd.f32 %v2501_v32, %v1166_v47  ;;  %v1144_v17 = vmul.f32 %v1888_v39, %v2376_v8  ;;  %v1083_v37 = vadd.f32 1e-05, %v1051_v56  ;;  %v1014_v33 = vpop.xlane.xlu1 %1013 }
 0x252   : > { %v992_v49 = vpop.xlane.xlu0 %991  ;;  %v1133_v10 = vmul.f32 %v1890_v36, %v2380_v23  ;;  %1899 = vrsqrt.f32 %v1068_v41  ;;  %v1052_v50 = vmul.f32 0.03125, %v1014_v33  ;;  %v1219_v8 = vadd.f32 %v2501_v32, %v1181_v19 }
 0x253   : > { %v1640_v3 = vpack.c.bf16 %v1204_v1, %v1203_v35  ;;  %v1182_v61 = vmul.f32 %v2494_v53, %v1144_v17  ;;  %1901 = vrsqrt.f32 %v1083_v37  ;;  %v1041_v43 = vmul.f32 0.03125, %v992_v49 }
 0x254   : > { %v1892_v42 = vpop.eup %1891  ;;  %v1171_v63 = vmul.f32 %v2494_v53, %v1133_v10  ;;  %v1084_v51 = vadd.f32 1e-05, %v1052_v50 }
 0x255   : > { %v1894_v6 = vpop.eup %1893  ;;  %1723 = vst [vmem:[%s2513_s9 + $0x10] sm:$0xff] %v1640_v3   ;;  %v1220_v48 = vadd.f32 %v2501_v32, %v1182_v61  ;;  %v1134_v23 = vmul.f32 %v1892_v42, %v2390_v29  ;;  %v1073_v18 = vadd.f32 1e-05, %v1041_v43  ;;  %v994_v55 = vpop.xlane.xlu1 %993 }
 0x256   : > { %v988_v27 = vpop.xlane.xlu0 %987  ;;  %v1149_v14 = vmul.f32 %v1894_v6, %v2394_v38  ;;  %1903 = vrsqrt.f32 %v1084_v51  ;;  %v1042_v5 = vmul.f32 0.03125, %v994_v55  ;;  %v1209_v20 = vadd.f32 %v2501_v32, %v1171_v63 }
 0x257   : > { %v1680_v16 = vpack.c.bf16 %v1220_v48, %v1219_v8  ;;  %v1172_v7 = vmul.f32 %v2494_v53, %v1134_v23  ;;  %1905 = vrsqrt.f32 %v1073_v18  ;;  %v1039_v12 = vmul.f32 0.03125, %v988_v27 }
 0x258   : > { %v1896_v15 = vpop.eup %1895  ;;  %v1074_v4 = vadd.f32 1e-05, %v1042_v5  ;;  %v1187_v57 = vmul.f32 %v2494_v53, %v1149_v14 }
 0x259   : > { %v1898_v24 = vpop.eup %1897  ;;  %1731 = vst [vmem:[%s2513_s9 + $0x50] sm:$0xff] %v1680_v16   ;;  %v1210_v29 = vadd.f32 %v2501_v32, %v1172_v7  ;;  %v1150_v38 = vmul.f32 %v1896_v15, %v2404_v45  ;;  %v1071_v22 = vadd.f32 1e-05, %v1039_v12  ;;  %v990_v44 = vpop.xlane.xlu1 %989 }
 0x25a   : > { %v1020_v54 = vpop.xlane.xlu0 %1019  ;;  %v1131_v2 = vmul.f32 %v1898_v24, %v2408_v60  ;;  %1907 = vrsqrt.f32 %v1074_v4  ;;  %v1040_v28 = vmul.f32 0.03125, %v990_v44  ;;  %v1225_v45 = vadd.f32 %v2501_v32, %v1187_v57 }
 0x25b   : > { %v1655_v62 = vpack.c.bf16 %v1210_v29, %v1209_v20  ;;  %v1188_v0 = vmul.f32 %v2494_v53, %v1150_v38  ;;  %1909 = vrsqrt.f32 %v1071_v22  ;;  %v1055_v25 = vmul.f32 0.03125, %v1020_v54 }
 0x25c   : > { %v1900_v26 = vpop.eup %1899  ;;  %v1169_v9 = vmul.f32 %v2494_v53, %v1131_v2  ;;  %v1072_v47 = vadd.f32 1e-05, %v1040_v28 }
 0x25d   : > { %v1902_v56 = vpop.eup %1901  ;;  %1726 = vst [vmem:[%s2513_s9 + $0x28] sm:$0xff] %v1655_v62   ;;  %v1226_v39 = vadd.f32 %v2501_v32, %v1188_v0  ;;  %v1132_v60 = vmul.f32 %v1900_v26, %v2418_v40  ;;  %v1087_v35 = vadd.f32 1e-05, %v1055_v25  ;;  %v1022_v41 = vpop.xlane.xlu1 %1021 }
 0x25e   : > { %v1024_v36 = vpop.xlane.xlu0 %1023  ;;  %v1147_v1 = vmul.f32 %v1902_v56, %v2422_v13  ;;  %1911 = vrsqrt.f32 %v1072_v47  ;;  %v1056_v19 = vmul.f32 0.03125, %v1022_v41  ;;  %v1207_v10 = vadd.f32 %v2501_v32, %v1169_v9 }
 0x25f   : > { %v1695_v17 = vpack.c.bf16 %v1226_v39, %v1225_v45  ;;  %v1170_v37 = vmul.f32 %v2494_v53, %v1132_v60  ;;  %1913 = vrsqrt.f32 %v1087_v35  ;;  %v1057_v33 = vmul.f32 0.03125, %v1024_v36 }
 0x260   : > { %v1904_v49 = vpop.eup %1903  ;;  %v1088_v50 = vadd.f32 1e-05, %v1056_v19  ;;  %v1185_v61 = vmul.f32 %v2494_v53, %v1147_v1 }
 0x261   : > { %v1906_v3 = vpop.eup %1905  ;;  %1734 = vst [vmem:[%s2513_s9 + $0x68] sm:$0xff] %v1695_v17   ;;  %v1208_v40 = vadd.f32 %v2501_v32, %v1170_v37  ;;  %v1148_v13 = vmul.f32 %v1904_v49, %v2432_v11  ;;  %v1089_v43 = vadd.f32 1e-05, %v1057_v33  ;;  %v1026_v42 = vpop.xlane.xlu1 %1025 }
 0x262   : > { %v1137_v63 = vmul.f32 %v1906_v3, %v2436_v21  ;;  %1915 = vrsqrt.f32 %v1088_v50  ;;  %v1058_v51 = vmul.f32 0.03125, %v1026_v42  ;;  %v1223_v55 = vadd.f32 %v2501_v32, %v1185_v61 }
 0x263   : > { %v1650_v6 = vpack.c.bf16 %v1208_v40, %v1207_v10  ;;  %v1186_v8 = vmul.f32 %v2494_v53, %v1148_v13  ;;  %1917 = vrsqrt.f32 %v1089_v43 }
 0x264   : > { %v1908_v48 = vpop.eup %1907  ;;  %v1090_v23 = vadd.f32 1e-05, %v1058_v51  ;;  %v1175_v11 = vmul.f32 %v2494_v53, %v1137_v63 }
 0x265   : > { %v1910_v18 = vpop.eup %1909  ;;  %1725 = vst [vmem:[%s2513_s9 + $0x20] sm:$0xff] %v1650_v6   ;;  %v1224_v27 = vadd.f32 %v2501_v32, %v1186_v8  ;;  %v1138_v14 = vmul.f32 %v1908_v48, %v2446_v30 }
 0x266   : > { %v1135_v21 = vmul.f32 %v1910_v18, %v2450_v34  ;;  %1919 = vrsqrt.f32 %v1090_v23  ;;  %v1213_v15 = vadd.f32 %v2501_v32, %v1175_v11 }
 0x267   : > { %v1690_v5 = vpack.c.bf16 %v1224_v27, %v1223_v55  ;;  %v1176_v16 = vmul.f32 %v2494_v53, %v1138_v14 }
 0x268   : > { %v1912_v7 = vpop.eup %1911  ;;  %v1173_v4 = vmul.f32 %v2494_v53, %v1135_v21 }
 0x269   : > { %v1914_v12 = vpop.eup %1913  ;;  %1733 = vst [vmem:[%s2513_s9 + $0x60] sm:$0xff] %v1690_v5   ;;  %v1214_v20 = vadd.f32 %v2501_v32, %v1176_v16  ;;  %v1136_v24 = vmul.f32 %v1912_v7, %v2460_v46 }
 0x26a   : > { %v1151_v30 = vmul.f32 %v1914_v12, %v2464_v52  ;;  %v1211_v22 = vadd.f32 %v2501_v32, %v1173_v4 }
 0x26b   : > { %v1665_v34 = vpack.c.bf16 %v1214_v20, %v1213_v15  ;;  %v1174_v29 = vmul.f32 %v2494_v53, %v1136_v24 }
 0x26c   : > { %v1916_v57 = vpop.eup %1915  ;;  %v1189_v54 = vmul.f32 %v2494_v53, %v1151_v30 }
 0x26d   : > { %v1918_v38 = vpop.eup %1917  ;;  %1728 = vst [vmem:[%s2513_s9 + $0x38] sm:$0xff] %v1665_v34   ;;  %v1212_v44 = vadd.f32 %v2501_v32, %v1174_v29  ;;  %v1152_v2 = vmul.f32 %v1916_v57, %v2474_v58 }
 0x26e   : > { %v1153_v46 = vmul.f32 %v1918_v38, %v2478_v59  ;;  %v1227_v0 = vadd.f32 %v2501_v32, %v1189_v54 }
 0x26f   : > { %v1660_v28 = vpack.c.bf16 %v1212_v44, %v1211_v22  ;;  %v1190_v52 = vmul.f32 %v2494_v53, %v1152_v2 }
 0x270   : > { %v1920_v62 = vpop.eup %1919  ;;  %v1191_v26 = vmul.f32 %v2494_v53, %v1153_v46 }
 0x271   : > { %1727 = vst [vmem:[%s2513_s9 + $0x30] sm:$0xff] %v1660_v28   ;;  %v1228_v25 = vadd.f32 %v2501_v32, %v1190_v52  ;;  %v1154_v9 = vmul.f32 %v1920_v62, %v2486_v31 }
 0x272   : > { %v1229_v58 = vadd.f32 %v2501_v32, %v1191_v26 }
 0x273   : > { %v1700_v47 = vpack.c.bf16 %v1228_v25, %v1227_v0  ;;  %v1192_v56 = vmul.f32 %v2494_v53, %v1154_v9 }
 0x275   : > { %1735 = vst [vmem:[%s2513_s9 + $0x70] sm:$0xff] %v1700_v47   ;;  %v1230_v59 = vadd.f32 %v2501_v32, %v1192_v56 }
 0x277   : > { %v1705_v45 = vpack.c.bf16 %v1230_v59, %v1229_v58 }
 0x279   : > { %1736 = vst [vmem:[%s2513_s9 + $0x78] sm:$0xff] %v1705_v45  }
 0x27a PF: > { %s16_s21 = sadd.s32 1, %s1927_s21  }
 0x27b   : > { %p13_p4 = scmp.ge.s32.totalorder %s16_s21, 4  }
 0x27d   :  { %15 = sbr.rel (!%p13_p4) target bundleno = 1 (0x1), region = 77 }

// kernel: hybrid_encoder_forward.24
= control target key start
LH: loop header
LB: loop body
LE: loop exit
PB: predicated region body
PF: predicated region fallthrough
CT: control target
= control target key end

     0   :  { %s2893_s13 = smov 0   ;;  %s3199_s0 = inlined_call_operand.vmem [shape: bf16[512,128], index: 0, kind: input, shape index: {}]   ;;  %s3200_s1 = inlined_call_operand.vmem [shape: bf16[512,128], index: 1, kind: input, shape index: {}]   ;;  %s3201_s2 = inlined_call_operand.vmem [shape: bf16[128,128], index: 2, kind: input, shape index: {}]   ;;  %s3202_s3 = inlined_call_operand.vmem [shape: f32[1,128], index: 3, kind: input, shape index: {}]   ;;  %s3203_s4 = inlined_call_operand.vmem [shape: bf16[128,128], index: 4, kind: input, shape index: {}]   ;;  %s3204_s5 = inlined_call_operand.vmem [shape: f32[1,128], index: 5, kind: input, shape index: {}]   ;;  %s3205_s6 = inlined_call_operand.vmem [shape: bf16[128,128], index: 6, kind: input, shape index: {}]   ;;  %s3206_s7 = inlined_call_operand.vmem [shape: f32[1,128], index: 7, kind: input, shape index: {}]   ;;  %s3207_s8 = inlined_call_operand.vmem [shape: bf16[512,128], index: 8, kind: output, shape index: {0}]   ;;  %s3208_s9 = inlined_call_operand.vmem [shape: bf16[512,128], index: 9, kind: output, shape index: {1}]   ;;  %s3209_s10 = inlined_call_operand.vmem [shape: bf16[512,128], index: 10, kind: output, shape index: {2}]  }
   0x1 LB: > { %s1981_s14 = sadd.s32 4294967295, %s2836_s13   ;;  %p1985_p0 = scmp.ge.s32.totalorder %s2836_s13, 1  ;;  %s2836_s13 = sphi %s2893_s13, %s21_s13  }
   0x2   : > { %p329_p1 = scmp.lt.s32.totalorder %s2836_s13, 3 }
   0x4   : > { %p330_p2 = pnand %p1985_p0, %p329_p1 }
   0x5   : > { %v2774_v0 = vld [vmem:[%s3201_s2] sm:$0xff] (!%p330_p2)   ;;  %s1986_s17 = sshll.u32 (!%p330_p2), %s1981_s14, 5  ;;  %v2775_v1 = vld [vmem:[%s3201_s2 + $0x8] sm:$0xff] (!%p330_p2)   ;;  %v2776_v2 = vld [vmem:[%s3201_s2 + $0x10] sm:$0xff] (!%p330_p2)  }
   0x6   : > { %333 = sbr.rel (%p330_p2) target bundleno = 346 (0x15a), region = 52  ;;  %p383_p3 = scmp.lt.s32.totalorder (!%p330_p2), %s1986_s17, 63  ;;  %2606 = vmatprep.subr.bf16.mxu0 (!%p330_p2), %v2774_v0  ;;  %2750 = vmatprep.subr.bf16.mxu1 (!%p330_p2), %v2774_v0  ;;  %v2777_v3 = vld [vmem:[%s3201_s2 + $0x18] sm:$0xff] (!%p330_p2)   ;;  %v2778_v6 = vld [vmem:[%s3201_s2 + $0x20] sm:$0xff] (!%p330_p2)   ;;  %v2779_v7 = vld [vmem:[%s3201_s2 + $0x28] sm:$0xff] (!%p330_p2)  }
   0x7   : > { %2607 = vmatpush3.bf16.msra.mxu0 (!%p330_p2), %v2774_v0  ;;  %2758 = vmatpush3.bf16.msra.mxu1 (!%p330_p2), %v2774_v0  ;;  %v2780_v8 = vld [vmem:[%s3201_s2 + $0x30] sm:$0xff] (!%p330_p2)   ;;  %v2781_v9 = vld [vmem:[%s3201_s2 + $0x38] sm:$0xff] (!%p330_p2)   ;;  %v2786_v10 = vld [vmem:[%s3203_s4] sm:$0xff] (!%p330_p2)  }
   0x8   : > { %2608 = vmatprep.subr.bf16.mxu0 (!%p330_p2), %v2775_v1  ;;  %2751 = vmatprep.subr.bf16.mxu1 (!%p330_p2), %v2775_v1  ;;  %v2787_v12 = vld [vmem:[%s3205_s6] sm:$0xff] (!%p330_p2)   ;;  %v2788_v14 = vld [vmem:[%s3203_s4 + $0x8] sm:$0xff] (!%p330_p2)   ;;  %v2794_v18 = vld [vmem:[%s3203_s4 + $0x10] sm:$0xff] (!%p330_p2)  }
   0x9   : > { %v2789_v15 = vld [vmem:[%s3205_s6 + $0x8] sm:$0xff] (!%p330_p2)   ;;  %v2795_v20 = vld [vmem:[%s3205_s6 + $0x10] sm:$0xff] (!%p330_p2)   ;;  %v2796_v22 = vld [vmem:[%s3203_s4 + $0x18] sm:$0xff] (!%p330_p2)  }
   0xa   : > { %v2797_v23 = vld [vmem:[%s3205_s6 + $0x18] sm:$0xff] (!%p330_p2)   ;;  %v2802_v26 = vld [vmem:[%s3203_s4 + $0x20] sm:$0xff] (!%p330_p2)   ;;  %v2804_v30 = vld [vmem:[%s3203_s4 + $0x28] sm:$0xff] (!%p330_p2)  }
   0xb   : > { %2609 = vmatpush3.bf16.msra.mxu0 (!%p330_p2), %v2775_v1  ;;  %2759 = vmatpush3.bf16.msra.mxu1 (!%p330_p2), %v2775_v1  ;;  %v2803_v28 = vld [vmem:[%s3205_s6 + $0x20] sm:$0xff] (!%p330_p2)   ;;  %v2805_v31 = vld [vmem:[%s3205_s6 + $0x28] sm:$0xff] (!%p330_p2)   ;;  %v2810_v34 = vld [vmem:[%s3203_s4 + $0x30] sm:$0xff] (!%p330_p2)  }
   0xc   : > { %2610 = vmatprep.subr.bf16.mxu0 (!%p330_p2), %v2776_v2  ;;  %2752 = vmatprep.subr.bf16.mxu1 (!%p330_p2), %v2776_v2  ;;  %v2811_v35 = vld [vmem:[%s3205_s6 + $0x30] sm:$0xff] (!%p330_p2)   ;;  %v2812_v38 = vld [vmem:[%s3203_s4 + $0x38] sm:$0xff] (!%p330_p2)   ;;  %v3022_v57 = vld [vmem:[%s3202_s3] ss:$0 sm:$0xff] (!%p330_p2) }
   0xd   : > { %s3211_s17 = smov (!%p383_p3, %s1986_s17), 63  ;;  %v2813_v39 = vld [vmem:[%s3205_s6 + $0x38] sm:$0xff]  }
   0xe   : > { %s2910_s22 = sshll.u32 %s3211_s17, 2 }
   0xf   : > { %s2916_s25 = scalar_lea.vmem %s3199_s0, %s2910_s22  ;;  %2611 = vmatpush3.bf16.msra.mxu0 %v2776_v2  ;;  %2760 = vmatpush3.bf16.msra.mxu1 %v2776_v2  ;;  %s2969_s18 = scalar_lea.vmem %s3200_s1, %s2910_s22 }
  0x10   : > { %v2782_v4 = vld [vmem:[%s2916_s25] sm:$0xff]   ;;  %2612 = vmatprep.subr.bf16.mxu0 %v2777_v3  ;;  %2753 = vmatprep.subr.bf16.mxu1 %v2777_v3  ;;  %v2784_v11 = vld [vmem:[%s2916_s25 + $0x8] sm:$0xff]   ;;  %v2790_v16 = vld [vmem:[%s2916_s25 + $0x10] sm:$0xff]   ;;  %s3034_s21 = scalar_lea.vmem %s3207_s8, %s2910_s22  ;;  %s3098_s30 = scalar_lea.vmem %s3208_s9, %s2910_s22 }
  0x11   : > { %v2783_v5 = vld [vmem:[%s2916_s25 + $0x40] sm:$0xff]   ;;  %2622 = vmatprep.mubr.bf16.mxu0 %v2782_v4  ;;  %v2785_v13 = vld [vmem:[%s2916_s25 + $0x48] sm:$0xff]   ;;  %v2791_v17 = vld [vmem:[%s2916_s25 + $0x50] sm:$0xff]   ;;  %s3104_s14 = scalar_lea.vmem %s3209_s10, %s2910_s22 }
  0x12   : > { %2638 = vmatprep.mubr.bf16.mxu1 %v2783_v5  ;;  %v2792_v19 = vld [vmem:[%s2916_s25 + $0x18] sm:$0xff]   ;;  %v2798_v24 = vld [vmem:[%s2916_s25 + $0x20] sm:$0xff]   ;;  %v2800_v27 = vld [vmem:[%s2916_s25 + $0x28] sm:$0xff]  }
  0x13   : > { %2613 = vmatpush3.bf16.msra.mxu0 %v2777_v3  ;;  %2761 = vmatpush3.bf16.msra.mxu1 %v2777_v3  ;;  %v2793_v21 = vld [vmem:[%s2916_s25 + $0x58] sm:$0xff]   ;;  %v2799_v25 = vld [vmem:[%s2916_s25 + $0x60] sm:$0xff]   ;;  %v2801_v29 = vld [vmem:[%s2916_s25 + $0x68] sm:$0xff]  }
  0x14   : > { %2614 = vmatprep.subr.bf16.mxu0 %v2778_v6  ;;  %2754 = vmatprep.subr.bf16.mxu1 %v2778_v6  ;;  %v2806_v32 = vld [vmem:[%s2916_s25 + $0x30] sm:$0xff]   ;;  %v2808_v36 = vld [vmem:[%s2916_s25 + $0x38] sm:$0xff]   ;;  %v2814_v40 = vld [vmem:[%s2969_s18] sm:$0xff]  }
  0x15   : > { %v2807_v33 = vld [vmem:[%s2916_s25 + $0x70] sm:$0xff]   ;;  %v2809_v37 = vld [vmem:[%s2916_s25 + $0x78] sm:$0xff]   ;;  %v2815_v41 = vld [vmem:[%s2969_s18 + $0x8] sm:$0xff]  }
  0x16   : > { %v2816_v42 = vld [vmem:[%s2969_s18 + $0x10] sm:$0xff]   ;;  %v2817_v43 = vld [vmem:[%s2969_s18 + $0x18] sm:$0xff]   ;;  %v2818_v44 = vld [vmem:[%s2969_s18 + $0x20] sm:$0xff]  }
  0x17   : > { %2615 = vmatpush3.bf16.msra.mxu0 %v2778_v6  ;;  %2762 = vmatpush3.bf16.msra.mxu1 %v2778_v6  ;;  %v2819_v45 = vld [vmem:[%s2969_s18 + $0x28] sm:$0xff]   ;;  %v2820_v46 = vld [vmem:[%s2969_s18 + $0x30] sm:$0xff]   ;;  %v2821_v47 = vld [vmem:[%s2969_s18 + $0x38] sm:$0xff]  }
  0x18   : > { %2616 = vmatprep.subr.bf16.mxu0 %v2779_v7  ;;  %2755 = vmatprep.subr.bf16.mxu1 %v2779_v7  ;;  %v2822_v48 = vld [vmem:[%s2969_s18 + $0x40] sm:$0xff]   ;;  %v2823_v49 = vld [vmem:[%s2969_s18 + $0x48] sm:$0xff]   ;;  %v2824_v50 = vld [vmem:[%s2969_s18 + $0x50] sm:$0xff]  }
  0x19   : > { %v2825_v51 = vld [vmem:[%s2969_s18 + $0x58] sm:$0xff]   ;;  %v2826_v52 = vld [vmem:[%s2969_s18 + $0x60] sm:$0xff]   ;;  %v2827_v53 = vld [vmem:[%s2969_s18 + $0x68] sm:$0xff]  }
  0x1a   : > { %v2828_v54 = vld [vmem:[%s2969_s18 + $0x70] sm:$0xff]   ;;  %v2829_v55 = vld [vmem:[%s2969_s18 + $0x78] sm:$0xff]  }
  0x1b   : > { %2617 = vmatpush3.bf16.msra.mxu0 %v2779_v7  ;;  %2763 = vmatpush3.bf16.msra.mxu1 %v2779_v7 }
  0x1c   : > { %2618 = vmatprep.subr.bf16.mxu0 %v2780_v8  ;;  %2756 = vmatprep.subr.bf16.mxu1 %v2780_v8 }
  0x1f   : > { %2619 = vmatpush3.bf16.msra.mxu0 %v2780_v8  ;;  %2764 = vmatpush3.bf16.msra.mxu1 %v2780_v8 }
  0x20   : > { %2620 = vmatprep.subr.bf16.mxu0 %v2781_v9  ;;  %2757 = vmatprep.subr.bf16.mxu1 %v2781_v9 }
  0x23   : > { %2621 = vmatpush3.bf16.msra.mxu0 %v2781_v9  ;;  %2765 = vmatpush3.bf16.msra.mxu1 %v2781_v9 }
  0x24   : > { %2654 = vmatprep.subr.bf16.mxu1 %v2786_v10  ;;  %2702 = vmatprep.subr.bf16.mxu0 %v2787_v12 }
  0x26   : > { %2623 = vmatmul.mubr.bf16.vlgmr.msra.gmra.mrb[0].mxu0 %v2784_v11  ;;  %2639 = vmatmul.mubr.bf16.vlgmr.msra.gmra.mrb[0].mxu1 %v2785_v13 }
  0x27   : > { %2655 = vmatpush3.bf16.msra.mxu1 %v2786_v10  ;;  %2703 = vmatpush3.bf16.msra.mxu0 %v2787_v12 }
  0x28   : > { %2656 = vmatprep.subr.bf16.mxu1 %v2788_v14  ;;  %2704 = vmatprep.subr.bf16.mxu0 %v2789_v15 }
  0x29   : > { %2626 = vmatprep.mubr.bf16.mxu0 %v2790_v16  ;;  %2642 = vmatprep.mubr.bf16.mxu1 %v2791_v17 }
  0x2b   : > { %2657 = vmatpush3.bf16.msra.mxu1 %v2788_v14  ;;  %2705 = vmatpush3.bf16.msra.mxu0 %v2789_v15 }
  0x2c   : > { %2658 = vmatprep.subr.bf16.mxu1 %v2794_v18  ;;  %2706 = vmatprep.subr.bf16.mxu0 %v2795_v20 }
  0x2e   : > { %2627 = vmatmul.mubr.bf16.gmra.mrb[4].mxu0 %v2792_v19  ;;  %2643 = vmatmul.mubr.bf16.gmra.mrb[4].mxu1 %v2793_v21 }
  0x2f   : > { %2659 = vmatpush3.bf16.msra.mxu1 %v2794_v18  ;;  %2707 = vmatpush3.bf16.msra.mxu0 %v2795_v20 }
  0x30   : > { %2660 = vmatprep.subr.bf16.mxu1 %v2796_v22  ;;  %2708 = vmatprep.subr.bf16.mxu0 %v2797_v23 }
  0x31   : > { %2630 = vmatprep.mubr.bf16.mxu0 %v2798_v24  ;;  %2646 = vmatprep.mubr.bf16.mxu1 %v2799_v25 }
  0x33   : > { %2661 = vmatpush3.bf16.msra.mxu1 %v2796_v22  ;;  %2709 = vmatpush3.bf16.msra.mxu0 %v2797_v23 }
  0x34   : > { %2662 = vmatprep.subr.bf16.mxu1 %v2802_v26  ;;  %2710 = vmatprep.subr.bf16.mxu0 %v2803_v28 }
  0x36   : > { %2631 = vmatmul.mubr.bf16.gmra.mrb[8].mxu0 %v2800_v27  ;;  %2647 = vmatmul.mubr.bf16.gmra.mrb[8].mxu1 %v2801_v29 }
  0x37   : > { %2663 = vmatpush3.bf16.msra.mxu1 %v2802_v26  ;;  %2711 = vmatpush3.bf16.msra.mxu0 %v2803_v28 }
  0x38   : > { %2664 = vmatprep.subr.bf16.mxu1 %v2804_v30  ;;  %2712 = vmatprep.subr.bf16.mxu0 %v2805_v31 }
  0x39   : > { %2634 = vmatprep.mubr.bf16.mxu0 %v2806_v32  ;;  %2650 = vmatprep.mubr.bf16.mxu1 %v2807_v33 }
  0x3b   : > { %2665 = vmatpush3.bf16.msra.mxu1 %v2804_v30  ;;  %2713 = vmatpush3.bf16.msra.mxu0 %v2805_v31 }
  0x3c   : > { %2666 = vmatprep.subr.bf16.mxu1 %v2810_v34  ;;  %2714 = vmatprep.subr.bf16.mxu0 %v2811_v35 }
  0x3e   : > { %2635 = vmatmul.mubr.bf16.gmra.mrb[12].mxu0 %v2808_v36  ;;  %2651 = vmatmul.mubr.bf16.gmra.mrb[12].mxu1 %v2809_v37 }
  0x3f   : > { %2667 = vmatpush3.bf16.msra.mxu1 %v2810_v34  ;;  %2715 = vmatpush3.bf16.msra.mxu0 %v2811_v35 }
  0x40   : > { %2668 = vmatprep.subr.bf16.mxu1 %v2812_v38  ;;  %2716 = vmatprep.subr.bf16.mxu0 %v2813_v39 }
  0x41   : > { %2670 = vmatprep.mubr.bf16.mxu1 %v2814_v40  ;;  %2718 = vmatprep.mubr.bf16.mxu0 %v2814_v40 }
  0x43   : > { %2669 = vmatpush3.bf16.msra.mxu1 %v2812_v38  ;;  %2717 = vmatpush3.bf16.msra.mxu0 %v2813_v39 }
  0x46   : > { %2671 = vmatmul.mubr.bf16.vlgmr.msra.gmra.mrb[16].mxu1 %v2815_v41  ;;  %2719 = vmatmul.mubr.bf16.vlgmr.msra.gmra.mrb[16].mxu0 %v2815_v41 }
  0x47   : > { %2674 = vmatprep.mubr.bf16.mxu1 %v2816_v42  ;;  %2722 = vmatprep.mubr.bf16.mxu0 %v2816_v42 }
  0x4e   : > { %2675 = vmatmul.mubr.bf16.gmra.mrb[20].mxu1 %v2817_v43  ;;  %2723 = vmatmul.mubr.bf16.gmra.mrb[20].mxu0 %v2817_v43 }
  0x4f   : > { %2678 = vmatprep.mubr.bf16.mxu1 %v2818_v44  ;;  %2726 = vmatprep.mubr.bf16.mxu0 %v2818_v44 }
  0x56   : > { %2679 = vmatmul.mubr.bf16.gmra.mrb[24].mxu1 %v2819_v45  ;;  %2727 = vmatmul.mubr.bf16.gmra.mrb[24].mxu0 %v2819_v45 }
  0x57   : > { %2682 = vmatprep.mubr.bf16.mxu1 %v2820_v46  ;;  %2730 = vmatprep.mubr.bf16.mxu0 %v2820_v46 }
  0x5e   : > { %2683 = vmatmul.mubr.bf16.gmra.mrb[28].mxu1 %v2821_v47  ;;  %2731 = vmatmul.mubr.bf16.gmra.mrb[28].mxu0 %v2821_v47 }
  0x5f   : > { %2686 = vmatprep.mubr.bf16.mxu1 %v2822_v48  ;;  %2734 = vmatprep.mubr.bf16.mxu0 %v2822_v48 }
  0x66   : > { %2687 = vmatmul.mubr.bf16.gmra.mrb[32].mxu1 %v2823_v49  ;;  %2735 = vmatmul.mubr.bf16.gmra.mrb[32].mxu0 %v2823_v49 }
  0x67   : > { %2690 = vmatprep.mubr.bf16.mxu1 %v2824_v50  ;;  %2738 = vmatprep.mubr.bf16.mxu0 %v2824_v50 }
  0x6e   : > { %2691 = vmatmul.mubr.bf16.gmra.mrb[36].mxu1 %v2825_v51  ;;  %2739 = vmatmul.mubr.bf16.gmra.mrb[36].mxu0 %v2825_v51 }
  0x6f   : > { %2694 = vmatprep.mubr.bf16.mxu1 %v2826_v52  ;;  %2742 = vmatprep.mubr.bf16.mxu0 %v2826_v52 }
  0x76   : > { %2695 = vmatmul.mubr.bf16.gmra.mrb[40].mxu1 %v2827_v53  ;;  %2743 = vmatmul.mubr.bf16.gmra.mrb[40].mxu0 %v2827_v53 }
  0x77   : > { %2698 = vmatprep.mubr.bf16.mxu1 %v2828_v54  ;;  %2746 = vmatprep.mubr.bf16.mxu0 %v2828_v54 }
  0x7e   : > { %2699 = vmatmul.mubr.bf16.gmra.mrb[44].mxu1 %v2829_v55  ;;  %2747 = vmatmul.mubr.bf16.gmra.mrb[44].mxu0 %v2829_v55 }
  0xf9   : > { %v2624_v56 = vpop.f32.mrb[0].mxu0  ;;  %v2640_v58 = vpop.f32.mrb[0].mxu1 }
  0xfa   : > { %v678_v59 = vpop.f32.mrb[1].mxu0  ;;  %v742_v60 = vpop.f32.mrb[1].mxu1  ;;  %v687_v63 = vadd.f32 %v2624_v56, %v3022_v57  ;;  %v751_v0 = vadd.f32 %v2640_v58, %v3022_v57 }
  0xfb   : > { %v2625_v61 = vpop.f32.mrb[2].mxu0  ;;  %v2641_v62 = vpop.f32.mrb[2].mxu1  ;;  %v679_v5 = vadd.f32 %v3022_v57, %v678_v59  ;;  %v743_v6 = vadd.f32 %v3022_v57, %v742_v60 }
  0xfc   : > { %v690_v1 = vadd.f32 %v2625_v61, %v3022_v57  ;;  %v754_v2 = vadd.f32 %v2641_v62, %v3022_v57  ;;  %v681_v3 = vpop.f32.mrb[3].mxu0  ;;  %v745_v4 = vpop.f32.mrb[3].mxu1 }
  0xfd   : > { %v682_v7 = vadd.f32 %v3022_v57, %v681_v3  ;;  %v746_v8 = vadd.f32 %v3022_v57, %v745_v4 }
  0xfe   : > { %v2257_v9 = vpack.c.bf16 %v690_v1, %v687_v63  ;;  %v2297_v10 = vpack.c.bf16 %v754_v2, %v751_v0 }
  0xff   : > { %v2252_v11 = vpack.c.bf16 %v682_v7, %v679_v5  ;;  %v2292_v12 = vpack.c.bf16 %v746_v8, %v743_v6 }
 0x100   : > { %2489 = vst [vmem:[%s3034_s21 + $0x8] sm:$0xff] %v2257_v9   ;;  %2497 = vst [vmem:[%s3034_s21 + $0x48] sm:$0xff] %v2297_v10  }
 0x101   : > { %2253 = vst [vmem:[%s3034_s21] sm:$0xff] %v2252_v11   ;;  %2496 = vst [vmem:[%s3034_s21 + $0x40] sm:$0xff] %v2292_v12   ;;  %v2628_v13 = vpop.f32.mrb[4].mxu0  ;;  %v2644_v14 = vpop.f32.mrb[4].mxu1  ;;  %v3081_v11 = vld [vmem:[%s3204_s5] ss:$0 sm:$0xff] }
 0x102   : > { %v694_v15 = vpop.f32.mrb[5].mxu0  ;;  %v758_v16 = vpop.f32.mrb[5].mxu1  ;;  %v703_v19 = vadd.f32 %v2628_v13, %v3022_v57  ;;  %v767_v20 = vadd.f32 %v2644_v14, %v3022_v57 }
 0x103   : > { %v2629_v17 = vpop.f32.mrb[6].mxu0  ;;  %v2645_v18 = vpop.f32.mrb[6].mxu1  ;;  %v695_v25 = vadd.f32 %v3022_v57, %v694_v15  ;;  %v759_v26 = vadd.f32 %v3022_v57, %v758_v16 }
 0x104   : > { %v706_v21 = vadd.f32 %v2629_v17, %v3022_v57  ;;  %v770_v22 = vadd.f32 %v2645_v18, %v3022_v57  ;;  %v697_v23 = vpop.f32.mrb[7].mxu0  ;;  %v761_v24 = vpop.f32.mrb[7].mxu1 }
 0x105   : > { %v698_v27 = vadd.f32 %v3022_v57, %v697_v23  ;;  %v762_v28 = vadd.f32 %v3022_v57, %v761_v24 }
 0x106   : > { %v2267_v29 = vpack.c.bf16 %v706_v21, %v703_v19  ;;  %v2307_v30 = vpack.c.bf16 %v770_v22, %v767_v20 }
 0x107   : > { %v2262_v31 = vpack.c.bf16 %v698_v27, %v695_v25  ;;  %v2302_v32 = vpack.c.bf16 %v762_v28, %v759_v26 }
 0x108   : > { %2491 = vst [vmem:[%s3034_s21 + $0x18] sm:$0xff] %v2267_v29   ;;  %2499 = vst [vmem:[%s3034_s21 + $0x58] sm:$0xff] %v2307_v30  }
 0x109   : > { %2490 = vst [vmem:[%s3034_s21 + $0x10] sm:$0xff] %v2262_v31   ;;  %2498 = vst [vmem:[%s3034_s21 + $0x50] sm:$0xff] %v2302_v32   ;;  %v2632_v33 = vpop.f32.mrb[8].mxu0  ;;  %v2648_v34 = vpop.f32.mrb[8].mxu1 }
 0x10a   : > { %v710_v35 = vpop.f32.mrb[9].mxu0  ;;  %v774_v36 = vpop.f32.mrb[9].mxu1  ;;  %v719_v39 = vadd.f32 %v2632_v33, %v3022_v57  ;;  %v783_v40 = vadd.f32 %v2648_v34, %v3022_v57 }
 0x10b   : > { %v2633_v37 = vpop.f32.mrb[10].mxu0  ;;  %v2649_v38 = vpop.f32.mrb[10].mxu1  ;;  %v711_v45 = vadd.f32 %v3022_v57, %v710_v35  ;;  %v775_v46 = vadd.f32 %v3022_v57, %v774_v36 }
 0x10c   : > { %v722_v41 = vadd.f32 %v2633_v37, %v3022_v57  ;;  %v786_v42 = vadd.f32 %v2649_v38, %v3022_v57  ;;  %v713_v43 = vpop.f32.mrb[11].mxu0  ;;  %v777_v44 = vpop.f32.mrb[11].mxu1 }
 0x10d   : > { %v714_v47 = vadd.f32 %v3022_v57, %v713_v43  ;;  %v778_v48 = vadd.f32 %v3022_v57, %v777_v44 }
 0x10e   : > { %v2277_v49 = vpack.c.bf16 %v722_v41, %v719_v39  ;;  %v2317_v50 = vpack.c.bf16 %v786_v42, %v783_v40 }
 0x10f   : > { %v2272_v51 = vpack.c.bf16 %v714_v47, %v711_v45  ;;  %v2312_v52 = vpack.c.bf16 %v778_v48, %v775_v46 }
 0x110   : > { %2493 = vst [vmem:[%s3034_s21 + $0x28] sm:$0xff] %v2277_v49   ;;  %2501 = vst [vmem:[%s3034_s21 + $0x68] sm:$0xff] %v2317_v50  }
 0x111   : > { %2492 = vst [vmem:[%s3034_s21 + $0x20] sm:$0xff] %v2272_v51   ;;  %2500 = vst [vmem:[%s3034_s21 + $0x60] sm:$0xff] %v2312_v52   ;;  %v2636_v53 = vpop.f32.mrb[12].mxu0  ;;  %v2652_v54 = vpop.f32.mrb[12].mxu1 }
 0x112   : > { %v726_v55 = vpop.f32.mrb[13].mxu0  ;;  %v790_v56 = vpop.f32.mrb[13].mxu1  ;;  %v735_v60 = vadd.f32 %v2636_v53, %v3022_v57  ;;  %v799_v61 = vadd.f32 %v2652_v54, %v3022_v57 }
 0x113   : > { %v2637_v58 = vpop.f32.mrb[14].mxu0  ;;  %v2653_v59 = vpop.f32.mrb[14].mxu1  ;;  %v727_v2 = vadd.f32 %v3022_v57, %v726_v55  ;;  %v791_v3 = vadd.f32 %v3022_v57, %v790_v56 }
 0x114   : > { %v738_v62 = vadd.f32 %v2637_v58, %v3022_v57  ;;  %v802_v63 = vadd.f32 %v2653_v59, %v3022_v57  ;;  %v729_v0 = vpop.f32.mrb[15].mxu0  ;;  %v793_v1 = vpop.f32.mrb[15].mxu1 }
 0x115   : > { %v730_v4 = vadd.f32 %v3022_v57, %v729_v0  ;;  %v794_v5 = vadd.f32 %v3022_v57, %v793_v1  ;;  %v3086_v57 = vld [vmem:[%s3206_s7] ss:$0 sm:$0xff] }
 0x116   : > { %v2287_v6 = vpack.c.bf16 %v738_v62, %v735_v60  ;;  %v2327_v7 = vpack.c.bf16 %v802_v63, %v799_v61 }
 0x117   : > { %v2282_v8 = vpack.c.bf16 %v730_v4, %v727_v2  ;;  %v2322_v9 = vpack.c.bf16 %v794_v5, %v791_v3 }
 0x118   : > { %2495 = vst [vmem:[%s3034_s21 + $0x38] sm:$0xff] %v2287_v6   ;;  %2503 = vst [vmem:[%s3034_s21 + $0x78] sm:$0xff] %v2327_v7  }
 0x119   : > { %2494 = vst [vmem:[%s3034_s21 + $0x30] sm:$0xff] %v2282_v8   ;;  %2502 = vst [vmem:[%s3034_s21 + $0x70] sm:$0xff] %v2322_v9   ;;  %v2672_v10 = vpop.f32.mrb[16].mxu1  ;;  %v2720_v12 = vpop.f32.mrb[16].mxu0 }
 0x11a   : > { %v1006_v13 = vpop.f32.mrb[17].mxu1  ;;  %v1238_v14 = vpop.f32.mrb[17].mxu0  ;;  %v1015_v17 = vadd.f32 %v2672_v10, %v3081_v11  ;;  %v1247_v18 = vadd.f32 %v2720_v12, %v3086_v57 }
 0x11b   : > { %v2673_v15 = vpop.f32.mrb[18].mxu1  ;;  %v2721_v16 = vpop.f32.mrb[18].mxu0  ;;  %v1007_v23 = vadd.f32 %v3081_v11, %v1006_v13  ;;  %v1239_v24 = vadd.f32 %v3086_v57, %v1238_v14 }
 0x11c   : > { %v1018_v19 = vadd.f32 %v2673_v15, %v3081_v11  ;;  %v1250_v20 = vadd.f32 %v2721_v16, %v3086_v57  ;;  %v1009_v21 = vpop.f32.mrb[19].mxu1  ;;  %v1241_v22 = vpop.f32.mrb[19].mxu0 }
 0x11d   : > { %v1010_v25 = vadd.f32 %v3081_v11, %v1009_v21  ;;  %v1242_v26 = vadd.f32 %v3086_v57, %v1241_v22 }
 0x11e   : > { %v2337_v27 = vpack.c.bf16 %v1018_v19, %v1015_v17  ;;  %v2417_v28 = vpack.c.bf16 %v1250_v20, %v1247_v18 }
 0x11f   : > { %v2332_v29 = vpack.c.bf16 %v1010_v25, %v1007_v23  ;;  %v2412_v30 = vpack.c.bf16 %v1242_v26, %v1239_v24 }
 0x120   : > { %2504 = vst [vmem:[%s3098_s30 + $0x8] sm:$0xff] %v2337_v27   ;;  %2519 = vst [vmem:[%s3104_s14 + $0x8] sm:$0xff] %v2417_v28  }
 0x121   : > { %2333 = vst [vmem:[%s3098_s30] sm:$0xff] %v2332_v29   ;;  %2413 = vst [vmem:[%s3104_s14] sm:$0xff] %v2412_v30   ;;  %v2676_v31 = vpop.f32.mrb[20].mxu1  ;;  %v2724_v32 = vpop.f32.mrb[20].mxu0 }
 0x122   : > { %v1022_v33 = vpop.f32.mrb[21].mxu1  ;;  %v1254_v34 = vpop.f32.mrb[21].mxu0  ;;  %v1031_v37 = vadd.f32 %v2676_v31, %v3081_v11  ;;  %v1263_v38 = vadd.f32 %v2724_v32, %v3086_v57 }
 0x123   : > { %v2677_v35 = vpop.f32.mrb[22].mxu1  ;;  %v2725_v36 = vpop.f32.mrb[22].mxu0  ;;  %v1023_v43 = vadd.f32 %v3081_v11, %v1022_v33  ;;  %v1255_v44 = vadd.f32 %v3086_v57, %v1254_v34 }
 0x124   : > { %v1034_v39 = vadd.f32 %v2677_v35, %v3081_v11  ;;  %v1266_v40 = vadd.f32 %v2725_v36, %v3086_v57  ;;  %v1025_v41 = vpop.f32.mrb[23].mxu1  ;;  %v1257_v42 = vpop.f32.mrb[23].mxu0 }
 0x125   : > { %v1026_v45 = vadd.f32 %v3081_v11, %v1025_v41  ;;  %v1258_v46 = vadd.f32 %v3086_v57, %v1257_v42 }
 0x126   : > { %v2347_v47 = vpack.c.bf16 %v1034_v39, %v1031_v37  ;;  %v2427_v48 = vpack.c.bf16 %v1266_v40, %v1263_v38 }
 0x127   : > { %v2342_v49 = vpack.c.bf16 %v1026_v45, %v1023_v43  ;;  %v2422_v50 = vpack.c.bf16 %v1258_v46, %v1255_v44 }
 0x128   : > { %2506 = vst [vmem:[%s3098_s30 + $0x18] sm:$0xff] %v2347_v47   ;;  %2521 = vst [vmem:[%s3104_s14 + $0x18] sm:$0xff] %v2427_v48  }
 0x129   : > { %2505 = vst [vmem:[%s3098_s30 + $0x10] sm:$0xff] %v2342_v49   ;;  %2520 = vst [vmem:[%s3104_s14 + $0x10] sm:$0xff] %v2422_v50   ;;  %v2680_v51 = vpop.f32.mrb[24].mxu1  ;;  %v2728_v52 = vpop.f32.mrb[24].mxu0 }
 0x12a   : > { %v1038_v53 = vpop.f32.mrb[25].mxu1  ;;  %v1270_v54 = vpop.f32.mrb[25].mxu0  ;;  %v1047_v58 = vadd.f32 %v2680_v51, %v3081_v11  ;;  %v1279_v59 = vadd.f32 %v2728_v52, %v3086_v57 }
 0x12b   : > { %v2681_v55 = vpop.f32.mrb[26].mxu1  ;;  %v2729_v56 = vpop.f32.mrb[26].mxu0  ;;  %v1039_v0 = vadd.f32 %v3081_v11, %v1038_v53  ;;  %v1271_v1 = vadd.f32 %v3086_v57, %v1270_v54 }
 0x12c   : > { %v1050_v60 = vadd.f32 %v2681_v55, %v3081_v11  ;;  %v1282_v61 = vadd.f32 %v2729_v56, %v3086_v57  ;;  %v1041_v62 = vpop.f32.mrb[27].mxu1  ;;  %v1273_v63 = vpop.f32.mrb[27].mxu0 }
 0x12d   : > { %v1042_v2 = vadd.f32 %v3081_v11, %v1041_v62  ;;  %v1274_v3 = vadd.f32 %v3086_v57, %v1273_v63 }
 0x12e   : > { %v2357_v4 = vpack.c.bf16 %v1050_v60, %v1047_v58  ;;  %v2437_v5 = vpack.c.bf16 %v1282_v61, %v1279_v59 }
 0x12f   : > { %v2352_v6 = vpack.c.bf16 %v1042_v2, %v1039_v0  ;;  %v2432_v7 = vpack.c.bf16 %v1274_v3, %v1271_v1 }
 0x130   : > { %2508 = vst [vmem:[%s3098_s30 + $0x28] sm:$0xff] %v2357_v4   ;;  %2523 = vst [vmem:[%s3104_s14 + $0x28] sm:$0xff] %v2437_v5  }
 0x131   : > { %2507 = vst [vmem:[%s3098_s30 + $0x20] sm:$0xff] %v2352_v6   ;;  %2522 = vst [vmem:[%s3104_s14 + $0x20] sm:$0xff] %v2432_v7   ;;  %v2684_v8 = vpop.f32.mrb[28].mxu1  ;;  %v2732_v9 = vpop.f32.mrb[28].mxu0 }
 0x132   : > { %v1054_v10 = vpop.f32.mrb[29].mxu1  ;;  %v1286_v12 = vpop.f32.mrb[29].mxu0  ;;  %v1063_v15 = vadd.f32 %v2684_v8, %v3081_v11  ;;  %v1295_v16 = vadd.f32 %v2732_v9, %v3086_v57 }
 0x133   : > { %v2685_v13 = vpop.f32.mrb[30].mxu1  ;;  %v2733_v14 = vpop.f32.mrb[30].mxu0  ;;  %v1055_v21 = vadd.f32 %v3081_v11, %v1054_v10  ;;  %v1287_v22 = vadd.f32 %v3086_v57, %v1286_v12 }
 0x134   : > { %v1066_v17 = vadd.f32 %v2685_v13, %v3081_v11  ;;  %v1298_v18 = vadd.f32 %v2733_v14, %v3086_v57  ;;  %v1057_v19 = vpop.f32.mrb[31].mxu1  ;;  %v1289_v20 = vpop.f32.mrb[31].mxu0 }
 0x135   : > { %v1058_v23 = vadd.f32 %v3081_v11, %v1057_v19  ;;  %v1290_v24 = vadd.f32 %v3086_v57, %v1289_v20 }
 0x136   : > { %v2367_v25 = vpack.c.bf16 %v1066_v17, %v1063_v15  ;;  %v2447_v26 = vpack.c.bf16 %v1298_v18, %v1295_v16 }
 0x137   : > { %v2362_v27 = vpack.c.bf16 %v1058_v23, %v1055_v21  ;;  %v2442_v28 = vpack.c.bf16 %v1290_v24, %v1287_v22 }
 0x138   : > { %2510 = vst [vmem:[%s3098_s30 + $0x38] sm:$0xff] %v2367_v25   ;;  %2525 = vst [vmem:[%s3104_s14 + $0x38] sm:$0xff] %v2447_v26  }
 0x139   : > { %2509 = vst [vmem:[%s3098_s30 + $0x30] sm:$0xff] %v2362_v27   ;;  %2524 = vst [vmem:[%s3104_s14 + $0x30] sm:$0xff] %v2442_v28   ;;  %v2688_v29 = vpop.f32.mrb[32].mxu1  ;;  %v2736_v30 = vpop.f32.mrb[32].mxu0 }
 0x13a   : > { %v1070_v31 = vpop.f32.mrb[33].mxu1  ;;  %v1302_v32 = vpop.f32.mrb[33].mxu0  ;;  %v1079_v35 = vadd.f32 %v2688_v29, %v3081_v11  ;;  %v1311_v36 = vadd.f32 %v2736_v30, %v3086_v57 }
 0x13b   : > { %v2689_v33 = vpop.f32.mrb[34].mxu1  ;;  %v2737_v34 = vpop.f32.mrb[34].mxu0  ;;  %v1071_v41 = vadd.f32 %v3081_v11, %v1070_v31  ;;  %v1303_v42 = vadd.f32 %v3086_v57, %v1302_v32 }
 0x13c   : > { %v1082_v37 = vadd.f32 %v2689_v33, %v3081_v11  ;;  %v1314_v38 = vadd.f32 %v2737_v34, %v3086_v57  ;;  %v1073_v39 = vpop.f32.mrb[35].mxu1  ;;  %v1305_v40 = vpop.f32.mrb[35].mxu0 }
 0x13d   : > { %v1074_v43 = vadd.f32 %v3081_v11, %v1073_v39  ;;  %v1306_v44 = vadd.f32 %v3086_v57, %v1305_v40 }
 0x13e   : > { %v2377_v45 = vpack.c.bf16 %v1082_v37, %v1079_v35  ;;  %v2457_v46 = vpack.c.bf16 %v1314_v38, %v1311_v36 }
 0x13f   : > { %v2372_v47 = vpack.c.bf16 %v1074_v43, %v1071_v41  ;;  %v2452_v48 = vpack.c.bf16 %v1306_v44, %v1303_v42 }
 0x140   : > { %2512 = vst [vmem:[%s3098_s30 + $0x48] sm:$0xff] %v2377_v45   ;;  %2527 = vst [vmem:[%s3104_s14 + $0x48] sm:$0xff] %v2457_v46  }
 0x141   : > { %2511 = vst [vmem:[%s3098_s30 + $0x40] sm:$0xff] %v2372_v47   ;;  %2526 = vst [vmem:[%s3104_s14 + $0x40] sm:$0xff] %v2452_v48   ;;  %v2692_v49 = vpop.f32.mrb[36].mxu1  ;;  %v2740_v50 = vpop.f32.mrb[36].mxu0 }
 0x142   : > { %v1086_v51 = vpop.f32.mrb[37].mxu1  ;;  %v1318_v52 = vpop.f32.mrb[37].mxu0  ;;  %v1095_v55 = vadd.f32 %v2692_v49, %v3081_v11  ;;  %v1327_v56 = vadd.f32 %v2740_v50, %v3086_v57 }
 0x143   : > { %v2693_v53 = vpop.f32.mrb[38].mxu1  ;;  %v2741_v54 = vpop.f32.mrb[38].mxu0  ;;  %v1087_v62 = vadd.f32 %v3081_v11, %v1086_v51  ;;  %v1319_v63 = vadd.f32 %v3086_v57, %v1318_v52 }
 0x144   : > { %v1098_v58 = vadd.f32 %v2693_v53, %v3081_v11  ;;  %v1330_v59 = vadd.f32 %v2741_v54, %v3086_v57  ;;  %v1089_v60 = vpop.f32.mrb[39].mxu1  ;;  %v1321_v61 = vpop.f32.mrb[39].mxu0 }
 0x145   : > { %v1090_v0 = vadd.f32 %v3081_v11, %v1089_v60  ;;  %v1322_v1 = vadd.f32 %v3086_v57, %v1321_v61 }
 0x146   : > { %v2387_v2 = vpack.c.bf16 %v1098_v58, %v1095_v55  ;;  %v2467_v3 = vpack.c.bf16 %v1330_v59, %v1327_v56 }
 0x147   : > { %v2382_v4 = vpack.c.bf16 %v1090_v0, %v1087_v62  ;;  %v2462_v5 = vpack.c.bf16 %v1322_v1, %v1319_v63 }
 0x148   : > { %2514 = vst [vmem:[%s3098_s30 + $0x58] sm:$0xff] %v2387_v2   ;;  %2529 = vst [vmem:[%s3104_s14 + $0x58] sm:$0xff] %v2467_v3  }
 0x149   : > { %2513 = vst [vmem:[%s3098_s30 + $0x50] sm:$0xff] %v2382_v4   ;;  %2528 = vst [vmem:[%s3104_s14 + $0x50] sm:$0xff] %v2462_v5   ;;  %v2696_v6 = vpop.f32.mrb[40].mxu1  ;;  %v2744_v7 = vpop.f32.mrb[40].mxu0 }
 0x14a   : > { %v1102_v8 = vpop.f32.mrb[41].mxu1  ;;  %v1334_v9 = vpop.f32.mrb[41].mxu0  ;;  %v1111_v13 = vadd.f32 %v2696_v6, %v3081_v11  ;;  %v1343_v14 = vadd.f32 %v2744_v7, %v3086_v57 }
 0x14b   : > { %v2697_v10 = vpop.f32.mrb[42].mxu1  ;;  %v2745_v12 = vpop.f32.mrb[42].mxu0  ;;  %v1103_v19 = vadd.f32 %v3081_v11, %v1102_v8  ;;  %v1335_v20 = vadd.f32 %v3086_v57, %v1334_v9 }
 0x14c   : > { %v1114_v15 = vadd.f32 %v2697_v10, %v3081_v11  ;;  %v1346_v16 = vadd.f32 %v2745_v12, %v3086_v57  ;;  %v1105_v17 = vpop.f32.mrb[43].mxu1  ;;  %v1337_v18 = vpop.f32.mrb[43].mxu0 }
 0x14d   : > { %v1106_v21 = vadd.f32 %v3081_v11, %v1105_v17  ;;  %v1338_v22 = vadd.f32 %v3086_v57, %v1337_v18 }
 0x14e   : > { %v2397_v23 = vpack.c.bf16 %v1114_v15, %v1111_v13  ;;  %v2477_v24 = vpack.c.bf16 %v1346_v16, %v1343_v14 }
 0x14f   : > { %v2392_v25 = vpack.c.bf16 %v1106_v21, %v1103_v19  ;;  %v2472_v26 = vpack.c.bf16 %v1338_v22, %v1335_v20 }
 0x150   : > { %2516 = vst [vmem:[%s3098_s30 + $0x68] sm:$0xff] %v2397_v23   ;;  %2531 = vst [vmem:[%s3104_s14 + $0x68] sm:$0xff] %v2477_v24  }
 0x151   : > { %2515 = vst [vmem:[%s3098_s30 + $0x60] sm:$0xff] %v2392_v25   ;;  %2530 = vst [vmem:[%s3104_s14 + $0x60] sm:$0xff] %v2472_v26   ;;  %v2700_v27 = vpop.f32.mrb[44].mxu1  ;;  %v2748_v28 = vpop.f32.mrb[44].mxu0 }
 0x152   : > { %v1118_v29 = vpop.f32.mrb[45].mxu1  ;;  %v1350_v30 = vpop.f32.mrb[45].mxu0  ;;  %v1127_v33 = vadd.f32 %v2700_v27, %v3081_v11  ;;  %v1359_v34 = vadd.f32 %v2748_v28, %v3086_v57 }
 0x153   : > { %v2701_v31 = vpop.f32.mrb[46].mxu1  ;;  %v2749_v32 = vpop.f32.mrb[46].mxu0  ;;  %v1119_v39 = vadd.f32 %v3081_v11, %v1118_v29  ;;  %v1351_v40 = vadd.f32 %v3086_v57, %v1350_v30 }
 0x154   : > { %v1130_v35 = vadd.f32 %v2701_v31, %v3081_v11  ;;  %v1362_v36 = vadd.f32 %v2749_v32, %v3086_v57  ;;  %v1121_v37 = vpop.f32.mrb[47].mxu1  ;;  %v1353_v38 = vpop.f32.mrb[47].mxu0 }
 0x155   : > { %v1122_v41 = vadd.f32 %v3081_v11, %v1121_v37  ;;  %v1354_v42 = vadd.f32 %v3086_v57, %v1353_v38 }
 0x156   : > { %v2407_v43 = vpack.c.bf16 %v1130_v35, %v1127_v33  ;;  %v2487_v44 = vpack.c.bf16 %v1362_v36, %v1359_v34 }
 0x157   : > { %v2402_v45 = vpack.c.bf16 %v1122_v41, %v1119_v39  ;;  %v2482_v46 = vpack.c.bf16 %v1354_v42, %v1351_v40 }
 0x158   : > { %2518 = vst [vmem:[%s3098_s30 + $0x78] sm:$0xff] %v2407_v43   ;;  %2533 = vst [vmem:[%s3104_s14 + $0x78] sm:$0xff] %v2487_v44  }
 0x159   : > { %2517 = vst [vmem:[%s3098_s30 + $0x70] sm:$0xff] %v2402_v45   ;;  %2532 = vst [vmem:[%s3104_s14 + $0x70] sm:$0xff] %v2482_v46  }
 0x15a PF: > { %s21_s13 = sadd.s32 1, %s2836_s13  }
 0x15b   : > { %p18_p4 = scmp.ge.s32.totalorder %s21_s13, 4  }
 0x15d   :  { %20 = sbr.rel (!%p18_p4) target bundleno = 1 (0x1), region = 109 }

// kernel: hybrid_encoder_forward.27
= control target key start
LH: loop header
LB: loop body
LE: loop exit
PB: predicated region body
PF: predicated region fallthrough
CT: control target
= control target key end

     0   :  { %8 = vsyncpa [#allocation3], 0  ;;  %s1958_s0 = inlined_call_operand.vmem [shape: bf16[512,384], index: 0, kind: input, shape index: {}]   ;;  %s1959_s1 = inlined_call_operand.vmem [shape: bf16[384,128], index: 1, kind: input, shape index: {}]   ;;  %s1960_s2 = inlined_call_operand.vmem [shape: f32[1,128], index: 2, kind: input, shape index: {}]   ;;  %s1961_s3 = inlined_call_operand.hbm [shape: f32[512,128], index: 3, kind: output, shape index: {}]  }
   0x1   :  { %10 = vsyncpa [#allocation3 + $0x1], 0  ;;  %s1628_s12 = smov 0   ;;  %s1630_s13 = smov 0  }
   0x2   :  { %s1632_s14 = smov 0   ;;  %s1634_s15 = smov 0  }
   0x3 LB: > { %s1649_s16 = sadd.s32 4294967295, %s1603_s15   ;;  %s1125_s17 = sadd.s32 4294967294, %s1603_s15   ;;  %s1603_s15 = sphi %s1634_s15, %s1967_s15   ;;  %s1599_s14 = sphi %s1632_s14, %s1966_s14   ;;  %s1595_s13 = sphi %s1630_s13, %s1965_s13   ;;  %s1591_s12 = sphi %s1628_s12, %s1964_s12  }
   0x4   : > { %s1653_s18 = sadd.s32 1, %s1603_s15   ;;  %s91_s19 = sadd.s32 1, %s1599_s14 }
   0x5   : > { %s88_s20 = ssub.s32 %s1603_s15, %s1653_s18  ;;  %p101_p0 = scmp.ne.s32.totalorder %s1599_s14, %s1595_s13 }
   0x6   : > { %p89_p1 = scmp.eq.s32.totalorder %s88_s20, 0  ;;  %p102_p2 = scmp.eq.s32.totalorder %s1649_s16, 1 }
   0x7   : > { %p107_p3 = scmp.ne.s32.totalorder %s1595_s13, %s1591_s12  ;;  %p108_p4 = scmp.eq.s32.totalorder %s1125_s17, 1 }
   0x8   : > { %s1664_s21 = scalar_select %p89_p1, %s1599_s14, %s91_s19  }
   0x9   : > { %p1666_p5 = por %p102_p2, %p101_p0  ;;  %p1670_p6 = por %p108_p4, %p107_p3 }
   0xa   : > { %p1128_p7 = scmp.ge.s32.totalorder %s1603_s15, 1  ;;  %p142_p8 = scmp.lt.s32.totalorder %s1603_s15, 3 }
   0xc   : > { %p143_p9 = pnand %p1128_p7, %p142_p8 }
   0xd   : > { %v1453_v0 = vld [vmem:[%s1959_s1 + $0x40] sm:$0xff] (!%p143_p9)   ;;  %s1130_s26 = sshll.u32 (!%p143_p9), %s1649_s16, 5  ;;  %v1455_v2 = vld [vmem:[%s1959_s1 + $0x48] sm:$0xff] (!%p143_p9)   ;;  %v1457_v4 = vld [vmem:[%s1959_s1 + $0x50] sm:$0xff] (!%p143_p9)   ;;  %s1605_s8 = smov (!%p143_p9), [#allocation2]  }
   0xe   : > { %146 = sbr.rel (%p143_p9) target bundleno = 370 (0x172), region = 32  ;;  %v1454_v1 = vld [vmem:[%s1959_s1] sm:$0xff] (!%p143_p9)   ;;  %1211 = vmatprep.subr.bf16.mxu0 (!%p143_p9), %v1453_v0  ;;  %1395 = vmatprep.subr.bf16.mxu1 (!%p143_p9), %v1453_v0  ;;  %p168_p10 = scmp.lt.s32.totalorder (!%p143_p9), %s1130_s26, 63  ;;  %v1456_v3 = vld [vmem:[%s1959_s1 + $0x8] sm:$0xff] (!%p143_p9)   ;;  %v1458_v5 = vld [vmem:[%s1959_s1 + $0x10] sm:$0xff] (!%p143_p9)  }
   0xf   : > { %1212 = vmatpush3.bf16.msra.mxu0 (!%p143_p9), %v1454_v1  ;;  %1403 = vmatpush3.bf16.msra.mxu1 (!%p143_p9), %v1454_v1  ;;  %v1459_v6 = vld [vmem:[%s1959_s1 + $0x58] sm:$0xff] (!%p143_p9)   ;;  %v1461_v8 = vld [vmem:[%s1959_s1 + $0x60] sm:$0xff] (!%p143_p9)   ;;  %v1463_v10 = vld [vmem:[%s1959_s1 + $0x68] sm:$0xff] (!%p143_p9)   ;;  %s1545_s9 = sshll.u32 (!%p143_p9), %s1605_s8, 4  ;;  %s1546_s9 = int_to_ptr.vmem [resolvable:$false] %s1545_s9 }
  0x10   : > { %1213 = vmatprep.subr.bf16.mxu0 (!%p143_p9), %v1455_v2  ;;  %1396 = vmatprep.subr.bf16.mxu1 (!%p143_p9), %v1455_v2  ;;  %v1460_v7 = vld [vmem:[%s1959_s1 + $0x18] sm:$0xff] (!%p143_p9)   ;;  %v1462_v9 = vld [vmem:[%s1959_s1 + $0x20] sm:$0xff] (!%p143_p9)   ;;  %v1464_v13 = vld [vmem:[%s1959_s1 + $0x28] sm:$0xff] (!%p143_p9)   ;;  %s1547_s10 = scalar_lea.vmem (!%p143_p9), %s1546_s9, 8192 }
  0x11   : > { %v1465_v14 = vld [vmem:[%s1959_s1 + $0x70] sm:$0xff] (!%p143_p9)   ;;  %v1467_v16 = vld [vmem:[%s1959_s1 + $0x78] sm:$0xff] (!%p143_p9)   ;;  %v1475_v18 = vld [vmem:[%s1959_s1 + $0x80] sm:$0xff] (!%p143_p9)  }
  0x12   : > { %v1466_v15 = vld [vmem:[%s1959_s1 + $0x30] sm:$0xff] (!%p143_p9)   ;;  %v1468_v17 = vld [vmem:[%s1959_s1 + $0x38] sm:$0xff] (!%p143_p9)   ;;  %v1476_v22 = vld [vmem:[%s1959_s1 + $0x88] sm:$0xff] (!%p143_p9)  }
  0x13   : > { %1214 = vmatpush3.bf16.msra.mxu0 (!%p143_p9), %v1456_v3  ;;  %1404 = vmatpush3.bf16.msra.mxu1 (!%p143_p9), %v1456_v3  ;;  %v1483_v25 = vld [vmem:[%s1959_s1 + $0x90] sm:$0xff] (!%p143_p9)   ;;  %v1484_v27 = vld [vmem:[%s1959_s1 + $0x98] sm:$0xff] (!%p143_p9)   ;;  %v1491_v30 = vld [vmem:[%s1959_s1 + $0xa0] sm:$0xff] (!%p143_p9)  }
  0x14   : > { %1215 = vmatprep.subr.bf16.mxu0 (!%p143_p9), %v1457_v4  ;;  %1397 = vmatprep.subr.bf16.mxu1 (!%p143_p9), %v1457_v4  ;;  %v1492_v33 = vld [vmem:[%s1959_s1 + $0xa8] sm:$0xff] (!%p143_p9)   ;;  %v1499_v36 = vld [vmem:[%s1959_s1 + $0xb0] sm:$0xff] (!%p143_p9)   ;;  %v1500_v40 = vld [vmem:[%s1959_s1 + $0xb8] sm:$0xff] (!%p143_p9)  }
  0x15   : > { %s1969_s26 = smov (!%p168_p10, %s1130_s26), 63 }
  0x16   : > { %s1411_s17 = smul.u32 12, %s1969_s26  ;;  %s1210_s26 = sshll.u32 %s1649_s16, 12 }
  0x17   : > { %1216 = vmatpush3.bf16.msra.mxu0 %v1458_v5  ;;  %1405 = vmatpush3.bf16.msra.mxu1 %v1458_v5  ;;  %s1908_s6 = scalar_lea.hbm %s1961_s3, %s1210_s26 }
  0x18   : > { %1217 = vmatprep.subr.bf16.mxu0 %v1459_v6  ;;  %1398 = vmatprep.subr.bf16.mxu1 %v1459_v6  ;;  %s1707_s29 = scalar_lea.vmem %s1958_s0, %s1411_s17 }
  0x19   : > { %v1471_v11 = vld [vmem:[%s1707_s29 + $0x4] ss:$12 sps:$4 sm:$0xff]   ;;  %v1469_v19 = vld [vmem:[%s1707_s29] ss:$12 sps:$4 sm:$0xff]   ;;  %v1477_v21 = vld [vmem:[%s1707_s29 + $0x1c] ss:$12 sps:$4 sm:$0xff]  }
  0x1a   : > { %v1474_v12 = vld [vmem:[%s1707_s29 + $0x124] ss:$12 sps:$4 sm:$0xff]   ;;  %727 = vmatprep.mubr.bf16.mxu0 %v1471_v11  ;;  %v1472_v20 = vld [vmem:[%s1707_s29 + $0x120] ss:$12 sps:$4 sm:$0xff]   ;;  %v1479_v23 = vld [vmem:[%s1707_s29 + $0x13c] ss:$12 sps:$4 sm:$0xff]  }
  0x1b   : > { %1218 = vmatpush3.bf16.msra.mxu0 %v1460_v7  ;;  %1406 = vmatpush3.bf16.msra.mxu1 %v1460_v7  ;;  %v1481_v24 = vld [vmem:[%s1707_s29 + $0x18] ss:$12 sps:$4 sm:$0xff]   ;;  %v1485_v28 = vld [vmem:[%s1707_s29 + $0x34] ss:$12 sps:$4 sm:$0xff]   ;;  %v1489_v31 = vld [vmem:[%s1707_s29 + $0x30] ss:$12 sps:$4 sm:$0xff]  }
  0x1c   : > { %1219 = vmatprep.subr.bf16.mxu0 %v1461_v8  ;;  %1399 = vmatprep.subr.bf16.mxu1 %v1461_v8  ;;  %v1482_v26 = vld [vmem:[%s1707_s29 + $0x138] ss:$12 sps:$4 sm:$0xff]   ;;  %v1487_v29 = vld [vmem:[%s1707_s29 + $0x154] ss:$12 sps:$4 sm:$0xff]   ;;  %v1490_v32 = vld [vmem:[%s1707_s29 + $0x150] ss:$12 sps:$4 sm:$0xff]  }
  0x1d   : > { %823 = vmatprep.mubr.bf16.mxu1 %v1474_v12  ;;  %v1493_v34 = vld [vmem:[%s1707_s29 + $0x4c] ss:$12 sps:$4 sm:$0xff]   ;;  %v1497_v37 = vld [vmem:[%s1707_s29 + $0x48] ss:$12 sps:$4 sm:$0xff]   ;;  %v1501_v39 = vld [vmem:[%s1707_s29 + $0x64] ss:$12 sps:$4 sm:$0xff]  }
  0x1e   : > { %v1495_v35 = vld [vmem:[%s1707_s29 + $0x16c] ss:$12 sps:$4 sm:$0xff]   ;;  %v1498_v38 = vld [vmem:[%s1707_s29 + $0x168] ss:$12 sps:$4 sm:$0xff]   ;;  %v1510_v47 = vld [vmem:[%s1707_s29 + $0x50] ss:$12 sps:$4 sm:$0xff]  }
  0x1f   : > { %1220 = vmatpush3.bf16.msra.mxu0 %v1462_v9  ;;  %1407 = vmatpush3.bf16.msra.mxu1 %v1462_v9  ;;  %v1503_v41 = vld [vmem:[%s1707_s29 + $0x8] ss:$12 sps:$4 sm:$0xff]   ;;  %v1504_v42 = vld [vmem:[%s1707_s29 + $0x60] ss:$12 sps:$4 sm:$0xff]   ;;  %v1508_v45 = vld [vmem:[%s1707_s29 + $0x38] ss:$12 sps:$4 sm:$0xff]  }
  0x20   : > { %1221 = vmatprep.subr.bf16.mxu0 %v1463_v10  ;;  %1400 = vmatprep.subr.bf16.mxu1 %v1463_v10  ;;  %v1505_v43 = vld [vmem:[%s1707_s29 + $0x20] ss:$12 sps:$4 sm:$0xff]   ;;  %v1506_v44 = vld [vmem:[%s1707_s29 + $0x7c] ss:$12 sps:$4 sm:$0xff]   ;;  %v1509_v46 = vld [vmem:[%s1707_s29 + $0x78] ss:$12 sps:$4 sm:$0xff]  }
  0x21   : > { %v1511_v48 = vld [vmem:[%s1707_s29 + $0x94] ss:$12 sps:$4 sm:$0xff]   ;;  %v1514_v50 = vld [vmem:[%s1707_s29 + $0x90] ss:$12 sps:$4 sm:$0xff]   ;;  %v1516_v52 = vld [vmem:[%s1707_s29 + $0xac] ss:$12 sps:$4 sm:$0xff]  }
  0x22   : > { %v1513_v49 = vld [vmem:[%s1707_s29 + $0x68] ss:$12 sps:$4 sm:$0xff]   ;;  %v1515_v51 = vld [vmem:[%s1707_s29 + $0x80] ss:$12 sps:$4 sm:$0xff]   ;;  %v1518_v53 = vld [vmem:[%s1707_s29 + $0x98] ss:$12 sps:$4 sm:$0xff]  }
  0x23   : > { %1222 = vmatpush3.bf16.msra.mxu0 %v1464_v13  ;;  %1408 = vmatpush3.bf16.msra.mxu1 %v1464_v13  ;;  %v1519_v54 = vld [vmem:[%s1707_s29 + $0xa8] ss:$12 sps:$4 sm:$0xff]   ;;  %v1520_v55 = vld [vmem:[%s1707_s29 + $0xb0] ss:$12 sps:$4 sm:$0xff]   ;;  %v1524_v58 = vld [vmem:[%s1707_s29 + $0xc0] ss:$12 sps:$4 sm:$0xff]  }
  0x24   : > { %1223 = vmatprep.subr.bf16.mxu0 %v1465_v14  ;;  %1401 = vmatprep.subr.bf16.mxu1 %v1465_v14  ;;  %v1521_v56 = vld [vmem:[%s1707_s29 + $0xc4] ss:$12 sps:$4 sm:$0xff]   ;;  %v1523_v57 = vld [vmem:[%s1707_s29 + $0xc8] ss:$12 sps:$4 sm:$0xff]   ;;  %v1525_v59 = vld [vmem:[%s1707_s29 + $0xe0] ss:$12 sps:$4 sm:$0xff]  }
  0x25   : > { %v1526_v60 = vld [vmem:[%s1707_s29 + $0xdc] ss:$12 sps:$4 sm:$0xff]   ;;  %v1528_v61 = vld [vmem:[%s1707_s29 + $0xf8] ss:$12 sps:$4 sm:$0xff]   ;;  %v1531_v0 = vld [vmem:[%s1707_s29 + $0xf4] ss:$12 sps:$4 sm:$0xff]  }
  0x26   : > { %v1529_v62 = vld [vmem:[%s1707_s29 + $0xd8] ss:$12 sps:$4 sm:$0xff]   ;;  %v1530_v63 = vld [vmem:[%s1707_s29 + $0x110] ss:$12 sps:$4 sm:$0xff]   ;;  %v1533_v1 = vld [vmem:[%s1707_s29 + $0x128] ss:$12 sps:$4 sm:$0xff]  }
  0x27   : > { %1224 = vmatpush3.bf16.msra.mxu0 %v1466_v15  ;;  %1409 = vmatpush3.bf16.msra.mxu1 %v1466_v15  ;;  %v1534_v2 = vld [vmem:[%s1707_s29 + $0xf0] ss:$12 sps:$4 sm:$0xff]   ;;  %v1535_v3 = vld [vmem:[%s1707_s29 + $0x140] ss:$12 sps:$4 sm:$0xff]   ;;  %v1538_v5 = vld [vmem:[%s1707_s29 + $0x158] ss:$12 sps:$4 sm:$0xff]  }
  0x28   : > { %1225 = vmatprep.subr.bf16.mxu0 %v1467_v16  ;;  %1402 = vmatprep.subr.bf16.mxu1 %v1467_v16  ;;  %v1536_v4 = vld [vmem:[%s1707_s29 + $0x10c] ss:$12 sps:$4 sm:$0xff]   ;;  %v1539_v6 = vld [vmem:[%s1707_s29 + $0x108] ss:$12 sps:$4 sm:$0xff]   ;;  %v1540_v7 = vld [vmem:[%s1707_s29 + $0x170] ss:$12 sps:$4 sm:$0xff]  }
  0x29   : > { %s164_s29 = sand.u32 1, %s1595_s13  }
  0x2a   : > { %s1129_s24 = sshll.u32 %s164_s29, 8  ;;  %s1917_s16 = scalar_lea.sflag [#allocation3], %s164_s29 }
  0x2b   : > { %1226 = vmatpush3.bf16.msra.mxu0 %v1468_v17  ;;  %1410 = vmatpush3.bf16.msra.mxu1 %v1468_v17  ;;  %s1830_s28 = scalar_lea.vmem [#allocation2], %s1129_s24 }
  0x2c   : > { %1347 = vmatprep.subr.bf16.mxu1 %v1475_v18  ;;  %s1063_s30 = sshll.u32 %s1830_s28, 4  ;;  %s1910_s30 = int_to_ptr.vmem [resolvable:$true] %s1063_s30 }
  0x2d   : > { %s1541_s7 = scalar_lea.vmem %s1910_s30, 4096  ;;  %p1548_p0 = scmp.lt.s32.totalorder %s1910_s30, %s1546_s9 }
  0x2e   : > { %728 = vmatmul.mubr.bf16.vlgmr.msra.gmra.mrb[0].mxu0 %v1469_v19  ;;  %824 = vmatmul.mubr.bf16.vlgmr.msra.gmra.mrb[0].mxu1 %v1472_v20  ;;  %p1542_p11 = scmp.ne.s32.totalorder %s1910_s30, %s1541_s7  ;;  %p1549_p1 = scmp.lt.s32.totalorder %s1547_s10, %s1541_s7 }
  0x2f   : > { %1348 = vmatpush3.bf16.msra.mxu1 %v1475_v18  ;;  %735 = vmatprep.mubr.bf16.mxu0 %v1477_v21 }
  0x30   : > { %1349 = vmatprep.subr.bf16.mxu1 %v1476_v22  ;;  %831 = vmatprep.mubr.bf16.mxu1 %v1479_v23  ;;  %p1543_p12 = pnand %p1542_p11, %p1666_p5  ;;  %p1550_p2 = por %p1549_p1, %p1548_p0 }
  0x32   : > { %p1544_p13 = pneg %p1543_p12 }
  0x33   : > { %1350 = vmatpush3.bf16.msra.mxu1 %v1476_v22 }
  0x34   : > { %1351 = vmatprep.subr.bf16.mxu1 %v1483_v25  ;;  %p1551_p3 = pnand %p1550_p2, %p1544_p13 }
  0x36   : > { %736 = vmatmul.mubr.bf16.gmra.mrb[4].mxu0 %v1481_v24  ;;  %832 = vmatmul.mubr.bf16.gmra.mrb[4].mxu1 %v1482_v26 }
  0x37   : > { %1352 = vmatpush3.bf16.msra.mxu1 %v1483_v25  ;;  %743 = vmatprep.mubr.bf16.mxu0 %v1485_v28 }
  0x38   : > { %1353 = vmatprep.subr.bf16.mxu1 %v1484_v27  ;;  %839 = vmatprep.mubr.bf16.mxu1 %v1487_v29 }
  0x3b   : > { %1354 = vmatpush3.bf16.msra.mxu1 %v1484_v27 }
  0x3c   : > { %1355 = vmatprep.subr.bf16.mxu1 %v1491_v30 }
  0x3e   : > { %744 = vmatmul.mubr.bf16.gmra.mrb[8].mxu0 %v1489_v31  ;;  %840 = vmatmul.mubr.bf16.gmra.mrb[8].mxu1 %v1490_v32 }
  0x3f   : > { %1356 = vmatpush3.bf16.msra.mxu1 %v1491_v30  ;;  %751 = vmatprep.mubr.bf16.mxu0 %v1493_v34 }
  0x40   : > { %1357 = vmatprep.subr.bf16.mxu1 %v1492_v33  ;;  %847 = vmatprep.mubr.bf16.mxu1 %v1495_v35 }
  0x43   : > { %1358 = vmatpush3.bf16.msra.mxu1 %v1492_v33 }
  0x44   : > { %1359 = vmatprep.subr.bf16.mxu1 %v1499_v36 }
  0x46   : > { %752 = vmatmul.mubr.bf16.gmra.mrb[12].mxu0 %v1497_v37  ;;  %848 = vmatmul.mubr.bf16.gmra.mrb[12].mxu1 %v1498_v38 }
  0x47   : > { %1360 = vmatpush3.bf16.msra.mxu1 %v1499_v36  ;;  %759 = vmatprep.mubr.bf16.mxu0 %v1501_v39 }
  0x48   : > { %1361 = vmatprep.subr.bf16.mxu1 %v1500_v40  ;;  %1363 = vmatprep.mubr.bf16.mxu1 %v1503_v41 }
  0x4b   : > { %1362 = vmatpush3.bf16.msra.mxu1 %v1500_v40 }
  0x4e   : > { %760 = vmatmul.mubr.bf16.gmra.mrb[16].mxu0 %v1504_v42  ;;  %1364 = vmatmul.mubr.bf16.vlgmr.msra.gmra.mrb[16].mxu1 %v1505_v43 }
  0x4f   : > { %767 = vmatprep.mubr.bf16.mxu0 %v1506_v44  ;;  %1367 = vmatprep.mubr.bf16.mxu1 %v1508_v45 }
  0x56   : > { %768 = vmatmul.mubr.bf16.gmra.mrb[20].mxu0 %v1509_v46  ;;  %1368 = vmatmul.mubr.bf16.gmra.mrb[20].mxu1 %v1510_v47 }
  0x57   : > { %775 = vmatprep.mubr.bf16.mxu0 %v1511_v48  ;;  %1371 = vmatprep.mubr.bf16.mxu1 %v1513_v49 }
  0x5e   : > { %776 = vmatmul.mubr.bf16.gmra.mrb[24].mxu0 %v1514_v50  ;;  %1372 = vmatmul.mubr.bf16.gmra.mrb[24].mxu1 %v1515_v51 }
  0x5f   : > { %783 = vmatprep.mubr.bf16.mxu0 %v1516_v52  ;;  %1375 = vmatprep.mubr.bf16.mxu1 %v1518_v53 }
  0x66   : > { %784 = vmatmul.mubr.bf16.gmra.mrb[28].mxu0 %v1519_v54  ;;  %1376 = vmatmul.mubr.bf16.gmra.mrb[28].mxu1 %v1520_v55 }
  0x67   : > { %791 = vmatprep.mubr.bf16.mxu0 %v1521_v56  ;;  %1379 = vmatprep.mubr.bf16.mxu1 %v1523_v57  ;;  %v1824_v56 = vld [vmem:[%s1960_s2] ss:$0 sm:$0xff] }
  0x6e   : > { %792 = vmatmul.mubr.bf16.gmra.mrb[32].mxu0 %v1524_v58  ;;  %1380 = vmatmul.mubr.bf16.gmra.mrb[32].mxu1 %v1525_v59 }
  0x6f   : > { %799 = vmatprep.mubr.bf16.mxu0 %v1526_v60  ;;  %1383 = vmatprep.mubr.bf16.mxu1 %v1528_v61 }
  0x76   : > { %800 = vmatmul.mubr.bf16.gmra.mrb[36].mxu0 %v1529_v62  ;;  %1384 = vmatmul.mubr.bf16.gmra.mrb[36].mxu1 %v1530_v63 }
  0x77   : > { %807 = vmatprep.mubr.bf16.mxu0 %v1531_v0  ;;  %1387 = vmatprep.mubr.bf16.mxu1 %v1533_v1 }
  0x7e   : > { %808 = vmatmul.mubr.bf16.gmra.mrb[40].mxu0 %v1534_v2  ;;  %1388 = vmatmul.mubr.bf16.gmra.mrb[40].mxu1 %v1535_v3 }
  0x7f   : > { %815 = vmatprep.mubr.bf16.mxu0 %v1536_v4  ;;  %1391 = vmatprep.mubr.bf16.mxu1 %v1538_v5 }
  0x86   : > { %816 = vmatmul.mubr.bf16.gmra.mrb[44].mxu0 %v1539_v6  ;;  %1392 = vmatmul.mubr.bf16.gmra.mrb[44].mxu1 %v1540_v7 }
 0x101   : > { %v1227_v8 = vpop.f32.mrb[0].mxu0  ;;  %v1299_v9 = vpop.f32.mrb[0].mxu1 }
 0x102   : > { %v1228_v10 = vpop.f32.mrb[1].mxu0  ;;  %v1300_v11 = vpop.f32.mrb[1].mxu1 }
 0x103   : > { %v1229_v12 = vadd.f32 %v1228_v10, %v1227_v8  ;;  %v1230_v13 = vpop.f32.mrb[2].mxu0  ;;  %v1802_v14 = vadd.f32 %v1300_v11, %v1299_v9  ;;  %v1302_v15 = vpop.f32.mrb[2].mxu1 }
 0x104   : > { %v1231_v16 = vpop.f32.mrb[3].mxu0  ;;  %v1303_v17 = vpop.f32.mrb[3].mxu1 }
 0x105   : > { %v1232_v18 = vadd.f32 %v1231_v16, %v1230_v13  ;;  %v1804_v19 = vadd.f32 %v1303_v17, %v1302_v15  ;;  %v730_v60 = vadd.f32 %v1229_v12, %v1824_v56 }
 0x107   : > { %v733_v5 = vadd.f32 %v1232_v18, %v1824_v56 }
 0x109   : > { %v1233_v20 = vpop.f32.mrb[4].mxu0  ;;  %v1305_v21 = vpop.f32.mrb[4].mxu1 }
 0x10a   : > { %v1234_v22 = vpop.f32.mrb[5].mxu0  ;;  %v1306_v23 = vpop.f32.mrb[5].mxu1 }
 0x10b   : > { %v1235_v24 = vadd.f32 %v1234_v22, %v1233_v20  ;;  %v1236_v25 = vpop.f32.mrb[6].mxu0  ;;  %v1806_v26 = vadd.f32 %v1306_v23, %v1305_v21  ;;  %v1308_v27 = vpop.f32.mrb[6].mxu1 }
 0x10c   : > { %v1237_v28 = vpop.f32.mrb[7].mxu0  ;;  %v1309_v29 = vpop.f32.mrb[7].mxu1 }
 0x10d   : > { %v1238_v30 = vadd.f32 %v1237_v28, %v1236_v25  ;;  %v1808_v31 = vadd.f32 %v1309_v29, %v1308_v27  ;;  %v738_v57 = vadd.f32 %v1235_v24, %v1824_v56 }
 0x10f   : > { %v741_v0 = vadd.f32 %v1238_v30, %v1824_v56 }
 0x111   : > { %v1239_v32 = vpop.f32.mrb[8].mxu0  ;;  %v1311_v33 = vpop.f32.mrb[8].mxu1 }
 0x112   : > { %v1240_v34 = vpop.f32.mrb[9].mxu0  ;;  %v1312_v35 = vpop.f32.mrb[9].mxu1 }
 0x113   : > { %v1241_v36 = vadd.f32 %v1240_v34, %v1239_v32  ;;  %v1242_v37 = vpop.f32.mrb[10].mxu0  ;;  %v1810_v38 = vadd.f32 %v1312_v35, %v1311_v33  ;;  %v1314_v39 = vpop.f32.mrb[10].mxu1 }
 0x114   : > { %v1243_v40 = vpop.f32.mrb[11].mxu0  ;;  %v1315_v41 = vpop.f32.mrb[11].mxu1 }
 0x115   : > { %v1244_v42 = vadd.f32 %v1243_v40, %v1242_v37  ;;  %v1812_v43 = vadd.f32 %v1315_v41, %v1314_v39  ;;  %v746_v15 = vadd.f32 %v1241_v36, %v1824_v56 }
 0x117   : > { %v749_v25 = vadd.f32 %v1244_v42, %v1824_v56 }
 0x119   : > { %v1245_v44 = vpop.f32.mrb[12].mxu0  ;;  %v1317_v45 = vpop.f32.mrb[12].mxu1 }
 0x11a   : > { %v1246_v46 = vpop.f32.mrb[13].mxu0  ;;  %v1318_v47 = vpop.f32.mrb[13].mxu1 }
 0x11b   : > { %v1247_v48 = vadd.f32 %v1246_v46, %v1245_v44  ;;  %v1248_v49 = vpop.f32.mrb[14].mxu0  ;;  %v1814_v50 = vadd.f32 %v1318_v47, %v1317_v45  ;;  %v1320_v51 = vpop.f32.mrb[14].mxu1 }
 0x11c   : > { %v1249_v52 = vpop.f32.mrb[15].mxu0  ;;  %v1321_v53 = vpop.f32.mrb[15].mxu1 }
 0x11d   : > { %v1250_v54 = vadd.f32 %v1249_v52, %v1248_v49  ;;  %v1817_v55 = vadd.f32 %v1321_v53, %v1320_v51  ;;  %v754_v11 = vadd.f32 %v1247_v48, %v1824_v56 }
 0x11f   : > { %v757_v20 = vadd.f32 %v1250_v54, %v1824_v56 }
 0x121   : > { %v1251_v58 = vpop.f32.mrb[16].mxu0  ;;  %v1365_v59 = vpop.f32.mrb[16].mxu1 }
 0x122   : > { %v899_v61 = vadd.f32 %v1365_v59, %v738_v57  ;;  %v1252_v62 = vpop.f32.mrb[17].mxu0  ;;  %v890_v63 = vpop.f32.mrb[17].mxu1 }
 0x123   : > { %v1253_v1 = vadd.f32 %v1252_v62, %v1251_v58  ;;  %v891_v2 = vadd.f32 %v890_v63, %v730_v60  ;;  %v1254_v3 = vpop.f32.mrb[18].mxu0  ;;  %v1366_v4 = vpop.f32.mrb[18].mxu1 }
 0x124   : > { %1019 = vst [vmem:[%s1830_s28 + $0x10] sm:$0xff] %v899_v61  ;;  %v902_v6 = vadd.f32 %v1366_v4, %v741_v0  ;;  %v1255_v7 = vpop.f32.mrb[19].mxu0  ;;  %v893_v8 = vpop.f32.mrb[19].mxu1 }
 0x125   : > { %1017 = vst [vmem:[%s1830_s28] sm:$0xff] %v891_v2  ;;  %v1256_v9 = vadd.f32 %v1255_v7, %v1254_v3  ;;  %v894_v10 = vadd.f32 %v893_v8, %v733_v5  ;;  %v762_v36 = vadd.f32 %v1253_v1, %v1824_v56 }
 0x126   : > { %1020 = vst [vmem:[%s1830_s28 + $0x18] sm:$0xff] %v902_v6 }
 0x127   : > { %1018 = vst [vmem:[%s1830_s28 + $0x8] sm:$0xff] %v894_v10  ;;  %v765_v47 = vadd.f32 %v1256_v9, %v1824_v56 }
 0x129   : > { %v1257_v12 = vpop.f32.mrb[20].mxu0  ;;  %v1369_v13 = vpop.f32.mrb[20].mxu1 }
 0x12a   : > { %v915_v16 = vadd.f32 %v1369_v13, %v754_v11  ;;  %v1258_v17 = vpop.f32.mrb[21].mxu0  ;;  %v906_v18 = vpop.f32.mrb[21].mxu1 }
 0x12b   : > { %v1259_v21 = vadd.f32 %v1258_v17, %v1257_v12  ;;  %v907_v22 = vadd.f32 %v906_v18, %v746_v15  ;;  %v1260_v23 = vpop.f32.mrb[22].mxu0  ;;  %v1370_v24 = vpop.f32.mrb[22].mxu1 }
 0x12c   : > { %1023 = vst [vmem:[%s1830_s28 + $0x30] sm:$0xff] %v915_v16  ;;  %v918_v27 = vadd.f32 %v1370_v24, %v757_v20  ;;  %v1261_v28 = vpop.f32.mrb[23].mxu0  ;;  %v909_v29 = vpop.f32.mrb[23].mxu1 }
 0x12d   : > { %1021 = vst [vmem:[%s1830_s28 + $0x20] sm:$0xff] %v907_v22  ;;  %v1262_v30 = vadd.f32 %v1261_v28, %v1260_v23  ;;  %v910_v32 = vadd.f32 %v909_v29, %v749_v25  ;;  %v770_v33 = vadd.f32 %v1259_v21, %v1824_v56 }
 0x12e   : > { %1024 = vst [vmem:[%s1830_s28 + $0x38] sm:$0xff] %v918_v27 }
 0x12f   : > { %1022 = vst [vmem:[%s1830_s28 + $0x28] sm:$0xff] %v910_v32  ;;  %v773_v41 = vadd.f32 %v1262_v30, %v1824_v56 }
 0x131   : > { %v1263_v34 = vpop.f32.mrb[24].mxu0  ;;  %v1373_v35 = vpop.f32.mrb[24].mxu1 }
 0x132   : > { %v931_v37 = vadd.f32 %v1373_v35, %v770_v33  ;;  %v1264_v39 = vpop.f32.mrb[25].mxu0  ;;  %v922_v40 = vpop.f32.mrb[25].mxu1 }
 0x133   : > { %v1265_v42 = vadd.f32 %v1264_v39, %v1263_v34  ;;  %v923_v44 = vadd.f32 %v922_v40, %v762_v36  ;;  %v1266_v45 = vpop.f32.mrb[26].mxu0  ;;  %v1374_v46 = vpop.f32.mrb[26].mxu1 }
 0x134   : > { %1027 = vst [vmem:[%s1830_s28 + $0x50] sm:$0xff] %v931_v37  ;;  %v934_v48 = vadd.f32 %v1374_v46, %v773_v41  ;;  %v1267_v49 = vpop.f32.mrb[27].mxu0  ;;  %v925_v51 = vpop.f32.mrb[27].mxu1 }
 0x135   : > { %1025 = vst [vmem:[%s1830_s28 + $0x40] sm:$0xff] %v923_v44  ;;  %v1268_v52 = vadd.f32 %v1267_v49, %v1266_v45  ;;  %v926_v53 = vadd.f32 %v925_v51, %v765_v47  ;;  %v778_v58 = vadd.f32 %v1265_v42, %v1824_v56  ;;  %v834_v42 = vadd.f32 %v1806_v26, %v1824_v56 }
 0x136   : > { %1028 = vst [vmem:[%s1830_s28 + $0x58] sm:$0xff] %v934_v48  ;;  %v826_v47 = vadd.f32 %v1802_v14, %v1824_v56 }
 0x137   : > { %1026 = vst [vmem:[%s1830_s28 + $0x48] sm:$0xff] %v926_v53  ;;  %v781_v1 = vadd.f32 %v1268_v52, %v1824_v56  ;;  %v837_v52 = vadd.f32 %v1808_v31, %v1824_v56 }
 0x139   : > { %v1269_v54 = vpop.f32.mrb[28].mxu0  ;;  %v1377_v57 = vpop.f32.mrb[28].mxu1 }
 0x13a   : > { %v1270_v59 = vpop.f32.mrb[29].mxu0  ;;  %v938_v60 = vpop.f32.mrb[29].mxu1 }
 0x13b   : > { %v1271_v61 = vadd.f32 %v1270_v59, %v1269_v54  ;;  %v939_v62 = vadd.f32 %v938_v60, %v778_v58  ;;  %v1272_v63 = vpop.f32.mrb[30].mxu0  ;;  %v1378_v0 = vpop.f32.mrb[30].mxu1  ;;  %v829_v58 = vadd.f32 %v1804_v19, %v1824_v56 }
 0x13c   : > { %v1273_v2 = vpop.f32.mrb[31].mxu0  ;;  %v941_v3 = vpop.f32.mrb[31].mxu1 }
 0x13d   : > { %v786_v4 = vadd.f32 %v1271_v61, %v1824_v56  ;;  %1029 = vst [vmem:[%s1830_s28 + $0x60] sm:$0xff] %v939_v62  ;;  %v1274_v5 = vadd.f32 %v1273_v2, %v1272_v63  ;;  %v942_v6 = vadd.f32 %v941_v3, %v781_v1  ;;  %v850_v1 = vadd.f32 %v1814_v50, %v1824_v56 }
 0x13f   : > { %v947_v7 = vadd.f32 %v1377_v57, %v786_v4  ;;  %v789_v8 = vadd.f32 %v1274_v5, %v1824_v56  ;;  %1030 = vst [vmem:[%s1830_s28 + $0x68] sm:$0xff] %v942_v6  ;;  %v842_v4 = vadd.f32 %v1810_v38, %v1824_v56 }
 0x141   : > { %1031 = vst [vmem:[%s1830_s28 + $0x70] sm:$0xff] %v947_v7  ;;  %v950_v9 = vadd.f32 %v1378_v0, %v789_v8  ;;  %v1275_v10 = vpop.f32.mrb[32].mxu0  ;;  %v1381_v11 = vpop.f32.mrb[32].mxu1  ;;  %v853_v8 = vadd.f32 %v1817_v55, %v1824_v56 }
 0x142   : > { %v1276_v12 = vpop.f32.mrb[33].mxu0  ;;  %v954_v13 = vpop.f32.mrb[33].mxu1 }
 0x143   : > { %1032 = vst [vmem:[%s1830_s28 + $0x78] sm:$0xff] %v950_v9  ;;  %v1277_v15 = vadd.f32 %v1276_v12, %v1275_v10  ;;  %v1278_v16 = vpop.f32.mrb[34].mxu0  ;;  %v1382_v17 = vpop.f32.mrb[34].mxu1  ;;  %v845_v12 = vadd.f32 %v1812_v43, %v1824_v56 }
 0x144   : > { %v1279_v18 = vpop.f32.mrb[35].mxu0  ;;  %v957_v20 = vpop.f32.mrb[35].mxu1 }
 0x145   : > { %v794_v21 = vadd.f32 %v1277_v15, %v1824_v56  ;;  %v1280_v22 = vadd.f32 %v1279_v18, %v1278_v16 }
 0x147   : > { %v955_v23 = vadd.f32 %v954_v13, %v794_v21  ;;  %v797_v24 = vadd.f32 %v1280_v22, %v1824_v56 }
 0x149   : > { %1033 = vst [vmem:[%s1830_s28 + $0x80] sm:$0xff] %v955_v23  ;;  %v958_v25 = vadd.f32 %v957_v20, %v797_v24  ;;  %v1281_v27 = vpop.f32.mrb[36].mxu0  ;;  %v1863_v28 = vpop.f32.mrb[36].mxu1 }
 0x14a   : > { %v1282_v29 = vpop.f32.mrb[37].mxu0  ;;  %v970_v30 = vpop.f32.mrb[37].mxu1 }
 0x14b   : > { %1034 = vst [vmem:[%s1830_s28 + $0x88] sm:$0xff] %v958_v25  ;;  %v1283_v32 = vadd.f32 %v1282_v29, %v1281_v27  ;;  %v1284_v33 = vpop.f32.mrb[38].mxu0  ;;  %v1866_v34 = vpop.f32.mrb[38].mxu1 }
 0x14c   : > { %v1285_v35 = vpop.f32.mrb[39].mxu0  ;;  %v973_v36 = vpop.f32.mrb[39].mxu1 }
 0x14d   : > { %v802_v37 = vadd.f32 %v1283_v32, %v1824_v56  ;;  %v1286_v39 = vadd.f32 %v1285_v35, %v1284_v33 }
 0x14f   : > { %v963_v40 = vadd.f32 %v1381_v11, %v802_v37  ;;  %v805_v41 = vadd.f32 %v1286_v39, %v1824_v56 }
 0x151   : > { %1035 = vst [vmem:[%s1830_s28 + $0x90] sm:$0xff] %v963_v40  ;;  %v966_v44 = vadd.f32 %v1382_v17, %v805_v41  ;;  %v1287_v45 = vpop.f32.mrb[40].mxu0  ;;  %v1389_v46 = vpop.f32.mrb[40].mxu1 }
 0x152   : > { %v995_v48 = vadd.f32 %v1389_v46, %v834_v42  ;;  %v1288_v49 = vpop.f32.mrb[41].mxu0  ;;  %v986_v51 = vpop.f32.mrb[41].mxu1 }
 0x153   : > { %1036 = vst [vmem:[%s1830_s28 + $0x98] sm:$0xff] %v966_v44  ;;  %v1289_v53 = vadd.f32 %v1288_v49, %v1287_v45  ;;  %v987_v26 = vadd.f32 %v986_v51, %v826_v47  ;;  %v1290_v54 = vpop.f32.mrb[42].mxu0  ;;  %v1390_v57 = vpop.f32.mrb[42].mxu1 }
 0x154   : > { %1043 = vst [vmem:[%s1830_s28 + $0xd0] sm:$0xff] %v995_v48  ;;  %v998_v14 = vadd.f32 %v1390_v57, %v837_v52  ;;  %v1291_v59 = vpop.f32.mrb[43].mxu0  ;;  %v989_v60 = vpop.f32.mrb[43].mxu1 }
 0x155   : > { %v810_v61 = vadd.f32 %v1289_v53, %v1824_v56  ;;  %1041 = vst [vmem:[%s1830_s28 + $0xc0] sm:$0xff] %v987_v26  ;;  %v1292_v62 = vadd.f32 %v1291_v59, %v1290_v54  ;;  %v990_v31 = vadd.f32 %v989_v60, %v829_v58 }
 0x156   : > { %1044 = vst [vmem:[%s1830_s28 + $0xd8] sm:$0xff] %v998_v14 }
 0x157   : > { %v971_v63 = vadd.f32 %v970_v30, %v810_v61  ;;  %v813_v0 = vadd.f32 %v1292_v62, %v1824_v56  ;;  %1042 = vst [vmem:[%s1830_s28 + $0xc8] sm:$0xff] %v990_v31 }
 0x159   : > { %1037 = vst [vmem:[%s1830_s28 + $0xa0] sm:$0xff] %v971_v63  ;;  %v974_v19 = vadd.f32 %v973_v36, %v813_v0  ;;  %v1293_v2 = vpop.f32.mrb[44].mxu0  ;;  %v1393_v3 = vpop.f32.mrb[44].mxu1 }
 0x15a   : > { %v1011_v5 = vadd.f32 %v1393_v3, %v850_v1  ;;  %v1294_v6 = vpop.f32.mrb[45].mxu0  ;;  %v1002_v7 = vpop.f32.mrb[45].mxu1 }
 0x15b   : > { %1038 = vst [vmem:[%s1830_s28 + $0xa8] sm:$0xff] %v974_v19  ;;  %v1295_v50 = vadd.f32 %v1294_v6, %v1293_v2  ;;  %v1003_v9 = vadd.f32 %v1002_v7, %v842_v4  ;;  %v1296_v10 = vpop.f32.mrb[46].mxu0  ;;  %v1394_v11 = vpop.f32.mrb[46].mxu1 }
 0x15c   : > { %1047 = vst [vmem:[%s1830_s28 + $0xf0] sm:$0xff] %v1011_v5  ;;  %v1014_v38 = vadd.f32 %v1394_v11, %v853_v8  ;;  %v1297_v13 = vpop.f32.mrb[47].mxu0  ;;  %v1005_v15 = vpop.f32.mrb[47].mxu1 }
 0x15d   : > { %v818_v55 = vadd.f32 %v1295_v50, %v1824_v56  ;;  %1045 = vst [vmem:[%s1830_s28 + $0xe0] sm:$0xff] %v1003_v9  ;;  %v1298_v16 = vadd.f32 %v1297_v13, %v1296_v10  ;;  %v1006_v17 = vadd.f32 %v1005_v15, %v845_v12 }
 0x15e   : > { %1048 = vst [vmem:[%s1830_s28 + $0xf8] sm:$0xff] %v1014_v38 }
 0x15f   : > { %v979_v18 = vadd.f32 %v1863_v28, %v818_v55  ;;  %v821_v43 = vadd.f32 %v1298_v16, %v1824_v56  ;;  %1046 = vst [vmem:[%s1830_s28 + $0xe8] sm:$0xff] %v1006_v17 }
 0x161   : > { %1039 = vst [vmem:[%s1830_s28 + $0xb0] sm:$0xff] %v979_v18  ;;  %v982_v20 = vadd.f32 %v1866_v34, %v821_v43 }
 0x163   : > { %1040 = vst [vmem:[%s1830_s28 + $0xb8] sm:$0xff] %v982_v20 }
 0x164   : > { %1554 = shalt.err (!%p1551_p3)
}
 0x165   : > { %s1555_s11 = scalar_lea.hbm %s1908_s6, 4096  ;;  %s1559_s20 = scalar_lea.hbm %s1961_s3, 8192 }
 0x166   : > { %p1556_p4 = scmp.ne.s32.totalorder %s1908_s6, %s1555_s11  ;;  %p1560_p9 = scmp.lt.u32.totalorder %s1908_s6, %s1961_s3 }
 0x167   : > { %p1561_p10 = scmp.lt.u32.totalorder %s1559_s20, %s1555_s11  ;;  %p1563_p12 = scmp.lt.u32.totalorder %s1555_s11, %s1908_s6 }
 0x168   : > { %p1557_p7 = pnand %p1556_p4, %p1666_p5 }
 0x169   : > { %p1562_p11 = por %p1561_p10, %p1560_p9 }
 0x16a   : > { %p1558_p8 = pneg %p1557_p7 }
 0x16b   : > { %p1564_p13 = por %p1563_p12, %p1562_p11 }
 0x16d   : > { %p1565_p0 = pnand %p1564_p13, %p1558_p8 }
 0x16f   : > { %1568 = shalt.err (!%p1565_p0)
}
 0x170   : > { %s1606_s25 = smov 128   ;;  %s1607_s27 = smov 8  }
 0x171   : > { %1412 = dma.vmem_to_hbm [thread:$0]  (%p1666_p5), %s1910_s30, 4096, %s1908_s6, %s1917_s16, %s1606_s25, %s1606_s25, %s1607_s27  }
 0x172 PF: > { %p1418_p1 = scmp.ge.s32.totalorder %s1603_s15, 2  ;;  %s1078_s28 = sand.u32 1, %s1591_s12  }
 0x173   : > { %s1079_s26 = scalar_lea.sflag [#allocation3], %s1078_s28 }
 0x174   : > { %p1415_p2 = pnand %p1418_p1, %p1670_p6 }
 0x176   : > { %1586 = dma.done.wait (!%p1415_p2), %s1079_s26, 4096  }
 0x177   : > { %1588 = vsyncadd (!%p1415_p2), %s1079_s26, 4294963200  ;;  %p13_p3 = scmp.ge.s32.totalorder %s1653_s18, 4   ;;  %s1964_s12 = smov %s1595_s13 }
 0x178   : > { %s1965_s13 = smov %s1599_s14  ;;  %s1966_s14 = smov %s1664_s21 }
 0x179   : > { %s1967_s15 = smov %s1653_s18  ;;  %15 = sbr.rel (!%p13_p3) target bundleno = 3 (0x3), region = 67 }
 0x180   :  { %1084 = vsyncpa [#allocation3], 1 }
 0x181   :  { %1086 = vsyncpa [#allocation3 + $0x1], 1 }

</bundles_post_ra>
